<compile_context>
chip_gen: v6e
topology: v6e:2x2x1
jax: 0.10.0
libtpu: 0.0.40
codegen_flags: <defaults>
</compile_context>

<pallas_src>
import functools

import jax
import jax.numpy as jnp
from jax.experimental import pallas as pl
from jax.experimental.pallas import tpu as pltpu

N_RESNET_BLOCKS = 9
EPS = 1e-5


# ----------------------------------------------------------------------------
# Pallas kernels
# ----------------------------------------------------------------------------
def _conv_in_relu_kernel(x_ref, w_ref, o_ref):
    """One grid step = one instance: (HW, K)bf16 @ (K, C)bf16 -> IN -> ReLU.

    InstanceNorm reduces over all HW rows of this block (all spatial positions
    of one image), i.e. exact per-(n, c) statistics, so fusing it into the
    matmul epilogue is exact.  No bias: InstanceNorm removes it anyway.
    """
    z = jnp.dot(x_ref[...], w_ref[...], preferred_element_type=jnp.float32)
    mu = jnp.mean(z, axis=0, keepdims=True)
    var = jnp.mean(jnp.square(z - mu), axis=0, keepdims=True)
    o_ref[...] = jnp.maximum((z - mu) * jax.lax.rsqrt(var + EPS), 0.0)


def _conv_bias_tanh_kernel(x_ref, w_ref, b_ref, o_ref):
    """Final conv: matmul + bias + tanh fused in one kernel."""
    z = jnp.dot(x_ref[...], w_ref[...], preferred_element_type=jnp.float32)
    o_ref[...] = jnp.tanh(z + b_ref[...])


def _make_trunk_kernel(H, W, C):
    """Fused 9-block ResNet trunk.  grid = (batch, 9).

    State: reflect-padded activation (1, H+2, W+2, C) in VMEM scratch, carried
    across the block axis.  Each grid step executes one full ResNet block:
        r = ReLU(IN(conv3x3(pad(x))));  v = ReLU(IN(conv3x3(pad(r))));  x += v
    (the trailing ReLU inside the block matches the given PyTorch module).
    """
    Hp, Wp = H + 2, W + 2
    HW = H * W

    def trunk_kernel(x0_ref, wa_ref, wb_ref, o_ref, xpad_ref, rpad_ref, colbuf_ref):
        b = pl.program_id(1)

        @pl.when(b == 0)
        def _init():
            xpad_ref[...] = x0_ref[...]

        def reflect_borders(ref):
            # left / right columns of the interior rows, then top / bottom rows
            for h in range(1, 1 + H):
                ref[0, h, 0:1, :] = ref[0, h, 2:3, :]
                ref[0, h, Wp - 1:Wp, :] = ref[0, h, Wp - 3:Wp - 2, :]
            ref[0, 0, :, :] = ref[0, 2, :, :]
            ref[0, Hp - 1, :, :] = ref[0, Hp - 3, :, :]

        def conv3x3_in_relu_to_colbuf(src_ref, w_ref):
            # 3x3 conv as 9 shifted (HW, C) @ (C, C) bf16 matmuls, f32 acc.
            z = jnp.zeros((HW, C), jnp.float32)
            for dh in range(3):
                for dw in range(3):
                    for i in range(H):
                        colbuf_ref[i * W:(i + 1) * W, :] = (
                            src_ref[0, i + dh, dw:dw + W, :])
                    wk = w_ref[0, dh * 3 + dw]  # (C, C) bf16
                    z = z + jnp.dot(colbuf_ref[...].astype(jnp.bfloat16), wk,
                                    preferred_element_type=jnp.float32)
            # InstanceNorm + ReLU epilogue (per-column stats over HW rows).
            mu = jnp.mean(z, axis=0, keepdims=True)
            var = jnp.mean(jnp.square(z - mu), axis=0, keepdims=True)
            colbuf_ref[...] = jnp.maximum((z - mu) * jax.lax.rsqrt(var + EPS), 0.0)

        # conv1 + IN + ReLU  -> rpad (reflect padded)
        conv3x3_in_relu_to_colbuf(xpad_ref, wa_ref)
        for i in range(H):
            rpad_ref[0, 1 + i, 1:1 + W, :] = colbuf_ref[i * W:(i + 1) * W, :]
        reflect_borders(rpad_ref)

        # conv2 + IN + ReLU, residual add into the running activation
        conv3x3_in_relu_to_colbuf(rpad_ref, wb_ref)
        for i in range(H):
            xpad_ref[0, 1 + i, 1:1 + W, :] = (
                xpad_ref[0, 1 + i, 1:1 + W, :] + colbuf_ref[i * W:(i + 1) * W, :])
        reflect_borders(xpad_ref)

        @pl.when(b == pl.num_programs(1) - 1)
        def _finalize():
            o_ref[...] = xpad_ref[...]

    return trunk_kernel


# ----------------------------------------------------------------------------
# Wrappers (plain-JAX glue + pallas_call setup)
# ----------------------------------------------------------------------------
def _im2col(x, kh, kw, stride):
    """x: (N, H, W, C) already padded -> (N*Ho*Wo, kh*kw*C), Ho, Wo."""
    N, H, W, C = x.shape
    Ho = (H - kh) // stride + 1
    Wo = (W - kw) // stride + 1
    patches = []
    for dh in range(kh):
        for dw in range(kw):
            patches.append(
                x[:, dh: dh + Ho * stride: stride, dw: dw + Wo * stride: stride, :])
    cols = jnp.concatenate(patches, axis=-1)  # (N, Ho, Wo, kh*kw*C)
    return cols.reshape(N * Ho * Wo, kh * kw * C), Ho, Wo


def conv2d_in_relu(x, w, stride=1):
    """Fused conv + InstanceNorm + ReLU.  x: padded NHWC; w: (Cout, Cin, kh, kw)."""
    Cout, Cin, kh, kw = w.shape
    N = x.shape[0]
    cols, Ho, Wo = _im2col(x, kh, kw, stride)
    K = kh * kw * Cin
    HW = Ho * Wo
    wm = w.transpose(2, 3, 1, 0).reshape(K, Cout).astype(jnp.bfloat16)
    cols = cols.astype(jnp.bfloat16)
    out = pl.pallas_call(
        _conv_in_relu_kernel,
        out_shape=jax.ShapeDtypeStruct((N * HW, Cout), jnp.float32),
        grid=(N,),
        in_specs=[
            pl.BlockSpec((HW, K), lambda i: (i, 0)),
            pl.BlockSpec((K, Cout), lambda i: (0, 0)),
        ],
        out_specs=pl.BlockSpec((HW, Cout), lambda i: (i, 0)),
        compiler_params=pltpu.CompilerParams(dimension_semantics=("parallel",)),
    )(cols, wm)
    return out.reshape(N, Ho, Wo, Cout)


def conv2d_bias_tanh(x, w, b):
    """Final conv: conv + bias + tanh fused.  x: padded NHWC."""
    Cout, Cin, kh, kw = w.shape
    N = x.shape[0]
    cols, Ho, Wo = _im2col(x, kh, kw, 1)
    K = kh * kw * Cin
    HW = Ho * Wo
    wm = w.transpose(2, 3, 1, 0).reshape(K, Cout).astype(jnp.bfloat16)
    cols = cols.astype(jnp.bfloat16)
    out = pl.pallas_call(
        _conv_bias_tanh_kernel,
        out_shape=jax.ShapeDtypeStruct((N * HW, Cout), jnp.float32),
        grid=(N,),
        in_specs=[
            pl.BlockSpec((HW, K), lambda i: (i, 0)),
            pl.BlockSpec((K, Cout), lambda i: (0, 0)),
            pl.BlockSpec((1, Cout), lambda i: (0, 0)),
        ],
        out_specs=pl.BlockSpec((HW, Cout), lambda i: (i, 0)),
        compiler_params=pltpu.CompilerParams(dimension_semantics=("parallel",)),
    )(cols, wm, b.reshape(1, Cout).astype(jnp.float32))
    return out.reshape(N, Ho, Wo, Cout)


def conv_transpose2d_in_relu(x, w, stride=2, padding=1, output_padding=1):
    """ConvTranspose2d + IN + ReLU.  w: PyTorch layout (Cin, Cout, kh, kw)."""
    N, H, W, Cin = x.shape
    _, Cout, kh, kw = w.shape
    # dilate input with (stride-1) zeros between elements, then pad
    xd = jnp.zeros((N, (H - 1) * stride + 1, (W - 1) * stride + 1, Cin), x.dtype)
    xd = xd.at[:, ::stride, ::stride, :].set(x)
    lo = kh - 1 - padding
    hi = kh - 1 - padding + output_padding
    xp = jnp.pad(xd, ((0, 0), (lo, hi), (lo, hi), (0, 0)))
    # equivalent plain conv weight: flip spatially, swap channel axes
    w_conv = jnp.flip(w, axis=(2, 3)).transpose(1, 0, 2, 3)  # (Cout, Cin, kh, kw)
    return conv2d_in_relu(xp, w_conv, stride=1)


def resnet_trunk(y, wa_stack, wb_stack):
    """All 9 ResNet blocks in one pallas_call.  y: (N, H, W, C) f32."""
    N, H, W, C = y.shape
    Hp, Wp = H + 2, W + 2
    yp = jnp.pad(y, ((0, 0), (1, 1), (1, 1), (0, 0)), mode="reflect")
    kern = _make_trunk_kernel(H, W, C)
    out = pl.pallas_call(
        kern,
        out_shape=jax.ShapeDtypeStruct((N, Hp, Wp, C), jnp.float32),
        grid=(N, N_RESNET_BLOCKS),
        in_specs=[
            pl.BlockSpec((1, Hp, Wp, C), lambda n, b: (n, 0, 0, 0)),
            pl.BlockSpec((1, 9, C, C), lambda n, b: (b, 0, 0, 0)),
            pl.BlockSpec((1, 9, C, C), lambda n, b: (b, 0, 0, 0)),
        ],
        out_specs=pl.BlockSpec((1, Hp, Wp, C), lambda n, b: (n, 0, 0, 0)),
        scratch_shapes=[
            pltpu.VMEM((1, Hp, Wp, C), jnp.float32),   # running padded activation
            pltpu.VMEM((1, Hp, Wp, C), jnp.float32),   # intermediate padded act
            pltpu.VMEM((H * W, C), jnp.float32),       # shifted-operand / result buf
        ],
        compiler_params=pltpu.CompilerParams(
            dimension_semantics=("parallel", "arbitrary")),
    )(yp, wa_stack, wb_stack)
    return out[:, 1:1 + H, 1:1 + W, :]


def _stack_trunk_weights(params):
    """Stack the 9 blocks' conv weights as (9, 9, Cin, Cout) bf16 (k = dh*3+dw)."""
    wa, wb = [], []
    for i in range(N_RESNET_BLOCKS):
        for tag, lst in (("a", wa), ("b", wb)):
            w = params[f"r{i}{tag}_w"]                       # (Cout, Cin, 3, 3)
            lst.append(w.transpose(2, 3, 1, 0).reshape(9, w.shape[1], w.shape[0]))
    return (jnp.stack(wa).astype(jnp.bfloat16),
            jnp.stack(wb).astype(jnp.bfloat16))


def reflect_pad(x, p):
    return jnp.pad(x, ((0, 0), (p, p), (p, p), (0, 0)), mode="reflect")


def zero_pad(x, p):
    return jnp.pad(x, ((0, 0), (p, p), (p, p), (0, 0)))


# ----------------------------------------------------------------------------
# Parameter construction (deterministic, synthetic)
# ----------------------------------------------------------------------------
def make_params(key, input_channels, output_channels, gf):
    # Biases are created for parity with the PyTorch module, but biases of
    # convs followed by InstanceNorm are mathematical no-ops and are not used.
    params = {}

    def nxt():
        nonlocal key
        key, sub = jax.random.split(key)
        return sub

    def conv_p(name, cout, cin, k):
        params[f"{name}_w"] = 0.05 * jax.random.normal(nxt(), (cout, cin, k, k), jnp.float32)
        params[f"{name}_b"] = 0.05 * jax.random.normal(nxt(), (cout,), jnp.float32)

    def convT_p(name, cin, cout, k):
        params[f"{name}_w"] = 0.05 * jax.random.normal(nxt(), (cin, cout, k, k), jnp.float32)
        params[f"{name}_b"] = 0.05 * jax.random.normal(nxt(), (cout,), jnp.float32)

    conv_p("c1", gf, input_channels, 7)
    conv_p("c2", 2 * gf, gf, 3)
    conv_p("c3", 4 * gf, 2 * gf, 3)
    for i in range(N_RESNET_BLOCKS):
        conv_p(f"r{i}a", 4 * gf, 4 * gf, 3)
        conv_p(f"r{i}b", 4 * gf, 4 * gf, 3)
    convT_p("t1", 4 * gf, 2 * gf, 3)
    convT_p("t2", 2 * gf, gf, 3)
    conv_p("c4", output_channels, gf, 7)
    return params


# ----------------------------------------------------------------------------
# Full generator forward
# ----------------------------------------------------------------------------
def cyclegan_generator_forward(params, x_nchw):
    # Input/output are NCHW (PyTorch convention); compute in NHWC.
    x = jnp.transpose(x_nchw.astype(jnp.float32), (0, 2, 3, 1))

    # c7s1-gf
    y = conv2d_in_relu(reflect_pad(x, 3), params["c1_w"])
    # d2gf
    y = conv2d_in_relu(zero_pad(y, 1), params["c2_w"], stride=2)
    # d4gf
    y = conv2d_in_relu(zero_pad(y, 1), params["c3_w"], stride=2)

    # 9 ResNet blocks, fully fused into one pallas_call
    wa_stack, wb_stack = _stack_trunk_weights(params)
    y = resnet_trunk(y, wa_stack, wb_stack)

    # u2gf / u1gf
    y = conv_transpose2d_in_relu(y, params["t1_w"])
    y = conv_transpose2d_in_relu(y, params["t2_w"])

    # c7s1-out + tanh
    y = conv2d_bias_tanh(reflect_pad(y, 3), params["c4_w"], params["c4_b"])

    return jnp.transpose(y, (0, 3, 1, 2))  # back to NCHW


# ----------------------------------------------------------------------------
# Main
# ----------------------------------------------------------------------------
if __name__ == "__main__":
    key = jax.random.PRNGKey(0)
    k_params, k_input = jax.random.split(key)

    input_channels, output_channels, gen_features = 3, 3, 8
    batch, spatial = 2, 16

    params = make_params(k_params, input_channels, output_channels, gen_features)
    x = jax.random.normal(k_input, (batch, input_channels, spatial, spatial), jnp.float32)

    fwd = jax.jit(functools.partial(cyclegan_generator_forward, params))
    out = jax.block_until_ready(fwd(x))

    assert out.shape == (batch, output_channels, spatial, spatial), out.shape
    assert bool(jnp.all(jnp.isfinite(out)))
    assert bool(jnp.all(jnp.abs(out) <= 1.0 + 1e-6))  # tanh range
    print("KERNEL_OK")
</pallas_src>

<mosaic_0001>
module attributes {stable_mosaic.version = 11 : i64} {
  func.func @_conv_in_relu_kernel(%arg0: i32, %arg1: memref<256x147xbf16, #tpu.memory_space<vmem>>, %arg2: memref<147x8xbf16, #tpu.memory_space<vmem>>, %arg3: memref<256x8xf32, #tpu.memory_space<vmem>>) attributes {dimension_semantics = [#tpu.dimension_semantics<parallel>], iteration_bounds = array<i64: 2>, scalar_prefetch = 0 : i64, scratch_operands = 0 : i64, tpu.core_type = #tpu.core_type<tc>, window_params = [{transform_indices = @transform_0, window_bounds = array<i64: 256, 147>}, {pipeline_mode = #tpu.pipeline_mode<synchronous>, transform_indices = @transform_1, window_bounds = array<i64: 147, 8>}, {transform_indices = @transform_2, window_bounds = array<i64: 256, 8>}]} {
    %c0 = arith.constant 0 : index
    %c0_0 = arith.constant 0 : index
    %0 = vector.load %arg1[%c0, %c0_0] : memref<256x147xbf16, #tpu.memory_space<vmem>>, vector<256x147xbf16>
    %c0_1 = arith.constant 0 : index
    %c0_2 = arith.constant 0 : index
    %1 = vector.load %arg2[%c0_1, %c0_2] : memref<147x8xbf16, #tpu.memory_space<vmem>>, vector<147x8xbf16>
    %cst = arith.constant dense<0.000000e+00> : vector<256x8xf32>
    %2 = tpu.matmul %0, %1, %cst {dimension_numbers = #tpu.dot_dimension_numbers<[1], [0], [0], [1], [0, 0, 1, 1], [], []>} : vector<256x147xbf16>, vector<147x8xbf16>, vector<256x8xf32> -> vector<256x8xf32>
    %cst_3 = arith.constant dense<0.000000e+00> : vector<8xf32>
    %3 = vector.multi_reduction <add>, %2, %cst_3 [0] : vector<256x8xf32> to vector<8xf32>
    %4 = vector.shape_cast %3 : vector<8xf32> to vector<1x8xf32>
    %cst_4 = arith.constant 2.560000e+02 : f32
    %5 = vector.broadcast %cst_4 : f32 to vector<1x8xf32>
    %6 = arith.divf %4, %5 : vector<1x8xf32>
    %7 = vector.broadcast %6 : vector<1x8xf32> to vector<256x8xf32>
    %8 = arith.subf %2, %7 : vector<256x8xf32>
    %9 = arith.mulf %8, %8 : vector<256x8xf32>
    %cst_5 = arith.constant dense<0.000000e+00> : vector<8xf32>
    %10 = vector.multi_reduction <add>, %9, %cst_5 [0] : vector<256x8xf32> to vector<8xf32>
    %11 = vector.shape_cast %10 : vector<8xf32> to vector<1x8xf32>
    %cst_6 = arith.constant 2.560000e+02 : f32
    %12 = vector.broadcast %cst_6 : f32 to vector<1x8xf32>
    %13 = arith.divf %11, %12 : vector<1x8xf32>
    %14 = vector.broadcast %6 : vector<1x8xf32> to vector<256x8xf32>
    %15 = arith.subf %2, %14 : vector<256x8xf32>
    %cst_7 = arith.constant 9.99999974E-6 : f32
    %16 = vector.broadcast %cst_7 : f32 to vector<1x8xf32>
    %17 = arith.addf %13, %16 : vector<1x8xf32>
    %18 = math.rsqrt %17 : vector<1x8xf32>
    %19 = vector.broadcast %18 : vector<1x8xf32> to vector<256x8xf32>
    %20 = arith.mulf %15, %19 : vector<256x8xf32>
    %cst_8 = arith.constant 0.000000e+00 : f32
    %21 = vector.broadcast %cst_8 : f32 to vector<256x8xf32>
    %22 = arith.maximumf %20, %21 : vector<256x8xf32>
    %c0_9 = arith.constant 0 : index
    %c0_10 = arith.constant 0 : index
    %23 = vector.load %arg3[%c0_9, %c0_10] : memref<256x8xf32, #tpu.memory_space<vmem>>, vector<256x8xf32>
    tpu.vector_store %arg3[%c0_9, %c0_10], %22 {strides = array<i32>} : memref<256x8xf32, #tpu.memory_space<vmem>>, vector<256x8xf32>,
    return
  }
  func.func @transform_0(%arg0: i32) -> (i32, i32) {
    %c0_i32 = arith.constant 0 : i32
    %c0_i32_0 = arith.constant 0 : i32
    return %arg0, %c0_i32 : i32, i32
  }
  func.func @transform_1(%arg0: i32) -> (i32, i32) {
    %c0_i32 = arith.constant 0 : i32
    %c0_i32_0 = arith.constant 0 : i32
    %c0_i32_1 = arith.constant 0 : i32
    return %c0_i32, %c0_i32_0 : i32, i32
  }
  func.func @transform_2(%arg0: i32) -> (i32, i32) {
    %c0_i32 = arith.constant 0 : i32
    %c0_i32_0 = arith.constant 0 : i32
    return %arg0, %c0_i32 : i32, i32
  }
}

module attributes {stable_mosaic.version = 11 : i64} {
  func.func @_conv_in_relu_kernel(%arg0: i32, %arg1: memref<64x72xbf16, #tpu.memory_space<vmem>>, %arg2: memref<72x16xbf16, #tpu.memory_space<vmem>>, %arg3: memref<64x16xf32, #tpu.memory_space<vmem>>) attributes {dimension_semantics = [#tpu.dimension_semantics<parallel>], iteration_bounds = array<i64: 2>, scalar_prefetch = 0 : i64, scratch_operands = 0 : i64, tpu.core_type = #tpu.core_type<tc>, window_params = [{transform_indices = @transform_0, window_bounds = array<i64: 64, 72>}, {pipeline_mode = #tpu.pipeline_mode<synchronous>, transform_indices = @transform_1, window_bounds = array<i64: 72, 16>}, {transform_indices = @transform_2, window_bounds = array<i64: 64, 16>}]} {
    %c0 = arith.constant 0 : index
    %c0_0 = arith.constant 0 : index
    %0 = vector.load %arg1[%c0, %c0_0] : memref<64x72xbf16, #tpu.memory_space<vmem>>, vector<64x72xbf16>
    %c0_1 = arith.constant 0 : index
    %c0_2 = arith.constant 0 : index
    %1 = vector.load %arg2[%c0_1, %c0_2] : memref<72x16xbf16, #tpu.memory_space<vmem>>, vector<72x16xbf16>
    %cst = arith.constant dense<0.000000e+00> : vector<64x16xf32>
    %2 = tpu.matmul %0, %1, %cst {dimension_numbers = #tpu.dot_dimension_numbers<[1], [0], [0], [1], [0, 0, 1, 1], [], []>} : vector<64x72xbf16>, vector<72x16xbf16>, vector<64x16xf32> -> vector<64x16xf32>
    %cst_3 = arith.constant dense<0.000000e+00> : vector<16xf32>
    %3 = vector.multi_reduction <add>, %2, %cst_3 [0] : vector<64x16xf32> to vector<16xf32>
    %4 = vector.shape_cast %3 : vector<16xf32> to vector<1x16xf32>
    %cst_4 = arith.constant 6.400000e+01 : f32
    %5 = vector.broadcast %cst_4 : f32 to vector<1x16xf32>
    %6 = arith.divf %4, %5 : vector<1x16xf32>
    %7 = vector.broadcast %6 : vector<1x16xf32> to vector<64x16xf32>
    %8 = arith.subf %2, %7 : vector<64x16xf32>
    %9 = arith.mulf %8, %8 : vector<64x16xf32>
    %cst_5 = arith.constant dense<0.000000e+00> : vector<16xf32>
    %10 = vector.multi_reduction <add>, %9, %cst_5 [0] : vector<64x16xf32> to vector<16xf32>
    %11 = vector.shape_cast %10 : vector<16xf32> to vector<1x16xf32>
    %cst_6 = arith.constant 6.400000e+01 : f32
    %12 = vector.broadcast %cst_6 : f32 to vector<1x16xf32>
    %13 = arith.divf %11, %12 : vector<1x16xf32>
    %14 = vector.broadcast %6 : vector<1x16xf32> to vector<64x16xf32>
    %15 = arith.subf %2, %14 : vector<64x16xf32>
    %cst_7 = arith.constant 9.99999974E-6 : f32
    %16 = vector.broadcast %cst_7 : f32 to vector<1x16xf32>
    %17 = arith.addf %13, %16 : vector<1x16xf32>
    %18 = math.rsqrt %17 : vector<1x16xf32>
    %19 = vector.broadcast %18 : vector<1x16xf32> to vector<64x16xf32>
    %20 = arith.mulf %15, %19 : vector<64x16xf32>
    %cst_8 = arith.constant 0.000000e+00 : f32
    %21 = vector.broadcast %cst_8 : f32 to vector<64x16xf32>
    %22 = arith.maximumf %20, %21 : vector<64x16xf32>
    %c0_9 = arith.constant 0 : index
    %c0_10 = arith.constant 0 : index
    %23 = vector.load %arg3[%c0_9, %c0_10] : memref<64x16xf32, #tpu.memory_space<vmem>>, vector<64x16xf32>
    tpu.vector_store %arg3[%c0_9, %c0_10], %22 {strides = array<i32>} : memref<64x16xf32, #tpu.memory_space<vmem>>, vector<64x16xf32>,
    return
  }
  func.func @transform_0(%arg0: i32) -> (i32, i32) {
    %c0_i32 = arith.constant 0 : i32
    %c0_i32_0 = arith.constant 0 : i32
    return %arg0, %c0_i32 : i32, i32
  }
  func.func @transform_1(%arg0: i32) -> (i32, i32) {
    %c0_i32 = arith.constant 0 : i32
    %c0_i32_0 = arith.constant 0 : i32
    %c0_i32_1 = arith.constant 0 : i32
    return %c0_i32, %c0_i32_0 : i32, i32
  }
  func.func @transform_2(%arg0: i32) -> (i32, i32) {
    %c0_i32 = arith.constant 0 : i32
    %c0_i32_0 = arith.constant 0 : i32
    return %arg0, %c0_i32 : i32, i32
  }
}

module attributes {stable_mosaic.version = 11 : i64} {
  func.func @_conv_in_relu_kernel(%arg0: i32, %arg1: memref<16x144xbf16, #tpu.memory_space<vmem>>, %arg2: memref<144x32xbf16, #tpu.memory_space<vmem>>, %arg3: memref<16x32xf32, #tpu.memory_space<vmem>>) attributes {dimension_semantics = [#tpu.dimension_semantics<parallel>], iteration_bounds = array<i64: 2>, scalar_prefetch = 0 : i64, scratch_operands = 0 : i64, tpu.core_type = #tpu.core_type<tc>, window_params = [{transform_indices = @transform_0, window_bounds = array<i64: 16, 144>}, {pipeline_mode = #tpu.pipeline_mode<synchronous>, transform_indices = @transform_1, window_bounds = array<i64: 144, 32>}, {transform_indices = @transform_2, window_bounds = array<i64: 16, 32>}]} {
    %c0 = arith.constant 0 : index
    %c0_0 = arith.constant 0 : index
    %0 = vector.load %arg1[%c0, %c0_0] : memref<16x144xbf16, #tpu.memory_space<vmem>>, vector<16x144xbf16>
    %c0_1 = arith.constant 0 : index
    %c0_2 = arith.constant 0 : index
    %1 = vector.load %arg2[%c0_1, %c0_2] : memref<144x32xbf16, #tpu.memory_space<vmem>>, vector<144x32xbf16>
    %cst = arith.constant dense<0.000000e+00> : vector<16x32xf32>
    %2 = tpu.matmul %0, %1, %cst {dimension_numbers = #tpu.dot_dimension_numbers<[1], [0], [0], [1], [0, 0, 1, 1], [], []>} : vector<16x144xbf16>, vector<144x32xbf16>, vector<16x32xf32> -> vector<16x32xf32>
    %cst_3 = arith.constant dense<0.000000e+00> : vector<32xf32>
    %3 = vector.multi_reduction <add>, %2, %cst_3 [0] : vector<16x32xf32> to vector<32xf32>
    %4 = vector.shape_cast %3 : vector<32xf32> to vector<1x32xf32>
    %cst_4 = arith.constant 1.600000e+01 : f32
    %5 = vector.broadcast %cst_4 : f32 to vector<1x32xf32>
    %6 = arith.divf %4, %5 : vector<1x32xf32>
    %7 = vector.broadcast %6 : vector<1x32xf32> to vector<16x32xf32>
    %8 = arith.subf %2, %7 : vector<16x32xf32>
    %9 = arith.mulf %8, %8 : vector<16x32xf32>
    %cst_5 = arith.constant dense<0.000000e+00> : vector<32xf32>
    %10 = vector.multi_reduction <add>, %9, %cst_5 [0] : vector<16x32xf32> to vector<32xf32>
    %11 = vector.shape_cast %10 : vector<32xf32> to vector<1x32xf32>
    %cst_6 = arith.constant 1.600000e+01 : f32
    %12 = vector.broadcast %cst_6 : f32 to vector<1x32xf32>
    %13 = arith.divf %11, %12 : vector<1x32xf32>
    %14 = vector.broadcast %6 : vector<1x32xf32> to vector<16x32xf32>
    %15 = arith.subf %2, %14 : vector<16x32xf32>
    %cst_7 = arith.constant 9.99999974E-6 : f32
    %16 = vector.broadcast %cst_7 : f32 to vector<1x32xf32>
    %17 = arith.addf %13, %16 : vector<1x32xf32>
    %18 = math.rsqrt %17 : vector<1x32xf32>
    %19 = vector.broadcast %18 : vector<1x32xf32> to vector<16x32xf32>
    %20 = arith.mulf %15, %19 : vector<16x32xf32>
    %cst_8 = arith.constant 0.000000e+00 : f32
    %21 = vector.broadcast %cst_8 : f32 to vector<16x32xf32>
    %22 = arith.maximumf %20, %21 : vector<16x32xf32>
    %c0_9 = arith.constant 0 : index
    %c0_10 = arith.constant 0 : index
    %23 = vector.load %arg3[%c0_9, %c0_10] : memref<16x32xf32, #tpu.memory_space<vmem>>, vector<16x32xf32>
    tpu.vector_store %arg3[%c0_9, %c0_10], %22 {strides = array<i32>} : memref<16x32xf32, #tpu.memory_space<vmem>>, vector<16x32xf32>,
    return
  }
  func.func @transform_0(%arg0: i32) -> (i32, i32) {
    %c0_i32 = arith.constant 0 : i32
    %c0_i32_0 = arith.constant 0 : i32
    return %arg0, %c0_i32 : i32, i32
  }
  func.func @transform_1(%arg0: i32) -> (i32, i32) {
    %c0_i32 = arith.constant 0 : i32
    %c0_i32_0 = arith.constant 0 : i32
    %c0_i32_1 = arith.constant 0 : i32
    return %c0_i32, %c0_i32_0 : i32, i32
  }
  func.func @transform_2(%arg0: i32) -> (i32, i32) {
    %c0_i32 = arith.constant 0 : i32
    %c0_i32_0 = arith.constant 0 : i32
    return %arg0, %c0_i32 : i32, i32
  }
}

module attributes {stable_mosaic.version = 11 : i64} {
  func.func @trunk_kernel(%arg0: i32, %arg1: i32, %arg2: memref<1x6x6x32xf32, #tpu.memory_space<vmem>>, %arg3: memref<1x9x32x32xbf16, #tpu.memory_space<vmem>>, %arg4: memref<1x9x32x32xbf16, #tpu.memory_space<vmem>>, %arg5: memref<1x6x6x32xf32, #tpu.memory_space<vmem>>, %arg6: memref<1x6x6x32xf32, #tpu.memory_space<vmem>>, %arg7: memref<1x6x6x32xf32, #tpu.memory_space<vmem>>, %arg8: memref<16x32xf32, #tpu.memory_space<vmem>>) attributes {dimension_semantics = [#tpu.dimension_semantics<parallel>, #tpu.dimension_semantics<arbitrary>], iteration_bounds = array<i64: 2, 9>, scalar_prefetch = 0 : i64, scratch_operands = 3 : i64, tpu.core_type = #tpu.core_type<tc>, window_params = [{transform_indices = @transform_0, window_bounds = array<i64: 1, 6, 6, 32>}, {transform_indices = @transform_1, window_bounds = array<i64: 1, 9, 32, 32>}, {transform_indices = @transform_2, window_bounds = array<i64: 1, 9, 32, 32>}, {transform_indices = @transform_3, window_bounds = array<i64: 1, 6, 6, 32>}]} {
    %c0_i32 = arith.constant 0 : i32
    %0 = arith.cmpi eq, %arg1, %c0_i32 : i32
    %1 = arith.extui %0 : i1 to i32
    %c0_i32_0 = arith.constant 0 : i32
    %2 = arith.cmpi ne, %1, %c0_i32_0 : i32
    scf.if %2 {
      %c0_791 = arith.constant 0 : index
      %c0_792 = arith.constant 0 : index
      %c0_793 = arith.constant 0 : index
      %c0_794 = arith.constant 0 : index
      %518 = vector.load %arg2[%c0_791, %c0_792, %c0_793, %c0_794] : memref<1x6x6x32xf32, #tpu.memory_space<vmem>>, vector<1x6x6x32xf32>
      %c0_795 = arith.constant 0 : index
      %c0_796 = arith.constant 0 : index
      %c0_797 = arith.constant 0 : index
      %c0_798 = arith.constant 0 : index
      %519 = vector.load %arg6[%c0_795, %c0_796, %c0_797, %c0_798] : memref<1x6x6x32xf32, #tpu.memory_space<vmem>>, vector<1x6x6x32xf32>
      tpu.vector_store %arg6[%c0_795, %c0_796, %c0_797, %c0_798], %518 {strides = array<i32>} : memref<1x6x6x32xf32, #tpu.memory_space<vmem>>, vector<1x6x6x32xf32>,
    } else {
    }
    %cst = arith.constant 0.000000e+00 : f32
    %3 = vector.broadcast %cst : f32 to vector<16x32xf32>
    %c0 = arith.constant 0 : index
    %c0_1 = arith.constant 0 : index
    %c0_2 = arith.constant 0 : index
    %c0_3 = arith.constant 0 : index
    %4 = vector.load %arg6[%c0, %c0_1, %c0_2, %c0_3] : memref<1x6x6x32xf32, #tpu.memory_space<vmem>>, vector<1x1x4x32xf32>
    %5 = vector.shape_cast %4 : vector<1x1x4x32xf32> to vector<4x32xf32>
    %c0_4 = arith.constant 0 : index
    %c0_5 = arith.constant 0 : index
    %6 = vector.load %arg8[%c0_4, %c0_5] : memref<16x32xf32, #tpu.memory_space<vmem>>, vector<4x32xf32>
    tpu.vector_store %arg8[%c0_4, %c0_5], %5 {strides = array<i32>} : memref<16x32xf32, #tpu.memory_space<vmem>>, vector<4x32xf32>,
    %c0_6 = arith.constant 0 : index
    %c1 = arith.constant 1 : index
    %c0_7 = arith.constant 0 : index
    %c0_8 = arith.constant 0 : index
    %7 = vector.load %arg6[%c0_6, %c1, %c0_7, %c0_8] : memref<1x6x6x32xf32, #tpu.memory_space<vmem>>, vector<1x1x4x32xf32>
    %8 = vector.shape_cast %7 : vector<1x1x4x32xf32> to vector<4x32xf32>
    %c4 = arith.constant 4 : index
    %c0_9 = arith.constant 0 : index
    %9 = vector.load %arg8[%c4, %c0_9] : memref<16x32xf32, #tpu.memory_space<vmem>>, vector<4x32xf32>
    tpu.vector_store %arg8[%c4, %c0_9], %8 {strides = array<i32>} : memref<16x32xf32, #tpu.memory_space<vmem>>, vector<4x32xf32>,
    %c0_10 = arith.constant 0 : index
    %c2 = arith.constant 2 : index
    %c0_11 = arith.constant 0 : index
    %c0_12 = arith.constant 0 : index
    %10 = vector.load %arg6[%c0_10, %c2, %c0_11, %c0_12] : memref<1x6x6x32xf32, #tpu.memory_space<vmem>>, vector<1x1x4x32xf32>
    %11 = vector.shape_cast %10 : vector<1x1x4x32xf32> to vector<4x32xf32>
    %c8 = arith.constant 8 : index
    %c0_13 = arith.constant 0 : index
    %12 = vector.load %arg8[%c8, %c0_13] : memref<16x32xf32, #tpu.memory_space<vmem>>, vector<4x32xf32>
    tpu.vector_store %arg8[%c8, %c0_13], %11 {strides = array<i32>} : memref<16x32xf32, #tpu.memory_space<vmem>>, vector<4x32xf32>,
    %c0_14 = arith.constant 0 : index
    %c3 = arith.constant 3 : index
    %c0_15 = arith.constant 0 : index
    %c0_16 = arith.constant 0 : index
    %13 = vector.load %arg6[%c0_14, %c3, %c0_15, %c0_16] : memref<1x6x6x32xf32, #tpu.memory_space<vmem>>, vector<1x1x4x32xf32>
    %14 = vector.shape_cast %13 : vector<1x1x4x32xf32> to vector<4x32xf32>
    %c12 = arith.constant 12 : index
    %c0_17 = arith.constant 0 : index
    %15 = vector.load %arg8[%c12, %c0_17] : memref<16x32xf32, #tpu.memory_space<vmem>>, vector<4x32xf32>
    tpu.vector_store %arg8[%c12, %c0_17], %14 {strides = array<i32>} : memref<16x32xf32, #tpu.memory_space<vmem>>, vector<4x32xf32>,
    %c0_18 = arith.constant 0 : index
    %c0_19 = arith.constant 0 : index
    %c0_20 = arith.constant 0 : index
    %c0_21 = arith.constant 0 : index
    %16 = vector.load %arg3[%c0_18, %c0_19, %c0_20, %c0_21] : memref<1x9x32x32xbf16, #tpu.memory_space<vmem>>, vector<1x1x32x32xbf16>
    %17 = vector.shape_cast %16 : vector<1x1x32x32xbf16> to vector<32x32xbf16>
    %c0_22 = arith.constant 0 : index
    %c0_23 = arith.constant 0 : index
    %18 = vector.load %arg8[%c0_22, %c0_23] : memref<16x32xf32, #tpu.memory_space<vmem>>, vector<16x32xf32>
    %19 = arith.truncf %18 : vector<16x32xf32> to vector<16x32xbf16>
    %cst_24 = arith.constant dense<0.000000e+00> : vector<16x32xf32>
    %20 = tpu.matmul %19, %17, %cst_24 {dimension_numbers = #tpu.dot_dimension_numbers<[1], [0], [0], [1], [0, 0, 1, 1], [], []>} : vector<16x32xbf16>, vector<32x32xbf16>, vector<16x32xf32> -> vector<16x32xf32>
    %21 = arith.addf %3, %20 : vector<16x32xf32>
    %c0_25 = arith.constant 0 : index
    %c0_26 = arith.constant 0 : index
    %c1_27 = arith.constant 1 : index
    %c0_28 = arith.constant 0 : index
    %22 = vector.load %arg6[%c0_25, %c0_26, %c1_27, %c0_28] : memref<1x6x6x32xf32, #tpu.memory_space<vmem>>, vector<1x1x4x32xf32>
    %23 = vector.shape_cast %22 : vector<1x1x4x32xf32> to vector<4x32xf32>
    %c0_29 = arith.constant 0 : index
    %c0_30 = arith.constant 0 : index
    %24 = vector.load %arg8[%c0_29, %c0_30] : memref<16x32xf32, #tpu.memory_space<vmem>>, vector<4x32xf32>
    tpu.vector_store %arg8[%c0_29, %c0_30], %23 {strides = array<i32>} : memref<16x32xf32, #tpu.memory_space<vmem>>, vector<4x32xf32>,
    %c0_31 = arith.constant 0 : index
    %c1_32 = arith.constant 1 : index
    %c1_33 = arith.constant 1 : index
    %c0_34 = arith.constant 0 : index
    %25 = vector.load %arg6[%c0_31, %c1_32, %c1_33, %c0_34] : memref<1x6x6x32xf32, #tpu.memory_space<vmem>>, vector<1x1x4x32xf32>
    %26 = vector.shape_cast %25 : vector<1x1x4x32xf32> to vector<4x32xf32>
    %c4_35 = arith.constant 4 : index
    %c0_36 = arith.constant 0 : index
    %27 = vector.load %arg8[%c4_35, %c0_36] : memref<16x32xf32, #tpu.memory_space<vmem>>, vector<4x32xf32>
    tpu.vector_store %arg8[%c4_35, %c0_36], %26 {strides = array<i32>} : memref<16x32xf32, #tpu.memory_space<vmem>>, vector<4x32xf32>,
    %c0_37 = arith.constant 0 : index
    %c2_38 = arith.constant 2 : index
    %c1_39 = arith.constant 1 : index
    %c0_40 = arith.constant 0 : index
    %28 = vector.load %arg6[%c0_37, %c2_38, %c1_39, %c0_40] : memref<1x6x6x32xf32, #tpu.memory_space<vmem>>, vector<1x1x4x32xf32>
    %29 = vector.shape_cast %28 : vector<1x1x4x32xf32> to vector<4x32xf32>
    %c8_41 = arith.constant 8 : index
    %c0_42 = arith.constant 0 : index
    %30 = vector.load %arg8[%c8_41, %c0_42] : memref<16x32xf32, #tpu.memory_space<vmem>>, vector<4x32xf32>
    tpu.vector_store %arg8[%c8_41, %c0_42], %29 {strides = array<i32>} : memref<16x32xf32, #tpu.memory_space<vmem>>, vector<4x32xf32>,
    %c0_43 = arith.constant 0 : index
    %c3_44 = arith.constant 3 : index
    %c1_45 = arith.constant 1 : index
    %c0_46 = arith.constant 0 : index
    %31 = vector.load %arg6[%c0_43, %c3_44, %c1_45, %c0_46] : memref<1x6x6x32xf32, #tpu.memory_space<vmem>>, vector<1x1x4x32xf32>
    %32 = vector.shape_cast %31 : vector<1x1x4x32xf32> to vector<4x32xf32>
    %c12_47 = arith.constant 12 : index
    %c0_48 = arith.constant 0 : index
    %33 = vector.load %arg8[%c12_47, %c0_48] : memref<16x32xf32, #tpu.memory_space<vmem>>, vector<4x32xf32>
    tpu.vector_store %arg8[%c12_47, %c0_48], %32 {strides = array<i32>} : memref<16x32xf32, #tpu.memory_space<vmem>>, vector<4x32xf32>,
    %c0_49 = arith.constant 0 : index
    %c1_50 = arith.constant 1 : index
    %c0_51 = arith.constant 0 : index
    %c0_52 = arith.constant 0 : index
    %34 = vector.load %arg3[%c0_49, %c1_50, %c0_51, %c0_52] : memref<1x9x32x32xbf16, #tpu.memory_space<vmem>>, vector<1x1x32x32xbf16>
    %35 = vector.shape_cast %34 : vector<1x1x32x32xbf16> to vector<32x32xbf16>
    %c0_53 = arith.constant 0 : index
    %c0_54 = arith.constant 0 : index
    %36 = vector.load %arg8[%c0_53, %c0_54] : memref<16x32xf32, #tpu.memory_space<vmem>>, vector<16x32xf32>
    %37 = arith.truncf %36 : vector<16x32xf32> to vector<16x32xbf16>
    %cst_55 = arith.constant dense<0.000000e+00> : vector<16x32xf32>
    %38 = tpu.matmul %37, %35, %cst_55 {dimension_numbers = #tpu.dot_dimension_numbers<[1], [0], [0], [1], [0, 0, 1, 1], [], []>} : vector<16x32xbf16>, vector<32x32xbf16>, vector<16x32xf32> -> vector<16x32xf32>
    %39 = arith.addf %21, %38 : vector<16x32xf32>
    %c0_56 = arith.constant 0 : index
    %c0_57 = arith.constant 0 : index
    %c2_58 = arith.constant 2 : index
    %c0_59 = arith.constant 0 : index
    %40 = vector.load %arg6[%c0_56, %c0_57, %c2_58, %c0_59] : memref<1x6x6x32xf32, #tpu.memory_space<vmem>>, vector<1x1x4x32xf32>
    %41 = vector.shape_cast %40 : vector<1x1x4x32xf32> to vector<4x32xf32>
    %c0_60 = arith.constant 0 : index
    %c0_61 = arith.constant 0 : index
    %42 = vector.load %arg8[%c0_60, %c0_61] : memref<16x32xf32, #tpu.memory_space<vmem>>, vector<4x32xf32>
    tpu.vector_store %arg8[%c0_60, %c0_61], %41 {strides = array<i32>} : memref<16x32xf32, #tpu.memory_space<vmem>>, vector<4x32xf32>,
    %c0_62 = arith.constant 0 : index
    %c1_63 = arith.constant 1 : index
    %c2_64 = arith.constant 2 : index
    %c0_65 = arith.constant 0 : index
    %43 = vector.load %arg6[%c0_62, %c1_63, %c2_64, %c0_65] : memref<1x6x6x32xf32, #tpu.memory_space<vmem>>, vector<1x1x4x32xf32>
    %44 = vector.shape_cast %43 : vector<1x1x4x32xf32> to vector<4x32xf32>
    %c4_66 = arith.constant 4 : index
    %c0_67 = arith.constant 0 : index
    %45 = vector.load %arg8[%c4_66, %c0_67] : memref<16x32xf32, #tpu.memory_space<vmem>>, vector<4x32xf32>
    tpu.vector_store %arg8[%c4_66, %c0_67], %44 {strides = array<i32>} : memref<16x32xf32, #tpu.memory_space<vmem>>, vector<4x32xf32>,
    %c0_68 = arith.constant 0 : index
    %c2_69 = arith.constant 2 : index
    %c2_70 = arith.constant 2 : index
    %c0_71 = arith.constant 0 : index
    %46 = vector.load %arg6[%c0_68, %c2_69, %c2_70, %c0_71] : memref<1x6x6x32xf32, #tpu.memory_space<vmem>>, vector<1x1x4x32xf32>
    %47 = vector.shape_cast %46 : vector<1x1x4x32xf32> to vector<4x32xf32>
    %c8_72 = arith.constant 8 : index
    %c0_73 = arith.constant 0 : index
    %48 = vector.load %arg8[%c8_72, %c0_73] : memref<16x32xf32, #tpu.memory_space<vmem>>, vector<4x32xf32>
    tpu.vector_store %arg8[%c8_72, %c0_73], %47 {strides = array<i32>} : memref<16x32xf32, #tpu.memory_space<vmem>>, vector<4x32xf32>,
    %c0_74 = arith.constant 0 : index
    %c3_75 = arith.constant 3 : index
    %c2_76 = arith.constant 2 : index
    %c0_77 = arith.constant 0 : index
    %49 = vector.load %arg6[%c0_74, %c3_75, %c2_76, %c0_77] : memref<1x6x6x32xf32, #tpu.memory_space<vmem>>, vector<1x1x4x32xf32>
    %50 = vector.shape_cast %49 : vector<1x1x4x32xf32> to vector<4x32xf32>
    %c12_78 = arith.constant 12 : index
    %c0_79 = arith.constant 0 : index
    %51 = vector.load %arg8[%c12_78, %c0_79] : memref<16x32xf32, #tpu.memory_space<vmem>>, vector<4x32xf32>
    tpu.vector_store %arg8[%c12_78, %c0_79], %50 {strides = array<i32>} : memref<16x32xf32, #tpu.memory_space<vmem>>, vector<4x32xf32>,
    %c0_80 = arith.constant 0 : index
    %c2_81 = arith.constant 2 : index
    %c0_82 = arith.constant 0 : index
    %c0_83 = arith.constant 0 : index
    %52 = vector.load %arg3[%c0_80, %c2_81, %c0_82, %c0_83] : memref<1x9x32x32xbf16, #tpu.memory_space<vmem>>, vector<1x1x32x32xbf16>
    %53 = vector.shape_cast %52 : vector<1x1x32x32xbf16> to vector<32x32xbf16>
    %c0_84 = arith.constant 0 : index
    %c0_85 = arith.constant 0 : index
    %54 = vector.load %arg8[%c0_84, %c0_85] : memref<16x32xf32, #tpu.memory_space<vmem>>, vector<16x32xf32>
    %55 = arith.truncf %54 : vector<16x32xf32> to vector<16x32xbf16>
    %cst_86 = arith.constant dense<0.000000e+00> : vector<16x32xf32>
    %56 = tpu.matmul %55, %53, %cst_86 {dimension_numbers = #tpu.dot_dimension_numbers<[1], [0], [0], [1], [0, 0, 1, 1], [], []>} : vector<16x32xbf16>, vector<32x32xbf16>, vector<16x32xf32> -> vector<16x32xf32>
    %57 = arith.addf %39, %56 : vector<16x32xf32>
    %c0_87 = arith.constant 0 : index
    %c1_88 = arith.constant 1 : index
    %c0_89 = arith.constant 0 : index
    %c0_90 = arith.constant 0 : index
    %58 = vector.load %arg6[%c0_87, %c1_88, %c0_89, %c0_90] : memref<1x6x6x32xf32, #tpu.memory_space<vmem>>, vector<1x1x4x32xf32>
    %59 = vector.shape_cast %58 : vector<1x1x4x32xf32> to vector<4x32xf32>
    %c0_91 = arith.constant 0 : index
    %c0_92 = arith.constant 0 : index
    %60 = vector.load %arg8[%c0_91, %c0_92] : memref<16x32xf32, #tpu.memory_space<vmem>>, vector<4x32xf32>
    tpu.vector_store %arg8[%c0_91, %c0_92], %59 {strides = array<i32>} : memref<16x32xf32, #tpu.memory_space<vmem>>, vector<4x32xf32>,
    %c0_93 = arith.constant 0 : index
    %c2_94 = arith.constant 2 : index
    %c0_95 = arith.constant 0 : index
    %c0_96 = arith.constant 0 : index
    %61 = vector.load %arg6[%c0_93, %c2_94, %c0_95, %c0_96] : memref<1x6x6x32xf32, #tpu.memory_space<vmem>>, vector<1x1x4x32xf32>
    %62 = vector.shape_cast %61 : vector<1x1x4x32xf32> to vector<4x32xf32>
    %c4_97 = arith.constant 4 : index
    %c0_98 = arith.constant 0 : index
    %63 = vector.load %arg8[%c4_97, %c0_98] : memref<16x32xf32, #tpu.memory_space<vmem>>, vector<4x32xf32>
    tpu.vector_store %arg8[%c4_97, %c0_98], %62 {strides = array<i32>} : memref<16x32xf32, #tpu.memory_space<vmem>>, vector<4x32xf32>,
    %c0_99 = arith.constant 0 : index
    %c3_100 = arith.constant 3 : index
    %c0_101 = arith.constant 0 : index
    %c0_102 = arith.constant 0 : index
    %64 = vector.load %arg6[%c0_99, %c3_100, %c0_101, %c0_102] : memref<1x6x6x32xf32, #tpu.memory_space<vmem>>, vector<1x1x4x32xf32>
    %65 = vector.shape_cast %64 : vector<1x1x4x32xf32> to vector<4x32xf32>
    %c8_103 = arith.constant 8 : index
    %c0_104 = arith.constant 0 : index
    %66 = vector.load %arg8[%c8_103, %c0_104] : memref<16x32xf32, #tpu.memory_space<vmem>>, vector<4x32xf32>
    tpu.vector_store %arg8[%c8_103, %c0_104], %65 {strides = array<i32>} : memref<16x32xf32, #tpu.memory_space<vmem>>, vector<4x32xf32>,
    %c0_105 = arith.constant 0 : index
    %c4_106 = arith.constant 4 : index
    %c0_107 = arith.constant 0 : index
    %c0_108 = arith.constant 0 : index
    %67 = vector.load %arg6[%c0_105, %c4_106, %c0_107, %c0_108] : memref<1x6x6x32xf32, #tpu.memory_space<vmem>>, vector<1x1x4x32xf32>
    %68 = vector.shape_cast %67 : vector<1x1x4x32xf32> to vector<4x32xf32>
    %c12_109 = arith.constant 12 : index
    %c0_110 = arith.constant 0 : index
    %69 = vector.load %arg8[%c12_109, %c0_110] : memref<16x32xf32, #tpu.memory_space<vmem>>, vector<4x32xf32>
    tpu.vector_store %arg8[%c12_109, %c0_110], %68 {strides = array<i32>} : memref<16x32xf32, #tpu.memory_space<vmem>>, vector<4x32xf32>,
    %c0_111 = arith.constant 0 : index
    %c3_112 = arith.constant 3 : index
    %c0_113 = arith.constant 0 : index
    %c0_114 = arith.constant 0 : index
    %70 = vector.load %arg3[%c0_111, %c3_112, %c0_113, %c0_114] : memref<1x9x32x32xbf16, #tpu.memory_space<vmem>>, vector<1x1x32x32xbf16>
    %71 = vector.shape_cast %70 : vector<1x1x32x32xbf16> to vector<32x32xbf16>
    %c0_115 = arith.constant 0 : index
    %c0_116 = arith.constant 0 : index
    %72 = vector.load %arg8[%c0_115, %c0_116] : memref<16x32xf32, #tpu.memory_space<vmem>>, vector<16x32xf32>
    %73 = arith.truncf %72 : vector<16x32xf32> to vector<16x32xbf16>
    %cst_117 = arith.constant dense<0.000000e+00> : vector<16x32xf32>
    %74 = tpu.matmul %73, %71, %cst_117 {dimension_numbers = #tpu.dot_dimension_numbers<[1], [0], [0], [1], [0, 0, 1, 1], [], []>} : vector<16x32xbf16>, vector<32x32xbf16>, vector<16x32xf32> -> vector<16x32xf32>
    %75 = arith.addf %57, %74 : vector<16x32xf32>
    %c0_118 = arith.constant 0 : index
    %c1_119 = arith.constant 1 : index
    %c1_120 = arith.constant 1 : index
    %c0_121 = arith.constant 0 : index
    %76 = vector.load %arg6[%c0_118, %c1_119, %c1_120, %c0_121] : memref<1x6x6x32xf32, #tpu.memory_space<vmem>>, vector<1x1x4x32xf32>
    %77 = vector.shape_cast %76 : vector<1x1x4x32xf32> to vector<4x32xf32>
    %c0_122 = arith.constant 0 : index
    %c0_123 = arith.constant 0 : index
    %78 = vector.load %arg8[%c0_122, %c0_123] : memref<16x32xf32, #tpu.memory_space<vmem>>, vector<4x32xf32>
    tpu.vector_store %arg8[%c0_122, %c0_123], %77 {strides = array<i32>} : memref<16x32xf32, #tpu.memory_space<vmem>>, vector<4x32xf32>,
    %c0_124 = arith.constant 0 : index
    %c2_125 = arith.constant 2 : index
    %c1_126 = arith.constant 1 : index
    %c0_127 = arith.constant 0 : index
    %79 = vector.load %arg6[%c0_124, %c2_125, %c1_126, %c0_127] : memref<1x6x6x32xf32, #tpu.memory_space<vmem>>, vector<1x1x4x32xf32>
    %80 = vector.shape_cast %79 : vector<1x1x4x32xf32> to vector<4x32xf32>
    %c4_128 = arith.constant 4 : index
    %c0_129 = arith.constant 0 : index
    %81 = vector.load %arg8[%c4_128, %c0_129] : memref<16x32xf32, #tpu.memory_space<vmem>>, vector<4x32xf32>
    tpu.vector_store %arg8[%c4_128, %c0_129], %80 {strides = array<i32>} : memref<16x32xf32, #tpu.memory_space<vmem>>, vector<4x32xf32>,
    %c0_130 = arith.constant 0 : index
    %c3_131 = arith.constant 3 : index
    %c1_132 = arith.constant 1 : index
    %c0_133 = arith.constant 0 : index
    %82 = vector.load %arg6[%c0_130, %c3_131, %c1_132, %c0_133] : memref<1x6x6x32xf32, #tpu.memory_space<vmem>>, vector<1x1x4x32xf32>
    %83 = vector.shape_cast %82 : vector<1x1x4x32xf32> to vector<4x32xf32>
    %c8_134 = arith.constant 8 : index
    %c0_135 = arith.constant 0 : index
    %84 = vector.load %arg8[%c8_134, %c0_135] : memref<16x32xf32, #tpu.memory_space<vmem>>, vector<4x32xf32>
    tpu.vector_store %arg8[%c8_134, %c0_135], %83 {strides = array<i32>} : memref<16x32xf32, #tpu.memory_space<vmem>>, vector<4x32xf32>,
    %c0_136 = arith.constant 0 : index
    %c4_137 = arith.constant 4 : index
    %c1_138 = arith.constant 1 : index
    %c0_139 = arith.constant 0 : index
    %85 = vector.load %arg6[%c0_136, %c4_137, %c1_138, %c0_139] : memref<1x6x6x32xf32, #tpu.memory_space<vmem>>, vector<1x1x4x32xf32>
    %86 = vector.shape_cast %85 : vector<1x1x4x32xf32> to vector<4x32xf32>
    %c12_140 = arith.constant 12 : index
    %c0_141 = arith.constant 0 : index
    %87 = vector.load %arg8[%c12_140, %c0_141] : memref<16x32xf32, #tpu.memory_space<vmem>>, vector<4x32xf32>
    tpu.vector_store %arg8[%c12_140, %c0_141], %86 {strides = array<i32>} : memref<16x32xf32, #tpu.memory_space<vmem>>, vector<4x32xf32>,
    %c0_142 = arith.constant 0 : index
    %c4_143 = arith.constant 4 : index
    %c0_144 = arith.constant 0 : index
    %c0_145 = arith.constant 0 : index
    %88 = vector.load %arg3[%c0_142, %c4_143, %c0_144, %c0_145] : memref<1x9x32x32xbf16, #tpu.memory_space<vmem>>, vector<1x1x32x32xbf16>
    %89 = vector.shape_cast %88 : vector<1x1x32x32xbf16> to vector<32x32xbf16>
    %c0_146 = arith.constant 0 : index
    %c0_147 = arith.constant 0 : index
    %90 = vector.load %arg8[%c0_146, %c0_147] : memref<16x32xf32, #tpu.memory_space<vmem>>, vector<16x32xf32>
    %91 = arith.truncf %90 : vector<16x32xf32> to vector<16x32xbf16>
    %cst_148 = arith.constant dense<0.000000e+00> : vector<16x32xf32>
    %92 = tpu.matmul %91, %89, %cst_148 {dimension_numbers = #tpu.dot_dimension_numbers<[1], [0], [0], [1], [0, 0, 1, 1], [], []>} : vector<16x32xbf16>, vector<32x32xbf16>, vector<16x32xf32> -> vector<16x32xf32>
    %93 = arith.addf %75, %92 : vector<16x32xf32>
    %c0_149 = arith.constant 0 : index
    %c1_150 = arith.constant 1 : index
    %c2_151 = arith.constant 2 : index
    %c0_152 = arith.constant 0 : index
    %94 = vector.load %arg6[%c0_149, %c1_150, %c2_151, %c0_152] : memref<1x6x6x32xf32, #tpu.memory_space<vmem>>, vector<1x1x4x32xf32>
    %95 = vector.shape_cast %94 : vector<1x1x4x32xf32> to vector<4x32xf32>
    %c0_153 = arith.constant 0 : index
    %c0_154 = arith.constant 0 : index
    %96 = vector.load %arg8[%c0_153, %c0_154] : memref<16x32xf32, #tpu.memory_space<vmem>>, vector<4x32xf32>
    tpu.vector_store %arg8[%c0_153, %c0_154], %95 {strides = array<i32>} : memref<16x32xf32, #tpu.memory_space<vmem>>, vector<4x32xf32>,
    %c0_155 = arith.constant 0 : index
    %c2_156 = arith.constant 2 : index
    %c2_157 = arith.constant 2 : index
    %c0_158 = arith.constant 0 : index
    %97 = vector.load %arg6[%c0_155, %c2_156, %c2_157, %c0_158] : memref<1x6x6x32xf32, #tpu.memory_space<vmem>>, vector<1x1x4x32xf32>
    %98 = vector.shape_cast %97 : vector<1x1x4x32xf32> to vector<4x32xf32>
    %c4_159 = arith.constant 4 : index
    %c0_160 = arith.constant 0 : index
    %99 = vector.load %arg8[%c4_159, %c0_160] : memref<16x32xf32, #tpu.memory_space<vmem>>, vector<4x32xf32>
    tpu.vector_store %arg8[%c4_159, %c0_160], %98 {strides = array<i32>} : memref<16x32xf32, #tpu.memory_space<vmem>>, vector<4x32xf32>,
    %c0_161 = arith.constant 0 : index
    %c3_162 = arith.constant 3 : index
    %c2_163 = arith.constant 2 : index
    %c0_164 = arith.constant 0 : index
    %100 = vector.load %arg6[%c0_161, %c3_162, %c2_163, %c0_164] : memref<1x6x6x32xf32, #tpu.memory_space<vmem>>, vector<1x1x4x32xf32>
    %101 = vector.shape_cast %100 : vector<1x1x4x32xf32> to vector<4x32xf32>
    %c8_165 = arith.constant 8 : index
    %c0_166 = arith.constant 0 : index
    %102 = vector.load %arg8[%c8_165, %c0_166] : memref<16x32xf32, #tpu.memory_space<vmem>>, vector<4x32xf32>
    tpu.vector_store %arg8[%c8_165, %c0_166], %101 {strides = array<i32>} : memref<16x32xf32, #tpu.memory_space<vmem>>, vector<4x32xf32>,
    %c0_167 = arith.constant 0 : index
    %c4_168 = arith.constant 4 : index
    %c2_169 = arith.constant 2 : index
    %c0_170 = arith.constant 0 : index
    %103 = vector.load %arg6[%c0_167, %c4_168, %c2_169, %c0_170] : memref<1x6x6x32xf32, #tpu.memory_space<vmem>>, vector<1x1x4x32xf32>
    %104 = vector.shape_cast %103 : vector<1x1x4x32xf32> to vector<4x32xf32>
    %c12_171 = arith.constant 12 : index
    %c0_172 = arith.constant 0 : index
    %105 = vector.load %arg8[%c12_171, %c0_172] : memref<16x32xf32, #tpu.memory_space<vmem>>, vector<4x32xf32>
    tpu.vector_store %arg8[%c12_171, %c0_172], %104 {strides = array<i32>} : memref<16x32xf32, #tpu.memory_space<vmem>>, vector<4x32xf32>,
    %c0_173 = arith.constant 0 : index
    %c5 = arith.constant 5 : index
    %c0_174 = arith.constant 0 : index
    %c0_175 = arith.constant 0 : index
    %106 = vector.load %arg3[%c0_173, %c5, %c0_174, %c0_175] : memref<1x9x32x32xbf16, #tpu.memory_space<vmem>>, vector<1x1x32x32xbf16>
    %107 = vector.shape_cast %106 : vector<1x1x32x32xbf16> to vector<32x32xbf16>
    %c0_176 = arith.constant 0 : index
    %c0_177 = arith.constant 0 : index
    %108 = vector.load %arg8[%c0_176, %c0_177] : memref<16x32xf32, #tpu.memory_space<vmem>>, vector<16x32xf32>
    %109 = arith.truncf %108 : vector<16x32xf32> to vector<16x32xbf16>
    %cst_178 = arith.constant dense<0.000000e+00> : vector<16x32xf32>
    %110 = tpu.matmul %109, %107, %cst_178 {dimension_numbers = #tpu.dot_dimension_numbers<[1], [0], [0], [1], [0, 0, 1, 1], [], []>} : vector<16x32xbf16>, vector<32x32xbf16>, vector<16x32xf32> -> vector<16x32xf32>
    %111 = arith.addf %93, %110 : vector<16x32xf32>
    %c0_179 = arith.constant 0 : index
    %c2_180 = arith.constant 2 : index
    %c0_181 = arith.constant 0 : index
    %c0_182 = arith.constant 0 : index
    %112 = vector.load %arg6[%c0_179, %c2_180, %c0_181, %c0_182] : memref<1x6x6x32xf32, #tpu.memory_space<vmem>>, vector<1x1x4x32xf32>
    %113 = vector.shape_cast %112 : vector<1x1x4x32xf32> to vector<4x32xf32>
    %c0_183 = arith.constant 0 : index
    %c0_184 = arith.constant 0 : index
    %114 = vector.load %arg8[%c0_183, %c0_184] : memref<16x32xf32, #tpu.memory_space<vmem>>, vector<4x32xf32>
    tpu.vector_store %arg8[%c0_183, %c0_184], %113 {strides = array<i32>} : memref<16x32xf32, #tpu.memory_space<vmem>>, vector<4x32xf32>,
    %c0_185 = arith.constant 0 : index
    %c3_186 = arith.constant 3 : index
    %c0_187 = arith.constant 0 : index
    %c0_188 = arith.constant 0 : index
    %115 = vector.load %arg6[%c0_185, %c3_186, %c0_187, %c0_188] : memref<1x6x6x32xf32, #tpu.memory_space<vmem>>, vector<1x1x4x32xf32>
    %116 = vector.shape_cast %115 : vector<1x1x4x32xf32> to vector<4x32xf32>
    %c4_189 = arith.constant 4 : index
    %c0_190 = arith.constant 0 : index
    %117 = vector.load %arg8[%c4_189, %c0_190] : memref<16x32xf32, #tpu.memory_space<vmem>>, vector<4x32xf32>
    tpu.vector_store %arg8[%c4_189, %c0_190], %116 {strides = array<i32>} : memref<16x32xf32, #tpu.memory_space<vmem>>, vector<4x32xf32>,
    %c0_191 = arith.constant 0 : index
    %c4_192 = arith.constant 4 : index
    %c0_193 = arith.constant 0 : index
    %c0_194 = arith.constant 0 : index
    %118 = vector.load %arg6[%c0_191, %c4_192, %c0_193, %c0_194] : memref<1x6x6x32xf32, #tpu.memory_space<vmem>>, vector<1x1x4x32xf32>
    %119 = vector.shape_cast %118 : vector<1x1x4x32xf32> to vector<4x32xf32>
    %c8_195 = arith.constant 8 : index
    %c0_196 = arith.constant 0 : index
    %120 = vector.load %arg8[%c8_195, %c0_196] : memref<16x32xf32, #tpu.memory_space<vmem>>, vector<4x32xf32>
    tpu.vector_store %arg8[%c8_195, %c0_196], %119 {strides = array<i32>} : memref<16x32xf32, #tpu.memory_space<vmem>>, vector<4x32xf32>,
    %c0_197 = arith.constant 0 : index
    %c5_198 = arith.constant 5 : index
    %c0_199 = arith.constant 0 : index
    %c0_200 = arith.constant 0 : index
    %121 = vector.load %arg6[%c0_197, %c5_198, %c0_199, %c0_200] : memref<1x6x6x32xf32, #tpu.memory_space<vmem>>, vector<1x1x4x32xf32>
    %122 = vector.shape_cast %121 : vector<1x1x4x32xf32> to vector<4x32xf32>
    %c12_201 = arith.constant 12 : index
    %c0_202 = arith.constant 0 : index
    %123 = vector.load %arg8[%c12_201, %c0_202] : memref<16x32xf32, #tpu.memory_space<vmem>>, vector<4x32xf32>
    tpu.vector_store %arg8[%c12_201, %c0_202], %122 {strides = array<i32>} : memref<16x32xf32, #tpu.memory_space<vmem>>, vector<4x32xf32>,
    %c0_203 = arith.constant 0 : index
    %c6 = arith.constant 6 : index
    %c0_204 = arith.constant 0 : index
    %c0_205 = arith.constant 0 : index
    %124 = vector.load %arg3[%c0_203, %c6, %c0_204, %c0_205] : memref<1x9x32x32xbf16, #tpu.memory_space<vmem>>, vector<1x1x32x32xbf16>
    %125 = vector.shape_cast %124 : vector<1x1x32x32xbf16> to vector<32x32xbf16>
    %c0_206 = arith.constant 0 : index
    %c0_207 = arith.constant 0 : index
    %126 = vector.load %arg8[%c0_206, %c0_207] : memref<16x32xf32, #tpu.memory_space<vmem>>, vector<16x32xf32>
    %127 = arith.truncf %126 : vector<16x32xf32> to vector<16x32xbf16>
    %cst_208 = arith.constant dense<0.000000e+00> : vector<16x32xf32>
    %128 = tpu.matmul %127, %125, %cst_208 {dimension_numbers = #tpu.dot_dimension_numbers<[1], [0], [0], [1], [0, 0, 1, 1], [], []>} : vector<16x32xbf16>, vector<32x32xbf16>, vector<16x32xf32> -> vector<16x32xf32>
    %129 = arith.addf %111, %128 : vector<16x32xf32>
    %c0_209 = arith.constant 0 : index
    %c2_210 = arith.constant 2 : index
    %c1_211 = arith.constant 1 : index
    %c0_212 = arith.constant 0 : index
    %130 = vector.load %arg6[%c0_209, %c2_210, %c1_211, %c0_212] : memref<1x6x6x32xf32, #tpu.memory_space<vmem>>, vector<1x1x4x32xf32>
    %131 = vector.shape_cast %130 : vector<1x1x4x32xf32> to vector<4x32xf32>
    %c0_213 = arith.constant 0 : index
    %c0_214 = arith.constant 0 : index
    %132 = vector.load %arg8[%c0_213, %c0_214] : memref<16x32xf32, #tpu.memory_space<vmem>>, vector<4x32xf32>
    tpu.vector_store %arg8[%c0_213, %c0_214], %131 {strides = array<i32>} : memref<16x32xf32, #tpu.memory_space<vmem>>, vector<4x32xf32>,
    %c0_215 = arith.constant 0 : index
    %c3_216 = arith.constant 3 : index
    %c1_217 = arith.constant 1 : index
    %c0_218 = arith.constant 0 : index
    %133 = vector.load %arg6[%c0_215, %c3_216, %c1_217, %c0_218] : memref<1x6x6x32xf32, #tpu.memory_space<vmem>>, vector<1x1x4x32xf32>
    %134 = vector.shape_cast %133 : vector<1x1x4x32xf32> to vector<4x32xf32>
    %c4_219 = arith.constant 4 : index
    %c0_220 = arith.constant 0 : index
    %135 = vector.load %arg8[%c4_219, %c0_220] : memref<16x32xf32, #tpu.memory_space<vmem>>, vector<4x32xf32>
    tpu.vector_store %arg8[%c4_219, %c0_220], %134 {strides = array<i32>} : memref<16x32xf32, #tpu.memory_space<vmem>>, vector<4x32xf32>,
    %c0_221 = arith.constant 0 : index
    %c4_222 = arith.constant 4 : index
    %c1_223 = arith.constant 1 : index
    %c0_224 = arith.constant 0 : index
    %136 = vector.load %arg6[%c0_221, %c4_222, %c1_223, %c0_224] : memref<1x6x6x32xf32, #tpu.memory_space<vmem>>, vector<1x1x4x32xf32>
    %137 = vector.shape_cast %136 : vector<1x1x4x32xf32> to vector<4x32xf32>
    %c8_225 = arith.constant 8 : index
    %c0_226 = arith.constant 0 : index
    %138 = vector.load %arg8[%c8_225, %c0_226] : memref<16x32xf32, #tpu.memory_space<vmem>>, vector<4x32xf32>
    tpu.vector_store %arg8[%c8_225, %c0_226], %137 {strides = array<i32>} : memref<16x32xf32, #tpu.memory_space<vmem>>, vector<4x32xf32>,
    %c0_227 = arith.constant 0 : index
    %c5_228 = arith.constant 5 : index
    %c1_229 = arith.constant 1 : index
    %c0_230 = arith.constant 0 : index
    %139 = vector.load %arg6[%c0_227, %c5_228, %c1_229, %c0_230] : memref<1x6x6x32xf32, #tpu.memory_space<vmem>>, vector<1x1x4x32xf32>
    %140 = vector.shape_cast %139 : vector<1x1x4x32xf32> to vector<4x32xf32>
    %c12_231 = arith.constant 12 : index
    %c0_232 = arith.constant 0 : index
    %141 = vector.load %arg8[%c12_231, %c0_232] : memref<16x32xf32, #tpu.memory_space<vmem>>, vector<4x32xf32>
    tpu.vector_store %arg8[%c12_231, %c0_232], %140 {strides = array<i32>} : memref<16x32xf32, #tpu.memory_space<vmem>>, vector<4x32xf32>,
    %c0_233 = arith.constant 0 : index
    %c7 = arith.constant 7 : index
    %c0_234 = arith.constant 0 : index
    %c0_235 = arith.constant 0 : index
    %142 = vector.load %arg3[%c0_233, %c7, %c0_234, %c0_235] : memref<1x9x32x32xbf16, #tpu.memory_space<vmem>>, vector<1x1x32x32xbf16>
    %143 = vector.shape_cast %142 : vector<1x1x32x32xbf16> to vector<32x32xbf16>
    %c0_236 = arith.constant 0 : index
    %c0_237 = arith.constant 0 : index
    %144 = vector.load %arg8[%c0_236, %c0_237] : memref<16x32xf32, #tpu.memory_space<vmem>>, vector<16x32xf32>
    %145 = arith.truncf %144 : vector<16x32xf32> to vector<16x32xbf16>
    %cst_238 = arith.constant dense<0.000000e+00> : vector<16x32xf32>
    %146 = tpu.matmul %145, %143, %cst_238 {dimension_numbers = #tpu.dot_dimension_numbers<[1], [0], [0], [1], [0, 0, 1, 1], [], []>} : vector<16x32xbf16>, vector<32x32xbf16>, vector<16x32xf32> -> vector<16x32xf32>
    %147 = arith.addf %129, %146 : vector<16x32xf32>
    %c0_239 = arith.constant 0 : index
    %c2_240 = arith.constant 2 : index
    %c2_241 = arith.constant 2 : index
    %c0_242 = arith.constant 0 : index
    %148 = vector.load %arg6[%c0_239, %c2_240, %c2_241, %c0_242] : memref<1x6x6x32xf32, #tpu.memory_space<vmem>>, vector<1x1x4x32xf32>
    %149 = vector.shape_cast %148 : vector<1x1x4x32xf32> to vector<4x32xf32>
    %c0_243 = arith.constant 0 : index
    %c0_244 = arith.constant 0 : index
    %150 = vector.load %arg8[%c0_243, %c0_244] : memref<16x32xf32, #tpu.memory_space<vmem>>, vector<4x32xf32>
    tpu.vector_store %arg8[%c0_243, %c0_244], %149 {strides = array<i32>} : memref<16x32xf32, #tpu.memory_space<vmem>>, vector<4x32xf32>,
    %c0_245 = arith.constant 0 : index
    %c3_246 = arith.constant 3 : index
    %c2_247 = arith.constant 2 : index
    %c0_248 = arith.constant 0 : index
    %151 = vector.load %arg6[%c0_245, %c3_246, %c2_247, %c0_248] : memref<1x6x6x32xf32, #tpu.memory_space<vmem>>, vector<1x1x4x32xf32>
    %152 = vector.shape_cast %151 : vector<1x1x4x32xf32> to vector<4x32xf32>
    %c4_249 = arith.constant 4 : index
    %c0_250 = arith.constant 0 : index
    %153 = vector.load %arg8[%c4_249, %c0_250] : memref<16x32xf32, #tpu.memory_space<vmem>>, vector<4x32xf32>
    tpu.vector_store %arg8[%c4_249, %c0_250], %152 {strides = array<i32>} : memref<16x32xf32, #tpu.memory_space<vmem>>, vector<4x32xf32>,
    %c0_251 = arith.constant 0 : index
    %c4_252 = arith.constant 4 : index
    %c2_253 = arith.constant 2 : index
    %c0_254 = arith.constant 0 : index
    %154 = vector.load %arg6[%c0_251, %c4_252, %c2_253, %c0_254] : memref<1x6x6x32xf32, #tpu.memory_space<vmem>>, vector<1x1x4x32xf32>
    %155 = vector.shape_cast %154 : vector<1x1x4x32xf32> to vector<4x32xf32>
    %c8_255 = arith.constant 8 : index
    %c0_256 = arith.constant 0 : index
    %156 = vector.load %arg8[%c8_255, %c0_256] : memref<16x32xf32, #tpu.memory_space<vmem>>, vector<4x32xf32>
    tpu.vector_store %arg8[%c8_255, %c0_256], %155 {strides = array<i32>} : memref<16x32xf32, #tpu.memory_space<vmem>>, vector<4x32xf32>,
    %c0_257 = arith.constant 0 : index
    %c5_258 = arith.constant 5 : index
    %c2_259 = arith.constant 2 : index
    %c0_260 = arith.constant 0 : index
    %157 = vector.load %arg6[%c0_257, %c5_258, %c2_259, %c0_260] : memref<1x6x6x32xf32, #tpu.memory_space<vmem>>, vector<1x1x4x32xf32>
    %158 = vector.shape_cast %157 : vector<1x1x4x32xf32> to vector<4x32xf32>
    %c12_261 = arith.constant 12 : index
    %c0_262 = arith.constant 0 : index
    %159 = vector.load %arg8[%c12_261, %c0_262] : memref<16x32xf32, #tpu.memory_space<vmem>>, vector<4x32xf32>
    tpu.vector_store %arg8[%c12_261, %c0_262], %158 {strides = array<i32>} : memref<16x32xf32, #tpu.memory_space<vmem>>, vector<4x32xf32>,
    %c0_263 = arith.constant 0 : index
    %c8_264 = arith.constant 8 : index
    %c0_265 = arith.constant 0 : index
    %c0_266 = arith.constant 0 : index
    %160 = vector.load %arg3[%c0_263, %c8_264, %c0_265, %c0_266] : memref<1x9x32x32xbf16, #tpu.memory_space<vmem>>, vector<1x1x32x32xbf16>
    %161 = vector.shape_cast %160 : vector<1x1x32x32xbf16> to vector<32x32xbf16>
    %c0_267 = arith.constant 0 : index
    %c0_268 = arith.constant 0 : index
    %162 = vector.load %arg8[%c0_267, %c0_268] : memref<16x32xf32, #tpu.memory_space<vmem>>, vector<16x32xf32>
    %163 = arith.truncf %162 : vector<16x32xf32> to vector<16x32xbf16>
    %cst_269 = arith.constant dense<0.000000e+00> : vector<16x32xf32>
    %164 = tpu.matmul %163, %161, %cst_269 {dimension_numbers = #tpu.dot_dimension_numbers<[1], [0], [0], [1], [0, 0, 1, 1], [], []>} : vector<16x32xbf16>, vector<32x32xbf16>, vector<16x32xf32> -> vector<16x32xf32>
    %165 = arith.addf %147, %164 : vector<16x32xf32>
    %cst_270 = arith.constant dense<0.000000e+00> : vector<32xf32>
    %166 = vector.multi_reduction <add>, %165, %cst_270 [0] : vector<16x32xf32> to vector<32xf32>
    %167 = vector.shape_cast %166 : vector<32xf32> to vector<1x32xf32>
    %cst_271 = arith.constant 1.600000e+01 : f32
    %168 = vector.broadcast %cst_271 : f32 to vector<1x32xf32>
    %169 = arith.divf %167, %168 : vector<1x32xf32>
    %170 = vector.broadcast %169 : vector<1x32xf32> to vector<16x32xf32>
    %171 = arith.subf %165, %170 : vector<16x32xf32>
    %172 = arith.mulf %171, %171 : vector<16x32xf32>
    %cst_272 = arith.constant dense<0.000000e+00> : vector<32xf32>
    %173 = vector.multi_reduction <add>, %172, %cst_272 [0] : vector<16x32xf32> to vector<32xf32>
    %174 = vector.shape_cast %173 : vector<32xf32> to vector<1x32xf32>
    %cst_273 = arith.constant 1.600000e+01 : f32
    %175 = vector.broadcast %cst_273 : f32 to vector<1x32xf32>
    %176 = arith.divf %174, %175 : vector<1x32xf32>
    %177 = vector.broadcast %169 : vector<1x32xf32> to vector<16x32xf32>
    %178 = arith.subf %165, %177 : vector<16x32xf32>
    %cst_274 = arith.constant 9.99999974E-6 : f32
    %179 = vector.broadcast %cst_274 : f32 to vector<1x32xf32>
    %180 = arith.addf %176, %179 : vector<1x32xf32>
    %181 = math.rsqrt %180 : vector<1x32xf32>
    %182 = vector.broadcast %181 : vector<1x32xf32> to vector<16x32xf32>
    %183 = arith.mulf %178, %182 : vector<16x32xf32>
    %cst_275 = arith.constant 0.000000e+00 : f32
    %184 = vector.broadcast %cst_275 : f32 to vector<16x32xf32>
    %185 = arith.maximumf %183, %184 : vector<16x32xf32>
    %c0_276 = arith.constant 0 : index
    %c0_277 = arith.constant 0 : index
    %186 = vector.load %arg8[%c0_276, %c0_277] : memref<16x32xf32, #tpu.memory_space<vmem>>, vector<16x32xf32>
    tpu.vector_store %arg8[%c0_276, %c0_277], %185 {strides = array<i32>} : memref<16x32xf32, #tpu.memory_space<vmem>>, vector<16x32xf32>,
    %c0_278 = arith.constant 0 : index
    %c0_279 = arith.constant 0 : index
    %187 = vector.load %arg8[%c0_278, %c0_279] : memref<16x32xf32, #tpu.memory_space<vmem>>, vector<4x32xf32>
    %c0_280 = arith.constant 0 : index
    %c1_281 = arith.constant 1 : index
    %c1_282 = arith.constant 1 : index
    %c0_283 = arith.constant 0 : index
    %188 = vector.load %arg7[%c0_280, %c1_281, %c1_282, %c0_283] : memref<1x6x6x32xf32, #tpu.memory_space<vmem>>, vector<1x1x4x32xf32>
    %189 = vector.shape_cast %188 : vector<1x1x4x32xf32> to vector<4x32xf32>
    %190 = vector.shape_cast %187 : vector<4x32xf32> to vector<1x1x4x32xf32>
    tpu.vector_store %arg7[%c0_280, %c1_281, %c1_282, %c0_283], %190 {strides = array<i32>} : memref<1x6x6x32xf32, #tpu.memory_space<vmem>>, vector<1x1x4x32xf32>,
    %c4_284 = arith.constant 4 : index
    %c0_285 = arith.constant 0 : index
    %191 = vector.load %arg8[%c4_284, %c0_285] : memref<16x32xf32, #tpu.memory_space<vmem>>, vector<4x32xf32>
    %c0_286 = arith.constant 0 : index
    %c2_287 = arith.constant 2 : index
    %c1_288 = arith.constant 1 : index
    %c0_289 = arith.constant 0 : index
    %192 = vector.load %arg7[%c0_286, %c2_287, %c1_288, %c0_289] : memref<1x6x6x32xf32, #tpu.memory_space<vmem>>, vector<1x1x4x32xf32>
    %193 = vector.shape_cast %192 : vector<1x1x4x32xf32> to vector<4x32xf32>
    %194 = vector.shape_cast %191 : vector<4x32xf32> to vector<1x1x4x32xf32>
    tpu.vector_store %arg7[%c0_286, %c2_287, %c1_288, %c0_289], %194 {strides = array<i32>} : memref<1x6x6x32xf32, #tpu.memory_space<vmem>>, vector<1x1x4x32xf32>,
    %c8_290 = arith.constant 8 : index
    %c0_291 = arith.constant 0 : index
    %195 = vector.load %arg8[%c8_290, %c0_291] : memref<16x32xf32, #tpu.memory_space<vmem>>, vector<4x32xf32>
    %c0_292 = arith.constant 0 : index
    %c3_293 = arith.constant 3 : index
    %c1_294 = arith.constant 1 : index
    %c0_295 = arith.constant 0 : index
    %196 = vector.load %arg7[%c0_292, %c3_293, %c1_294, %c0_295] : memref<1x6x6x32xf32, #tpu.memory_space<vmem>>, vector<1x1x4x32xf32>
    %197 = vector.shape_cast %196 : vector<1x1x4x32xf32> to vector<4x32xf32>
    %198 = vector.shape_cast %195 : vector<4x32xf32> to vector<1x1x4x32xf32>
    tpu.vector_store %arg7[%c0_292, %c3_293, %c1_294, %c0_295], %198 {strides = array<i32>} : memref<1x6x6x32xf32, #tpu.memory_space<vmem>>, vector<1x1x4x32xf32>,
    %c12_296 = arith.constant 12 : index
    %c0_297 = arith.constant 0 : index
    %199 = vector.load %arg8[%c12_296, %c0_297] : memref<16x32xf32, #tpu.memory_space<vmem>>, vector<4x32xf32>
    %c0_298 = arith.constant 0 : index
    %c4_299 = arith.constant 4 : index
    %c1_300 = arith.constant 1 : index
    %c0_301 = arith.constant 0 : index
    %200 = vector.load %arg7[%c0_298, %c4_299, %c1_300, %c0_301] : memref<1x6x6x32xf32, #tpu.memory_space<vmem>>, vector<1x1x4x32xf32>
    %201 = vector.shape_cast %200 : vector<1x1x4x32xf32> to vector<4x32xf32>
    %202 = vector.shape_cast %199 : vector<4x32xf32> to vector<1x1x4x32xf32>
    tpu.vector_store %arg7[%c0_298, %c4_299, %c1_300, %c0_301], %202 {strides = array<i32>} : memref<1x6x6x32xf32, #tpu.memory_space<vmem>>, vector<1x1x4x32xf32>,
    %c0_302 = arith.constant 0 : index
    %c1_303 = arith.constant 1 : index
    %c2_304 = arith.constant 2 : index
    %c0_305 = arith.constant 0 : index
    %203 = vector.load %arg7[%c0_302, %c1_303, %c2_304, %c0_305] : memref<1x6x6x32xf32, #tpu.memory_space<vmem>>, vector<1x1x1x32xf32>
    %204 = vector.shape_cast %203 : vector<1x1x1x32xf32> to vector<1x32xf32>
    %c0_306 = arith.constant 0 : index
    %c1_307 = arith.constant 1 : index
    %c0_308 = arith.constant 0 : index
    %c0_309 = arith.constant 0 : index
    %205 = vector.load %arg7[%c0_306, %c1_307, %c0_308, %c0_309] : memref<1x6x6x32xf32, #tpu.memory_space<vmem>>, vector<1x1x1x32xf32>
    %206 = vector.shape_cast %205 : vector<1x1x1x32xf32> to vector<1x32xf32>
    %207 = vector.shape_cast %204 : vector<1x32xf32> to vector<1x1x1x32xf32>
    tpu.vector_store %arg7[%c0_306, %c1_307, %c0_308, %c0_309], %207 {strides = array<i32>} : memref<1x6x6x32xf32, #tpu.memory_space<vmem>>, vector<1x1x1x32xf32>,
    %c0_310 = arith.constant 0 : index
    %c1_311 = arith.constant 1 : index
    %c3_312 = arith.constant 3 : index
    %c0_313 = arith.constant 0 : index
    %208 = vector.load %arg7[%c0_310, %c1_311, %c3_312, %c0_313] : memref<1x6x6x32xf32, #tpu.memory_space<vmem>>, vector<1x1x1x32xf32>
    %209 = vector.shape_cast %208 : vector<1x1x1x32xf32> to vector<1x32xf32>
    %c0_314 = arith.constant 0 : index
    %c1_315 = arith.constant 1 : index
    %c5_316 = arith.constant 5 : index
    %c0_317 = arith.constant 0 : index
    %210 = vector.load %arg7[%c0_314, %c1_315, %c5_316, %c0_317] : memref<1x6x6x32xf32, #tpu.memory_space<vmem>>, vector<1x1x1x32xf32>
    %211 = vector.shape_cast %210 : vector<1x1x1x32xf32> to vector<1x32xf32>
    %212 = vector.shape_cast %209 : vector<1x32xf32> to vector<1x1x1x32xf32>
    tpu.vector_store %arg7[%c0_314, %c1_315, %c5_316, %c0_317], %212 {strides = array<i32>} : memref<1x6x6x32xf32, #tpu.memory_space<vmem>>, vector<1x1x1x32xf32>,
    %c0_318 = arith.constant 0 : index
    %c2_319 = arith.constant 2 : index
    %c2_320 = arith.constant 2 : index
    %c0_321 = arith.constant 0 : index
    %213 = vector.load %arg7[%c0_318, %c2_319, %c2_320, %c0_321] : memref<1x6x6x32xf32, #tpu.memory_space<vmem>>, vector<1x1x1x32xf32>
    %214 = vector.shape_cast %213 : vector<1x1x1x32xf32> to vector<1x32xf32>
    %c0_322 = arith.constant 0 : index
    %c2_323 = arith.constant 2 : index
    %c0_324 = arith.constant 0 : index
    %c0_325 = arith.constant 0 : index
    %215 = vector.load %arg7[%c0_322, %c2_323, %c0_324, %c0_325] : memref<1x6x6x32xf32, #tpu.memory_space<vmem>>, vector<1x1x1x32xf32>
    %216 = vector.shape_cast %215 : vector<1x1x1x32xf32> to vector<1x32xf32>
    %217 = vector.shape_cast %214 : vector<1x32xf32> to vector<1x1x1x32xf32>
    tpu.vector_store %arg7[%c0_322, %c2_323, %c0_324, %c0_325], %217 {strides = array<i32>} : memref<1x6x6x32xf32, #tpu.memory_space<vmem>>, vector<1x1x1x32xf32>,
    %c0_326 = arith.constant 0 : index
    %c2_327 = arith.constant 2 : index
    %c3_328 = arith.constant 3 : index
    %c0_329 = arith.constant 0 : index
    %218 = vector.load %arg7[%c0_326, %c2_327, %c3_328, %c0_329] : memref<1x6x6x32xf32, #tpu.memory_space<vmem>>, vector<1x1x1x32xf32>
    %219 = vector.shape_cast %218 : vector<1x1x1x32xf32> to vector<1x32xf32>
    %c0_330 = arith.constant 0 : index
    %c2_331 = arith.constant 2 : index
    %c5_332 = arith.constant 5 : index
    %c0_333 = arith.constant 0 : index
    %220 = vector.load %arg7[%c0_330, %c2_331, %c5_332, %c0_333] : memref<1x6x6x32xf32, #tpu.memory_space<vmem>>, vector<1x1x1x32xf32>
    %221 = vector.shape_cast %220 : vector<1x1x1x32xf32> to vector<1x32xf32>
    %222 = vector.shape_cast %219 : vector<1x32xf32> to vector<1x1x1x32xf32>
    tpu.vector_store %arg7[%c0_330, %c2_331, %c5_332, %c0_333], %222 {strides = array<i32>} : memref<1x6x6x32xf32, #tpu.memory_space<vmem>>, vector<1x1x1x32xf32>,
    %c0_334 = arith.constant 0 : index
    %c3_335 = arith.constant 3 : index
    %c2_336 = arith.constant 2 : index
    %c0_337 = arith.constant 0 : index
    %223 = vector.load %arg7[%c0_334, %c3_335, %c2_336, %c0_337] : memref<1x6x6x32xf32, #tpu.memory_space<vmem>>, vector<1x1x1x32xf32>
    %224 = vector.shape_cast %223 : vector<1x1x1x32xf32> to vector<1x32xf32>
    %c0_338 = arith.constant 0 : index
    %c3_339 = arith.constant 3 : index
    %c0_340 = arith.constant 0 : index
    %c0_341 = arith.constant 0 : index
    %225 = vector.load %arg7[%c0_338, %c3_339, %c0_340, %c0_341] : memref<1x6x6x32xf32, #tpu.memory_space<vmem>>, vector<1x1x1x32xf32>
    %226 = vector.shape_cast %225 : vector<1x1x1x32xf32> to vector<1x32xf32>
    %227 = vector.shape_cast %224 : vector<1x32xf32> to vector<1x1x1x32xf32>
    tpu.vector_store %arg7[%c0_338, %c3_339, %c0_340, %c0_341], %227 {strides = array<i32>} : memref<1x6x6x32xf32, #tpu.memory_space<vmem>>, vector<1x1x1x32xf32>,
    %c0_342 = arith.constant 0 : index
    %c3_343 = arith.constant 3 : index
    %c3_344 = arith.constant 3 : index
    %c0_345 = arith.constant 0 : index
    %228 = vector.load %arg7[%c0_342, %c3_343, %c3_344, %c0_345] : memref<1x6x6x32xf32, #tpu.memory_space<vmem>>, vector<1x1x1x32xf32>
    %229 = vector.shape_cast %228 : vector<1x1x1x32xf32> to vector<1x32xf32>
    %c0_346 = arith.constant 0 : index
    %c3_347 = arith.constant 3 : index
    %c5_348 = arith.constant 5 : index
    %c0_349 = arith.constant 0 : index
    %230 = vector.load %arg7[%c0_346, %c3_347, %c5_348, %c0_349] : memref<1x6x6x32xf32, #tpu.memory_space<vmem>>, vector<1x1x1x32xf32>
    %231 = vector.shape_cast %230 : vector<1x1x1x32xf32> to vector<1x32xf32>
    %232 = vector.shape_cast %229 : vector<1x32xf32> to vector<1x1x1x32xf32>
    tpu.vector_store %arg7[%c0_346, %c3_347, %c5_348, %c0_349], %232 {strides = array<i32>} : memref<1x6x6x32xf32, #tpu.memory_space<vmem>>, vector<1x1x1x32xf32>,
    %c0_350 = arith.constant 0 : index
    %c4_351 = arith.constant 4 : index
    %c2_352 = arith.constant 2 : index
    %c0_353 = arith.constant 0 : index
    %233 = vector.load %arg7[%c0_350, %c4_351, %c2_352, %c0_353] : memref<1x6x6x32xf32, #tpu.memory_space<vmem>>, vector<1x1x1x32xf32>
    %234 = vector.shape_cast %233 : vector<1x1x1x32xf32> to vector<1x32xf32>
    %c0_354 = arith.constant 0 : index
    %c4_355 = arith.constant 4 : index
    %c0_356 = arith.constant 0 : index
    %c0_357 = arith.constant 0 : index
    %235 = vector.load %arg7[%c0_354, %c4_355, %c0_356, %c0_357] : memref<1x6x6x32xf32, #tpu.memory_space<vmem>>, vector<1x1x1x32xf32>
    %236 = vector.shape_cast %235 : vector<1x1x1x32xf32> to vector<1x32xf32>
    %237 = vector.shape_cast %234 : vector<1x32xf32> to vector<1x1x1x32xf32>
    tpu.vector_store %arg7[%c0_354, %c4_355, %c0_356, %c0_357], %237 {strides = array<i32>} : memref<1x6x6x32xf32, #tpu.memory_space<vmem>>, vector<1x1x1x32xf32>,
    %c0_358 = arith.constant 0 : index
    %c4_359 = arith.constant 4 : index
    %c3_360 = arith.constant 3 : index
    %c0_361 = arith.constant 0 : index
    %238 = vector.load %arg7[%c0_358, %c4_359, %c3_360, %c0_361] : memref<1x6x6x32xf32, #tpu.memory_space<vmem>>, vector<1x1x1x32xf32>
    %239 = vector.shape_cast %238 : vector<1x1x1x32xf32> to vector<1x32xf32>
    %c0_362 = arith.constant 0 : index
    %c4_363 = arith.constant 4 : index
    %c5_364 = arith.constant 5 : index
    %c0_365 = arith.constant 0 : index
    %240 = vector.load %arg7[%c0_362, %c4_363, %c5_364, %c0_365] : memref<1x6x6x32xf32, #tpu.memory_space<vmem>>, vector<1x1x1x32xf32>
    %241 = vector.shape_cast %240 : vector<1x1x1x32xf32> to vector<1x32xf32>
    %242 = vector.shape_cast %239 : vector<1x32xf32> to vector<1x1x1x32xf32>
    tpu.vector_store %arg7[%c0_362, %c4_363, %c5_364, %c0_365], %242 {strides = array<i32>} : memref<1x6x6x32xf32, #tpu.memory_space<vmem>>, vector<1x1x1x32xf32>,
    %c0_366 = arith.constant 0 : index
    %c2_367 = arith.constant 2 : index
    %c0_368 = arith.constant 0 : index
    %c0_369 = arith.constant 0 : index
    %243 = vector.load %arg7[%c0_366, %c2_367, %c0_368, %c0_369] : memref<1x6x6x32xf32, #tpu.memory_space<vmem>>, vector<1x1x6x32xf32>
    %244 = vector.shape_cast %243 : vector<1x1x6x32xf32> to vector<6x32xf32>
    %c0_370 = arith.constant 0 : index
    %c0_371 = arith.constant 0 : index
    %c0_372 = arith.constant 0 : index
    %c0_373 = arith.constant 0 : index
    %245 = vector.load %arg7[%c0_370, %c0_371, %c0_372, %c0_373] : memref<1x6x6x32xf32, #tpu.memory_space<vmem>>, vector<1x1x6x32xf32>
    %246 = vector.shape_cast %245 : vector<1x1x6x32xf32> to vector<6x32xf32>
    %247 = vector.shape_cast %244 : vector<6x32xf32> to vector<1x1x6x32xf32>
    tpu.vector_store %arg7[%c0_370, %c0_371, %c0_372, %c0_373], %247 {strides = array<i32>} : memref<1x6x6x32xf32, #tpu.memory_space<vmem>>, vector<1x1x6x32xf32>,
    %c0_374 = arith.constant 0 : index
    %c3_375 = arith.constant 3 : index
    %c0_376 = arith.constant 0 : index
    %c0_377 = arith.constant 0 : index
    %248 = vector.load %arg7[%c0_374, %c3_375, %c0_376, %c0_377] : memref<1x6x6x32xf32, #tpu.memory_space<vmem>>, vector<1x1x6x32xf32>
    %249 = vector.shape_cast %248 : vector<1x1x6x32xf32> to vector<6x32xf32>
    %c0_378 = arith.constant 0 : index
    %c5_379 = arith.constant 5 : index
    %c0_380 = arith.constant 0 : index
    %c0_381 = arith.constant 0 : index
    %250 = vector.load %arg7[%c0_378, %c5_379, %c0_380, %c0_381] : memref<1x6x6x32xf32, #tpu.memory_space<vmem>>, vector<1x1x6x32xf32>
    %251 = vector.shape_cast %250 : vector<1x1x6x32xf32> to vector<6x32xf32>
    %252 = vector.shape_cast %249 : vector<6x32xf32> to vector<1x1x6x32xf32>
    tpu.vector_store %arg7[%c0_378, %c5_379, %c0_380, %c0_381], %252 {strides = array<i32>} : memref<1x6x6x32xf32, #tpu.memory_space<vmem>>, vector<1x1x6x32xf32>,
    %cst_382 = arith.constant 0.000000e+00 : f32
    %253 = vector.broadcast %cst_382 : f32 to vector<16x32xf32>
    %c0_383 = arith.constant 0 : index
    %c0_384 = arith.constant 0 : index
    %c0_385 = arith.constant 0 : index
    %c0_386 = arith.constant 0 : index
    %254 = vector.load %arg7[%c0_383, %c0_384, %c0_385, %c0_386] : memref<1x6x6x32xf32, #tpu.memory_space<vmem>>, vector<1x1x4x32xf32>
    %255 = vector.shape_cast %254 : vector<1x1x4x32xf32> to vector<4x32xf32>
    %c0_387 = arith.constant 0 : index
    %c0_388 = arith.constant 0 : index
    %256 = vector.load %arg8[%c0_387, %c0_388] : memref<16x32xf32, #tpu.memory_space<vmem>>, vector<4x32xf32>
    tpu.vector_store %arg8[%c0_387, %c0_388], %255 {strides = array<i32>} : memref<16x32xf32, #tpu.memory_space<vmem>>, vector<4x32xf32>,
    %c0_389 = arith.constant 0 : index
    %c1_390 = arith.constant 1 : index
    %c0_391 = arith.constant 0 : index
    %c0_392 = arith.constant 0 : index
    %257 = vector.load %arg7[%c0_389, %c1_390, %c0_391, %c0_392] : memref<1x6x6x32xf32, #tpu.memory_space<vmem>>, vector<1x1x4x32xf32>
    %258 = vector.shape_cast %257 : vector<1x1x4x32xf32> to vector<4x32xf32>
    %c4_393 = arith.constant 4 : index
    %c0_394 = arith.constant 0 : index
    %259 = vector.load %arg8[%c4_393, %c0_394] : memref<16x32xf32, #tpu.memory_space<vmem>>, vector<4x32xf32>
    tpu.vector_store %arg8[%c4_393, %c0_394], %258 {strides = array<i32>} : memref<16x32xf32, #tpu.memory_space<vmem>>, vector<4x32xf32>,
    %c0_395 = arith.constant 0 : index
    %c2_396 = arith.constant 2 : index
    %c0_397 = arith.constant 0 : index
    %c0_398 = arith.constant 0 : index
    %260 = vector.load %arg7[%c0_395, %c2_396, %c0_397, %c0_398] : memref<1x6x6x32xf32, #tpu.memory_space<vmem>>, vector<1x1x4x32xf32>
    %261 = vector.shape_cast %260 : vector<1x1x4x32xf32> to vector<4x32xf32>
    %c8_399 = arith.constant 8 : index
    %c0_400 = arith.constant 0 : index
    %262 = vector.load %arg8[%c8_399, %c0_400] : memref<16x32xf32, #tpu.memory_space<vmem>>, vector<4x32xf32>
    tpu.vector_store %arg8[%c8_399, %c0_400], %261 {strides = array<i32>} : memref<16x32xf32, #tpu.memory_space<vmem>>, vector<4x32xf32>,
    %c0_401 = arith.constant 0 : index
    %c3_402 = arith.constant 3 : index
    %c0_403 = arith.constant 0 : index
    %c0_404 = arith.constant 0 : index
    %263 = vector.load %arg7[%c0_401, %c3_402, %c0_403, %c0_404] : memref<1x6x6x32xf32, #tpu.memory_space<vmem>>, vector<1x1x4x32xf32>
    %264 = vector.shape_cast %263 : vector<1x1x4x32xf32> to vector<4x32xf32>
    %c12_405 = arith.constant 12 : index
    %c0_406 = arith.constant 0 : index
    %265 = vector.load %arg8[%c12_405, %c0_406] : memref<16x32xf32, #tpu.memory_space<vmem>>, vector<4x32xf32>
    tpu.vector_store %arg8[%c12_405, %c0_406], %264 {strides = array<i32>} : memref<16x32xf32, #tpu.memory_space<vmem>>, vector<4x32xf32>,
    %c0_407 = arith.constant 0 : index
    %c0_408 = arith.constant 0 : index
    %c0_409 = arith.constant 0 : index
    %c0_410 = arith.constant 0 : index
    %266 = vector.load %arg4[%c0_407, %c0_408, %c0_409, %c0_410] : memref<1x9x32x32xbf16, #tpu.memory_space<vmem>>, vector<1x1x32x32xbf16>
    %267 = vector.shape_cast %266 : vector<1x1x32x32xbf16> to vector<32x32xbf16>
    %c0_411 = arith.constant 0 : index
    %c0_412 = arith.constant 0 : index
    %268 = vector.load %arg8[%c0_411, %c0_412] : memref<16x32xf32, #tpu.memory_space<vmem>>, vector<16x32xf32>
    %269 = arith.truncf %268 : vector<16x32xf32> to vector<16x32xbf16>
    %cst_413 = arith.constant dense<0.000000e+00> : vector<16x32xf32>
    %270 = tpu.matmul %269, %267, %cst_413 {dimension_numbers = #tpu.dot_dimension_numbers<[1], [0], [0], [1], [0, 0, 1, 1], [], []>} : vector<16x32xbf16>, vector<32x32xbf16>, vector<16x32xf32> -> vector<16x32xf32>
    %271 = arith.addf %253, %270 : vector<16x32xf32>
    %c0_414 = arith.constant 0 : index
    %c0_415 = arith.constant 0 : index
    %c1_416 = arith.constant 1 : index
    %c0_417 = arith.constant 0 : index
    %272 = vector.load %arg7[%c0_414, %c0_415, %c1_416, %c0_417] : memref<1x6x6x32xf32, #tpu.memory_space<vmem>>, vector<1x1x4x32xf32>
    %273 = vector.shape_cast %272 : vector<1x1x4x32xf32> to vector<4x32xf32>
    %c0_418 = arith.constant 0 : index
    %c0_419 = arith.constant 0 : index
    %274 = vector.load %arg8[%c0_418, %c0_419] : memref<16x32xf32, #tpu.memory_space<vmem>>, vector<4x32xf32>
    tpu.vector_store %arg8[%c0_418, %c0_419], %273 {strides = array<i32>} : memref<16x32xf32, #tpu.memory_space<vmem>>, vector<4x32xf32>,
    %c0_420 = arith.constant 0 : index
    %c1_421 = arith.constant 1 : index
    %c1_422 = arith.constant 1 : index
    %c0_423 = arith.constant 0 : index
    %275 = vector.load %arg7[%c0_420, %c1_421, %c1_422, %c0_423] : memref<1x6x6x32xf32, #tpu.memory_space<vmem>>, vector<1x1x4x32xf32>
    %276 = vector.shape_cast %275 : vector<1x1x4x32xf32> to vector<4x32xf32>
    %c4_424 = arith.constant 4 : index
    %c0_425 = arith.constant 0 : index
    %277 = vector.load %arg8[%c4_424, %c0_425] : memref<16x32xf32, #tpu.memory_space<vmem>>, vector<4x32xf32>
    tpu.vector_store %arg8[%c4_424, %c0_425], %276 {strides = array<i32>} : memref<16x32xf32, #tpu.memory_space<vmem>>, vector<4x32xf32>,
    %c0_426 = arith.constant 0 : index
    %c2_427 = arith.constant 2 : index
    %c1_428 = arith.constant 1 : index
    %c0_429 = arith.constant 0 : index
    %278 = vector.load %arg7[%c0_426, %c2_427, %c1_428, %c0_429] : memref<1x6x6x32xf32, #tpu.memory_space<vmem>>, vector<1x1x4x32xf32>
    %279 = vector.shape_cast %278 : vector<1x1x4x32xf32> to vector<4x32xf32>
    %c8_430 = arith.constant 8 : index
    %c0_431 = arith.constant 0 : index
    %280 = vector.load %arg8[%c8_430, %c0_431] : memref<16x32xf32, #tpu.memory_space<vmem>>, vector<4x32xf32>
    tpu.vector_store %arg8[%c8_430, %c0_431], %279 {strides = array<i32>} : memref<16x32xf32, #tpu.memory_space<vmem>>, vector<4x32xf32>,
    %c0_432 = arith.constant 0 : index
    %c3_433 = arith.constant 3 : index
    %c1_434 = arith.constant 1 : index
    %c0_435 = arith.constant 0 : index
    %281 = vector.load %arg7[%c0_432, %c3_433, %c1_434, %c0_435] : memref<1x6x6x32xf32, #tpu.memory_space<vmem>>, vector<1x1x4x32xf32>
    %282 = vector.shape_cast %281 : vector<1x1x4x32xf32> to vector<4x32xf32>
    %c12_436 = arith.constant 12 : index
    %c0_437 = arith.constant 0 : index
    %283 = vector.load %arg8[%c12_436, %c0_437] : memref<16x32xf32, #tpu.memory_space<vmem>>, vector<4x32xf32>
    tpu.vector_store %arg8[%c12_436, %c0_437], %282 {strides = array<i32>} : memref<16x32xf32, #tpu.memory_space<vmem>>, vector<4x32xf32>,
    %c0_438 = arith.constant 0 : index
    %c1_439 = arith.constant 1 : index
    %c0_440 = arith.constant 0 : index
    %c0_441 = arith.constant 0 : index
    %284 = vector.load %arg4[%c0_438, %c1_439, %c0_440, %c0_441] : memref<1x9x32x32xbf16, #tpu.memory_space<vmem>>, vector<1x1x32x32xbf16>
    %285 = vector.shape_cast %284 : vector<1x1x32x32xbf16> to vector<32x32xbf16>
    %c0_442 = arith.constant 0 : index
    %c0_443 = arith.constant 0 : index
    %286 = vector.load %arg8[%c0_442, %c0_443] : memref<16x32xf32, #tpu.memory_space<vmem>>, vector<16x32xf32>
    %287 = arith.truncf %286 : vector<16x32xf32> to vector<16x32xbf16>
    %cst_444 = arith.constant dense<0.000000e+00> : vector<16x32xf32>
    %288 = tpu.matmul %287, %285, %cst_444 {dimension_numbers = #tpu.dot_dimension_numbers<[1], [0], [0], [1], [0, 0, 1, 1], [], []>} : vector<16x32xbf16>, vector<32x32xbf16>, vector<16x32xf32> -> vector<16x32xf32>
    %289 = arith.addf %271, %288 : vector<16x32xf32>
    %c0_445 = arith.constant 0 : index
    %c0_446 = arith.constant 0 : index
    %c2_447 = arith.constant 2 : index
    %c0_448 = arith.constant 0 : index
    %290 = vector.load %arg7[%c0_445, %c0_446, %c2_447, %c0_448] : memref<1x6x6x32xf32, #tpu.memory_space<vmem>>, vector<1x1x4x32xf32>
    %291 = vector.shape_cast %290 : vector<1x1x4x32xf32> to vector<4x32xf32>
    %c0_449 = arith.constant 0 : index
    %c0_450 = arith.constant 0 : index
    %292 = vector.load %arg8[%c0_449, %c0_450] : memref<16x32xf32, #tpu.memory_space<vmem>>, vector<4x32xf32>
    tpu.vector_store %arg8[%c0_449, %c0_450], %291 {strides = array<i32>} : memref<16x32xf32, #tpu.memory_space<vmem>>, vector<4x32xf32>,
    %c0_451 = arith.constant 0 : index
    %c1_452 = arith.constant 1 : index
    %c2_453 = arith.constant 2 : index
    %c0_454 = arith.constant 0 : index
    %293 = vector.load %arg7[%c0_451, %c1_452, %c2_453, %c0_454] : memref<1x6x6x32xf32, #tpu.memory_space<vmem>>, vector<1x1x4x32xf32>
    %294 = vector.shape_cast %293 : vector<1x1x4x32xf32> to vector<4x32xf32>
    %c4_455 = arith.constant 4 : index
    %c0_456 = arith.constant 0 : index
    %295 = vector.load %arg8[%c4_455, %c0_456] : memref<16x32xf32, #tpu.memory_space<vmem>>, vector<4x32xf32>
    tpu.vector_store %arg8[%c4_455, %c0_456], %294 {strides = array<i32>} : memref<16x32xf32, #tpu.memory_space<vmem>>, vector<4x32xf32>,
    %c0_457 = arith.constant 0 : index
    %c2_458 = arith.constant 2 : index
    %c2_459 = arith.constant 2 : index
    %c0_460 = arith.constant 0 : index
    %296 = vector.load %arg7[%c0_457, %c2_458, %c2_459, %c0_460] : memref<1x6x6x32xf32, #tpu.memory_space<vmem>>, vector<1x1x4x32xf32>
    %297 = vector.shape_cast %296 : vector<1x1x4x32xf32> to vector<4x32xf32>
    %c8_461 = arith.constant 8 : index
    %c0_462 = arith.constant 0 : index
    %298 = vector.load %arg8[%c8_461, %c0_462] : memref<16x32xf32, #tpu.memory_space<vmem>>, vector<4x32xf32>
    tpu.vector_store %arg8[%c8_461, %c0_462], %297 {strides = array<i32>} : memref<16x32xf32, #tpu.memory_space<vmem>>, vector<4x32xf32>,
    %c0_463 = arith.constant 0 : index
    %c3_464 = arith.constant 3 : index
    %c2_465 = arith.constant 2 : index
    %c0_466 = arith.constant 0 : index
    %299 = vector.load %arg7[%c0_463, %c3_464, %c2_465, %c0_466] : memref<1x6x6x32xf32, #tpu.memory_space<vmem>>, vector<1x1x4x32xf32>
    %300 = vector.shape_cast %299 : vector<1x1x4x32xf32> to vector<4x32xf32>
    %c12_467 = arith.constant 12 : index
    %c0_468 = arith.constant 0 : index
    %301 = vector.load %arg8[%c12_467, %c0_468] : memref<16x32xf32, #tpu.memory_space<vmem>>, vector<4x32xf32>
    tpu.vector_store %arg8[%c12_467, %c0_468], %300 {strides = array<i32>} : memref<16x32xf32, #tpu.memory_space<vmem>>, vector<4x32xf32>,
    %c0_469 = arith.constant 0 : index
    %c2_470 = arith.constant 2 : index
    %c0_471 = arith.constant 0 : index
    %c0_472 = arith.constant 0 : index
    %302 = vector.load %arg4[%c0_469, %c2_470, %c0_471, %c0_472] : memref<1x9x32x32xbf16, #tpu.memory_space<vmem>>, vector<1x1x32x32xbf16>
    %303 = vector.shape_cast %302 : vector<1x1x32x32xbf16> to vector<32x32xbf16>
    %c0_473 = arith.constant 0 : index
    %c0_474 = arith.constant 0 : index
    %304 = vector.load %arg8[%c0_473, %c0_474] : memref<16x32xf32, #tpu.memory_space<vmem>>, vector<16x32xf32>
    %305 = arith.truncf %304 : vector<16x32xf32> to vector<16x32xbf16>
    %cst_475 = arith.constant dense<0.000000e+00> : vector<16x32xf32>
    %306 = tpu.matmul %305, %303, %cst_475 {dimension_numbers = #tpu.dot_dimension_numbers<[1], [0], [0], [1], [0, 0, 1, 1], [], []>} : vector<16x32xbf16>, vector<32x32xbf16>, vector<16x32xf32> -> vector<16x32xf32>
    %307 = arith.addf %289, %306 : vector<16x32xf32>
    %c0_476 = arith.constant 0 : index
    %c1_477 = arith.constant 1 : index
    %c0_478 = arith.constant 0 : index
    %c0_479 = arith.constant 0 : index
    %308 = vector.load %arg7[%c0_476, %c1_477, %c0_478, %c0_479] : memref<1x6x6x32xf32, #tpu.memory_space<vmem>>, vector<1x1x4x32xf32>
    %309 = vector.shape_cast %308 : vector<1x1x4x32xf32> to vector<4x32xf32>
    %c0_480 = arith.constant 0 : index
    %c0_481 = arith.constant 0 : index
    %310 = vector.load %arg8[%c0_480, %c0_481] : memref<16x32xf32, #tpu.memory_space<vmem>>, vector<4x32xf32>
    tpu.vector_store %arg8[%c0_480, %c0_481], %309 {strides = array<i32>} : memref<16x32xf32, #tpu.memory_space<vmem>>, vector<4x32xf32>,
    %c0_482 = arith.constant 0 : index
    %c2_483 = arith.constant 2 : index
    %c0_484 = arith.constant 0 : index
    %c0_485 = arith.constant 0 : index
    %311 = vector.load %arg7[%c0_482, %c2_483, %c0_484, %c0_485] : memref<1x6x6x32xf32, #tpu.memory_space<vmem>>, vector<1x1x4x32xf32>
    %312 = vector.shape_cast %311 : vector<1x1x4x32xf32> to vector<4x32xf32>
    %c4_486 = arith.constant 4 : index
    %c0_487 = arith.constant 0 : index
    %313 = vector.load %arg8[%c4_486, %c0_487] : memref<16x32xf32, #tpu.memory_space<vmem>>, vector<4x32xf32>
    tpu.vector_store %arg8[%c4_486, %c0_487], %312 {strides = array<i32>} : memref<16x32xf32, #tpu.memory_space<vmem>>, vector<4x32xf32>,
    %c0_488 = arith.constant 0 : index
    %c3_489 = arith.constant 3 : index
    %c0_490 = arith.constant 0 : index
    %c0_491 = arith.constant 0 : index
    %314 = vector.load %arg7[%c0_488, %c3_489, %c0_490, %c0_491] : memref<1x6x6x32xf32, #tpu.memory_space<vmem>>, vector<1x1x4x32xf32>
    %315 = vector.shape_cast %314 : vector<1x1x4x32xf32> to vector<4x32xf32>
    %c8_492 = arith.constant 8 : index
    %c0_493 = arith.constant 0 : index
    %316 = vector.load %arg8[%c8_492, %c0_493] : memref<16x32xf32, #tpu.memory_space<vmem>>, vector<4x32xf32>
    tpu.vector_store %arg8[%c8_492, %c0_493], %315 {strides = array<i32>} : memref<16x32xf32, #tpu.memory_space<vmem>>, vector<4x32xf32>,
    %c0_494 = arith.constant 0 : index
    %c4_495 = arith.constant 4 : index
    %c0_496 = arith.constant 0 : index
    %c0_497 = arith.constant 0 : index
    %317 = vector.load %arg7[%c0_494, %c4_495, %c0_496, %c0_497] : memref<1x6x6x32xf32, #tpu.memory_space<vmem>>, vector<1x1x4x32xf32>
    %318 = vector.shape_cast %317 : vector<1x1x4x32xf32> to vector<4x32xf32>
    %c12_498 = arith.constant 12 : index
    %c0_499 = arith.constant 0 : index
    %319 = vector.load %arg8[%c12_498, %c0_499] : memref<16x32xf32, #tpu.memory_space<vmem>>, vector<4x32xf32>
    tpu.vector_store %arg8[%c12_498, %c0_499], %318 {strides = array<i32>} : memref<16x32xf32, #tpu.memory_space<vmem>>, vector<4x32xf32>,
    %c0_500 = arith.constant 0 : index
    %c3_501 = arith.constant 3 : index
    %c0_502 = arith.constant 0 : index
    %c0_503 = arith.constant 0 : index
    %320 = vector.load %arg4[%c0_500, %c3_501, %c0_502, %c0_503] : memref<1x9x32x32xbf16, #tpu.memory_space<vmem>>, vector<1x1x32x32xbf16>
    %321 = vector.shape_cast %320 : vector<1x1x32x32xbf16> to vector<32x32xbf16>
    %c0_504 = arith.constant 0 : index
    %c0_505 = arith.constant 0 : index
    %322 = vector.load %arg8[%c0_504, %c0_505] : memref<16x32xf32, #tpu.memory_space<vmem>>, vector<16x32xf32>
    %323 = arith.truncf %322 : vector<16x32xf32> to vector<16x32xbf16>
    %cst_506 = arith.constant dense<0.000000e+00> : vector<16x32xf32>
    %324 = tpu.matmul %323, %321, %cst_506 {dimension_numbers = #tpu.dot_dimension_numbers<[1], [0], [0], [1], [0, 0, 1, 1], [], []>} : vector<16x32xbf16>, vector<32x32xbf16>, vector<16x32xf32> -> vector<16x32xf32>
    %325 = arith.addf %307, %324 : vector<16x32xf32>
    %c0_507 = arith.constant 0 : index
    %c1_508 = arith.constant 1 : index
    %c1_509 = arith.constant 1 : index
    %c0_510 = arith.constant 0 : index
    %326 = vector.load %arg7[%c0_507, %c1_508, %c1_509, %c0_510] : memref<1x6x6x32xf32, #tpu.memory_space<vmem>>, vector<1x1x4x32xf32>
    %327 = vector.shape_cast %326 : vector<1x1x4x32xf32> to vector<4x32xf32>
    %c0_511 = arith.constant 0 : index
    %c0_512 = arith.constant 0 : index
    %328 = vector.load %arg8[%c0_511, %c0_512] : memref<16x32xf32, #tpu.memory_space<vmem>>, vector<4x32xf32>
    tpu.vector_store %arg8[%c0_511, %c0_512], %327 {strides = array<i32>} : memref<16x32xf32, #tpu.memory_space<vmem>>, vector<4x32xf32>,
    %c0_513 = arith.constant 0 : index
    %c2_514 = arith.constant 2 : index
    %c1_515 = arith.constant 1 : index
    %c0_516 = arith.constant 0 : index
    %329 = vector.load %arg7[%c0_513, %c2_514, %c1_515, %c0_516] : memref<1x6x6x32xf32, #tpu.memory_space<vmem>>, vector<1x1x4x32xf32>
    %330 = vector.shape_cast %329 : vector<1x1x4x32xf32> to vector<4x32xf32>
    %c4_517 = arith.constant 4 : index
    %c0_518 = arith.constant 0 : index
    %331 = vector.load %arg8[%c4_517, %c0_518] : memref<16x32xf32, #tpu.memory_space<vmem>>, vector<4x32xf32>
    tpu.vector_store %arg8[%c4_517, %c0_518], %330 {strides = array<i32>} : memref<16x32xf32, #tpu.memory_space<vmem>>, vector<4x32xf32>,
    %c0_519 = arith.constant 0 : index
    %c3_520 = arith.constant 3 : index
    %c1_521 = arith.constant 1 : index
    %c0_522 = arith.constant 0 : index
    %332 = vector.load %arg7[%c0_519, %c3_520, %c1_521, %c0_522] : memref<1x6x6x32xf32, #tpu.memory_space<vmem>>, vector<1x1x4x32xf32>
    %333 = vector.shape_cast %332 : vector<1x1x4x32xf32> to vector<4x32xf32>
    %c8_523 = arith.constant 8 : index
    %c0_524 = arith.constant 0 : index
    %334 = vector.load %arg8[%c8_523, %c0_524] : memref<16x32xf32, #tpu.memory_space<vmem>>, vector<4x32xf32>
    tpu.vector_store %arg8[%c8_523, %c0_524], %333 {strides = array<i32>} : memref<16x32xf32, #tpu.memory_space<vmem>>, vector<4x32xf32>,
    %c0_525 = arith.constant 0 : index
    %c4_526 = arith.constant 4 : index
    %c1_527 = arith.constant 1 : index
    %c0_528 = arith.constant 0 : index
    %335 = vector.load %arg7[%c0_525, %c4_526, %c1_527, %c0_528] : memref<1x6x6x32xf32, #tpu.memory_space<vmem>>, vector<1x1x4x32xf32>
    %336 = vector.shape_cast %335 : vector<1x1x4x32xf32> to vector<4x32xf32>
    %c12_529 = arith.constant 12 : index
    %c0_530 = arith.constant 0 : index
    %337 = vector.load %arg8[%c12_529, %c0_530] : memref<16x32xf32, #tpu.memory_space<vmem>>, vector<4x32xf32>
    tpu.vector_store %arg8[%c12_529, %c0_530], %336 {strides = array<i32>} : memref<16x32xf32, #tpu.memory_space<vmem>>, vector<4x32xf32>,
    %c0_531 = arith.constant 0 : index
    %c4_532 = arith.constant 4 : index
    %c0_533 = arith.constant 0 : index
    %c0_534 = arith.constant 0 : index
    %338 = vector.load %arg4[%c0_531, %c4_532, %c0_533, %c0_534] : memref<1x9x32x32xbf16, #tpu.memory_space<vmem>>, vector<1x1x32x32xbf16>
    %339 = vector.shape_cast %338 : vector<1x1x32x32xbf16> to vector<32x32xbf16>
    %c0_535 = arith.constant 0 : index
    %c0_536 = arith.constant 0 : index
    %340 = vector.load %arg8[%c0_535, %c0_536] : memref<16x32xf32, #tpu.memory_space<vmem>>, vector<16x32xf32>
    %341 = arith.truncf %340 : vector<16x32xf32> to vector<16x32xbf16>
    %cst_537 = arith.constant dense<0.000000e+00> : vector<16x32xf32>
    %342 = tpu.matmul %341, %339, %cst_537 {dimension_numbers = #tpu.dot_dimension_numbers<[1], [0], [0], [1], [0, 0, 1, 1], [], []>} : vector<16x32xbf16>, vector<32x32xbf16>, vector<16x32xf32> -> vector<16x32xf32>
    %343 = arith.addf %325, %342 : vector<16x32xf32>
    %c0_538 = arith.constant 0 : index
    %c1_539 = arith.constant 1 : index
    %c2_540 = arith.constant 2 : index
    %c0_541 = arith.constant 0 : index
    %344 = vector.load %arg7[%c0_538, %c1_539, %c2_540, %c0_541] : memref<1x6x6x32xf32, #tpu.memory_space<vmem>>, vector<1x1x4x32xf32>
    %345 = vector.shape_cast %344 : vector<1x1x4x32xf32> to vector<4x32xf32>
    %c0_542 = arith.constant 0 : index
    %c0_543 = arith.constant 0 : index
    %346 = vector.load %arg8[%c0_542, %c0_543] : memref<16x32xf32, #tpu.memory_space<vmem>>, vector<4x32xf32>
    tpu.vector_store %arg8[%c0_542, %c0_543], %345 {strides = array<i32>} : memref<16x32xf32, #tpu.memory_space<vmem>>, vector<4x32xf32>,
    %c0_544 = arith.constant 0 : index
    %c2_545 = arith.constant 2 : index
    %c2_546 = arith.constant 2 : index
    %c0_547 = arith.constant 0 : index
    %347 = vector.load %arg7[%c0_544, %c2_545, %c2_546, %c0_547] : memref<1x6x6x32xf32, #tpu.memory_space<vmem>>, vector<1x1x4x32xf32>
    %348 = vector.shape_cast %347 : vector<1x1x4x32xf32> to vector<4x32xf32>
    %c4_548 = arith.constant 4 : index
    %c0_549 = arith.constant 0 : index
    %349 = vector.load %arg8[%c4_548, %c0_549] : memref<16x32xf32, #tpu.memory_space<vmem>>, vector<4x32xf32>
    tpu.vector_store %arg8[%c4_548, %c0_549], %348 {strides = array<i32>} : memref<16x32xf32, #tpu.memory_space<vmem>>, vector<4x32xf32>,
    %c0_550 = arith.constant 0 : index
    %c3_551 = arith.constant 3 : index
    %c2_552 = arith.constant 2 : index
    %c0_553 = arith.constant 0 : index
    %350 = vector.load %arg7[%c0_550, %c3_551, %c2_552, %c0_553] : memref<1x6x6x32xf32, #tpu.memory_space<vmem>>, vector<1x1x4x32xf32>
    %351 = vector.shape_cast %350 : vector<1x1x4x32xf32> to vector<4x32xf32>
    %c8_554 = arith.constant 8 : index
    %c0_555 = arith.constant 0 : index
    %352 = vector.load %arg8[%c8_554, %c0_555] : memref<16x32xf32, #tpu.memory_space<vmem>>, vector<4x32xf32>
    tpu.vector_store %arg8[%c8_554, %c0_555], %351 {strides = array<i32>} : memref<16x32xf32, #tpu.memory_space<vmem>>, vector<4x32xf32>,
    %c0_556 = arith.constant 0 : index
    %c4_557 = arith.constant 4 : index
    %c2_558 = arith.constant 2 : index
    %c0_559 = arith.constant 0 : index
    %353 = vector.load %arg7[%c0_556, %c4_557, %c2_558, %c0_559] : memref<1x6x6x32xf32, #tpu.memory_space<vmem>>, vector<1x1x4x32xf32>
    %354 = vector.shape_cast %353 : vector<1x1x4x32xf32> to vector<4x32xf32>
    %c12_560 = arith.constant 12 : index
    %c0_561 = arith.constant 0 : index
    %355 = vector.load %arg8[%c12_560, %c0_561] : memref<16x32xf32, #tpu.memory_space<vmem>>, vector<4x32xf32>
    tpu.vector_store %arg8[%c12_560, %c0_561], %354 {strides = array<i32>} : memref<16x32xf32, #tpu.memory_space<vmem>>, vector<4x32xf32>,
    %c0_562 = arith.constant 0 : index
    %c5_563 = arith.constant 5 : index
    %c0_564 = arith.constant 0 : index
    %c0_565 = arith.constant 0 : index
    %356 = vector.load %arg4[%c0_562, %c5_563, %c0_564, %c0_565] : memref<1x9x32x32xbf16, #tpu.memory_space<vmem>>, vector<1x1x32x32xbf16>
    %357 = vector.shape_cast %356 : vector<1x1x32x32xbf16> to vector<32x32xbf16>
    %c0_566 = arith.constant 0 : index
    %c0_567 = arith.constant 0 : index
    %358 = vector.load %arg8[%c0_566, %c0_567] : memref<16x32xf32, #tpu.memory_space<vmem>>, vector<16x32xf32>
    %359 = arith.truncf %358 : vector<16x32xf32> to vector<16x32xbf16>
    %cst_568 = arith.constant dense<0.000000e+00> : vector<16x32xf32>
    %360 = tpu.matmul %359, %357, %cst_568 {dimension_numbers = #tpu.dot_dimension_numbers<[1], [0], [0], [1], [0, 0, 1, 1], [], []>} : vector<16x32xbf16>, vector<32x32xbf16>, vector<16x32xf32> -> vector<16x32xf32>
    %361 = arith.addf %343, %360 : vector<16x32xf32>
    %c0_569 = arith.constant 0 : index
    %c2_570 = arith.constant 2 : index
    %c0_571 = arith.constant 0 : index
    %c0_572 = arith.constant 0 : index
    %362 = vector.load %arg7[%c0_569, %c2_570, %c0_571, %c0_572] : memref<1x6x6x32xf32, #tpu.memory_space<vmem>>, vector<1x1x4x32xf32>
    %363 = vector.shape_cast %362 : vector<1x1x4x32xf32> to vector<4x32xf32>
    %c0_573 = arith.constant 0 : index
    %c0_574 = arith.constant 0 : index
    %364 = vector.load %arg8[%c0_573, %c0_574] : memref<16x32xf32, #tpu.memory_space<vmem>>, vector<4x32xf32>
    tpu.vector_store %arg8[%c0_573, %c0_574], %363 {strides = array<i32>} : memref<16x32xf32, #tpu.memory_space<vmem>>, vector<4x32xf32>,
    %c0_575 = arith.constant 0 : index
    %c3_576 = arith.constant 3 : index
    %c0_577 = arith.constant 0 : index
    %c0_578 = arith.constant 0 : index
    %365 = vector.load %arg7[%c0_575, %c3_576, %c0_577, %c0_578] : memref<1x6x6x32xf32, #tpu.memory_space<vmem>>, vector<1x1x4x32xf32>
    %366 = vector.shape_cast %365 : vector<1x1x4x32xf32> to vector<4x32xf32>
    %c4_579 = arith.constant 4 : index
    %c0_580 = arith.constant 0 : index
    %367 = vector.load %arg8[%c4_579, %c0_580] : memref<16x32xf32, #tpu.memory_space<vmem>>, vector<4x32xf32>
    tpu.vector_store %arg8[%c4_579, %c0_580], %366 {strides = array<i32>} : memref<16x32xf32, #tpu.memory_space<vmem>>, vector<4x32xf32>,
    %c0_581 = arith.constant 0 : index
    %c4_582 = arith.constant 4 : index
    %c0_583 = arith.constant 0 : index
    %c0_584 = arith.constant 0 : index
    %368 = vector.load %arg7[%c0_581, %c4_582, %c0_583, %c0_584] : memref<1x6x6x32xf32, #tpu.memory_space<vmem>>, vector<1x1x4x32xf32>
    %369 = vector.shape_cast %368 : vector<1x1x4x32xf32> to vector<4x32xf32>
    %c8_585 = arith.constant 8 : index
    %c0_586 = arith.constant 0 : index
    %370 = vector.load %arg8[%c8_585, %c0_586] : memref<16x32xf32, #tpu.memory_space<vmem>>, vector<4x32xf32>
    tpu.vector_store %arg8[%c8_585, %c0_586], %369 {strides = array<i32>} : memref<16x32xf32, #tpu.memory_space<vmem>>, vector<4x32xf32>,
    %c0_587 = arith.constant 0 : index
    %c5_588 = arith.constant 5 : index
    %c0_589 = arith.constant 0 : index
    %c0_590 = arith.constant 0 : index
    %371 = vector.load %arg7[%c0_587, %c5_588, %c0_589, %c0_590] : memref<1x6x6x32xf32, #tpu.memory_space<vmem>>, vector<1x1x4x32xf32>
    %372 = vector.shape_cast %371 : vector<1x1x4x32xf32> to vector<4x32xf32>
    %c12_591 = arith.constant 12 : index
    %c0_592 = arith.constant 0 : index
    %373 = vector.load %arg8[%c12_591, %c0_592] : memref<16x32xf32, #tpu.memory_space<vmem>>, vector<4x32xf32>
    tpu.vector_store %arg8[%c12_591, %c0_592], %372 {strides = array<i32>} : memref<16x32xf32, #tpu.memory_space<vmem>>, vector<4x32xf32>,
    %c0_593 = arith.constant 0 : index
    %c6_594 = arith.constant 6 : index
    %c0_595 = arith.constant 0 : index
    %c0_596 = arith.constant 0 : index
    %374 = vector.load %arg4[%c0_593, %c6_594, %c0_595, %c0_596] : memref<1x9x32x32xbf16, #tpu.memory_space<vmem>>, vector<1x1x32x32xbf16>
    %375 = vector.shape_cast %374 : vector<1x1x32x32xbf16> to vector<32x32xbf16>
    %c0_597 = arith.constant 0 : index
    %c0_598 = arith.constant 0 : index
    %376 = vector.load %arg8[%c0_597, %c0_598] : memref<16x32xf32, #tpu.memory_space<vmem>>, vector<16x32xf32>
    %377 = arith.truncf %376 : vector<16x32xf32> to vector<16x32xbf16>
    %cst_599 = arith.constant dense<0.000000e+00> : vector<16x32xf32>
    %378 = tpu.matmul %377, %375, %cst_599 {dimension_numbers = #tpu.dot_dimension_numbers<[1], [0], [0], [1], [0, 0, 1, 1], [], []>} : vector<16x32xbf16>, vector<32x32xbf16>, vector<16x32xf32> -> vector<16x32xf32>
    %379 = arith.addf %361, %378 : vector<16x32xf32>
    %c0_600 = arith.constant 0 : index
    %c2_601 = arith.constant 2 : index
    %c1_602 = arith.constant 1 : index
    %c0_603 = arith.constant 0 : index
    %380 = vector.load %arg7[%c0_600, %c2_601, %c1_602, %c0_603] : memref<1x6x6x32xf32, #tpu.memory_space<vmem>>, vector<1x1x4x32xf32>
    %381 = vector.shape_cast %380 : vector<1x1x4x32xf32> to vector<4x32xf32>
    %c0_604 = arith.constant 0 : index
    %c0_605 = arith.constant 0 : index
    %382 = vector.load %arg8[%c0_604, %c0_605] : memref<16x32xf32, #tpu.memory_space<vmem>>, vector<4x32xf32>
    tpu.vector_store %arg8[%c0_604, %c0_605], %381 {strides = array<i32>} : memref<16x32xf32, #tpu.memory_space<vmem>>, vector<4x32xf32>,
    %c0_606 = arith.constant 0 : index
    %c3_607 = arith.constant 3 : index
    %c1_608 = arith.constant 1 : index
    %c0_609 = arith.constant 0 : index
    %383 = vector.load %arg7[%c0_606, %c3_607, %c1_608, %c0_609] : memref<1x6x6x32xf32, #tpu.memory_space<vmem>>, vector<1x1x4x32xf32>
    %384 = vector.shape_cast %383 : vector<1x1x4x32xf32> to vector<4x32xf32>
    %c4_610 = arith.constant 4 : index
    %c0_611 = arith.constant 0 : index
    %385 = vector.load %arg8[%c4_610, %c0_611] : memref<16x32xf32, #tpu.memory_space<vmem>>, vector<4x32xf32>
    tpu.vector_store %arg8[%c4_610, %c0_611], %384 {strides = array<i32>} : memref<16x32xf32, #tpu.memory_space<vmem>>, vector<4x32xf32>,
    %c0_612 = arith.constant 0 : index
    %c4_613 = arith.constant 4 : index
    %c1_614 = arith.constant 1 : index
    %c0_615 = arith.constant 0 : index
    %386 = vector.load %arg7[%c0_612, %c4_613, %c1_614, %c0_615] : memref<1x6x6x32xf32, #tpu.memory_space<vmem>>, vector<1x1x4x32xf32>
    %387 = vector.shape_cast %386 : vector<1x1x4x32xf32> to vector<4x32xf32>
    %c8_616 = arith.constant 8 : index
    %c0_617 = arith.constant 0 : index
    %388 = vector.load %arg8[%c8_616, %c0_617] : memref<16x32xf32, #tpu.memory_space<vmem>>, vector<4x32xf32>
    tpu.vector_store %arg8[%c8_616, %c0_617], %387 {strides = array<i32>} : memref<16x32xf32, #tpu.memory_space<vmem>>, vector<4x32xf32>,
    %c0_618 = arith.constant 0 : index
    %c5_619 = arith.constant 5 : index
    %c1_620 = arith.constant 1 : index
    %c0_621 = arith.constant 0 : index
    %389 = vector.load %arg7[%c0_618, %c5_619, %c1_620, %c0_621] : memref<1x6x6x32xf32, #tpu.memory_space<vmem>>, vector<1x1x4x32xf32>
    %390 = vector.shape_cast %389 : vector<1x1x4x32xf32> to vector<4x32xf32>
    %c12_622 = arith.constant 12 : index
    %c0_623 = arith.constant 0 : index
    %391 = vector.load %arg8[%c12_622, %c0_623] : memref<16x32xf32, #tpu.memory_space<vmem>>, vector<4x32xf32>
    tpu.vector_store %arg8[%c12_622, %c0_623], %390 {strides = array<i32>} : memref<16x32xf32, #tpu.memory_space<vmem>>, vector<4x32xf32>,
    %c0_624 = arith.constant 0 : index
    %c7_625 = arith.constant 7 : index
    %c0_626 = arith.constant 0 : index
    %c0_627 = arith.constant 0 : index
    %392 = vector.load %arg4[%c0_624, %c7_625, %c0_626, %c0_627] : memref<1x9x32x32xbf16, #tpu.memory_space<vmem>>, vector<1x1x32x32xbf16>
    %393 = vector.shape_cast %392 : vector<1x1x32x32xbf16> to vector<32x32xbf16>
    %c0_628 = arith.constant 0 : index
    %c0_629 = arith.constant 0 : index
    %394 = vector.load %arg8[%c0_628, %c0_629] : memref<16x32xf32, #tpu.memory_space<vmem>>, vector<16x32xf32>
    %395 = arith.truncf %394 : vector<16x32xf32> to vector<16x32xbf16>
    %cst_630 = arith.constant dense<0.000000e+00> : vector<16x32xf32>
    %396 = tpu.matmul %395, %393, %cst_630 {dimension_numbers = #tpu.dot_dimension_numbers<[1], [0], [0], [1], [0, 0, 1, 1], [], []>} : vector<16x32xbf16>, vector<32x32xbf16>, vector<16x32xf32> -> vector<16x32xf32>
    %397 = arith.addf %379, %396 : vector<16x32xf32>
    %c0_631 = arith.constant 0 : index
    %c2_632 = arith.constant 2 : index
    %c2_633 = arith.constant 2 : index
    %c0_634 = arith.constant 0 : index
    %398 = vector.load %arg7[%c0_631, %c2_632, %c2_633, %c0_634] : memref<1x6x6x32xf32, #tpu.memory_space<vmem>>, vector<1x1x4x32xf32>
    %399 = vector.shape_cast %398 : vector<1x1x4x32xf32> to vector<4x32xf32>
    %c0_635 = arith.constant 0 : index
    %c0_636 = arith.constant 0 : index
    %400 = vector.load %arg8[%c0_635, %c0_636] : memref<16x32xf32, #tpu.memory_space<vmem>>, vector<4x32xf32>
    tpu.vector_store %arg8[%c0_635, %c0_636], %399 {strides = array<i32>} : memref<16x32xf32, #tpu.memory_space<vmem>>, vector<4x32xf32>,
    %c0_637 = arith.constant 0 : index
    %c3_638 = arith.constant 3 : index
    %c2_639 = arith.constant 2 : index
    %c0_640 = arith.constant 0 : index
    %401 = vector.load %arg7[%c0_637, %c3_638, %c2_639, %c0_640] : memref<1x6x6x32xf32, #tpu.memory_space<vmem>>, vector<1x1x4x32xf32>
    %402 = vector.shape_cast %401 : vector<1x1x4x32xf32> to vector<4x32xf32>
    %c4_641 = arith.constant 4 : index
    %c0_642 = arith.constant 0 : index
    %403 = vector.load %arg8[%c4_641, %c0_642] : memref<16x32xf32, #tpu.memory_space<vmem>>, vector<4x32xf32>
    tpu.vector_store %arg8[%c4_641, %c0_642], %402 {strides = array<i32>} : memref<16x32xf32, #tpu.memory_space<vmem>>, vector<4x32xf32>,
    %c0_643 = arith.constant 0 : index
    %c4_644 = arith.constant 4 : index
    %c2_645 = arith.constant 2 : index
    %c0_646 = arith.constant 0 : index
    %404 = vector.load %arg7[%c0_643, %c4_644, %c2_645, %c0_646] : memref<1x6x6x32xf32, #tpu.memory_space<vmem>>, vector<1x1x4x32xf32>
    %405 = vector.shape_cast %404 : vector<1x1x4x32xf32> to vector<4x32xf32>
    %c8_647 = arith.constant 8 : index
    %c0_648 = arith.constant 0 : index
    %406 = vector.load %arg8[%c8_647, %c0_648] : memref<16x32xf32, #tpu.memory_space<vmem>>, vector<4x32xf32>
    tpu.vector_store %arg8[%c8_647, %c0_648], %405 {strides = array<i32>} : memref<16x32xf32, #tpu.memory_space<vmem>>, vector<4x32xf32>,
    %c0_649 = arith.constant 0 : index
    %c5_650 = arith.constant 5 : index
    %c2_651 = arith.constant 2 : index
    %c0_652 = arith.constant 0 : index
    %407 = vector.load %arg7[%c0_649, %c5_650, %c2_651, %c0_652] : memref<1x6x6x32xf32, #tpu.memory_space<vmem>>, vector<1x1x4x32xf32>
    %408 = vector.shape_cast %407 : vector<1x1x4x32xf32> to vector<4x32xf32>
    %c12_653 = arith.constant 12 : index
    %c0_654 = arith.constant 0 : index
    %409 = vector.load %arg8[%c12_653, %c0_654] : memref<16x32xf32, #tpu.memory_space<vmem>>, vector<4x32xf32>
    tpu.vector_store %arg8[%c12_653, %c0_654], %408 {strides = array<i32>} : memref<16x32xf32, #tpu.memory_space<vmem>>, vector<4x32xf32>,
    %c0_655 = arith.constant 0 : index
    %c8_656 = arith.constant 8 : index
    %c0_657 = arith.constant 0 : index
    %c0_658 = arith.constant 0 : index
    %410 = vector.load %arg4[%c0_655, %c8_656, %c0_657, %c0_658] : memref<1x9x32x32xbf16, #tpu.memory_space<vmem>>, vector<1x1x32x32xbf16>
    %411 = vector.shape_cast %410 : vector<1x1x32x32xbf16> to vector<32x32xbf16>
    %c0_659 = arith.constant 0 : index
    %c0_660 = arith.constant 0 : index
    %412 = vector.load %arg8[%c0_659, %c0_660] : memref<16x32xf32, #tpu.memory_space<vmem>>, vector<16x32xf32>
    %413 = arith.truncf %412 : vector<16x32xf32> to vector<16x32xbf16>
    %cst_661 = arith.constant dense<0.000000e+00> : vector<16x32xf32>
    %414 = tpu.matmul %413, %411, %cst_661 {dimension_numbers = #tpu.dot_dimension_numbers<[1], [0], [0], [1], [0, 0, 1, 1], [], []>} : vector<16x32xbf16>, vector<32x32xbf16>, vector<16x32xf32> -> vector<16x32xf32>
    %415 = arith.addf %397, %414 : vector<16x32xf32>
    %cst_662 = arith.constant dense<0.000000e+00> : vector<32xf32>
    %416 = vector.multi_reduction <add>, %415, %cst_662 [0] : vector<16x32xf32> to vector<32xf32>
    %417 = vector.shape_cast %416 : vector<32xf32> to vector<1x32xf32>
    %cst_663 = arith.constant 1.600000e+01 : f32
    %418 = vector.broadcast %cst_663 : f32 to vector<1x32xf32>
    %419 = arith.divf %417, %418 : vector<1x32xf32>
    %420 = vector.broadcast %419 : vector<1x32xf32> to vector<16x32xf32>
    %421 = arith.subf %415, %420 : vector<16x32xf32>
    %422 = arith.mulf %421, %421 : vector<16x32xf32>
    %cst_664 = arith.constant dense<0.000000e+00> : vector<32xf32>
    %423 = vector.multi_reduction <add>, %422, %cst_664 [0] : vector<16x32xf32> to vector<32xf32>
    %424 = vector.shape_cast %423 : vector<32xf32> to vector<1x32xf32>
    %cst_665 = arith.constant 1.600000e+01 : f32
    %425 = vector.broadcast %cst_665 : f32 to vector<1x32xf32>
    %426 = arith.divf %424, %425 : vector<1x32xf32>
    %427 = vector.broadcast %419 : vector<1x32xf32> to vector<16x32xf32>
    %428 = arith.subf %415, %427 : vector<16x32xf32>
    %cst_666 = arith.constant 9.99999974E-6 : f32
    %429 = vector.broadcast %cst_666 : f32 to vector<1x32xf32>
    %430 = arith.addf %426, %429 : vector<1x32xf32>
    %431 = math.rsqrt %430 : vector<1x32xf32>
    %432 = vector.broadcast %431 : vector<1x32xf32> to vector<16x32xf32>
    %433 = arith.mulf %428, %432 : vector<16x32xf32>
    %cst_667 = arith.constant 0.000000e+00 : f32
    %434 = vector.broadcast %cst_667 : f32 to vector<16x32xf32>
    %435 = arith.maximumf %433, %434 : vector<16x32xf32>
    %c0_668 = arith.constant 0 : index
    %c0_669 = arith.constant 0 : index
    %436 = vector.load %arg8[%c0_668, %c0_669] : memref<16x32xf32, #tpu.memory_space<vmem>>, vector<16x32xf32>
    tpu.vector_store %arg8[%c0_668, %c0_669], %435 {strides = array<i32>} : memref<16x32xf32, #tpu.memory_space<vmem>>, vector<16x32xf32>,
    %c0_670 = arith.constant 0 : index
    %c1_671 = arith.constant 1 : index
    %c1_672 = arith.constant 1 : index
    %c0_673 = arith.constant 0 : index
    %437 = vector.load %arg6[%c0_670, %c1_671, %c1_672, %c0_673] : memref<1x6x6x32xf32, #tpu.memory_space<vmem>>, vector<1x1x4x32xf32>
    %438 = vector.shape_cast %437 : vector<1x1x4x32xf32> to vector<4x32xf32>
    %c0_674 = arith.constant 0 : index
    %c0_675 = arith.constant 0 : index
    %439 = vector.load %arg8[%c0_674, %c0_675] : memref<16x32xf32, #tpu.memory_space<vmem>>, vector<4x32xf32>
    %440 = arith.addf %438, %439 : vector<4x32xf32>
    %c0_676 = arith.constant 0 : index
    %c1_677 = arith.constant 1 : index
    %c1_678 = arith.constant 1 : index
    %c0_679 = arith.constant 0 : index
    %441 = vector.load %arg6[%c0_676, %c1_677, %c1_678, %c0_679] : memref<1x6x6x32xf32, #tpu.memory_space<vmem>>, vector<1x1x4x32xf32>
    %442 = vector.shape_cast %441 : vector<1x1x4x32xf32> to vector<4x32xf32>
    %443 = vector.shape_cast %440 : vector<4x32xf32> to vector<1x1x4x32xf32>
    tpu.vector_store %arg6[%c0_676, %c1_677, %c1_678, %c0_679], %443 {strides = array<i32>} : memref<1x6x6x32xf32, #tpu.memory_space<vmem>>, vector<1x1x4x32xf32>,
    %c0_680 = arith.constant 0 : index
    %c2_681 = arith.constant 2 : index
    %c1_682 = arith.constant 1 : index
    %c0_683 = arith.constant 0 : index
    %444 = vector.load %arg6[%c0_680, %c2_681, %c1_682, %c0_683] : memref<1x6x6x32xf32, #tpu.memory_space<vmem>>, vector<1x1x4x32xf32>
    %445 = vector.shape_cast %444 : vector<1x1x4x32xf32> to vector<4x32xf32>
    %c4_684 = arith.constant 4 : index
    %c0_685 = arith.constant 0 : index
    %446 = vector.load %arg8[%c4_684, %c0_685] : memref<16x32xf32, #tpu.memory_space<vmem>>, vector<4x32xf32>
    %447 = arith.addf %445, %446 : vector<4x32xf32>
    %c0_686 = arith.constant 0 : index
    %c2_687 = arith.constant 2 : index
    %c1_688 = arith.constant 1 : index
    %c0_689 = arith.constant 0 : index
    %448 = vector.load %arg6[%c0_686, %c2_687, %c1_688, %c0_689] : memref<1x6x6x32xf32, #tpu.memory_space<vmem>>, vector<1x1x4x32xf32>
    %449 = vector.shape_cast %448 : vector<1x1x4x32xf32> to vector<4x32xf32>
    %450 = vector.shape_cast %447 : vector<4x32xf32> to vector<1x1x4x32xf32>
    tpu.vector_store %arg6[%c0_686, %c2_687, %c1_688, %c0_689], %450 {strides = array<i32>} : memref<1x6x6x32xf32, #tpu.memory_space<vmem>>, vector<1x1x4x32xf32>,
    %c0_690 = arith.constant 0 : index
    %c3_691 = arith.constant 3 : index
    %c1_692 = arith.constant 1 : index
    %c0_693 = arith.constant 0 : index
    %451 = vector.load %arg6[%c0_690, %c3_691, %c1_692, %c0_693] : memref<1x6x6x32xf32, #tpu.memory_space<vmem>>, vector<1x1x4x32xf32>
    %452 = vector.shape_cast %451 : vector<1x1x4x32xf32> to vector<4x32xf32>
    %c8_694 = arith.constant 8 : index
    %c0_695 = arith.constant 0 : index
    %453 = vector.load %arg8[%c8_694, %c0_695] : memref<16x32xf32, #tpu.memory_space<vmem>>, vector<4x32xf32>
    %454 = arith.addf %452, %453 : vector<4x32xf32>
    %c0_696 = arith.constant 0 : index
    %c3_697 = arith.constant 3 : index
    %c1_698 = arith.constant 1 : index
    %c0_699 = arith.constant 0 : index
    %455 = vector.load %arg6[%c0_696, %c3_697, %c1_698, %c0_699] : memref<1x6x6x32xf32, #tpu.memory_space<vmem>>, vector<1x1x4x32xf32>
    %456 = vector.shape_cast %455 : vector<1x1x4x32xf32> to vector<4x32xf32>
    %457 = vector.shape_cast %454 : vector<4x32xf32> to vector<1x1x4x32xf32>
    tpu.vector_store %arg6[%c0_696, %c3_697, %c1_698, %c0_699], %457 {strides = array<i32>} : memref<1x6x6x32xf32, #tpu.memory_space<vmem>>, vector<1x1x4x32xf32>,
    %c0_700 = arith.constant 0 : index
    %c4_701 = arith.constant 4 : index
    %c1_702 = arith.constant 1 : index
    %c0_703 = arith.constant 0 : index
    %458 = vector.load %arg6[%c0_700, %c4_701, %c1_702, %c0_703] : memref<1x6x6x32xf32, #tpu.memory_space<vmem>>, vector<1x1x4x32xf32>
    %459 = vector.shape_cast %458 : vector<1x1x4x32xf32> to vector<4x32xf32>
    %c12_704 = arith.constant 12 : index
    %c0_705 = arith.constant 0 : index
    %460 = vector.load %arg8[%c12_704, %c0_705] : memref<16x32xf32, #tpu.memory_space<vmem>>, vector<4x32xf32>
    %461 = arith.addf %459, %460 : vector<4x32xf32>
    %c0_706 = arith.constant 0 : index
    %c4_707 = arith.constant 4 : index
    %c1_708 = arith.constant 1 : index
    %c0_709 = arith.constant 0 : index
    %462 = vector.load %arg6[%c0_706, %c4_707, %c1_708, %c0_709] : memref<1x6x6x32xf32, #tpu.memory_space<vmem>>, vector<1x1x4x32xf32>
    %463 = vector.shape_cast %462 : vector<1x1x4x32xf32> to vector<4x32xf32>
    %464 = vector.shape_cast %461 : vector<4x32xf32> to vector<1x1x4x32xf32>
    tpu.vector_store %arg6[%c0_706, %c4_707, %c1_708, %c0_709], %464 {strides = array<i32>} : memref<1x6x6x32xf32, #tpu.memory_space<vmem>>, vector<1x1x4x32xf32>,
    %c0_710 = arith.constant 0 : index
    %c1_711 = arith.constant 1 : index
    %c2_712 = arith.constant 2 : index
    %c0_713 = arith.constant 0 : index
    %465 = vector.load %arg6[%c0_710, %c1_711, %c2_712, %c0_713] : memref<1x6x6x32xf32, #tpu.memory_space<vmem>>, vector<1x1x1x32xf32>
    %466 = vector.shape_cast %465 : vector<1x1x1x32xf32> to vector<1x32xf32>
    %c0_714 = arith.constant 0 : index
    %c1_715 = arith.constant 1 : index
    %c0_716 = arith.constant 0 : index
    %c0_717 = arith.constant 0 : index
    %467 = vector.load %arg6[%c0_714, %c1_715, %c0_716, %c0_717] : memref<1x6x6x32xf32, #tpu.memory_space<vmem>>, vector<1x1x1x32xf32>
    %468 = vector.shape_cast %467 : vector<1x1x1x32xf32> to vector<1x32xf32>
    %469 = vector.shape_cast %466 : vector<1x32xf32> to vector<1x1x1x32xf32>
    tpu.vector_store %arg6[%c0_714, %c1_715, %c0_716, %c0_717], %469 {strides = array<i32>} : memref<1x6x6x32xf32, #tpu.memory_space<vmem>>, vector<1x1x1x32xf32>,
    %c0_718 = arith.constant 0 : index
    %c1_719 = arith.constant 1 : index
    %c3_720 = arith.constant 3 : index
    %c0_721 = arith.constant 0 : index
    %470 = vector.load %arg6[%c0_718, %c1_719, %c3_720, %c0_721] : memref<1x6x6x32xf32, #tpu.memory_space<vmem>>, vector<1x1x1x32xf32>
    %471 = vector.shape_cast %470 : vector<1x1x1x32xf32> to vector<1x32xf32>
    %c0_722 = arith.constant 0 : index
    %c1_723 = arith.constant 1 : index
    %c5_724 = arith.constant 5 : index
    %c0_725 = arith.constant 0 : index
    %472 = vector.load %arg6[%c0_722, %c1_723, %c5_724, %c0_725] : memref<1x6x6x32xf32, #tpu.memory_space<vmem>>, vector<1x1x1x32xf32>
    %473 = vector.shape_cast %472 : vector<1x1x1x32xf32> to vector<1x32xf32>
    %474 = vector.shape_cast %471 : vector<1x32xf32> to vector<1x1x1x32xf32>
    tpu.vector_store %arg6[%c0_722, %c1_723, %c5_724, %c0_725], %474 {strides = array<i32>} : memref<1x6x6x32xf32, #tpu.memory_space<vmem>>, vector<1x1x1x32xf32>,
    %c0_726 = arith.constant 0 : index
    %c2_727 = arith.constant 2 : index
    %c2_728 = arith.constant 2 : index
    %c0_729 = arith.constant 0 : index
    %475 = vector.load %arg6[%c0_726, %c2_727, %c2_728, %c0_729] : memref<1x6x6x32xf32, #tpu.memory_space<vmem>>, vector<1x1x1x32xf32>
    %476 = vector.shape_cast %475 : vector<1x1x1x32xf32> to vector<1x32xf32>
    %c0_730 = arith.constant 0 : index
    %c2_731 = arith.constant 2 : index
    %c0_732 = arith.constant 0 : index
    %c0_733 = arith.constant 0 : index
    %477 = vector.load %arg6[%c0_730, %c2_731, %c0_732, %c0_733] : memref<1x6x6x32xf32, #tpu.memory_space<vmem>>, vector<1x1x1x32xf32>
    %478 = vector.shape_cast %477 : vector<1x1x1x32xf32> to vector<1x32xf32>
    %479 = vector.shape_cast %476 : vector<1x32xf32> to vector<1x1x1x32xf32>
    tpu.vector_store %arg6[%c0_730, %c2_731, %c0_732, %c0_733], %479 {strides = array<i32>} : memref<1x6x6x32xf32, #tpu.memory_space<vmem>>, vector<1x1x1x32xf32>,
    %c0_734 = arith.constant 0 : index
    %c2_735 = arith.constant 2 : index
    %c3_736 = arith.constant 3 : index
    %c0_737 = arith.constant 0 : index
    %480 = vector.load %arg6[%c0_734, %c2_735, %c3_736, %c0_737] : memref<1x6x6x32xf32, #tpu.memory_space<vmem>>, vector<1x1x1x32xf32>
    %481 = vector.shape_cast %480 : vector<1x1x1x32xf32> to vector<1x32xf32>
    %c0_738 = arith.constant 0 : index
    %c2_739 = arith.constant 2 : index
    %c5_740 = arith.constant 5 : index
    %c0_741 = arith.constant 0 : index
    %482 = vector.load %arg6[%c0_738, %c2_739, %c5_740, %c0_741] : memref<1x6x6x32xf32, #tpu.memory_space<vmem>>, vector<1x1x1x32xf32>
    %483 = vector.shape_cast %482 : vector<1x1x1x32xf32> to vector<1x32xf32>
    %484 = vector.shape_cast %481 : vector<1x32xf32> to vector<1x1x1x32xf32>
    tpu.vector_store %arg6[%c0_738, %c2_739, %c5_740, %c0_741], %484 {strides = array<i32>} : memref<1x6x6x32xf32, #tpu.memory_space<vmem>>, vector<1x1x1x32xf32>,
    %c0_742 = arith.constant 0 : index
    %c3_743 = arith.constant 3 : index
    %c2_744 = arith.constant 2 : index
    %c0_745 = arith.constant 0 : index
    %485 = vector.load %arg6[%c0_742, %c3_743, %c2_744, %c0_745] : memref<1x6x6x32xf32, #tpu.memory_space<vmem>>, vector<1x1x1x32xf32>
    %486 = vector.shape_cast %485 : vector<1x1x1x32xf32> to vector<1x32xf32>
    %c0_746 = arith.constant 0 : index
    %c3_747 = arith.constant 3 : index
    %c0_748 = arith.constant 0 : index
    %c0_749 = arith.constant 0 : index
    %487 = vector.load %arg6[%c0_746, %c3_747, %c0_748, %c0_749] : memref<1x6x6x32xf32, #tpu.memory_space<vmem>>, vector<1x1x1x32xf32>
    %488 = vector.shape_cast %487 : vector<1x1x1x32xf32> to vector<1x32xf32>
    %489 = vector.shape_cast %486 : vector<1x32xf32> to vector<1x1x1x32xf32>
    tpu.vector_store %arg6[%c0_746, %c3_747, %c0_748, %c0_749], %489 {strides = array<i32>} : memref<1x6x6x32xf32, #tpu.memory_space<vmem>>, vector<1x1x1x32xf32>,
    %c0_750 = arith.constant 0 : index
    %c3_751 = arith.constant 3 : index
    %c3_752 = arith.constant 3 : index
    %c0_753 = arith.constant 0 : index
    %490 = vector.load %arg6[%c0_750, %c3_751, %c3_752, %c0_753] : memref<1x6x6x32xf32, #tpu.memory_space<vmem>>, vector<1x1x1x32xf32>
    %491 = vector.shape_cast %490 : vector<1x1x1x32xf32> to vector<1x32xf32>
    %c0_754 = arith.constant 0 : index
    %c3_755 = arith.constant 3 : index
    %c5_756 = arith.constant 5 : index
    %c0_757 = arith.constant 0 : index
    %492 = vector.load %arg6[%c0_754, %c3_755, %c5_756, %c0_757] : memref<1x6x6x32xf32, #tpu.memory_space<vmem>>, vector<1x1x1x32xf32>
    %493 = vector.shape_cast %492 : vector<1x1x1x32xf32> to vector<1x32xf32>
    %494 = vector.shape_cast %491 : vector<1x32xf32> to vector<1x1x1x32xf32>
    tpu.vector_store %arg6[%c0_754, %c3_755, %c5_756, %c0_757], %494 {strides = array<i32>} : memref<1x6x6x32xf32, #tpu.memory_space<vmem>>, vector<1x1x1x32xf32>,
    %c0_758 = arith.constant 0 : index
    %c4_759 = arith.constant 4 : index
    %c2_760 = arith.constant 2 : index
    %c0_761 = arith.constant 0 : index
    %495 = vector.load %arg6[%c0_758, %c4_759, %c2_760, %c0_761] : memref<1x6x6x32xf32, #tpu.memory_space<vmem>>, vector<1x1x1x32xf32>
    %496 = vector.shape_cast %495 : vector<1x1x1x32xf32> to vector<1x32xf32>
    %c0_762 = arith.constant 0 : index
    %c4_763 = arith.constant 4 : index
    %c0_764 = arith.constant 0 : index
    %c0_765 = arith.constant 0 : index
    %497 = vector.load %arg6[%c0_762, %c4_763, %c0_764, %c0_765] : memref<1x6x6x32xf32, #tpu.memory_space<vmem>>, vector<1x1x1x32xf32>
    %498 = vector.shape_cast %497 : vector<1x1x1x32xf32> to vector<1x32xf32>
    %499 = vector.shape_cast %496 : vector<1x32xf32> to vector<1x1x1x32xf32>
    tpu.vector_store %arg6[%c0_762, %c4_763, %c0_764, %c0_765], %499 {strides = array<i32>} : memref<1x6x6x32xf32, #tpu.memory_space<vmem>>, vector<1x1x1x32xf32>,
    %c0_766 = arith.constant 0 : index
    %c4_767 = arith.constant 4 : index
    %c3_768 = arith.constant 3 : index
    %c0_769 = arith.constant 0 : index
    %500 = vector.load %arg6[%c0_766, %c4_767, %c3_768, %c0_769] : memref<1x6x6x32xf32, #tpu.memory_space<vmem>>, vector<1x1x1x32xf32>
    %501 = vector.shape_cast %500 : vector<1x1x1x32xf32> to vector<1x32xf32>
    %c0_770 = arith.constant 0 : index
    %c4_771 = arith.constant 4 : index
    %c5_772 = arith.constant 5 : index
    %c0_773 = arith.constant 0 : index
    %502 = vector.load %arg6[%c0_770, %c4_771, %c5_772, %c0_773] : memref<1x6x6x32xf32, #tpu.memory_space<vmem>>, vector<1x1x1x32xf32>
    %503 = vector.shape_cast %502 : vector<1x1x1x32xf32> to vector<1x32xf32>
    %504 = vector.shape_cast %501 : vector<1x32xf32> to vector<1x1x1x32xf32>
    tpu.vector_store %arg6[%c0_770, %c4_771, %c5_772, %c0_773], %504 {strides = array<i32>} : memref<1x6x6x32xf32, #tpu.memory_space<vmem>>, vector<1x1x1x32xf32>,
    %c0_774 = arith.constant 0 : index
    %c2_775 = arith.constant 2 : index
    %c0_776 = arith.constant 0 : index
    %c0_777 = arith.constant 0 : index
    %505 = vector.load %arg6[%c0_774, %c2_775, %c0_776, %c0_777] : memref<1x6x6x32xf32, #tpu.memory_space<vmem>>, vector<1x1x6x32xf32>
    %506 = vector.shape_cast %505 : vector<1x1x6x32xf32> to vector<6x32xf32>
    %c0_778 = arith.constant 0 : index
    %c0_779 = arith.constant 0 : index
    %c0_780 = arith.constant 0 : index
    %c0_781 = arith.constant 0 : index
    %507 = vector.load %arg6[%c0_778, %c0_779, %c0_780, %c0_781] : memref<1x6x6x32xf32, #tpu.memory_space<vmem>>, vector<1x1x6x32xf32>
    %508 = vector.shape_cast %507 : vector<1x1x6x32xf32> to vector<6x32xf32>
    %509 = vector.shape_cast %506 : vector<6x32xf32> to vector<1x1x6x32xf32>
    tpu.vector_store %arg6[%c0_778, %c0_779, %c0_780, %c0_781], %509 {strides = array<i32>} : memref<1x6x6x32xf32, #tpu.memory_space<vmem>>, vector<1x1x6x32xf32>,
    %c0_782 = arith.constant 0 : index
    %c3_783 = arith.constant 3 : index
    %c0_784 = arith.constant 0 : index
    %c0_785 = arith.constant 0 : index
    %510 = vector.load %arg6[%c0_782, %c3_783, %c0_784, %c0_785] : memref<1x6x6x32xf32, #tpu.memory_space<vmem>>, vector<1x1x6x32xf32>
    %511 = vector.shape_cast %510 : vector<1x1x6x32xf32> to vector<6x32xf32>
    %c0_786 = arith.constant 0 : index
    %c5_787 = arith.constant 5 : index
    %c0_788 = arith.constant 0 : index
    %c0_789 = arith.constant 0 : index
    %512 = vector.load %arg6[%c0_786, %c5_787, %c0_788, %c0_789] : memref<1x6x6x32xf32, #tpu.memory_space<vmem>>, vector<1x1x6x32xf32>
    %513 = vector.shape_cast %512 : vector<1x1x6x32xf32> to vector<6x32xf32>
    %514 = vector.shape_cast %511 : vector<6x32xf32> to vector<1x1x6x32xf32>
    tpu.vector_store %arg6[%c0_786, %c5_787, %c0_788, %c0_789], %514 {strides = array<i32>} : memref<1x6x6x32xf32, #tpu.memory_space<vmem>>, vector<1x1x6x32xf32>,
    %c8_i32 = arith.constant 8 : i32
    %515 = arith.cmpi eq, %arg1, %c8_i32 : i32
    %516 = arith.extui %515 : i1 to i32
    %c0_i32_790 = arith.constant 0 : i32
    %517 = arith.cmpi ne, %516, %c0_i32_790 : i32
    scf.if %517 {
      %c0_791 = arith.constant 0 : index
      %c0_792 = arith.constant 0 : index
      %c0_793 = arith.constant 0 : index
      %c0_794 = arith.constant 0 : index
      %518 = vector.load %arg6[%c0_791, %c0_792, %c0_793, %c0_794] : memref<1x6x6x32xf32, #tpu.memory_space<vmem>>, vector<1x6x6x32xf32>
      %c0_795 = arith.constant 0 : index
      %c0_796 = arith.constant 0 : index
      %c0_797 = arith.constant 0 : index
      %c0_798 = arith.constant 0 : index
      %519 = vector.load %arg5[%c0_795, %c0_796, %c0_797, %c0_798] : memref<1x6x6x32xf32, #tpu.memory_space<vmem>>, vector<1x6x6x32xf32>
      tpu.vector_store %arg5[%c0_795, %c0_796, %c0_797, %c0_798], %518 {strides = array<i32>} : memref<1x6x6x32xf32, #tpu.memory_space<vmem>>, vector<1x6x6x32xf32>,
    } else {
    }
    return
  }
  func.func @transform_0(%arg0: i32, %arg1: i32) -> (i32, i32, i32, i32) {
    %c0_i32 = arith.constant 0 : i32
    %c0_i32_0 = arith.constant 0 : i32
    %c0_i32_1 = arith.constant 0 : i32
    %c0_i32_2 = arith.constant 0 : i32
    return %arg0, %c0_i32, %c0_i32_0, %c0_i32_1 : i32, i32, i32, i32
  }
  func.func @transform_1(%arg0: i32, %arg1: i32) -> (i32, i32, i32, i32) {
    %c0_i32 = arith.constant 0 : i32
    %c0_i32_0 = arith.constant 0 : i32
    %c0_i32_1 = arith.constant 0 : i32
    %c0_i32_2 = arith.constant 0 : i32
    return %arg1, %c0_i32, %c0_i32_0, %c0_i32_1 : i32, i32, i32, i32
  }
  func.func @transform_2(%arg0: i32, %arg1: i32) -> (i32, i32, i32, i32) {
    %c0_i32 = arith.constant 0 : i32
    %c0_i32_0 = arith.constant 0 : i32
    %c0_i32_1 = arith.constant 0 : i32
    %c0_i32_2 = arith.constant 0 : i32
    return %arg1, %c0_i32, %c0_i32_0, %c0_i32_1 : i32, i32, i32, i32
  }
  func.func @transform_3(%arg0: i32, %arg1: i32) -> (i32, i32, i32, i32) {
    %c0_i32 = arith.constant 0 : i32
    %c0_i32_0 = arith.constant 0 : i32
    %c0_i32_1 = arith.constant 0 : i32
    %c0_i32_2 = arith.constant 0 : i32
    return %arg0, %c0_i32, %c0_i32_0, %c0_i32_1 : i32, i32, i32, i32
  }
}

module attributes {stable_mosaic.version = 11 : i64} {
  func.func @_conv_in_relu_kernel(%arg0: i32, %arg1: memref<64x288xbf16, #tpu.memory_space<vmem>>, %arg2: memref<288x16xbf16, #tpu.memory_space<vmem>>, %arg3: memref<64x16xf32, #tpu.memory_space<vmem>>) attributes {dimension_semantics = [#tpu.dimension_semantics<parallel>], iteration_bounds = array<i64: 2>, scalar_prefetch = 0 : i64, scratch_operands = 0 : i64, tpu.core_type = #tpu.core_type<tc>, window_params = [{transform_indices = @transform_0, window_bounds = array<i64: 64, 288>}, {pipeline_mode = #tpu.pipeline_mode<synchronous>, transform_indices = @transform_1, window_bounds = array<i64: 288, 16>}, {transform_indices = @transform_2, window_bounds = array<i64: 64, 16>}]} {
    %c0 = arith.constant 0 : index
    %c0_0 = arith.constant 0 : index
    %0 = vector.load %arg1[%c0, %c0_0] : memref<64x288xbf16, #tpu.memory_space<vmem>>, vector<64x288xbf16>
    %c0_1 = arith.constant 0 : index
    %c0_2 = arith.constant 0 : index
    %1 = vector.load %arg2[%c0_1, %c0_2] : memref<288x16xbf16, #tpu.memory_space<vmem>>, vector<288x16xbf16>
    %cst = arith.constant dense<0.000000e+00> : vector<64x16xf32>
    %2 = tpu.matmul %0, %1, %cst {dimension_numbers = #tpu.dot_dimension_numbers<[1], [0], [0], [1], [0, 0, 1, 1], [], []>} : vector<64x288xbf16>, vector<288x16xbf16>, vector<64x16xf32> -> vector<64x16xf32>
    %cst_3 = arith.constant dense<0.000000e+00> : vector<16xf32>
    %3 = vector.multi_reduction <add>, %2, %cst_3 [0] : vector<64x16xf32> to vector<16xf32>
    %4 = vector.shape_cast %3 : vector<16xf32> to vector<1x16xf32>
    %cst_4 = arith.constant 6.400000e+01 : f32
    %5 = vector.broadcast %cst_4 : f32 to vector<1x16xf32>
    %6 = arith.divf %4, %5 : vector<1x16xf32>
    %7 = vector.broadcast %6 : vector<1x16xf32> to vector<64x16xf32>
    %8 = arith.subf %2, %7 : vector<64x16xf32>
    %9 = arith.mulf %8, %8 : vector<64x16xf32>
    %cst_5 = arith.constant dense<0.000000e+00> : vector<16xf32>
    %10 = vector.multi_reduction <add>, %9, %cst_5 [0] : vector<64x16xf32> to vector<16xf32>
    %11 = vector.shape_cast %10 : vector<16xf32> to vector<1x16xf32>
    %cst_6 = arith.constant 6.400000e+01 : f32
    %12 = vector.broadcast %cst_6 : f32 to vector<1x16xf32>
    %13 = arith.divf %11, %12 : vector<1x16xf32>
    %14 = vector.broadcast %6 : vector<1x16xf32> to vector<64x16xf32>
    %15 = arith.subf %2, %14 : vector<64x16xf32>
    %cst_7 = arith.constant 9.99999974E-6 : f32
    %16 = vector.broadcast %cst_7 : f32 to vector<1x16xf32>
    %17 = arith.addf %13, %16 : vector<1x16xf32>
    %18 = math.rsqrt %17 : vector<1x16xf32>
    %19 = vector.broadcast %18 : vector<1x16xf32> to vector<64x16xf32>
    %20 = arith.mulf %15, %19 : vector<64x16xf32>
    %cst_8 = arith.constant 0.000000e+00 : f32
    %21 = vector.broadcast %cst_8 : f32 to vector<64x16xf32>
    %22 = arith.maximumf %20, %21 : vector<64x16xf32>
    %c0_9 = arith.constant 0 : index
    %c0_10 = arith.constant 0 : index
    %23 = vector.load %arg3[%c0_9, %c0_10] : memref<64x16xf32, #tpu.memory_space<vmem>>, vector<64x16xf32>
    tpu.vector_store %arg3[%c0_9, %c0_10], %22 {strides = array<i32>} : memref<64x16xf32, #tpu.memory_space<vmem>>, vector<64x16xf32>,
    return
  }
  func.func @transform_0(%arg0: i32) -> (i32, i32) {
    %c0_i32 = arith.constant 0 : i32
    %c0_i32_0 = arith.constant 0 : i32
    return %arg0, %c0_i32 : i32, i32
  }
  func.func @transform_1(%arg0: i32) -> (i32, i32) {
    %c0_i32 = arith.constant 0 : i32
    %c0_i32_0 = arith.constant 0 : i32
    %c0_i32_1 = arith.constant 0 : i32
    return %c0_i32, %c0_i32_0 : i32, i32
  }
  func.func @transform_2(%arg0: i32) -> (i32, i32) {
    %c0_i32 = arith.constant 0 : i32
    %c0_i32_0 = arith.constant 0 : i32
    return %arg0, %c0_i32 : i32, i32
  }
}

module attributes {stable_mosaic.version = 11 : i64} {
  func.func @_conv_in_relu_kernel(%arg0: i32, %arg1: memref<256x144xbf16, #tpu.memory_space<vmem>>, %arg2: memref<144x8xbf16, #tpu.memory_space<vmem>>, %arg3: memref<256x8xf32, #tpu.memory_space<vmem>>) attributes {dimension_semantics = [#tpu.dimension_semantics<parallel>], iteration_bounds = array<i64: 2>, scalar_prefetch = 0 : i64, scratch_operands = 0 : i64, tpu.core_type = #tpu.core_type<tc>, window_params = [{transform_indices = @transform_0, window_bounds = array<i64: 256, 144>}, {pipeline_mode = #tpu.pipeline_mode<synchronous>, transform_indices = @transform_1, window_bounds = array<i64: 144, 8>}, {transform_indices = @transform_2, window_bounds = array<i64: 256, 8>}]} {
    %c0 = arith.constant 0 : index
    %c0_0 = arith.constant 0 : index
    %0 = vector.load %arg1[%c0, %c0_0] : memref<256x144xbf16, #tpu.memory_space<vmem>>, vector<256x144xbf16>
    %c0_1 = arith.constant 0 : index
    %c0_2 = arith.constant 0 : index
    %1 = vector.load %arg2[%c0_1, %c0_2] : memref<144x8xbf16, #tpu.memory_space<vmem>>, vector<144x8xbf16>
    %cst = arith.constant dense<0.000000e+00> : vector<256x8xf32>
    %2 = tpu.matmul %0, %1, %cst {dimension_numbers = #tpu.dot_dimension_numbers<[1], [0], [0], [1], [0, 0, 1, 1], [], []>} : vector<256x144xbf16>, vector<144x8xbf16>, vector<256x8xf32> -> vector<256x8xf32>
    %cst_3 = arith.constant dense<0.000000e+00> : vector<8xf32>
    %3 = vector.multi_reduction <add>, %2, %cst_3 [0] : vector<256x8xf32> to vector<8xf32>
    %4 = vector.shape_cast %3 : vector<8xf32> to vector<1x8xf32>
    %cst_4 = arith.constant 2.560000e+02 : f32
    %5 = vector.broadcast %cst_4 : f32 to vector<1x8xf32>
    %6 = arith.divf %4, %5 : vector<1x8xf32>
    %7 = vector.broadcast %6 : vector<1x8xf32> to vector<256x8xf32>
    %8 = arith.subf %2, %7 : vector<256x8xf32>
    %9 = arith.mulf %8, %8 : vector<256x8xf32>
    %cst_5 = arith.constant dense<0.000000e+00> : vector<8xf32>
    %10 = vector.multi_reduction <add>, %9, %cst_5 [0] : vector<256x8xf32> to vector<8xf32>
    %11 = vector.shape_cast %10 : vector<8xf32> to vector<1x8xf32>
    %cst_6 = arith.constant 2.560000e+02 : f32
    %12 = vector.broadcast %cst_6 : f32 to vector<1x8xf32>
    %13 = arith.divf %11, %12 : vector<1x8xf32>
    %14 = vector.broadcast %6 : vector<1x8xf32> to vector<256x8xf32>
    %15 = arith.subf %2, %14 : vector<256x8xf32>
    %cst_7 = arith.constant 9.99999974E-6 : f32
    %16 = vector.broadcast %cst_7 : f32 to vector<1x8xf32>
    %17 = arith.addf %13, %16 : vector<1x8xf32>
    %18 = math.rsqrt %17 : vector<1x8xf32>
    %19 = vector.broadcast %18 : vector<1x8xf32> to vector<256x8xf32>
    %20 = arith.mulf %15, %19 : vector<256x8xf32>
    %cst_8 = arith.constant 0.000000e+00 : f32
    %21 = vector.broadcast %cst_8 : f32 to vector<256x8xf32>
    %22 = arith.maximumf %20, %21 : vector<256x8xf32>
    %c0_9 = arith.constant 0 : index
    %c0_10 = arith.constant 0 : index
    %23 = vector.load %arg3[%c0_9, %c0_10] : memref<256x8xf32, #tpu.memory_space<vmem>>, vector<256x8xf32>
    tpu.vector_store %arg3[%c0_9, %c0_10], %22 {strides = array<i32>} : memref<256x8xf32, #tpu.memory_space<vmem>>, vector<256x8xf32>,
    return
  }
  func.func @transform_0(%arg0: i32) -> (i32, i32) {
    %c0_i32 = arith.constant 0 : i32
    %c0_i32_0 = arith.constant 0 : i32
    return %arg0, %c0_i32 : i32, i32
  }
  func.func @transform_1(%arg0: i32) -> (i32, i32) {
    %c0_i32 = arith.constant 0 : i32
    %c0_i32_0 = arith.constant 0 : i32
    %c0_i32_1 = arith.constant 0 : i32
    return %c0_i32, %c0_i32_0 : i32, i32
  }
  func.func @transform_2(%arg0: i32) -> (i32, i32) {
    %c0_i32 = arith.constant 0 : i32
    %c0_i32_0 = arith.constant 0 : i32
    return %arg0, %c0_i32 : i32, i32
  }
}

module attributes {stable_mosaic.version = 11 : i64} {
  func.func @_conv_bias_tanh_kernel(%arg0: i32, %arg1: memref<256x392xbf16, #tpu.memory_space<vmem>>, %arg2: memref<392x3xbf16, #tpu.memory_space<vmem>>, %arg3: memref<1x3xf32, #tpu.memory_space<vmem>>, %arg4: memref<256x3xf32, #tpu.memory_space<vmem>>) attributes {dimension_semantics = [#tpu.dimension_semantics<parallel>], iteration_bounds = array<i64: 2>, scalar_prefetch = 0 : i64, scratch_operands = 0 : i64, tpu.core_type = #tpu.core_type<tc>, window_params = [{transform_indices = @transform_0, window_bounds = array<i64: 256, 392>}, {pipeline_mode = #tpu.pipeline_mode<synchronous>, transform_indices = @transform_1, window_bounds = array<i64: 392, 3>}, {pipeline_mode = #tpu.pipeline_mode<synchronous>, transform_indices = @transform_2, window_bounds = array<i64: 1, 3>}, {transform_indices = @transform_3, window_bounds = array<i64: 256, 3>}]} {
    %c0 = arith.constant 0 : index
    %c0_0 = arith.constant 0 : index
    %0 = vector.load %arg1[%c0, %c0_0] : memref<256x392xbf16, #tpu.memory_space<vmem>>, vector<256x392xbf16>
    %c0_1 = arith.constant 0 : index
    %c0_2 = arith.constant 0 : index
    %1 = vector.load %arg2[%c0_1, %c0_2] : memref<392x3xbf16, #tpu.memory_space<vmem>>, vector<392x3xbf16>
    %cst = arith.constant dense<0.000000e+00> : vector<256x3xf32>
    %2 = tpu.matmul %0, %1, %cst {dimension_numbers = #tpu.dot_dimension_numbers<[1], [0], [0], [1], [0, 0, 1, 1], [], []>} : vector<256x392xbf16>, vector<392x3xbf16>, vector<256x3xf32> -> vector<256x3xf32>
    %c0_3 = arith.constant 0 : index
    %c0_4 = arith.constant 0 : index
    %3 = vector.load %arg3[%c0_3, %c0_4] : memref<1x3xf32, #tpu.memory_space<vmem>>, vector<1x3xf32>
    %4 = vector.broadcast %3 : vector<1x3xf32> to vector<256x3xf32>
    %5 = arith.addf %2, %4 : vector<256x3xf32>
    %6 = math.tanh %5 : vector<256x3xf32>
    %c0_5 = arith.constant 0 : index
    %c0_6 = arith.constant 0 : index
    %7 = vector.load %arg4[%c0_5, %c0_6] : memref<256x3xf32, #tpu.memory_space<vmem>>, vector<256x3xf32>
    tpu.vector_store %arg4[%c0_5, %c0_6], %6 {strides = array<i32>} : memref<256x3xf32, #tpu.memory_space<vmem>>, vector<256x3xf32>,
    return
  }
  func.func @transform_0(%arg0: i32) -> (i32, i32) {
    %c0_i32 = arith.constant 0 : i32
    %c0_i32_0 = arith.constant 0 : i32
    return %arg0, %c0_i32 : i32, i32
  }
  func.func @transform_1(%arg0: i32) -> (i32, i32) {
    %c0_i32 = arith.constant 0 : i32
    %c0_i32_0 = arith.constant 0 : i32
    %c0_i32_1 = arith.constant 0 : i32
    return %c0_i32, %c0_i32_0 : i32, i32
  }
  func.func @transform_2(%arg0: i32) -> (i32, i32) {
    %c0_i32 = arith.constant 0 : i32
    %c0_i32_0 = arith.constant 0 : i32
    %c0_i32_1 = arith.constant 0 : i32
    return %c0_i32, %c0_i32_0 : i32, i32
  }
  func.func @transform_3(%arg0: i32) -> (i32, i32) {
    %c0_i32 = arith.constant 0 : i32
    %c0_i32_0 = arith.constant 0 : i32
    return %arg0, %c0_i32 : i32, i32
  }
}

</mosaic_0001>

<bundles_post_ra>
// kernel: cyclegan_generator_forward.7
= control target key start
LH: loop header
LB: loop body
LE: loop exit
PB: predicated region body
PF: predicated region fallthrough
CT: control target
= control target key end

     0   :  { %s1166_s9 = smov 0   ;;  %s1743_s0 = inlined_call_operand.vmem [shape: bf16[512,147], index: 0, kind: input, shape index: {}]   ;;  %s1744_s1 = inlined_call_operand.vmem [shape: bf16[147,8], index: 1, kind: input, shape index: {}]   ;;  %s1745_s2 = inlined_call_operand.vmem [shape: f32[512,8], index: 2, kind: output, shape index: {}]  }
   0x1 LB: > { %s980_s10 = sadd.s32 4294967295, %s1147_s9   ;;  %p984_p0 = scmp.ge.s32.totalorder %s1147_s9, 1  ;;  %s1147_s9 = sphi %s1166_s9, %s12_s9  }
   0x2   : > { %p114_p1 = scmp.lt.s32.totalorder %s1147_s9, 3 }
   0x4   : > { %p115_p2 = pnand %p984_p0, %p114_p1 }
   0x5   : > { %s985_s17 = sshll.u32 (!%p115_p2), %s980_s10, 5 }
   0x6   : > { %118 = sbr.rel (%p115_p2) target bundleno = 477 (0x1dd), region = 28  ;;  %p138_p3 = scmp.lt.s32.totalorder (!%p115_p2), %s985_s17, 63 }
   0xb   : > { %v1081_v0 = vld [vmem:[%s1744_s1 + $0x38] sm:$0xff]   ;;  %v1149_v1 = vmov 0   ;;  %v1082_v2 = vld [vmem:[%s1744_s1 + $0x30] sm:$0xff]   ;;  %v1083_v3 = vld [vmem:[%s1744_s1 + $0x28] sm:$0xff]   ;;  %s1747_s17 = smov (!%p138_p3, %s985_s17), 63  ;;  %vm403_vm0 = vcmask 154624  }
   0xc   : > { %459 = vmatprep.subr.bf16.mxu0 %v1149_v1  ;;  %1051 = vmatprep.subr.bf16.mxu1 %v1149_v1  ;;  %v1084_v4 = vld [vmem:[%s1744_s1 + $0x20] sm:$0xff]   ;;  %s1050_s20 = sshll.u32 %s1747_s17, 3  ;;  %v1085_v5 = vld [vmem:[%s1744_s1 + $0x18] sm:$0xff]   ;;  %v1086_v7 = vld [vmem:[%s1744_s1 + $0x10] sm:$0xff]   ;;  %vm452_vm1 = vcmask 1040384   ;;  %vm453_vm2 = vcmask 1041408  }
   0xd   : > { %460 = vmatpush1.bf16.msra.mxu0 %v1081_v0  ;;  %1061 = vmatpush1.bf16.msra.mxu1 %v1081_v0  ;;  %s1194_s23 = scalar_lea.vmem %s1743_s0, %s1050_s20  ;;  %v1087_v9 = vld [vmem:[%s1744_s1 + $0x8] sm:$0xff]   ;;  %v1150_v10 = vmov 65535   ;;  %v1088_v12 = vld [vmem:[%s1744_s1] sm:$0xff]   ;;  %vm620_vm3 = vcmask 64512   ;;  %s1653_s11 = scalar_lea.vmem %s1745_s2, %s1050_s20 }
   0xe   : > { %461 = vmatprep.subr.bf16.mxu0 %v1149_v1  ;;  %1052 = vmatprep.subr.bf16.mxu1 %v1149_v1  ;;  %v1093_v6 = vld [vmem:[%s1194_s23 + $0x4] ss:$8 sps:$4 sm:$0xff]   ;;  %v454_v11 = vsel %vm452_vm1, 4294967295, %v1150_v10  ;;  %v1089_v13 = vld [vmem:[%s1744_s1 + $0x48] ss:$0 sps:$4 sm:$0x33]  }
   0xf   : > { %1032 = vmatprep.mubr.msk.bf16.mxu0 %vm403_vm0, %v1093_v6  ;;  %v1105_v8 = vld [vmem:[%s1194_s23 + $0x84] ss:$8 sps:$4 sm:$0xff]   ;;  %v455_v14 = vsel %vm453_vm2, %v454_v11, 0  ;;  %v1091_v17 = vld [vmem:[%s1194_s23] ss:$8 sps:$4 sm:$0xff]  }
  0x10   : > { %1040 = vmatprep.mubr.msk.bf16.mxu1 %vm403_vm0, %v1105_v8  ;;  %v457_v15 = vand.u32 %v1089_v13, %v455_v14  ;;  %v1090_v16 = vld [vmem:[%s1744_s1 + $0x40] sm:$0xff]   ;;  %v1094_v19 = vld [vmem:[%s1194_s23 + $0x14] ss:$8 sps:$4 sm:$0xff]   ;;  %v1096_v21 = vld [vmem:[%s1194_s23 + $0x10] ss:$8 sps:$4 sm:$0xff]  }
  0x11   : > { %462 = vmatpush1.bf16.msra.mxu0 %v1082_v2  ;;  %1062 = vmatpush1.bf16.msra.mxu1 %v1082_v2  ;;  %v1103_v18 = vld [vmem:[%s1194_s23 + $0x80] ss:$8 sps:$4 sm:$0xff]   ;;  %v1109_v20 = vld [vmem:[%s1194_s23 + $0x94] ss:$8 sps:$4 sm:$0xff]   ;;  %v1111_v22 = vld [vmem:[%s1194_s23 + $0x90] ss:$8 sps:$4 sm:$0xff]  }
  0x12   : > { %463 = vmatprep.subr.bf16.mxu0 %v1149_v1  ;;  %1053 = vmatprep.subr.bf16.mxu1 %v1149_v1  ;;  %v1097_v23 = vld [vmem:[%s1194_s23 + $0x24] ss:$8 sps:$4 sm:$0xff]   ;;  %v1099_v25 = vld [vmem:[%s1194_s23 + $0x20] ss:$8 sps:$4 sm:$0xff]   ;;  %v1100_v27 = vld [vmem:[%s1194_s23 + $0x34] ss:$8 sps:$4 sm:$0xff]  }
  0x13   : > { %v1115_v24 = vld [vmem:[%s1194_s23 + $0xa4] ss:$8 sps:$4 sm:$0xff]   ;;  %v1117_v26 = vld [vmem:[%s1194_s23 + $0xa0] ss:$8 sps:$4 sm:$0xff]   ;;  %v1121_v28 = vld [vmem:[%s1194_s23 + $0xb4] ss:$8 sps:$4 sm:$0xff]  }
  0x14   : > { %v1102_v29 = vld [vmem:[%s1194_s23 + $0x30] ss:$8 sps:$4 sm:$0xff]   ;;  %v1106_v31 = vld [vmem:[%s1194_s23 + $0x44] ss:$8 sps:$4 sm:$0xff]   ;;  %v1108_v33 = vld [vmem:[%s1194_s23 + $0x40] ss:$8 sps:$4 sm:$0xff]  }
  0x15   : > { %464 = vmatpush1.bf16.msra.mxu0 %v1083_v3  ;;  %1063 = vmatpush1.bf16.msra.mxu1 %v1083_v3  ;;  %v1123_v30 = vld [vmem:[%s1194_s23 + $0xb0] ss:$8 sps:$4 sm:$0xff]   ;;  %v1127_v32 = vld [vmem:[%s1194_s23 + $0xc4] ss:$8 sps:$4 sm:$0xff]   ;;  %v1129_v34 = vld [vmem:[%s1194_s23 + $0xc0] ss:$8 sps:$4 sm:$0xff]  }
  0x16   : > { %465 = vmatprep.subr.bf16.mxu0 %v1149_v1  ;;  %1054 = vmatprep.subr.bf16.mxu1 %v1149_v1  ;;  %v1112_v35 = vld [vmem:[%s1194_s23 + $0x54] ss:$8 sps:$4 sm:$0xff]   ;;  %v1114_v37 = vld [vmem:[%s1194_s23 + $0x50] ss:$8 sps:$4 sm:$0xff]   ;;  %v1118_v39 = vld [vmem:[%s1194_s23 + $0x64] ss:$8 sps:$4 sm:$0xff]  }
  0x17   : > { %v1130_v36 = vld [vmem:[%s1194_s23 + $0xd4] ss:$8 sps:$4 sm:$0xff]   ;;  %v1132_v38 = vld [vmem:[%s1194_s23 + $0xd0] ss:$8 sps:$4 sm:$0xff]   ;;  %v1133_v40 = vld [vmem:[%s1194_s23 + $0xe4] ss:$8 sps:$4 sm:$0xff]  }
  0x18   : > { %v1120_v41 = vld [vmem:[%s1194_s23 + $0x60] ss:$8 sps:$4 sm:$0xff]   ;;  %v1124_v43 = vld [vmem:[%s1194_s23 + $0x74] ss:$8 sps:$4 sm:$0xff]   ;;  %v1126_v45 = vld [vmem:[%s1194_s23 + $0x70] ss:$8 sps:$4 sm:$0xff]  }
  0x19   : > { %466 = vmatpush1.bf16.msra.mxu0 %v1084_v4  ;;  %1064 = vmatpush1.bf16.msra.mxu1 %v1084_v4  ;;  %v1135_v42 = vld [vmem:[%s1194_s23 + $0xe0] ss:$8 sps:$4 sm:$0xff]   ;;  %v1136_v44 = vld [vmem:[%s1194_s23 + $0xf4] ss:$8 sps:$4 sm:$0xff]   ;;  %v1138_v46 = vld [vmem:[%s1194_s23 + $0xf0] ss:$8 sps:$4 sm:$0xff]  }
  0x1a   : > { %467 = vmatprep.subr.bf16.mxu0 %v1149_v1  ;;  %1055 = vmatprep.subr.bf16.mxu1 %v1149_v1 }
  0x1d   : > { %468 = vmatpush1.bf16.msra.mxu0 %v1085_v5  ;;  %1065 = vmatpush1.bf16.msra.mxu1 %v1085_v5 }
  0x1e   : > { %469 = vmatprep.subr.bf16.mxu0 %v1149_v1  ;;  %1056 = vmatprep.subr.bf16.mxu1 %v1149_v1 }
  0x21   : > { %470 = vmatpush1.bf16.msra.mxu0 %v1086_v7  ;;  %1066 = vmatpush1.bf16.msra.mxu1 %v1086_v7 }
  0x22   : > { %471 = vmatprep.subr.bf16.mxu0 %v1149_v1  ;;  %1057 = vmatprep.subr.bf16.mxu1 %v1149_v1 }
  0x25   : > { %472 = vmatpush1.bf16.msra.mxu0 %v1087_v9  ;;  %1067 = vmatpush1.bf16.msra.mxu1 %v1087_v9 }
  0x26   : > { %473 = vmatprep.subr.bf16.mxu0 %v1149_v1  ;;  %1058 = vmatprep.subr.bf16.mxu1 %v1149_v1 }
  0x29   : > { %474 = vmatpush1.bf16.msra.mxu0 %v1088_v12  ;;  %1068 = vmatpush1.bf16.msra.mxu1 %v1088_v12 }
  0x2a   : > { %487 = vmatprep.subr.bf16.mxu0 %v1149_v1  ;;  %1059 = vmatprep.subr.bf16.mxu1 %v1149_v1 }
  0x2d   : > { %488 = vmatpush2.bf16.msra.mxu0 %v457_v15  ;;  %1069 = vmatpush2.bf16.msra.mxu1 %v457_v15 }
  0x2e   : > { %489 = vmatprep.subr.bf16.mxu0 %v1149_v1  ;;  %1060 = vmatprep.subr.bf16.mxu1 %v1149_v1 }
  0x31   : > { %490 = vmatpush2.bf16.msra.mxu0 %v1090_v16  ;;  %1070 = vmatpush2.bf16.msra.mxu1 %v1090_v16 }
  0x34   : > { %492 = vmatmul.mubr.bf16.vlgmr.msra.gmra.mxu0 %v1091_v17  ;;  %556 = vmatmul.mubr.bf16.vlgmr.msra.gmra.mxu1 %v1103_v18 }
  0x35   : > { %1033 = vmatprep.mubr.msk.bf16.mxu0 %vm403_vm0, %v1094_v19  ;;  %1041 = vmatprep.mubr.msk.bf16.mxu1 %vm403_vm0, %v1109_v20 }
  0x3c   : > { %500 = vmatmul.mubr.bf16.gmra.mxu0 %v1096_v21  ;;  %564 = vmatmul.mubr.bf16.gmra.mxu1 %v1111_v22 }
  0x3d   : > { %1034 = vmatprep.mubr.msk.bf16.mxu0 %vm403_vm0, %v1097_v23  ;;  %1042 = vmatprep.mubr.msk.bf16.mxu1 %vm403_vm0, %v1115_v24 }
  0x44   : > { %508 = vmatmul.mubr.bf16.gmra.mxu0 %v1099_v25  ;;  %572 = vmatmul.mubr.bf16.gmra.mxu1 %v1117_v26 }
  0x45   : > { %1035 = vmatprep.mubr.msk.bf16.mxu0 %vm403_vm0, %v1100_v27  ;;  %1043 = vmatprep.mubr.msk.bf16.mxu1 %vm403_vm0, %v1121_v28 }
  0x4c   : > { %516 = vmatmul.mubr.bf16.gmra.mxu0 %v1102_v29  ;;  %580 = vmatmul.mubr.bf16.gmra.mxu1 %v1123_v30 }
  0x4d   : > { %1036 = vmatprep.mubr.msk.bf16.mxu0 %vm403_vm0, %v1106_v31  ;;  %1044 = vmatprep.mubr.msk.bf16.mxu1 %vm403_vm0, %v1127_v32 }
  0x54   : > { %524 = vmatmul.mubr.bf16.gmra.mxu0 %v1108_v33  ;;  %588 = vmatmul.mubr.bf16.gmra.mxu1 %v1129_v34 }
  0x55   : > { %1037 = vmatprep.mubr.msk.bf16.mxu0 %vm403_vm0, %v1112_v35  ;;  %1045 = vmatprep.mubr.msk.bf16.mxu1 %vm403_vm0, %v1130_v36 }
  0x5c   : > { %532 = vmatmul.mubr.bf16.gmra.mxu0 %v1114_v37  ;;  %596 = vmatmul.mubr.bf16.gmra.mxu1 %v1132_v38 }
  0x5d   : > { %1038 = vmatprep.mubr.msk.bf16.mxu0 %vm403_vm0, %v1118_v39  ;;  %1046 = vmatprep.mubr.msk.bf16.mxu1 %vm403_vm0, %v1133_v40 }
  0x64   : > { %540 = vmatmul.mubr.bf16.gmra.mxu0 %v1120_v41  ;;  %604 = vmatmul.mubr.bf16.gmra.mxu1 %v1135_v42 }
  0x65   : > { %1039 = vmatprep.mubr.msk.bf16.mxu0 %vm403_vm0, %v1124_v43  ;;  %1047 = vmatprep.mubr.msk.bf16.mxu1 %vm403_vm0, %v1136_v44 }
  0x6c   : > { %548 = vmatmul.mubr.bf16.gmra.mxu0 %v1126_v45  ;;  %612 = vmatmul.mubr.bf16.gmra.mxu1 %v1138_v46 }
  0xf4   : > { %v1262_v47 = vpop.f32.mrf.mxu0  ;;  %v1264_v48 = vpop.f32.mrf.mxu1 }
  0xf5   : > { %v621_v18 = vsel %vm620_vm3, %v1262_v47, 0.0 }
  0xf6   : > { %v495_v49 = vpop.f32.mrf.mxu0  ;;  %v559_v50 = vpop.f32.mrf.mxu1 }
  0xf8   : > { %v1266_v51 = vpop.f32.mrf.mxu0  ;;  %v1268_v52 = vpop.f32.mrf.mxu1 }
  0xf9   : > { %v622_v15 = vsel %vm620_vm3, %v1266_v51, 0.0 }
  0xfa   : > { %v498_v53 = vpop.f32.mrf.mxu0  ;;  %v562_v54 = vpop.f32.mrf.mxu1  ;;  %v623_v20 = vadd.f32 %v622_v15, %v621_v18 }
  0xfc   : > { %v1270_v55 = vpop.f32.mrf.mxu0  ;;  %v1272_v56 = vpop.f32.mrf.mxu1 }
  0xfd   : > { %v624_v19 = vsel %vm620_vm3, %v1270_v55, 0.0 }
  0xfe   : > { %v503_v57 = vpop.f32.mrf.mxu0  ;;  %v567_v58 = vpop.f32.mrf.mxu1  ;;  %v625_v24 = vadd.f32 %v624_v19, %v623_v20 }
 0x100   : > { %v1274_v59 = vpop.f32.mrf.mxu0  ;;  %v1276_v60 = vpop.f32.mrf.mxu1 }
 0x101   : > { %v626_v23 = vsel %vm620_vm3, %v1274_v59, 0.0 }
 0x102   : > { %v506_v61 = vpop.f32.mrf.mxu0  ;;  %v570_v62 = vpop.f32.mrf.mxu1  ;;  %v627_v28 = vadd.f32 %v626_v23, %v625_v24 }
 0x104   : > { %v1278_v63 = vpop.f32.mrf.mxu0  ;;  %v1280_v0 = vpop.f32.mrf.mxu1 }
 0x105   : > { %v628_v27 = vsel %vm620_vm3, %v1278_v63, 0.0 }
 0x106   : > { %v511_v1 = vpop.f32.mrf.mxu0  ;;  %v575_v2 = vpop.f32.mrf.mxu1  ;;  %v629_v32 = vadd.f32 %v628_v27, %v627_v28 }
 0x108   : > { %v1282_v3 = vpop.f32.mrf.mxu0  ;;  %v1284_v4 = vpop.f32.mrf.mxu1 }
 0x109   : > { %v630_v31 = vsel %vm620_vm3, %v1282_v3, 0.0 }
 0x10a   : > { %v514_v5 = vpop.f32.mrf.mxu0  ;;  %v578_v6 = vpop.f32.mrf.mxu1  ;;  %v631_v36 = vadd.f32 %v630_v31, %v629_v32 }
 0x10c   : > { %v1286_v7 = vpop.f32.mrf.mxu0  ;;  %v1288_v8 = vpop.f32.mrf.mxu1 }
 0x10d   : > { %v632_v35 = vsel %vm620_vm3, %v1286_v7, 0.0 }
 0x10e   : > { %v519_v9 = vpop.f32.mrf.mxu0  ;;  %v583_v10 = vpop.f32.mrf.mxu1  ;;  %v633_v40 = vadd.f32 %v632_v35, %v631_v36  ;;  %v652_v36 = vsel %vm620_vm3, %v1264_v48, 0.0 }
 0x110   : > { %v1290_v11 = vpop.f32.mrf.mxu0  ;;  %v1292_v12 = vpop.f32.mrf.mxu1 }
 0x111   : > { %v634_v39 = vsel %vm620_vm3, %v1290_v11, 0.0 }
 0x112   : > { %v522_v13 = vpop.f32.mrf.mxu0  ;;  %v586_v14 = vpop.f32.mrf.mxu1  ;;  %v635_v44 = vadd.f32 %v634_v39, %v633_v40  ;;  %v656_v40 = vsel %vm620_vm3, %v1272_v56, 0.0 }
 0x114   : > { %v1296_v16 = vpop.f32.mrf.mxu0  ;;  %v1298_v17 = vpop.f32.mrf.mxu1 }
 0x115   : > { %v636_v43 = vsel %vm620_vm3, %v1296_v16, 0.0 }
 0x116   : > { %v527_v21 = vpop.f32.mrf.mxu0  ;;  %v591_v22 = vpop.f32.mrf.mxu1  ;;  %v637_v50 = vadd.f32 %v636_v43, %v635_v44  ;;  %v658_v44 = vsel %vm620_vm3, %v1276_v60, 0.0 }
 0x118   : > { %v1306_v25 = vpop.f32.mrf.mxu0  ;;  %v1308_v26 = vpop.f32.mrf.mxu1 }
 0x119   : > { %v638_v49 = vsel %vm620_vm3, %v1306_v25, 0.0 }
 0x11a   : > { %v530_v29 = vpop.f32.mrf.mxu0  ;;  %v594_v30 = vpop.f32.mrf.mxu1  ;;  %v639_v58 = vadd.f32 %v638_v49, %v637_v50  ;;  %v662_v50 = vsel %vm620_vm3, %v1284_v4, 0.0 }
 0x11c   : > { %v1314_v33 = vpop.f32.mrf.mxu0  ;;  %v1316_v34 = vpop.f32.mrf.mxu1 }
 0x11d   : > { %v640_v57 = vsel %vm620_vm3, %v1314_v33, 0.0 }
 0x11e   : > { %v535_v37 = vpop.f32.mrf.mxu0  ;;  %v599_v38 = vpop.f32.mrf.mxu1  ;;  %v641_v2 = vadd.f32 %v640_v57, %v639_v58  ;;  %v664_v58 = vsel %vm620_vm3, %v1288_v8, 0.0 }
 0x11f   : > { %v654_v38 = vsel %vm620_vm3, %v1268_v52, 0.0 }
 0x120   : > { %v1322_v41 = vpop.f32.mrf.mxu0  ;;  %v1324_v42 = vpop.f32.mrf.mxu1 }
 0x121   : > { %v642_v1 = vsel %vm620_vm3, %v1322_v41, 0.0 }
 0x122   : > { %v538_v45 = vpop.f32.mrf.mxu0  ;;  %v602_v46 = vpop.f32.mrf.mxu1  ;;  %v643_v10 = vadd.f32 %v642_v1, %v641_v2  ;;  %v668_v2 = vsel %vm620_vm3, %v1298_v17, 0.0 }
 0x123   : > { %v660_v46 = vsel %vm620_vm3, %v1280_v0, 0.0 }
 0x124   : > { %v1330_v53 = vpop.f32.mrf.mxu0  ;;  %v1332_v54 = vpop.f32.mrf.mxu1 }
 0x125   : > { %v644_v9 = vsel %vm620_vm3, %v1330_v53, 0.0 }
 0x126   : > { %v543_v61 = vpop.f32.mrf.mxu0  ;;  %v607_v62 = vpop.f32.mrf.mxu1  ;;  %v645_v18 = vadd.f32 %v644_v9, %v643_v10  ;;  %v670_v10 = vsel %vm620_vm3, %v1308_v26, 0.0 }
 0x127   : > { %v666_v62 = vsel %vm620_vm3, %v1292_v12, 0.0 }
 0x128   : > { %v1338_v5 = vpop.f32.mrf.mxu0  ;;  %v1340_v6 = vpop.f32.mrf.mxu1 }
 0x129   : > { %v646_v15 = vsel %vm620_vm3, %v1338_v5, 0.0 }
 0x12a   : > { %v546_v13 = vpop.f32.mrf.mxu0  ;;  %v610_v14 = vpop.f32.mrf.mxu1  ;;  %v647_v22 = vadd.f32 %v646_v15, %v645_v18  ;;  %v674_v18 = vsel %vm620_vm3, %v1324_v42, 0.0 }
 0x12b   : > { %v672_v14 = vsel %vm620_vm3, %v1316_v34, 0.0 }
 0x12c   : > { %v1346_v19 = vpop.f32.mrf.mxu0  ;;  %v1348_v20 = vpop.f32.mrf.mxu1 }
 0x12d   : > { %v648_v21 = vsel %vm620_vm3, %v1346_v19, 0.0 }
 0x12e   : > { %v551_v23 = vpop.f32.mrf.mxu0  ;;  %v615_v24 = vpop.f32.mrf.mxu1  ;;  %v649_v27 = vadd.f32 %v648_v21, %v647_v22  ;;  %v676_v22 = vsel %vm620_vm3, %v1332_v54, 0.0 }
 0x12f   : > { %v678_v24 = vsel %vm620_vm3, %v1340_v6, 0.0 }
 0x130   : > { %v1352_v28 = vpop.f32.mrf.mxu0  ;;  %v1354_v29 = vpop.f32.mrf.mxu1 }
 0x131   : > { %v650_v30 = vsel %vm620_vm3, %v1352_v28, 0.0 }
 0x132   : > { %v651_v31 = vadd.f32 %v650_v30, %v649_v27  ;;  %v554_v32 = vpop.f32.mrf.mxu0  ;;  %v618_v35 = vpop.f32.mrf.mxu1  ;;  %v680_v30 = vsel %vm620_vm3, %v1348_v20, 0.0 }
 0x133   : > { %v682_v32 = vsel %vm620_vm3, %v1354_v29, 0.0 }
 0x134   : > { %v653_v37 = vadd.f32 %v652_v36, %v651_v31 }
 0x136   : > { %v655_v39 = vadd.f32 %v654_v38, %v653_v37 }
 0x138   : > { %v657_v43 = vadd.f32 %v656_v40, %v655_v39 }
 0x13a   : > { %v659_v45 = vadd.f32 %v658_v44, %v657_v43 }
 0x13c   : > { %v661_v49 = vadd.f32 %v660_v46, %v659_v45 }
 0x13e   : > { %v663_v57 = vadd.f32 %v662_v50, %v661_v49 }
 0x140   : > { %v665_v61 = vadd.f32 %v664_v58, %v663_v57 }
 0x142   : > { %v667_v1 = vadd.f32 %v666_v62, %v665_v61 }
 0x144   : > { %v669_v9 = vadd.f32 %v668_v2, %v667_v1 }
 0x146   : > { %v671_v13 = vadd.f32 %v670_v10, %v669_v9 }
 0x148   : > { %v673_v15 = vadd.f32 %v672_v14, %v671_v13 }
 0x14a   : > { %v675_v21 = vadd.f32 %v674_v18, %v673_v15 }
 0x14c   : > { %v677_v23 = vadd.f32 %v676_v22, %v675_v21 }
 0x14e   : > { %v679_v27 = vadd.f32 %v678_v24, %v677_v23 }
 0x150   : > { %v681_v31 = vadd.f32 %v680_v30, %v679_v27 }
 0x152   : > { %v683_v35 = vadd.f32 %v682_v32, %v681_v31 }
 0x154   : > { %v684_v36 = vrot.slane %v683_v35, 4 }
 0x156   : > { %v685_v37 = vadd.f32 %v684_v36, %v683_v35 }
 0x158   : > { %v686_v38 = vrot.slane %v685_v37, 2 }
 0x15a   : > { %v687_v39 = vadd.f32 %v686_v38, %v685_v37 }
 0x15c   : > { %v688_v40 = vrot.slane %v687_v39, 1 }
 0x15e   : > { %v689_v43 = vadd.f32 %v688_v40, %v687_v39 }
 0x160   : > { %v1390_v44 = vmul.f32 0.00390625, %v689_v43 }
 0x162   : > { %v1394_v45 = vsub.f32 %v1262_v47, %v1390_v44  ;;  %v1398_v46 = vsub.f32 %v1266_v51, %v1390_v44  ;;  %v1402_v49 = vsub.f32 %v1270_v55, %v1390_v44  ;;  %v1406_v50 = vsub.f32 %v1274_v59, %v1390_v44 }
 0x163   : > { %v1414_v47 = vsub.f32 %v1278_v63, %v1390_v44  ;;  %v1420_v55 = vsub.f32 %v1282_v3, %v1390_v44  ;;  %v1428_v2 = vsub.f32 %v1286_v7, %v1390_v44  ;;  %v1435_v3 = vsub.f32 %v1290_v11, %v1390_v44 }
 0x164   : > { %v724_v57 = vmul.f32 %v1394_v45, %v1394_v45  ;;  %v725_v58 = vmul.f32 %v1398_v46, %v1398_v46  ;;  %v726_v51 = vmul.f32 %v1402_v49, %v1402_v49  ;;  %v727_v59 = vmul.f32 %v1406_v50, %v1406_v50 }
 0x165   : > { %v728_v63 = vmul.f32 %v1414_v47, %v1414_v47  ;;  %v729_v13 = vmul.f32 %v1420_v55, %v1420_v55  ;;  %v1442_v7 = vsub.f32 %v1296_v16, %v1390_v44  ;;  %v730_v18 = vmul.f32 %v1428_v2, %v1428_v2 }
 0x166   : > { %v756_v61 = vsel %vm620_vm3, %v724_v57, 0.0  ;;  %v757_v62 = vsel %vm620_vm3, %v725_v58, 0.0  ;;  %v759_v9 = vsel %vm620_vm3, %v726_v51, 0.0  ;;  %v761_v14 = vsel %vm620_vm3, %v727_v59, 0.0 }
 0x167   : > { %v758_v1 = vadd.f32 %v757_v62, %v756_v61  ;;  %v763_v21 = vsel %vm620_vm3, %v728_v63, 0.0  ;;  %v1449_v11 = vsub.f32 %v1306_v25, %v1390_v44  ;;  %v731_v23 = vmul.f32 %v1435_v3, %v1435_v3 }
 0x168   : > { %v765_v24 = vsel %vm620_vm3, %v729_v13, 0.0  ;;  %v1456_v16 = vsub.f32 %v1314_v33, %v1390_v44  ;;  %v732_v30 = vmul.f32 %v1442_v7, %v1442_v7  ;;  %v767_v31 = vsel %vm620_vm3, %v730_v18, 0.0 }
 0x169   : > { %v760_v10 = vadd.f32 %v759_v9, %v758_v1  ;;  %v1463_v25 = vsub.f32 %v1322_v41, %v1390_v44  ;;  %v733_v35 = vmul.f32 %v1449_v11, %v1449_v11  ;;  %v769_v36 = vsel %vm620_vm3, %v731_v23, 0.0 }
 0x16a   : > { %v1470_v33 = vsub.f32 %v1330_v53, %v1390_v44  ;;  %v734_v38 = vmul.f32 %v1456_v16, %v1456_v16  ;;  %v771_v39 = vsel %vm620_vm3, %v732_v30, 0.0  ;;  %v1477_v41 = vsub.f32 %v1338_v5, %v1390_v44 }
 0x16b   : > { %v762_v15 = vadd.f32 %v761_v14, %v760_v10  ;;  %v735_v43 = vmul.f32 %v1463_v25, %v1463_v25  ;;  %v773_v57 = vsel %vm620_vm3, %v733_v35, 0.0  ;;  %v1484_v53 = vsub.f32 %v1346_v19, %v1390_v44 }
 0x16c   : > { %v736_v51 = vmul.f32 %v1470_v33, %v1470_v33  ;;  %v775_v59 = vsel %vm620_vm3, %v734_v38, 0.0  ;;  %v1491_v5 = vsub.f32 %v1352_v28, %v1390_v44  ;;  %v737_v62 = vmul.f32 %v1477_v41, %v1477_v41 }
 0x16d   : > { %v764_v22 = vadd.f32 %v763_v21, %v762_v15  ;;  %v777_v1 = vsel %vm620_vm3, %v735_v43, 0.0  ;;  %v1498_v19 = vsub.f32 %v1264_v48, %v1390_v44  ;;  %v738_v9 = vmul.f32 %v1484_v53, %v1484_v53 }
 0x16e   : > { %v779_v10 = vsel %vm620_vm3, %v736_v51, 0.0  ;;  %v1505_v28 = vsub.f32 %v1268_v52, %v1390_v44  ;;  %v739_v14 = vmul.f32 %v1491_v5, %v1491_v5  ;;  %v781_v15 = vsel %vm620_vm3, %v737_v62, 0.0 }
 0x16f   : > { %v766_v27 = vadd.f32 %v765_v24, %v764_v22  ;;  %v1512_v48 = vsub.f32 %v1272_v56, %v1390_v44  ;;  %v740_v21 = vmul.f32 %v1498_v19, %v1498_v19  ;;  %v783_v22 = vsel %vm620_vm3, %v738_v9, 0.0 }
 0x170   : > { %v1519_v52 = vsub.f32 %v1276_v60, %v1390_v44  ;;  %v741_v24 = vmul.f32 %v1505_v28, %v1505_v28  ;;  %v1526_v56 = vsub.f32 %v1280_v0, %v1390_v44  ;;  %v1533_v60 = vsub.f32 %v1284_v4, %v1390_v44 }
 0x171   : > { %v768_v32 = vadd.f32 %v767_v31, %v766_v27  ;;  %v785_v27 = vsel %vm620_vm3, %v739_v14, 0.0  ;;  %v742_v31 = vmul.f32 %v1512_v48, %v1512_v48  ;;  %v1540_v0 = vsub.f32 %v1288_v8, %v1390_v44 }
 0x172   : > { %v1547_v4 = vsub.f32 %v1292_v12, %v1390_v44  ;;  %v1554_v8 = vsub.f32 %v1298_v17, %v1390_v44  ;;  %v1561_v12 = vsub.f32 %v1308_v26, %v1390_v44  ;;  %v1568_v17 = vsub.f32 %v1316_v34, %v1390_v44 }
 0x173   : > { %v770_v37 = vadd.f32 %v769_v36, %v768_v32  ;;  %v787_v32 = vsel %vm620_vm3, %v740_v21, 0.0  ;;  %v743_v36 = vmul.f32 %v1519_v52, %v1519_v52  ;;  %v1575_v26 = vsub.f32 %v1324_v42, %v1390_v44 }
 0x174   : > { %v1582_v34 = vsub.f32 %v1332_v54, %v1390_v44  ;;  %v721_v42 = vsub.f32 %v1340_v6, %v1390_v44 }
 0x175   : > { %v772_v40 = vadd.f32 %v771_v39, %v770_v37  ;;  %v789_v37 = vsel %vm620_vm3, %v741_v24, 0.0  ;;  %v744_v39 = vmul.f32 %v1526_v56, %v1526_v56 }
 0x176   : > { %v752_v54 = vmul.f32 %v1582_v34, %v1582_v34 }
 0x177   : > { %v774_v58 = vadd.f32 %v773_v57, %v772_v40  ;;  %v791_v40 = vsel %vm620_vm3, %v742_v31, 0.0  ;;  %v745_v57 = vmul.f32 %v1533_v60, %v1533_v60 }
 0x179   : > { %v776_v61 = vadd.f32 %v775_v59, %v774_v58  ;;  %v793_v58 = vsel %vm620_vm3, %v743_v36, 0.0  ;;  %v746_v59 = vmul.f32 %v1540_v0, %v1540_v0 }
 0x17b   : > { %v778_v63 = vadd.f32 %v777_v1, %v776_v61  ;;  %v795_v61 = vsel %vm620_vm3, %v744_v39, 0.0  ;;  %v747_v1 = vmul.f32 %v1547_v4, %v1547_v4 }
 0x17d   : > { %v780_v13 = vadd.f32 %v779_v10, %v778_v63  ;;  %v797_v63 = vsel %vm620_vm3, %v745_v57, 0.0  ;;  %v748_v10 = vmul.f32 %v1554_v8, %v1554_v8 }
 0x17f   : > { %v782_v18 = vadd.f32 %v781_v15, %v780_v13  ;;  %v799_v13 = vsel %vm620_vm3, %v746_v59, 0.0  ;;  %v749_v15 = vmul.f32 %v1561_v12, %v1561_v12 }
 0x181   : > { %v784_v23 = vadd.f32 %v783_v22, %v782_v18  ;;  %v801_v18 = vsel %vm620_vm3, %v747_v1, 0.0  ;;  %v750_v22 = vmul.f32 %v1568_v17, %v1568_v17 }
 0x183   : > { %v786_v30 = vadd.f32 %v785_v27, %v784_v23  ;;  %v803_v23 = vsel %vm620_vm3, %v748_v10, 0.0  ;;  %v751_v27 = vmul.f32 %v1575_v26, %v1575_v26 }
 0x185   : > { %v788_v35 = vadd.f32 %v787_v32, %v786_v30  ;;  %v805_v30 = vsel %vm620_vm3, %v749_v15, 0.0  ;;  %v722_v32 = vsub.f32 %v1348_v20, %v1390_v44  ;;  %v809_v6 = vsel %vm620_vm3, %v751_v27, 0.0 }
 0x187   : > { %v790_v38 = vadd.f32 %v789_v37, %v788_v35  ;;  %v807_v35 = vsel %vm620_vm3, %v750_v22, 0.0  ;;  %v723_v37 = vsub.f32 %v1354_v29, %v1390_v44 }
 0x189   : > { %v792_v43 = vadd.f32 %v791_v40, %v790_v38  ;;  %v753_v38 = vmul.f32 %v721_v42, %v721_v42  ;;  %v754_v40 = vmul.f32 %v722_v32, %v722_v32 }
 0x18b   : > { %v794_v51 = vadd.f32 %v793_v58, %v792_v43  ;;  %v811_v43 = vsel %vm620_vm3, %v752_v54, 0.0  ;;  %v755_v58 = vmul.f32 %v723_v37, %v723_v37  ;;  %v813_v20 = vsel %vm620_vm3, %v753_v38, 0.0 }
 0x18c   : > { %v815_v59 = vsel %vm620_vm3, %v754_v40, 0.0 }
 0x18d   : > { %v796_v62 = vadd.f32 %v795_v61, %v794_v51 }
 0x18f   : > { %v798_v9 = vadd.f32 %v797_v63, %v796_v62  ;;  %v817_v62 = vsel %vm620_vm3, %v755_v58, 0.0 }
 0x191   : > { %v800_v14 = vadd.f32 %v799_v13, %v798_v9 }
 0x193   : > { %v802_v21 = vadd.f32 %v801_v18, %v800_v14 }
 0x195   : > { %v804_v24 = vadd.f32 %v803_v23, %v802_v21 }
 0x197   : > { %v806_v31 = vadd.f32 %v805_v30, %v804_v24 }
 0x199   : > { %v808_v36 = vadd.f32 %v807_v35, %v806_v31 }
 0x19b   : > { %v810_v39 = vadd.f32 %v809_v6, %v808_v36 }
 0x19d   : > { %v812_v57 = vadd.f32 %v811_v43, %v810_v39 }
 0x19f   : > { %v814_v51 = vadd.f32 %v813_v20, %v812_v57 }
 0x1a1   : > { %v816_v61 = vadd.f32 %v815_v59, %v814_v51 }
 0x1a3   : > { %v818_v1 = vadd.f32 %v817_v62, %v816_v61 }
 0x1a5   : > { %v819_v63 = vrot.slane %v818_v1, 4 }
 0x1a7   : > { %v820_v29 = vadd.f32 %v819_v63, %v818_v1 }
 0x1a9   : > { %v821_v44 = vrot.slane %v820_v29, 2 }
 0x1ab   : > { %v822_v9 = vadd.f32 %v821_v44, %v820_v29 }
 0x1ad   : > { %v823_v10 = vrot.slane %v822_v9, 1 }
 0x1af   : > { %v824_v13 = vadd.f32 %v823_v10, %v822_v9 }
 0x1b1   : > { %v825_v14 = vmul.f32 0.00390625, %v824_v13 }
 0x1b3   : > { %v826_v15 = vadd.f32 1e-05, %v825_v14 }
 0x1b5   : > { %1139 = vrsqrt.f32 %v826_v15 }
 0x1c2   : > { %v1140_v18 = vpop.eup %1139 }
 0x1c3   : > { %v828_v21 = vmul.f32 %v1140_v18, %v1394_v45  ;;  %v829_v22 = vmul.f32 %v1140_v18, %v1398_v46  ;;  %v830_v23 = vmul.f32 %v1140_v18, %v1402_v49  ;;  %v831_v24 = vmul.f32 %v1140_v18, %v1406_v50 }
 0x1c4   : > { %v832_v27 = vmul.f32 %v1140_v18, %v1414_v47  ;;  %v833_v30 = vmul.f32 %v1140_v18, %v1420_v55  ;;  %v834_v31 = vmul.f32 %v1140_v18, %v1428_v2  ;;  %v835_v54 = vmul.f32 %v1140_v18, %v1435_v3 }
 0x1c5   : > { %v836_v35 = vmul.f32 %v1140_v18, %v1442_v7  ;;  %v837_v36 = vmul.f32 %v1140_v18, %v1449_v11  ;;  %v838_v45 = vmul.f32 %v1140_v18, %v1456_v16  ;;  %v839_v46 = vmul.f32 %v1140_v18, %v1463_v25 }
 0x1c6   : > { %v840_v49 = vmul.f32 %v1140_v18, %v1470_v33  ;;  %v841_v50 = vmul.f32 %v1140_v18, %v1477_v41  ;;  %v842_v47 = vmul.f32 %v1140_v18, %v1484_v53  ;;  %v843_v55 = vmul.f32 %v1140_v18, %v1491_v5 }
 0x1c7   : > { %v844_v2 = vmul.f32 %v1140_v18, %v1498_v19  ;;  %v845_v3 = vmul.f32 %v1140_v18, %v1505_v28  ;;  %v846_v7 = vmul.f32 %v1140_v18, %v1512_v48  ;;  %v847_v11 = vmul.f32 %v1140_v18, %v1519_v52 }
 0x1c8   : > { %v1625_v16 = vmul.f32 %v1140_v18, %v1526_v56  ;;  %v1628_v25 = vmul.f32 %v1140_v18, %v1533_v60  ;;  %v1631_v33 = vmul.f32 %v1140_v18, %v1540_v0  ;;  %v1634_v41 = vmul.f32 %v1140_v18, %v1547_v4 }
 0x1c9   : > { %v1637_v53 = vmul.f32 %v1140_v18, %v1554_v8  ;;  %v1640_v5 = vmul.f32 %v1140_v18, %v1561_v12  ;;  %v1643_v19 = vmul.f32 %v1140_v18, %v1568_v17  ;;  %v1646_v28 = vmul.f32 %v1140_v18, %v1575_v26 }
 0x1ca   : > { %v1656_v48 = vmul.f32 %v1140_v18, %v1582_v34  ;;  %v1658_v52 = vmul.f32 %v1140_v18, %v721_v42  ;;  %v1660_v56 = vmul.f32 %v1140_v18, %v722_v32  ;;  %v1662_v60 = vmul.f32 %v1140_v18, %v723_v37 }
 0x1cb   : > { %v860_v0 = vmax.f32 %v828_v21, 0.0  ;;  %v861_v4 = vmax.f32 %v829_v22, 0.0  ;;  %v862_v8 = vmax.f32 %v830_v23, 0.0  ;;  %v863_v12 = vmax.f32 %v831_v24, 0.0 }
 0x1cc   : > { %v864_v17 = vmax.f32 %v832_v27, 0.0  ;;  %v865_v26 = vmax.f32 %v833_v30, 0.0  ;;  %v866_v34 = vmax.f32 %v834_v31, 0.0  ;;  %v867_v38 = vmax.f32 %v835_v54, 0.0 }
 0x1cd   : > { %v868_v42 = vmax.f32 %v836_v35, 0.0  ;;  %v869_v6 = vmax.f32 %v837_v36, 0.0  ;;  %v870_v32 = vmax.f32 %v838_v45, 0.0  ;;  %v871_v39 = vmax.f32 %v839_v46, 0.0  ;;  %892 = vst.msk [vmem:[%s1653_s11] sm:$0xff] %vm620_vm3, %v860_v0  ;;  %893 = vst.msk [vmem:[%s1653_s11 + $0x8] sm:$0xff] %vm620_vm3, %v861_v4 }
 0x1ce   : > { %894 = vst.msk [vmem:[%s1653_s11 + $0x10] sm:$0xff] %vm620_vm3, %v862_v8  ;;  %895 = vst.msk [vmem:[%s1653_s11 + $0x18] sm:$0xff] %vm620_vm3, %v863_v12  ;;  %v872_v37 = vmax.f32 %v840_v49, 0.0  ;;  %v873_v40 = vmax.f32 %v841_v50, 0.0  ;;  %v874_v43 = vmax.f32 %v842_v47, 0.0  ;;  %v875_v57 = vmax.f32 %v843_v55, 0.0 }
 0x1cf   : > { %896 = vst.msk [vmem:[%s1653_s11 + $0x20] sm:$0xff] %vm620_vm3, %v864_v17  ;;  %897 = vst.msk [vmem:[%s1653_s11 + $0x28] sm:$0xff] %vm620_vm3, %v865_v26  ;;  %v876_v58 = vmax.f32 %v844_v2, 0.0  ;;  %v877_v20 = vmax.f32 %v845_v3, 0.0  ;;  %v878_v51 = vmax.f32 %v846_v7, 0.0  ;;  %v879_v59 = vmax.f32 %v847_v11, 0.0 }
 0x1d0   : > { %898 = vst.msk [vmem:[%s1653_s11 + $0x30] sm:$0xff] %vm620_vm3, %v866_v34  ;;  %899 = vst.msk [vmem:[%s1653_s11 + $0x38] sm:$0xff] %vm620_vm3, %v867_v38  ;;  %v880_v61 = vmax.f32 %v1625_v16, 0.0  ;;  %v881_v62 = vmax.f32 %v1628_v25, 0.0  ;;  %v882_v1 = vmax.f32 %v1631_v33, 0.0  ;;  %v883_v63 = vmax.f32 %v1634_v41, 0.0 }
 0x1d1   : > { %900 = vst.msk [vmem:[%s1653_s11 + $0x40] sm:$0xff] %vm620_vm3, %v868_v42  ;;  %901 = vst.msk [vmem:[%s1653_s11 + $0x48] sm:$0xff] %vm620_vm3, %v869_v6  ;;  %v884_v29 = vmax.f32 %v1637_v53, 0.0  ;;  %v885_v44 = vmax.f32 %v1640_v5, 0.0  ;;  %v886_v9 = vmax.f32 %v1643_v19, 0.0  ;;  %v887_v10 = vmax.f32 %v1646_v28, 0.0 }
 0x1d2   : > { %902 = vst.msk [vmem:[%s1653_s11 + $0x50] sm:$0xff] %vm620_vm3, %v870_v32  ;;  %903 = vst.msk [vmem:[%s1653_s11 + $0x58] sm:$0xff] %vm620_vm3, %v871_v39  ;;  %v888_v13 = vmax.f32 %v1656_v48, 0.0  ;;  %v889_v14 = vmax.f32 %v1658_v52, 0.0  ;;  %v890_v15 = vmax.f32 %v1660_v56, 0.0  ;;  %v891_v18 = vmax.f32 %v1662_v60, 0.0 }
 0x1d3   : > { %904 = vst.msk [vmem:[%s1653_s11 + $0x60] sm:$0xff] %vm620_vm3, %v872_v37  ;;  %905 = vst.msk [vmem:[%s1653_s11 + $0x68] sm:$0xff] %vm620_vm3, %v873_v40 }
 0x1d4   : > { %906 = vst.msk [vmem:[%s1653_s11 + $0x70] sm:$0xff] %vm620_vm3, %v874_v43  ;;  %907 = vst.msk [vmem:[%s1653_s11 + $0x78] sm:$0xff] %vm620_vm3, %v875_v57 }
 0x1d5   : > { %908 = vst.msk [vmem:[%s1653_s11 + $0x80] sm:$0xff] %vm620_vm3, %v876_v58  ;;  %909 = vst.msk [vmem:[%s1653_s11 + $0x88] sm:$0xff] %vm620_vm3, %v877_v20 }
 0x1d6   : > { %910 = vst.msk [vmem:[%s1653_s11 + $0x90] sm:$0xff] %vm620_vm3, %v878_v51  ;;  %911 = vst.msk [vmem:[%s1653_s11 + $0x98] sm:$0xff] %vm620_vm3, %v879_v59 }
 0x1d7   : > { %912 = vst.msk [vmem:[%s1653_s11 + $0xa0] sm:$0xff] %vm620_vm3, %v880_v61  ;;  %913 = vst.msk [vmem:[%s1653_s11 + $0xa8] sm:$0xff] %vm620_vm3, %v881_v62 }
 0x1d8   : > { %914 = vst.msk [vmem:[%s1653_s11 + $0xb0] sm:$0xff] %vm620_vm3, %v882_v1  ;;  %915 = vst.msk [vmem:[%s1653_s11 + $0xb8] sm:$0xff] %vm620_vm3, %v883_v63 }
 0x1d9   : > { %916 = vst.msk [vmem:[%s1653_s11 + $0xc0] sm:$0xff] %vm620_vm3, %v884_v29  ;;  %917 = vst.msk [vmem:[%s1653_s11 + $0xc8] sm:$0xff] %vm620_vm3, %v885_v44 }
 0x1da   : > { %918 = vst.msk [vmem:[%s1653_s11 + $0xd0] sm:$0xff] %vm620_vm3, %v886_v9  ;;  %919 = vst.msk [vmem:[%s1653_s11 + $0xd8] sm:$0xff] %vm620_vm3, %v887_v10 }
 0x1db   : > { %920 = vst.msk [vmem:[%s1653_s11 + $0xe0] sm:$0xff] %vm620_vm3, %v888_v13  ;;  %921 = vst.msk [vmem:[%s1653_s11 + $0xe8] sm:$0xff] %vm620_vm3, %v889_v14 }
 0x1dc   : > { %922 = vst.msk [vmem:[%s1653_s11 + $0xf0] sm:$0xff] %vm620_vm3, %v890_v15  ;;  %923 = vst.msk [vmem:[%s1653_s11 + $0xf8] sm:$0xff] %vm620_vm3, %v891_v18 }
 0x1dd PF: > { %s12_s9 = sadd.s32 1, %s1147_s9  }
 0x1de   : > { %p9_p4 = scmp.ge.s32.totalorder %s12_s9, 4  }
 0x1e0   :  { %11 = sbr.rel (!%p9_p4) target bundleno = 1 (0x1), region = 58 }

// kernel: cyclegan_generator_forward.8
= control target key start
LH: loop header
LB: loop body
LE: loop exit
PB: predicated region body
PF: predicated region fallthrough
CT: control target
= control target key end

     0   :  { %s543_s9 = smov 0   ;;  %s607_s0 = inlined_call_operand.vmem [shape: bf16[128,72], index: 0, kind: input, shape index: {}]   ;;  %s608_s1 = inlined_call_operand.vmem [shape: bf16[72,16], index: 1, kind: input, shape index: {}]   ;;  %s609_s2 = inlined_call_operand.vmem [shape: f32[128,16], index: 2, kind: output, shape index: {}]  }
   0x1 LB: > { %s438_s10 = sadd.s32 4294967295, %s526_s9   ;;  %p442_p0 = scmp.ge.s32.totalorder %s526_s9, 1  ;;  %s526_s9 = sphi %s543_s9, %s12_s9  }
   0x2   : > { %p113_p1 = scmp.lt.s32.totalorder %s526_s9, 3 }
   0x4   : > { %p114_p2 = pnand %p442_p0, %p113_p1 }
   0x5   : > { %s443_s15 = sshll.u32 (!%p114_p2), %s438_s10, 3 }
   0x6   : > { %117 = sbr.rel (%p114_p2) target bundleno = 317 (0x13d), region = 28  ;;  %p136_p3 = scmp.lt.s32.totalorder (!%p114_p2), %s443_s15, 15 }
   0xb   : > { %v509_v0 = vld [vmem:[%s608_s1 + $0x20] ss:$0 sps:$4 sm:$0xff]   ;;  %vm225_vm0 = vcmask 1043456   ;;  %v510_v1 = vld [vmem:[%s608_s1 + $0x18] sm:$0xff]   ;;  %v511_v3 = vld [vmem:[%s608_s1 + $0x10] sm:$0xff]   ;;  %s611_s15 = smov (!%p136_p3, %s443_s15), 15 }
   0xc   : > { %499 = vmatprep.subr.msk.bf16.mxu0 %vm225_vm0, %v509_v0  ;;  %v227_v2 = vsel %vm225_vm0, %v509_v0, 0  ;;  %500 = vmatprep.subr.msk.bf16.mxu1 %vm225_vm0, %v509_v0  ;;  %v512_v4 = vld [vmem:[%s608_s1 + $0x8] sm:$0xff]   ;;  %s444_s20 = sshll.u32 %s611_s15, 2  ;;  %vm212_vm1 = vcmask 588800   ;;  %v513_v6 = vld [vmem:[%s608_s1] sm:$0xff]   ;;  %vm294_vm2 = vcmask 130048  }
   0xd   : > { %472 = vmatpush3.bf16.msra.mxu0 %v227_v2  ;;  %494 = vmatpush3.bf16.msra.mxu1 %v227_v2  ;;  %s139_s23 = scalar_lea.vmem %s607_s0, %s444_s20  ;;  %s446_s26 = sshll.u32 %s611_s15, 3 }
   0xe   : > { %473 = vmatprep.subr.bf16.mxu0 %v510_v1  ;;  %490 = vmatprep.subr.bf16.mxu1 %v510_v1  ;;  %v514_v5 = vld [vmem:[%s139_s23] sm:$0xff]   ;;  %v516_v7 = vld [vmem:[%s139_s23 + $0x10] sm:$0xff]   ;;  %v515_v8 = vld [vmem:[%s139_s23 + $0x8] sm:$0xff]   ;;  %s145_s29 = scalar_lea.vmem %s609_s2, %s446_s26 }
   0xf   : > { %481 = vmatprep.mubr.msk.bf16.mxu0 %vm212_vm1, %v514_v5  ;;  %485 = vmatprep.mubr.msk.bf16.mxu1 %vm212_vm1, %v516_v7  ;;  %v517_v9 = vld [vmem:[%s139_s23 + $0x18] sm:$0xff]  }
  0x11   : > { %474 = vmatpush3.bf16.msra.mxu0 %v510_v1  ;;  %495 = vmatpush3.bf16.msra.mxu1 %v510_v1 }
  0x12   : > { %475 = vmatprep.subr.bf16.mxu0 %v511_v3  ;;  %491 = vmatprep.subr.bf16.mxu1 %v511_v3 }
  0x15   : > { %476 = vmatpush3.bf16.msra.mxu0 %v511_v3  ;;  %496 = vmatpush3.bf16.msra.mxu1 %v511_v3 }
  0x16   : > { %477 = vmatprep.subr.bf16.mxu0 %v512_v4  ;;  %492 = vmatprep.subr.bf16.mxu1 %v512_v4 }
  0x19   : > { %478 = vmatpush3.bf16.msra.mxu0 %v512_v4  ;;  %497 = vmatpush3.bf16.msra.mxu1 %v512_v4 }
  0x1a   : > { %479 = vmatprep.subr.bf16.mxu0 %v513_v6  ;;  %493 = vmatprep.subr.bf16.mxu1 %v513_v6 }
  0x1d   : > { %480 = vmatpush3.bf16.msra.mxu0 %v513_v6  ;;  %498 = vmatpush3.bf16.msra.mxu1 %v513_v6 }
  0x20   : > { %482 = vmatmul.mubr.msk.bf16.vlgmr.msra.gmra.mxu0 %vm212_vm1, %v515_v8  ;;  %486 = vmatmul.mubr.msk.bf16.vlgmr.msra.gmra.mxu1 %vm212_vm1, %v517_v9 }
  0xe0   : > { %v483_v10 = vpop.f32.mrf.mxu0  ;;  %v487_v11 = vpop.f32.mrf.mxu1 }
  0xe1   : > { %v298_v20 = vsel %vm294_vm2, %v483_v10, 0.0  ;;  %v306_v29 = vsel %vm294_vm2, %v487_v11, 0.0 }
  0xe2   : > { %v263_v12 = vpop.f32.mrf.mxu0  ;;  %v279_v14 = vpop.f32.mrf.mxu1 }
  0xe3   : > { %v295_v16 = vsel %vm294_vm2, %v263_v12, 0.0  ;;  %v302_v25 = vsel %vm294_vm2, %v279_v14, 0.0 }
  0xe4   : > { %v484_v13 = vpop.f32.mrf.mxu0  ;;  %v488_v19 = vpop.f32.mrf.mxu1 }
  0xe5   : > { %v300_v22 = vsel %vm294_vm2, %v484_v13, 0.0  ;;  %v308_v31 = vsel %vm294_vm2, %v488_v19, 0.0 }
  0xe6   : > { %v266_v15 = vpop.f32.mrf.mxu0  ;;  %v282_v23 = vpop.f32.mrf.mxu1 }
  0xe7   : > { %v296_v17 = vsel %vm294_vm2, %v266_v15, 0.0  ;;  %v304_v27 = vsel %vm294_vm2, %v282_v23, 0.0 }
  0xe8   : > { %v297_v18 = vadd.f32 %v296_v17, %v295_v16 }
  0xea   : > { %v299_v21 = vadd.f32 %v298_v20, %v297_v18 }
  0xec   : > { %v301_v24 = vadd.f32 %v300_v22, %v299_v21 }
  0xee   : > { %v303_v26 = vadd.f32 %v302_v25, %v301_v24 }
  0xf0   : > { %v305_v28 = vadd.f32 %v304_v27, %v303_v26 }
  0xf2   : > { %v307_v30 = vadd.f32 %v306_v29, %v305_v28 }
  0xf4   : > { %v309_v32 = vadd.f32 %v308_v31, %v307_v30 }
  0xf6   : > { %v310_v33 = vrot.slane %v309_v32, 4 }
  0xf8   : > { %v311_v34 = vadd.f32 %v310_v33, %v309_v32 }
  0xfa   : > { %v312_v35 = vrot.slane %v311_v34, 2 }
  0xfc   : > { %v313_v36 = vadd.f32 %v312_v35, %v311_v34 }
  0xfe   : > { %v314_v37 = vrot.slane %v313_v36, 1 }
 0x100   : > { %v315_v38 = vadd.f32 %v314_v37, %v313_v36 }
 0x102   : > { %v317_v39 = vmul.f32 0.015625, %v315_v38 }
 0x104   : > { %v318_v40 = vsub.f32 %v263_v12, %v317_v39  ;;  %v319_v41 = vsub.f32 %v266_v15, %v317_v39  ;;  %v320_v42 = vsub.f32 %v483_v10, %v317_v39  ;;  %v321_v43 = vsub.f32 %v484_v13, %v317_v39 }
 0x105   : > { %v322_v44 = vsub.f32 %v279_v14, %v317_v39  ;;  %v323_v48 = vsub.f32 %v282_v23, %v317_v39  ;;  %v324_v53 = vsub.f32 %v487_v11, %v317_v39  ;;  %v325_v57 = vsub.f32 %v488_v19, %v317_v39 }
 0x106   : > { %v326_v45 = vmul.f32 %v318_v40, %v318_v40  ;;  %v327_v46 = vmul.f32 %v319_v41, %v319_v41  ;;  %v328_v47 = vmul.f32 %v320_v42, %v320_v42  ;;  %v329_v49 = vmul.f32 %v321_v43, %v321_v43 }
 0x107   : > { %v330_v54 = vmul.f32 %v322_v44, %v322_v44  ;;  %v331_v58 = vmul.f32 %v323_v48, %v323_v48  ;;  %v332_v61 = vmul.f32 %v324_v53, %v324_v53  ;;  %v333_v0 = vmul.f32 %v325_v57, %v325_v57 }
 0x108   : > { %v334_v50 = vsel %vm294_vm2, %v326_v45, 0.0  ;;  %v335_v51 = vsel %vm294_vm2, %v327_v46, 0.0  ;;  %v337_v55 = vsel %vm294_vm2, %v328_v47, 0.0  ;;  %v339_v59 = vsel %vm294_vm2, %v329_v49, 0.0 }
 0x109   : > { %v336_v52 = vadd.f32 %v335_v51, %v334_v50  ;;  %v341_v62 = vsel %vm294_vm2, %v330_v54, 0.0  ;;  %v343_v1 = vsel %vm294_vm2, %v331_v58, 0.0  ;;  %v345_v3 = vsel %vm294_vm2, %v332_v61, 0.0 }
 0x10a   : > { %v347_v5 = vsel %vm294_vm2, %v333_v0, 0.0 }
 0x10b   : > { %v338_v56 = vadd.f32 %v337_v55, %v336_v52 }
 0x10d   : > { %v340_v60 = vadd.f32 %v339_v59, %v338_v56 }
 0x10f   : > { %v342_v63 = vadd.f32 %v341_v62, %v340_v60 }
 0x111   : > { %v344_v2 = vadd.f32 %v343_v1, %v342_v63 }
 0x113   : > { %v346_v4 = vadd.f32 %v345_v3, %v344_v2 }
 0x115   : > { %v348_v6 = vadd.f32 %v347_v5, %v346_v4 }
 0x117   : > { %v349_v7 = vrot.slane %v348_v6, 4 }
 0x119   : > { %v350_v8 = vadd.f32 %v349_v7, %v348_v6 }
 0x11b   : > { %v351_v9 = vrot.slane %v350_v8, 2 }
 0x11d   : > { %v352_v10 = vadd.f32 %v351_v9, %v350_v8 }
 0x11f   : > { %v353_v11 = vrot.slane %v352_v10, 1 }
 0x121   : > { %v354_v12 = vadd.f32 %v353_v11, %v352_v10 }
 0x123   : > { %v355_v13 = vmul.f32 0.015625, %v354_v12 }
 0x125   : > { %v356_v14 = vadd.f32 1e-05, %v355_v13 }
 0x127   : > { %518 = vrsqrt.f32 %v356_v14 }
 0x134   : > { %v519_v15 = vpop.eup %518 }
 0x135   : > { %v358_v16 = vmul.f32 %v519_v15, %v318_v40  ;;  %v359_v17 = vmul.f32 %v519_v15, %v319_v41  ;;  %v360_v18 = vmul.f32 %v519_v15, %v320_v42  ;;  %v361_v19 = vmul.f32 %v519_v15, %v321_v43 }
 0x136   : > { %v362_v20 = vmul.f32 %v519_v15, %v322_v44  ;;  %v363_v21 = vmul.f32 %v519_v15, %v323_v48  ;;  %v364_v22 = vmul.f32 %v519_v15, %v324_v53  ;;  %v365_v23 = vmul.f32 %v519_v15, %v325_v57 }
 0x137   : > { %v366_v24 = vmax.f32 %v358_v16, 0.0  ;;  %v367_v25 = vmax.f32 %v359_v17, 0.0  ;;  %v368_v26 = vmax.f32 %v360_v18, 0.0  ;;  %v369_v27 = vmax.f32 %v361_v19, 0.0 }
 0x138   : > { %v370_v28 = vmax.f32 %v362_v20, 0.0  ;;  %v371_v29 = vmax.f32 %v363_v21, 0.0  ;;  %v372_v30 = vmax.f32 %v364_v22, 0.0  ;;  %v373_v31 = vmax.f32 %v365_v23, 0.0 }
 0x139   : > { %374 = vst.msk [vmem:[%s145_s29] sm:$0xff] %vm294_vm2, %v366_v24  ;;  %375 = vst.msk [vmem:[%s145_s29 + $0x8] sm:$0xff] %vm294_vm2, %v367_v25 }
 0x13a   : > { %376 = vst.msk [vmem:[%s145_s29 + $0x10] sm:$0xff] %vm294_vm2, %v368_v26  ;;  %377 = vst.msk [vmem:[%s145_s29 + $0x18] sm:$0xff] %vm294_vm2, %v369_v27 }
 0x13b   : > { %378 = vst.msk [vmem:[%s145_s29 + $0x20] sm:$0xff] %vm294_vm2, %v370_v28  ;;  %379 = vst.msk [vmem:[%s145_s29 + $0x28] sm:$0xff] %vm294_vm2, %v371_v29 }
 0x13c   : > { %380 = vst.msk [vmem:[%s145_s29 + $0x30] sm:$0xff] %vm294_vm2, %v372_v30  ;;  %381 = vst.msk [vmem:[%s145_s29 + $0x38] sm:$0xff] %vm294_vm2, %v373_v31 }
 0x13d PF: > { %s12_s9 = sadd.s32 1, %s526_s9  }
 0x13e   : > { %p9_p4 = scmp.ge.s32.totalorder %s12_s9, 4  }
 0x140   :  { %11 = sbr.rel (!%p9_p4) target bundleno = 1 (0x1), region = 58 }

// kernel: cyclegan_generator_forward.9
= control target key start
LH: loop header
LB: loop body
LE: loop exit
PB: predicated region body
PF: predicated region fallthrough
CT: control target
= control target key end

     0   :  { %s441_s9 = smov 0   ;;  %s498_s0 = inlined_call_operand.vmem [shape: bf16[32,144], index: 0, kind: input, shape index: {}]   ;;  %s499_s1 = inlined_call_operand.vmem [shape: bf16[144,32], index: 1, kind: input, shape index: {}]   ;;  %s500_s2 = inlined_call_operand.vmem [shape: f32[32,32], index: 2, kind: output, shape index: {}]  }
   0x1 LB: > { %s369_s10 = sadd.s32 4294967295, %s423_s9   ;;  %p373_p0 = scmp.ge.s32.totalorder %s423_s9, 1  ;;  %s423_s9 = sphi %s441_s9, %s12_s9  }
   0x2   : > { %p114_p1 = scmp.lt.s32.totalorder %s423_s9, 3 }
   0x4   : > { %p115_p2 = pnand %p373_p0, %p114_p1 }
   0x5   : > { %s374_s13 = sshll.u32 (!%p115_p2), %s369_s10, 1 }
   0x6   : > { %118 = sbr.rel (%p115_p2) target bundleno = 304 (0x130), region = 28  ;;  %p138_p3 = scmp.lt.s32.totalorder (!%p115_p2), %s374_s13, 3 }
   0xb   : > { %v403_v0 = vld [vmem:[%s499_s1 + $0x38] sm:$0xff]   ;;  %v425_v1 = vmov 0   ;;  %v404_v2 = vld [vmem:[%s499_s1 + $0x30] sm:$0xff]   ;;  %s502_s13 = smov (!%p138_p3, %s374_s13), 3  ;;  %v405_v3 = vld [vmem:[%s499_s1 + $0x28] sm:$0xff]   ;;  %vm234_vm0 = vcmask 130048  }
   0xc   : > { %238 = vmatprep.subr.bf16.mxu0 %v425_v1  ;;  %s393_s18 = sshll.u32 %s502_s13, 3  ;;  %v406_v4 = vld [vmem:[%s499_s1 + $0x20] sm:$0xff]   ;;  %v407_v6 = vld [vmem:[%s499_s1 + $0x18] sm:$0xff]   ;;  %v408_v7 = vld [vmem:[%s499_s1 + $0x10] sm:$0xff]   ;;  %vm279_vm1 = vcmask 261120  }
   0xd   : > { %239 = vmatpush1.bf16.msra.mxu0 %v403_v0  ;;  %s142_s21 = scalar_lea.vmem %s498_s0, %s393_s18  ;;  %v409_v8 = vld [vmem:[%s499_s1 + $0x8] sm:$0xff]   ;;  %v410_v9 = vld [vmem:[%s499_s1] sm:$0xff]   ;;  %s148_s8 = scalar_lea.vmem %s500_s2, %s393_s18 }
   0xe   : > { %240 = vmatprep.subr.bf16.mxu0 %v425_v1  ;;  %v414_v5 = vld [vmem:[%s142_s21 + $0x4] ss:$8 sps:$4 sm:$0xff]   ;;  %v412_v11 = vld [vmem:[%s142_s21] ss:$8 sps:$4 sm:$0xff]  }
   0xf   : > { %390 = vmatprep.mubr.msk.bf16.mxu0 %vm234_vm0, %v414_v5  ;;  %v411_v10 = vld [vmem:[%s499_s1 + $0x40] sm:$0xff]  }
  0x11   : > { %241 = vmatpush1.bf16.msra.mxu0 %v404_v2 }
  0x12   : > { %242 = vmatprep.subr.bf16.mxu0 %v425_v1 }
  0x15   : > { %243 = vmatpush1.bf16.msra.mxu0 %v405_v3 }
  0x16   : > { %244 = vmatprep.subr.bf16.mxu0 %v425_v1 }
  0x19   : > { %245 = vmatpush1.bf16.msra.mxu0 %v406_v4 }
  0x1a   : > { %246 = vmatprep.subr.bf16.mxu0 %v425_v1 }
  0x1d   : > { %247 = vmatpush1.bf16.msra.mxu0 %v407_v6 }
  0x1e   : > { %248 = vmatprep.subr.bf16.mxu0 %v425_v1 }
  0x21   : > { %249 = vmatpush1.bf16.msra.mxu0 %v408_v7 }
  0x22   : > { %250 = vmatprep.subr.bf16.mxu0 %v425_v1 }
  0x25   : > { %251 = vmatpush1.bf16.msra.mxu0 %v409_v8 }
  0x26   : > { %252 = vmatprep.subr.bf16.mxu0 %v425_v1 }
  0x29   : > { %253 = vmatpush1.bf16.msra.mxu0 %v410_v9 }
  0x2a   : > { %268 = vmatprep.subr.bf16.mxu0 %v425_v1 }
  0x2d   : > { %269 = vmatpush2.bf16.msra.mxu0 %v411_v10 }
  0x30   : > { %271 = vmatmul.mubr.bf16.vlgmr.msra.gmra.mxu0 %v412_v11 }
  0xf0   : > { %v272_v12 = vpop.f32.mrf.mxu0 }
  0xf1   : > { %v280_v15 = vsel %vm279_vm1, %v272_v12, 0.0 }
  0xf2   : > { %v274_v13 = vpop.f32.mrf.mxu0 }
  0xf4   : > { %v275_v14 = vpop.f32.mrf.mxu0 }
  0xf5   : > { %v281_v16 = vsel %vm279_vm1, %v275_v14, 0.0 }
  0xf6   : > { %v282_v17 = vadd.f32 %v281_v16, %v280_v15  ;;  %v277_v18 = vpop.f32.mrf.mxu0 }
  0xf8   : > { %v283_v19 = vrot.slane %v282_v17, 4 }
  0xfa   : > { %v284_v20 = vadd.f32 %v283_v19, %v282_v17 }
  0xfc   : > { %v285_v21 = vrot.slane %v284_v20, 2 }
  0xfe   : > { %v286_v22 = vadd.f32 %v285_v21, %v284_v20 }
 0x100   : > { %v287_v23 = vrot.slane %v286_v22, 1 }
 0x102   : > { %v288_v24 = vadd.f32 %v287_v23, %v286_v22 }
 0x104   : > { %v290_v25 = vmul.f32 0.0625, %v288_v24 }
 0x106   : > { %v291_v26 = vsub.f32 %v272_v12, %v290_v25  ;;  %v292_v27 = vsub.f32 %v275_v14, %v290_v25 }
 0x108   : > { %v293_v28 = vmul.f32 %v291_v26, %v291_v26  ;;  %v294_v29 = vmul.f32 %v292_v27, %v292_v27 }
 0x10a   : > { %v295_v30 = vsel %vm279_vm1, %v293_v28, 0.0  ;;  %v296_v31 = vsel %vm279_vm1, %v294_v29, 0.0 }
 0x10b   : > { %v297_v32 = vadd.f32 %v296_v31, %v295_v30 }
 0x10d   : > { %v298_v33 = vrot.slane %v297_v32, 4 }
 0x10f   : > { %v299_v34 = vadd.f32 %v298_v33, %v297_v32 }
 0x111   : > { %v300_v35 = vrot.slane %v299_v34, 2 }
 0x113   : > { %v301_v36 = vadd.f32 %v300_v35, %v299_v34 }
 0x115   : > { %v302_v37 = vrot.slane %v301_v36, 1 }
 0x117   : > { %v303_v38 = vadd.f32 %v302_v37, %v301_v36 }
 0x119   : > { %v304_v39 = vmul.f32 0.0625, %v303_v38 }
 0x11b   : > { %v305_v40 = vadd.f32 1e-05, %v304_v39 }
 0x11d   : > { %415 = vrsqrt.f32 %v305_v40 }
 0x12a   : > { %v416_v41 = vpop.eup %415 }
 0x12b   : > { %v307_v42 = vmul.f32 %v416_v41, %v291_v26  ;;  %v308_v43 = vmul.f32 %v416_v41, %v292_v27 }
 0x12d   : > { %v309_v44 = vmax.f32 %v307_v42, 0.0  ;;  %v310_v45 = vmax.f32 %v308_v43, 0.0 }
 0x12f   : > { %311 = vst.msk [vmem:[%s148_s8] sm:$0xff] %vm279_vm1, %v309_v44  ;;  %312 = vst.msk [vmem:[%s148_s8 + $0x8] sm:$0xff] %vm279_vm1, %v310_v45 }
 0x130 PF: > { %s12_s9 = sadd.s32 1, %s423_s9  }
 0x131   : > { %p9_p4 = scmp.ge.s32.totalorder %s12_s9, 4  }
 0x133   :  { %11 = sbr.rel (!%p9_p4) target bundleno = 1 (0x1), region = 58 }

// kernel: cyclegan_generator_forward.10
= control target key start
LH: loop header
LB: loop body
LE: loop exit
PB: predicated region body
PF: predicated region fallthrough
CT: control target
= control target key end

     0   :  { %s2287_s12 = smov 0   ;;  %s2289_s13 = smov 0   ;;  %s2606_s0 = inlined_call_operand.vmem [shape: f32[2,6,6,32], index: 0, kind: input, shape index: {}]   ;;  %s2607_s1 = inlined_call_operand.vmem [shape: bf16[9,9,32,32], index: 1, kind: input, shape index: {}]   ;;  %s2608_s2 = inlined_call_operand.vmem [shape: bf16[9,9,32,32], index: 2, kind: input, shape index: {}]   ;;  %s2609_s3 = inlined_call_operand.vmem [shape: f32[2,6,6,32], index: 3, kind: output, shape index: {}]  }
   0x1   :  { %s2291_s14 = smov 0   ;;  %s2293_s15 = smov 0  }
   0x2   :  { %s2295_s16 = smov 0  }
   0x3 LB: > { %s22_s17 = sadd.s32 1, %s2255_s14  ;;  %s25_s18 = sadd.s32 1, %s2259_s15  ;;  %s2263_s16 = sphi %s2295_s16, %s13_s16   ;;  %s2259_s15 = sphi %s2293_s15, %s2613_s15   ;;  %s2255_s14 = sphi %s2291_s14, %s2612_s14   ;;  %s2251_s13 = sphi %s2289_s13, %s2611_s13   ;;  %s2247_s12 = sphi %s2287_s12, %s2610_s12  }
   0x4   : > { %p23_p0 = scmp.ge.s32.totalorder %s22_s17, 9  ;;  %p1816_p1 = scmp.ge.s32.totalorder %s2263_s16, 1 }
   0x5   : > { %p169_p2 = scmp.lt.s32.totalorder %s2263_s16, 19 }
   0x6   : > { %s2615_s17 = smov (%p23_p0, %s22_s17), 0  ;;  %s2617_s18 = smov (!%p23_p0, %s25_s18), %s2259_s15 }
   0x7   : > { %p170_p3 = pnand %p1816_p1, %p169_p2  ;;  %p27_p4 = scmp.ge.s32.totalorder %s2617_s18, 2 }
   0x8   : > { %p203_p5 = scmp.lt.s32.totalorder (!%p170_p3), %s2251_s13, 1  ;;  %p208_p6 = scmp.lt.s32.totalorder (!%p170_p3), %s2247_s12, 8 }
   0x9   : > { %s2619_s18 = smov (%p27_p4, %s2617_s18), 0  ;;  %173 = sbr.rel (%p170_p3) target bundleno = 769 (0x301), region = 32 }
   0xa   : > { %p1821_p7 = scmp.ne.s32.totalorder (!%p170_p3), %s2247_s12, 0 }
   0xe   : > { %s2621_s13 = smov (!%p203_p5, %s2251_s13), 1 }
   0xf   : > { %s209_s19 = scalar_select %p208_p6, %s2247_s12, 8 }
  0x10   : > { %s2141_s20 = smul.u32 48, %s2621_s13 }
  0x11   : > { %s2142_s21 = smul.u32 144, %s209_s19 }
  0x12   : > { %s207_s24 = scalar_lea.vmem %s2606_s0, %s2141_s20  ;;  %s2327_s27 = scalar_lea.vmem %s2609_s3, %s2141_s20 }
  0x13   : > { %s2332_s30 = scalar_lea.vmem %s2607_s1, %s2142_s21  ;;  %s2337_s6 = scalar_lea.vmem %s2608_s2, %s2142_s21 }
  0x14   : > { %227 = sbr.rel (%p1821_p7) target bundleno = 30 (0x1e), region = 36 }
  0x19   : > { %v228_v0 = vld [vmem:[%s207_s24] sm:$0x3f]  ;;  %vm234_vm0 = vcmask 259072   ;;  %v229_v1 = vld [vmem:[%s207_s24 + $0x8] sm:$0x3f] }
  0x1a   : > { %235 = vst.msk [vmem:[#allocation2] sm:$0x3f] %vm234_vm0, %v228_v0  ;;  %236 = vst.msk [vmem:[#allocation2 + $0x8] sm:$0x3f] %vm234_vm0, %v229_v1  ;;  %v230_v2 = vld [vmem:[%s207_s24 + $0x10] sm:$0x3f] }
  0x1b   : > { %v231_v3 = vld [vmem:[%s207_s24 + $0x18] sm:$0x3f]  ;;  %v232_v4 = vld [vmem:[%s207_s24 + $0x20] sm:$0x3f]  ;;  %237 = vst.msk [vmem:[#allocation2 + $0x10] sm:$0x3f] %vm234_vm0, %v230_v2 }
  0x1c   : > { %238 = vst.msk [vmem:[#allocation2 + $0x18] sm:$0x3f] %vm234_vm0, %v231_v3  ;;  %239 = vst.msk [vmem:[#allocation2 + $0x20] sm:$0x3f] %vm234_vm0, %v232_v4  ;;  %v233_v5 = vld [vmem:[%s207_s24 + $0x28] sm:$0x3f] }
  0x1d   : > { %240 = vst.msk [vmem:[#allocation2 + $0x28] sm:$0x3f] %vm234_vm0, %v233_v5 }
  0x1e PF: > { %v2185_v6 = vld [vmem:[%s2332_s30 + $0x18] sm:$0xff]   ;;  %v2265_v7 = vmov 0.0   ;;  %v2186_v8 = vld [vmem:[%s2332_s30 + $0x10] sm:$0xff]   ;;  %vm2266_vm1 = vmmov 0   ;;  %v2187_v9 = vld [vmem:[%s2332_s30 + $0x8] sm:$0xff]   ;;  %vm242_vm2 = vcmask 257024  }
  0x1f   : > { %1997 = vmatprep.subr.bf16.mxu0 %v2265_v7  ;;  %2005 = vmatprep.subr.bf16.mxu1 %v2265_v7  ;;  %v2189_v14 = vld [vmem:[%s2332_s30] sm:$0xff]   ;;  %v2191_v21 = vld [vmem:[%s2332_s30 + $0x38] sm:$0xff]   ;;  %vm288_vm3 = vcmask 261120   ;;  %v2193_v23 = vld [vmem:[%s2332_s30 + $0x30] sm:$0xff]   ;;  %vm955_vm4 = vcmask 253952   ;;  %vm972_vm5 = vcmask 259072  }
  0x20   : > { %1998 = vmatpush3.bf16.msra.mxu0 %v2185_v6  ;;  %2001 = vmatprep.mubr.msk.bf16.mxu0 %vm2266_vm1, %v2265_v7  ;;  %v2188_v30 = vld [vmem:[%s2332_s30 + $0x28] sm:$0xff]   ;;  %v2190_v32 = vld [vmem:[%s2332_s30 + $0x20] sm:$0xff]   ;;  %v2195_v46 = vld [vmem:[%s2332_s30 + $0x58] sm:$0xff]   ;;  %p1940_p8 = scmp.ne.s32.totalorder %s2247_s12, 8 }
  0x21   : > { %1999 = vmatprep.subr.bf16.mxu0 %v2265_v7  ;;  %v241_v10 = vld [vmem:[#allocation2] sm:$0xf]  ;;  %v245_v11 = vld [vmem:[#allocation2 + $0x8] sm:$0xf]  ;;  %2009 = vmatprep.mubr.msk.bf16.mxu1 %vm2266_vm1, %v2265_v7  ;;  %v2196_v50 = vld [vmem:[%s2332_s30 + $0x50] sm:$0xff]  }
  0x22   : > { %v248_v12 = vld [vmem:[#allocation2 + $0x10] sm:$0xf]  ;;  %2006 = vmatpush3.bf16.msra.mxu1 %v2187_v9  ;;  %243 = vst.msk [vmem:[#allocation4] sm:$0xf] %vm242_vm2, %v241_v10  ;;  %246 = vst.msk [vmem:[#allocation4 + $0x4] sm:$0xf] %vm242_vm2, %v245_v11 }
  0x23   : > { %249 = vst.msk [vmem:[#allocation4 + $0x8] sm:$0xf] %vm242_vm2, %v248_v12  ;;  %v251_v13 = vld [vmem:[#allocation2 + $0x18] sm:$0xf]  ;;  %2007 = vmatprep.subr.bf16.mxu1 %v2265_v7  ;;  %v260_v15 = vld [vmem:[#allocation2 + $0x1] sm:$0xf] }
  0x24   : > { %252 = vst.msk [vmem:[#allocation4 + $0xc] sm:$0xf] %vm242_vm2, %v251_v13  ;;  %2000 = vmatpush3.bf16.msra.mxu0 %v2186_v8  ;;  %v262_v16 = vld [vmem:[#allocation2 + $0x9] sm:$0xf]  ;;  %v264_v17 = vld [vmem:[#allocation2 + $0x11] sm:$0xf] }
  0x25   : > { %2013 = vmatprep.subr.bf16.mxu0 %v2265_v7  ;;  %v266_v18 = vld [vmem:[#allocation2 + $0x19] sm:$0xf]  ;;  %v389_v24 = vld [vmem:[#allocation2 + $0x2] sm:$0xf]  ;;  %v391_v25 = vld [vmem:[#allocation2 + $0xa] sm:$0xf] }
  0x26   : > { %2008 = vmatpush3.bf16.msra.mxu1 %v2189_v14  ;;  %v393_v26 = vld [vmem:[#allocation2 + $0x12] sm:$0xf]  ;;  %v395_v27 = vld [vmem:[#allocation2 + $0x1a] sm:$0xf]  ;;  %v463_v33 = vld [vmem:[#allocation2 + $0x8] sm:$0xf] }
  0x27   : > { %2021 = vmatprep.subr.bf16.mxu1 %v2265_v7  ;;  %v465_v34 = vld [vmem:[#allocation2 + $0x10] sm:$0xf]  ;;  %v467_v35 = vld [vmem:[#allocation2 + $0x18] sm:$0xf]  ;;  %v470_v36 = vld [vmem:[#allocation2 + $0x20] sm:$0xf] }
  0x28   : > { %v2192_v39 = vld [vmem:[%s2332_s30 + $0x48] sm:$0xff]   ;;  %v2194_v41 = vld [vmem:[%s2332_s30 + $0x40] sm:$0xff]   ;;  %v540_v43 = vld [vmem:[#allocation2 + $0x11] sm:$0xf] }
  0x29   : > { %v257_v19 = vld [vmem:[#allocation4] sm:$0xff]  ;;  %v538_v42 = vld [vmem:[#allocation2 + $0x9] sm:$0xf]  ;;  %v542_v44 = vld [vmem:[#allocation2 + $0x19] sm:$0xf] }
  0x2a   : > { %261 = vst.msk [vmem:[#allocation4] sm:$0xf] %vm242_vm2, %v260_v15  ;;  %263 = vst.msk [vmem:[#allocation4 + $0x4] sm:$0xf] %vm242_vm2, %v262_v16  ;;  %v544_v45 = vld [vmem:[#allocation2 + $0x21] sm:$0xf] }
  0x2b   : > { %v258_v20 = vld [vmem:[#allocation4 + $0x8] sm:$0xff]  ;;  %v614_v52 = vld [vmem:[#allocation2 + $0x12] sm:$0xf]  ;;  %v616_v53 = vld [vmem:[#allocation2 + $0x1a] sm:$0xf] }
  0x2c   : > { %265 = vst.msk [vmem:[#allocation4 + $0x8] sm:$0xf] %vm242_vm2, %v264_v17  ;;  %267 = vst.msk [vmem:[#allocation4 + $0xc] sm:$0xf] %vm242_vm2, %v266_v18  ;;  %v259_v22 = vpack.c.bf16 %v258_v20, %v257_v19  ;;  %v612_v51 = vld [vmem:[#allocation2 + $0xa] sm:$0xf] }
  0x2d   : > { %v618_v54 = vld [vmem:[#allocation2 + $0x22] sm:$0xf]  ;;  %v2197_v55 = vld [vmem:[%s2332_s30 + $0x68] sm:$0xff]   ;;  %v686_v60 = vld [vmem:[#allocation2 + $0x10] sm:$0xf] }
  0x2e   : > { %2010 = vmatmul.mubr.msk.bf16.vlgmr.msra.gmra.mxu1 %vm288_vm3, %v259_v22  ;;  %v2198_v59 = vld [vmem:[%s2332_s30 + $0x60] sm:$0xff]   ;;  %v688_v61 = vld [vmem:[#allocation2 + $0x18] sm:$0xf]  ;;  %v693_v63 = vld [vmem:[#allocation2 + $0x28] sm:$0xf] }
  0x2f   : > { %2022 = vmatpush3.bf16.msra.mxu1 %v2191_v21  ;;  %2025 = vmatprep.mubr.msk.bf16.mxu1 %vm2266_vm1, %v2265_v7  ;;  %v690_v62 = vld [vmem:[#allocation2 + $0x20] sm:$0xf]  ;;  %v2199_v2 = vld [vmem:[%s2332_s30 + $0x78] sm:$0xff]   ;;  %v2200_v4 = vld [vmem:[%s2332_s30 + $0x70] sm:$0xff]  }
  0x30   : > { %2023 = vmatprep.subr.bf16.mxu1 %v2265_v7  ;;  %v761_v5 = vld [vmem:[#allocation2 + $0x11] sm:$0xf]  ;;  %v763_v6 = vld [vmem:[#allocation2 + $0x19] sm:$0xf]  ;;  %v765_v8 = vld [vmem:[#allocation2 + $0x21] sm:$0xf] }
  0x31   : > { %v273_v28 = vld [vmem:[#allocation4] sm:$0xff]  ;;  %v767_v9 = vld [vmem:[#allocation2 + $0x29] sm:$0xf]  ;;  %v835_v15 = vld [vmem:[#allocation2 + $0x12] sm:$0xf] }
  0x32   : > { %390 = vst.msk [vmem:[#allocation4] sm:$0xf] %vm242_vm2, %v389_v24  ;;  %392 = vst.msk [vmem:[#allocation4 + $0x4] sm:$0xf] %vm242_vm2, %v391_v25  ;;  %v2201_v12 = vld [vmem:[%s2332_s30 + $0x88] sm:$0xff]   ;;  %v2202_v14 = vld [vmem:[%s2332_s30 + $0x80] sm:$0xff]  }
  0x33   : > { %v274_v29 = vld [vmem:[#allocation4 + $0x8] sm:$0xff]  ;;  %2024 = vmatpush3.bf16.msra.mxu1 %v2193_v23  ;;  %v837_v16 = vld [vmem:[#allocation2 + $0x1a] sm:$0xf]  ;;  %v839_v17 = vld [vmem:[#allocation2 + $0x22] sm:$0xf] }
  0x34   : > { %v275_v31 = vpack.c.bf16 %v274_v29, %v273_v28  ;;  %394 = vst.msk [vmem:[#allocation4 + $0x8] sm:$0xf] %vm242_vm2, %v393_v26  ;;  %396 = vst.msk [vmem:[#allocation4 + $0xc] sm:$0xf] %vm242_vm2, %v395_v27  ;;  %2037 = vmatprep.subr.bf16.mxu1 %v2265_v7  ;;  %v841_v18 = vld [vmem:[#allocation2 + $0x2a] sm:$0xf] }
  0x36   : > { %2002 = vmatmul.mubr.msk.bf16.vlgmr.msra.gmra.mxu0 %vm288_vm3, %v275_v31 }
  0x37   : > { %2014 = vmatpush3.bf16.msra.mxu0 %v2188_v30  ;;  %2017 = vmatprep.mubr.msk.bf16.mxu0 %vm2266_vm1, %v2265_v7 }
  0x38   : > { %2015 = vmatprep.subr.bf16.mxu0 %v2265_v7 }
  0x39   : > { %v402_v37 = vld [vmem:[#allocation4] sm:$0xff] }
  0x3a   : > { %464 = vst.msk [vmem:[#allocation4] sm:$0xf] %vm242_vm2, %v463_v33  ;;  %466 = vst.msk [vmem:[#allocation4 + $0x4] sm:$0xf] %vm242_vm2, %v465_v34 }
  0x3b   : > { %2016 = vmatpush3.bf16.msra.mxu0 %v2190_v32  ;;  %v403_v38 = vld [vmem:[#allocation4 + $0x8] sm:$0xff] }
  0x3c   : > { %v404_v40 = vpack.c.bf16 %v403_v38, %v402_v37  ;;  %2029 = vmatprep.subr.bf16.mxu0 %v2265_v7  ;;  %468 = vst.msk [vmem:[#allocation4 + $0x8] sm:$0xf] %vm242_vm2, %v467_v35  ;;  %471 = vst.msk [vmem:[#allocation4 + $0xc] sm:$0xf] %vm242_vm2, %v470_v36 }
  0x3e   : > { %2018 = vmatmul.mubr.msk.bf16.vlgmr.msra.gmra.mxu0 %vm288_vm3, %v404_v40 }
  0x3f   : > { %2030 = vmatpush3.bf16.msra.mxu0 %v2192_v39  ;;  %2033 = vmatprep.mubr.msk.bf16.mxu0 %vm2266_vm1, %v2265_v7 }
  0x40   : > { %2031 = vmatprep.subr.bf16.mxu0 %v2265_v7 }
  0x41   : > { %v477_v47 = vld [vmem:[#allocation4] sm:$0xff] }
  0x42   : > { %539 = vst.msk [vmem:[#allocation4] sm:$0xf] %vm242_vm2, %v538_v42  ;;  %541 = vst.msk [vmem:[#allocation4 + $0x4] sm:$0xf] %vm242_vm2, %v540_v43  ;;  %v2203_v42 = vld [vmem:[%s2337_s6 + $0x8] sm:$0xff]  }
  0x43   : > { %2032 = vmatpush3.bf16.msra.mxu0 %v2194_v41  ;;  %v478_v48 = vld [vmem:[#allocation4 + $0x8] sm:$0xff] }
  0x44   : > { %v479_v49 = vpack.c.bf16 %v478_v48, %v477_v47  ;;  %543 = vst.msk [vmem:[#allocation4 + $0x8] sm:$0xf] %vm242_vm2, %v542_v44  ;;  %545 = vst.msk [vmem:[#allocation4 + $0xc] sm:$0xf] %vm242_vm2, %v544_v45  ;;  %2045 = vmatprep.subr.bf16.mxu0 %v2265_v7  ;;  %v2204_v44 = vld [vmem:[%s2337_s6] sm:$0xff]  }
  0x46   : > { %2026 = vmatmul.mubr.msk.bf16.vlgmr.msra.gmra.mxu1 %vm288_vm3, %v479_v49  ;;  %v2205_v49 = vld [vmem:[%s2337_s6 + $0x18] sm:$0xff]  }
  0x47   : > { %2038 = vmatpush3.bf16.msra.mxu1 %v2195_v46  ;;  %2041 = vmatprep.mubr.msk.bf16.mxu1 %vm2266_vm1, %v2265_v7 }
  0x48   : > { %2039 = vmatprep.subr.bf16.mxu1 %v2265_v7 }
  0x49   : > { %v551_v56 = vld [vmem:[#allocation4] sm:$0xff] }
  0x4a   : > { %613 = vst.msk [vmem:[#allocation4] sm:$0xf] %vm242_vm2, %v612_v51  ;;  %615 = vst.msk [vmem:[#allocation4 + $0x4] sm:$0xf] %vm242_vm2, %v614_v52  ;;  %v2206_v52 = vld [vmem:[%s2337_s6 + $0x10] sm:$0xff]  }
  0x4b   : > { %v552_v57 = vld [vmem:[#allocation4 + $0x8] sm:$0xff]  ;;  %2040 = vmatpush3.bf16.msra.mxu1 %v2196_v50 }
  0x4c   : > { %v553_v58 = vpack.c.bf16 %v552_v57, %v551_v56  ;;  %617 = vst.msk [vmem:[#allocation4 + $0x8] sm:$0xf] %vm242_vm2, %v616_v53  ;;  %619 = vst.msk [vmem:[#allocation4 + $0xc] sm:$0xf] %vm242_vm2, %v618_v54  ;;  %2053 = vmatprep.subr.bf16.mxu1 %v2265_v7 }
  0x4e   : > { %2034 = vmatmul.mubr.msk.bf16.vlgmr.msra.gmra.mxu0 %vm288_vm3, %v553_v58 }
  0x4f   : > { %2046 = vmatpush3.bf16.msra.mxu0 %v2197_v55  ;;  %2049 = vmatprep.mubr.msk.bf16.mxu0 %vm2266_vm1, %v2265_v7 }
  0x50   : > { %2047 = vmatprep.subr.bf16.mxu0 %v2265_v7 }
  0x51   : > { %v625_v0 = vld [vmem:[#allocation4] sm:$0xff] }
  0x52   : > { %687 = vst.msk [vmem:[#allocation4] sm:$0xf] %vm242_vm2, %v686_v60  ;;  %689 = vst.msk [vmem:[#allocation4 + $0x4] sm:$0xf] %vm242_vm2, %v688_v61 }
  0x53   : > { %v626_v1 = vld [vmem:[#allocation4 + $0x8] sm:$0xff]  ;;  %2048 = vmatpush3.bf16.msra.mxu0 %v2198_v59 }
  0x54   : > { %v627_v3 = vpack.c.bf16 %v626_v1, %v625_v0  ;;  %691 = vst.msk [vmem:[#allocation4 + $0x8] sm:$0xf] %vm242_vm2, %v690_v62  ;;  %694 = vst.msk [vmem:[#allocation4 + $0xc] sm:$0xf] %vm242_vm2, %v693_v63  ;;  %2061 = vmatprep.subr.bf16.mxu0 %v2265_v7 }
  0x56   : > { %2042 = vmatmul.mubr.msk.bf16.vlgmr.msra.gmra.mxu1 %vm288_vm3, %v627_v3 }
  0x57   : > { %2054 = vmatpush3.bf16.msra.mxu1 %v2199_v2  ;;  %2057 = vmatprep.mubr.msk.bf16.mxu1 %vm2266_vm1, %v2265_v7 }
  0x58   : > { %2055 = vmatprep.subr.bf16.mxu1 %v2265_v7 }
  0x59   : > { %v700_v10 = vld [vmem:[#allocation4] sm:$0xff] }
  0x5a   : > { %762 = vst.msk [vmem:[#allocation4] sm:$0xf] %vm242_vm2, %v761_v5  ;;  %764 = vst.msk [vmem:[#allocation4 + $0x4] sm:$0xf] %vm242_vm2, %v763_v6 }
  0x5b   : > { %v701_v11 = vld [vmem:[#allocation4 + $0x8] sm:$0xff]  ;;  %2056 = vmatpush3.bf16.msra.mxu1 %v2200_v4 }
  0x5c   : > { %v702_v13 = vpack.c.bf16 %v701_v11, %v700_v10  ;;  %766 = vst.msk [vmem:[#allocation4 + $0x8] sm:$0xf] %vm242_vm2, %v765_v8  ;;  %768 = vst.msk [vmem:[#allocation4 + $0xc] sm:$0xf] %vm242_vm2, %v767_v9  ;;  %2069 = vmatprep.subr.bf16.mxu1 %v2265_v7 }
  0x5e   : > { %2050 = vmatmul.mubr.msk.bf16.vlgmr.msra.gmra.mxu0 %vm288_vm3, %v702_v13 }
  0x5f   : > { %2062 = vmatpush3.bf16.msra.mxu0 %v2201_v12  ;;  %2065 = vmatprep.mubr.msk.bf16.mxu0 %vm2266_vm1, %v2265_v7 }
  0x60   : > { %2063 = vmatprep.subr.bf16.mxu0 %v2265_v7 }
  0x61   : > { %v774_v19 = vld [vmem:[#allocation4] sm:$0xff] }
  0x62   : > { %836 = vst.msk [vmem:[#allocation4] sm:$0xf] %vm242_vm2, %v835_v15  ;;  %838 = vst.msk [vmem:[#allocation4 + $0x4] sm:$0xf] %vm242_vm2, %v837_v16 }
  0x63   : > { %v775_v20 = vld [vmem:[#allocation4 + $0x8] sm:$0xff]  ;;  %2064 = vmatpush3.bf16.msra.mxu0 %v2202_v14 }
  0x64   : > { %v776_v21 = vpack.c.bf16 %v775_v20, %v774_v19  ;;  %840 = vst.msk [vmem:[#allocation4 + $0x8] sm:$0xf] %vm242_vm2, %v839_v17  ;;  %842 = vst.msk [vmem:[#allocation4 + $0xc] sm:$0xf] %vm242_vm2, %v841_v18  ;;  %2077 = vmatprep.subr.bf16.mxu0 %v2265_v7 }
  0x66   : > { %2058 = vmatmul.mubr.msk.bf16.vlgmr.msra.gmra.mxu1 %vm288_vm3, %v776_v21 }
  0x67   : > { %2073 = vmatprep.mubr.msk.bf16.mxu1 %vm2266_vm1, %v2265_v7  ;;  %2070 = vmatpush3.bf16.msra.mxu1 %v2205_v49 }
  0x68   : > { %2071 = vmatprep.subr.bf16.mxu1 %v2265_v7 }
  0x69   : > { %v848_v22 = vld [vmem:[#allocation4] sm:$0xff] }
  0x6b   : > { %v849_v23 = vld [vmem:[#allocation4 + $0x8] sm:$0xff]  ;;  %2072 = vmatpush3.bf16.msra.mxu1 %v2206_v52 }
  0x6c   : > { %v850_v24 = vpack.c.bf16 %v849_v23, %v848_v22  ;;  %2085 = vmatprep.subr.bf16.mxu1 %v2265_v7 }
  0x6e   : > { %2066 = vmatmul.mubr.msk.bf16.vlgmr.msra.gmra.mxu0 %vm288_vm3, %v850_v24 }
  0x6f   : > { %2081 = vmatprep.mubr.msk.bf16.mxu0 %vm2266_vm1, %v2265_v7  ;;  %2078 = vmatpush3.bf16.msra.mxu0 %v2203_v42 }
  0x70   : > { %2079 = vmatprep.subr.bf16.mxu0 %v2265_v7 }
  0x73   : > { %2080 = vmatpush3.bf16.msra.mxu0 %v2204_v44 }
  0x74   : > { %2093 = vmatprep.subr.bf16.mxu0 %v2265_v7 }
  0xee   : > { %v382_v25 = vpop.f32.mrf.mxu1 }
  0xf0   : > { %v2011_v26 = vpop.f32.mrf.mxu1 }
  0xf2   : > { %v385_v27 = vpop.f32.mrf.mxu1 }
  0xf4   : > { %v2012_v28 = vpop.f32.mrf.mxu1 }
  0xf6   : > { %v326_v29 = vpop.f32.mrf.mxu0 }
  0xf7   : > { %v383_v51 = vadd.f32 %v382_v25, %v326_v29 }
  0xf8   : > { %v2003_v30 = vpop.f32.mrf.mxu0 }
  0xfa   : > { %v329_v31 = vpop.f32.mrf.mxu0 }
  0xfb   : > { %v386_v56 = vadd.f32 %v385_v27, %v329_v31 }
  0xfc   : > { %v2004_v32 = vpop.f32.mrf.mxu0 }
  0xfe   : > { %v454_v33 = vpop.f32.mrf.mxu0 }
  0xff   : > { %v461_v55 = vadd.f32 %v454_v33, %v383_v51 }
 0x100   : > { %v2019_v34 = vpop.f32.mrf.mxu0 }
 0x102   : > { %v457_v35 = vpop.f32.mrf.mxu0 }
 0x103   : > { %v462_v59 = vadd.f32 %v457_v35, %v386_v56 }
 0x104   : > { %v2020_v36 = vpop.f32.mrf.mxu0 }
 0x106   : > { %v529_v37 = vpop.f32.mrf.mxu1 }
 0x107   : > { %v536_v60 = vadd.f32 %v529_v37, %v461_v55 }
 0x108   : > { %v2027_v38 = vpop.f32.mrf.mxu1 }
 0x10a   : > { %v532_v39 = vpop.f32.mrf.mxu1 }
 0x10b   : > { %v537_v0 = vadd.f32 %v532_v39, %v462_v59 }
 0x10c   : > { %v2028_v40 = vpop.f32.mrf.mxu1 }
 0x10e   : > { %v603_v41 = vpop.f32.mrf.mxu0 }
 0x10f   : > { %v610_v63 = vadd.f32 %v603_v41, %v536_v60 }
 0x110   : > { %v2035_v43 = vpop.f32.mrf.mxu0 }
 0x112   : > { %v606_v45 = vpop.f32.mrf.mxu0 }
 0x113   : > { %v611_v3 = vadd.f32 %v606_v45, %v537_v0 }
 0x114   : > { %v2036_v46 = vpop.f32.mrf.mxu0 }
 0x116   : > { %v677_v47 = vpop.f32.mrf.mxu1 }
 0x117   : > { %v684_v4 = vadd.f32 %v677_v47, %v610_v63 }
 0x118   : > { %v2043_v48 = vpop.f32.mrf.mxu1 }
 0x11a   : > { %v680_v50 = vpop.f32.mrf.mxu1 }
 0x11b   : > { %v685_v6 = vadd.f32 %v680_v50, %v611_v3 }
 0x11c   : > { %v2044_v53 = vpop.f32.mrf.mxu1 }
 0x11e   : > { %v752_v54 = vpop.f32.mrf.mxu0 }
 0x11f   : > { %v759_v8 = vadd.f32 %v752_v54, %v684_v4 }
 0x120   : > { %v2051_v57 = vpop.f32.mrf.mxu0 }
 0x122   : > { %v755_v58 = vpop.f32.mrf.mxu0 }
 0x123   : > { %v760_v10 = vadd.f32 %v755_v58, %v685_v6 }
 0x124   : > { %v2052_v61 = vpop.f32.mrf.mxu0 }
 0x126   : > { %v826_v62 = vpop.f32.mrf.mxu1 }
 0x127   : > { %v833_v11 = vadd.f32 %v826_v62, %v759_v8 }
 0x128   : > { %v2059_v1 = vpop.f32.mrf.mxu1 }
 0x12a   : > { %v829_v2 = vpop.f32.mrf.mxu1 }
 0x12b   : > { %v834_v13 = vadd.f32 %v829_v2, %v760_v10 }
 0x12c   : > { %v2060_v5 = vpop.f32.mrf.mxu1 }
 0x12d   : > { %v2209_v5 = vld [vmem:[%s2337_s6 + $0x38] sm:$0xff]  }
 0x12e   : > { %v900_v9 = vpop.f32.mrf.mxu0 }
 0x12f   : > { %v907_v14 = vadd.f32 %v900_v9, %v833_v11 }
 0x130   : > { %v2067_v12 = vpop.f32.mrf.mxu0 }
 0x131   : > { %v909_v18 = vsel %vm288_vm3, %v907_v14, 0.0 }
 0x132   : > { %v903_v15 = vpop.f32.mrf.mxu0 }
 0x133   : > { %v908_v16 = vadd.f32 %v903_v15, %v834_v13  ;;  %v2207_v15 = vld [vmem:[%s2337_s6 + $0x28] sm:$0xff]  }
 0x134   : > { %v2068_v17 = vpop.f32.mrf.mxu0 }
 0x135   : > { %v910_v19 = vsel %vm288_vm3, %v908_v16, 0.0 }
 0x136   : > { %v911_v20 = vadd.f32 %v910_v19, %v909_v18 }
 0x138   : > { %v912_v21 = vrot.slane %v911_v20, 4 }
 0x13a   : > { %v913_v22 = vadd.f32 %v912_v21, %v911_v20 }
 0x13c   : > { %v914_v23 = vrot.slane %v913_v22, 2 }
 0x13e   : > { %v915_v24 = vadd.f32 %v914_v23, %v913_v22  ;;  %v2208_v23 = vld [vmem:[%s2337_s6 + $0x20] sm:$0xff]  }
 0x140   : > { %v916_v25 = vrot.slane %v915_v24, 1 }
 0x142   : > { %v917_v26 = vadd.f32 %v916_v25, %v915_v24  ;;  %v2211_v24 = vld [vmem:[%s2337_s6 + $0x48] sm:$0xff]  }
 0x144   : > { %v919_v27 = vmul.f32 0.0625, %v917_v26 }
 0x146   : > { %v920_v28 = vsub.f32 %v907_v14, %v919_v27  ;;  %v921_v29 = vsub.f32 %v908_v16, %v919_v27  ;;  %v2210_v14 = vld [vmem:[%s2337_s6 + $0x30] sm:$0xff]  }
 0x148   : > { %v922_v30 = vmul.f32 %v920_v28, %v920_v28  ;;  %v923_v31 = vmul.f32 %v921_v29, %v921_v29 }
 0x14a   : > { %v924_v32 = vsel %vm288_vm3, %v922_v30, 0.0  ;;  %v925_v33 = vsel %vm288_vm3, %v923_v31, 0.0 }
 0x14b   : > { %v926_v34 = vadd.f32 %v925_v33, %v924_v32  ;;  %v2212_v32 = vld [vmem:[%s2337_s6 + $0x40] sm:$0xff]   ;;  %v2213_v33 = vld [vmem:[%s2337_s6 + $0x58] sm:$0xff]  }
 0x14d   : > { %v927_v35 = vrot.slane %v926_v34, 4 }
 0x14f   : > { %v928_v36 = vadd.f32 %v927_v35, %v926_v34 }
 0x151   : > { %v929_v37 = vrot.slane %v928_v36, 2 }
 0x153   : > { %v930_v38 = vadd.f32 %v929_v37, %v928_v36 }
 0x155   : > { %v931_v39 = vrot.slane %v930_v38, 1 }
 0x157   : > { %v932_v40 = vadd.f32 %v931_v39, %v930_v38 }
 0x159   : > { %v933_v41 = vmul.f32 0.0625, %v932_v40 }
 0x15b   : > { %v934_v42 = vadd.f32 1e-05, %v933_v41  ;;  %v2214_v41 = vld [vmem:[%s2337_s6 + $0x50] sm:$0xff]  }
 0x15d   : > { %2221 = vrsqrt.f32 %v934_v42  ;;  %v2215_v42 = vld [vmem:[%s2337_s6 + $0x68] sm:$0xff]  }
 0x16a   : > { %v2222_v43 = vpop.eup %2221 }
 0x16b   : > { %v936_v44 = vmul.f32 %v2222_v43, %v920_v28  ;;  %v937_v45 = vmul.f32 %v2222_v43, %v921_v29 }
 0x16d   : > { %v938_v46 = vmax.f32 %v936_v44, 0.0  ;;  %v939_v47 = vmax.f32 %v937_v45, 0.0 }
 0x16f   : > { %940 = vst.msk [vmem:[#allocation4] sm:$0xff] %vm288_vm3, %v938_v46  ;;  %941 = vst.msk [vmem:[#allocation4 + $0x8] sm:$0xff] %vm288_vm3, %v939_v47 }
 0x176   : > { %v942_v48 = vld [vmem:[#allocation4] sm:$0xf]  ;;  %v945_v49 = vld [vmem:[#allocation4 + $0x4] sm:$0xf]  ;;  %v948_v50 = vld [vmem:[#allocation4 + $0x8] sm:$0xf] }
 0x177   : > { %944 = vst.msk [vmem:[#allocation3 + $0x9] sm:$0xf] %vm242_vm2, %v942_v48  ;;  %947 = vst.msk [vmem:[#allocation3 + $0x11] sm:$0xf] %vm242_vm2, %v945_v49  ;;  %v951_v51 = vld [vmem:[#allocation4 + $0xc] sm:$0xf] }
 0x178   : > { %950 = vst.msk [vmem:[#allocation3 + $0x19] sm:$0xf] %vm242_vm2, %v948_v50  ;;  %953 = vst.msk [vmem:[#allocation3 + $0x21] sm:$0xf] %vm242_vm2, %v951_v51  ;;  %v2216_v50 = vld [vmem:[%s2337_s6 + $0x60] sm:$0xff]   ;;  %v2217_v51 = vld [vmem:[%s2337_s6 + $0x78] sm:$0xff]  }
 0x17e   : > { %v954_v52 = vld [vmem:[#allocation3 + $0xa] sm:$0x1]  ;;  %v959_v53 = vld [vmem:[#allocation3 + $0x12] sm:$0x1]  ;;  %v961_v54 = vld [vmem:[#allocation3 + $0x13] sm:$0x1] }
 0x17f   : > { %956 = vst.msk [vmem:[#allocation3 + $0x8] sm:$0x1] %vm955_vm4, %v954_v52  ;;  %960 = vst.msk [vmem:[#allocation3 + $0x10] sm:$0x1] %vm955_vm4, %v959_v53  ;;  %v963_v55 = vld [vmem:[#allocation3 + $0x1a] sm:$0x1] }
 0x180   : > { %962 = vst.msk [vmem:[#allocation3 + $0x15] sm:$0x1] %vm955_vm4, %v961_v54  ;;  %964 = vst.msk [vmem:[#allocation3 + $0x18] sm:$0x1] %vm955_vm4, %v963_v55  ;;  %v957_v56 = vld [vmem:[#allocation3 + $0xb] sm:$0x1] }
 0x181   : > { %v965_v57 = vld [vmem:[#allocation3 + $0x1b] sm:$0x1]  ;;  %958 = vst.msk [vmem:[#allocation3 + $0xd] sm:$0x1] %vm955_vm4, %v957_v56  ;;  %v967_v58 = vld [vmem:[#allocation3 + $0x22] sm:$0x1] }
 0x182   : > { %966 = vst.msk [vmem:[#allocation3 + $0x1d] sm:$0x1] %vm955_vm4, %v965_v57  ;;  %968 = vst.msk [vmem:[#allocation3 + $0x20] sm:$0x1] %vm955_vm4, %v967_v58  ;;  %v969_v59 = vld [vmem:[#allocation3 + $0x23] sm:$0x1] }
 0x183   : > { %970 = vst.msk [vmem:[#allocation3 + $0x25] sm:$0x1] %vm955_vm4, %v969_v59  ;;  %v996_v3 = vld [vmem:[#allocation3 + $0x11] sm:$0xf]  ;;  %v998_v4 = vld [vmem:[#allocation3 + $0x19] sm:$0xf] }
 0x184   : > { %v994_v9 = vld [vmem:[#allocation3 + $0x9] sm:$0xf]  ;;  %v1272_v30 = vld [vmem:[#allocation3 + $0x19] sm:$0xf]  ;;  %v1274_v31 = vld [vmem:[#allocation3 + $0x21] sm:$0xf] }
 0x185   : > { %v1268_v35 = vld [vmem:[#allocation3 + $0x9] sm:$0xf]  ;;  %v1270_v36 = vld [vmem:[#allocation3 + $0x11] sm:$0xf]  ;;  %v1494_v57 = vld [vmem:[#allocation3 + $0x21] sm:$0xf] }
 0x186   : > { %v979_v61 = vld [vmem:[#allocation3 + $0x8] sm:$0xf]  ;;  %v981_v62 = vld [vmem:[#allocation3 + $0x10] sm:$0xf]  ;;  %v2218_v59 = vld [vmem:[%s2337_s6 + $0x70] sm:$0xff]  }
 0x187   : > { %v971_v60 = vld [vmem:[#allocation3 + $0x10] sm:$0x3f]  ;;  %980 = vst.msk [vmem:[#allocation4 + $0x4] sm:$0xf] %vm242_vm2, %v979_v61  ;;  %982 = vst.msk [vmem:[#allocation4 + $0x8] sm:$0xf] %vm242_vm2, %v981_v62 }
 0x188   : > { %973 = vst.msk [vmem:[#allocation3] sm:$0x3f] %vm972_vm5, %v971_v60  ;;  %v983_v63 = vld [vmem:[#allocation3 + $0x18] sm:$0xf]  ;;  %v1124_v12 = vld [vmem:[#allocation3 + $0x12] sm:$0xf] }
 0x189   : > { %984 = vst.msk [vmem:[#allocation4 + $0xc] sm:$0xf] %vm242_vm2, %v983_v63  ;;  %v974_v0 = vld [vmem:[#allocation3 + $0x18] sm:$0x3f]  ;;  %v1122_v18 = vld [vmem:[#allocation3 + $0xa] sm:$0xf] }
 0x18a   : > { %976 = vst.msk [vmem:[#allocation3 + $0x28] sm:$0x3f] %vm972_vm5, %v974_v0  ;;  %v1126_v13 = vld [vmem:[#allocation3 + $0x1a] sm:$0xf]  ;;  %v1200_v22 = vld [vmem:[#allocation3 + $0x20] sm:$0xf] }
 0x18b   : > { %v1198_v21 = vld [vmem:[#allocation3 + $0x18] sm:$0xf]  ;;  %v1194_v26 = vld [vmem:[#allocation3 + $0x8] sm:$0xf]  ;;  %v1196_v27 = vld [vmem:[#allocation3 + $0x10] sm:$0xf] }
 0x18c   : > { %v1346_v39 = vld [vmem:[#allocation3 + $0x1a] sm:$0xf]  ;;  %v1348_v40 = vld [vmem:[#allocation3 + $0x22] sm:$0xf]  ;;  %v1342_v44 = vld [vmem:[#allocation3 + $0xa] sm:$0xf] }
 0x18d   : > { %v1344_v45 = vld [vmem:[#allocation3 + $0x12] sm:$0xf]  ;;  %v1420_v48 = vld [vmem:[#allocation3 + $0x20] sm:$0xf]  ;;  %v1418_v54 = vld [vmem:[#allocation3 + $0x18] sm:$0xf] }
 0x18e   : > { %v1416_v53 = vld [vmem:[#allocation3 + $0x10] sm:$0xf]  ;;  %v2219_v60 = vld [vmem:[%s2337_s6 + $0x88] sm:$0xff]  }
 0x18f   : > { %v977_v1 = vld [vmem:[#allocation3] sm:$0xf]  ;;  %v1490_v62 = vld [vmem:[#allocation3 + $0x11] sm:$0xf]  ;;  %v1492_v63 = vld [vmem:[#allocation3 + $0x19] sm:$0xf] }
 0x190   : > { %978 = vst.msk [vmem:[#allocation4] sm:$0xf] %vm242_vm2, %v977_v1  ;;  %v990_v2 = vld [vmem:[#allocation4 + $0x8] sm:$0xff]  ;;  %v992_v8 = vld [vmem:[#allocation3 + $0x1] sm:$0xf] }
 0x191   : > { %997 = vst.msk [vmem:[#allocation4 + $0x8] sm:$0xf] %vm242_vm2, %v996_v3  ;;  %999 = vst.msk [vmem:[#allocation4 + $0xc] sm:$0xf] %vm242_vm2, %v998_v4  ;;  %v1120_v17 = vld [vmem:[#allocation3 + $0x2] sm:$0xf] }
 0x192   : > { %v1422_v49 = vld [vmem:[#allocation3 + $0x28] sm:$0xf]  ;;  %v2220_v4 = vld [vmem:[%s2337_s6 + $0x80] sm:$0xff]  }
 0x193   : > { %v1496_v58 = vld [vmem:[#allocation3 + $0x29] sm:$0xf] }
 0x194   : > { %v1570_v3 = vld [vmem:[#allocation3 + $0x2a] sm:$0xf] }
 0x197   : > { %v989_v6 = vld [vmem:[#allocation4] sm:$0xff] }
 0x198   : > { %v991_v10 = vpack.c.bf16 %v990_v2, %v989_v6  ;;  %993 = vst.msk [vmem:[#allocation4] sm:$0xf] %vm242_vm2, %v992_v8  ;;  %995 = vst.msk [vmem:[#allocation4 + $0x4] sm:$0xf] %vm242_vm2, %v994_v9  ;;  %v1006_v11 = vld [vmem:[#allocation4 + $0x8] sm:$0xff] }
 0x199   : > { %1125 = vst.msk [vmem:[#allocation4 + $0x8] sm:$0xf] %vm242_vm2, %v1124_v12  ;;  %1127 = vst.msk [vmem:[#allocation4 + $0xc] sm:$0xf] %vm242_vm2, %v1126_v13  ;;  %v1568_v2 = vld [vmem:[#allocation3 + $0x22] sm:$0xf] }
 0x19a   : > { %2082 = vmatmul.mubr.msk.bf16.vlgmr.msra.gmra.mxu0 %vm288_vm3, %v991_v10  ;;  %v1564_v6 = vld [vmem:[#allocation3 + $0x12] sm:$0xf]  ;;  %v1566_v8 = vld [vmem:[#allocation3 + $0x1a] sm:$0xf] }
 0x19b   : > { %2094 = vmatpush3.bf16.msra.mxu0 %v2209_v5  ;;  %2097 = vmatprep.mubr.msk.bf16.mxu0 %vm2266_vm1, %v2265_v7 }
 0x19c   : > { %2095 = vmatprep.subr.bf16.mxu0 %v2265_v7 }
 0x19f   : > { %v1005_v16 = vld [vmem:[#allocation4] sm:$0xff]  ;;  %2096 = vmatpush3.bf16.msra.mxu0 %v2210_v14 }
 0x1a0   : > { %v1007_v19 = vpack.c.bf16 %v1006_v11, %v1005_v16  ;;  %1121 = vst.msk [vmem:[#allocation4] sm:$0xf] %vm242_vm2, %v1120_v17  ;;  %1123 = vst.msk [vmem:[#allocation4 + $0x4] sm:$0xf] %vm242_vm2, %v1122_v18  ;;  %v1134_v20 = vld [vmem:[#allocation4 + $0x8] sm:$0xff]  ;;  %2109 = vmatprep.subr.bf16.mxu0 %v2265_v7 }
 0x1a1   : > { %1199 = vst.msk [vmem:[#allocation4 + $0x8] sm:$0xf] %vm242_vm2, %v1198_v21  ;;  %1201 = vst.msk [vmem:[#allocation4 + $0xc] sm:$0xf] %vm242_vm2, %v1200_v22 }
 0x1a2   : > { %2074 = vmatmul.mubr.msk.bf16.vlgmr.msra.gmra.mxu1 %vm288_vm3, %v1007_v19 }
 0x1a3   : > { %2086 = vmatpush3.bf16.msra.mxu1 %v2207_v15  ;;  %2089 = vmatprep.mubr.msk.bf16.mxu1 %vm2266_vm1, %v2265_v7 }
 0x1a4   : > { %2087 = vmatprep.subr.bf16.mxu1 %v2265_v7 }
 0x1a7   : > { %2088 = vmatpush3.bf16.msra.mxu1 %v2208_v23  ;;  %v1133_v25 = vld [vmem:[#allocation4] sm:$0xff] }
 0x1a8   : > { %v1135_v28 = vpack.c.bf16 %v1134_v20, %v1133_v25  ;;  %1195 = vst.msk [vmem:[#allocation4] sm:$0xf] %vm242_vm2, %v1194_v26  ;;  %1197 = vst.msk [vmem:[#allocation4 + $0x4] sm:$0xf] %vm242_vm2, %v1196_v27  ;;  %v1208_v29 = vld [vmem:[#allocation4 + $0x8] sm:$0xff]  ;;  %2101 = vmatprep.subr.bf16.mxu1 %v2265_v7 }
 0x1a9   : > { %1273 = vst.msk [vmem:[#allocation4 + $0x8] sm:$0xf] %vm242_vm2, %v1272_v30  ;;  %1275 = vst.msk [vmem:[#allocation4 + $0xc] sm:$0xf] %vm242_vm2, %v1274_v31 }
 0x1aa   : > { %2090 = vmatmul.mubr.msk.bf16.vlgmr.msra.gmra.mxu1 %vm288_vm3, %v1135_v28 }
 0x1ab   : > { %2102 = vmatpush3.bf16.msra.mxu1 %v2211_v24  ;;  %2105 = vmatprep.mubr.msk.bf16.mxu1 %vm2266_vm1, %v2265_v7 }
 0x1ac   : > { %2103 = vmatprep.subr.bf16.mxu1 %v2265_v7 }
 0x1af   : > { %v1207_v34 = vld [vmem:[#allocation4] sm:$0xff]  ;;  %2104 = vmatpush3.bf16.msra.mxu1 %v2212_v32 }
 0x1b0   : > { %v1209_v37 = vpack.c.bf16 %v1208_v29, %v1207_v34  ;;  %1269 = vst.msk [vmem:[#allocation4] sm:$0xf] %vm242_vm2, %v1268_v35  ;;  %1271 = vst.msk [vmem:[#allocation4 + $0x4] sm:$0xf] %vm242_vm2, %v1270_v36  ;;  %v1282_v38 = vld [vmem:[#allocation4 + $0x8] sm:$0xff]  ;;  %2117 = vmatprep.subr.bf16.mxu1 %v2265_v7 }
 0x1b1   : > { %1347 = vst.msk [vmem:[#allocation4 + $0x8] sm:$0xf] %vm242_vm2, %v1346_v39  ;;  %1349 = vst.msk [vmem:[#allocation4 + $0xc] sm:$0xf] %vm242_vm2, %v1348_v40 }
 0x1b2   : > { %2098 = vmatmul.mubr.msk.bf16.vlgmr.msra.gmra.mxu0 %vm288_vm3, %v1209_v37 }
 0x1b3   : > { %2110 = vmatpush3.bf16.msra.mxu0 %v2213_v33  ;;  %2113 = vmatprep.mubr.msk.bf16.mxu0 %vm2266_vm1, %v2265_v7 }
 0x1b4   : > { %2111 = vmatprep.subr.bf16.mxu0 %v2265_v7 }
 0x1b7   : > { %v1281_v43 = vld [vmem:[#allocation4] sm:$0xff]  ;;  %2112 = vmatpush3.bf16.msra.mxu0 %v2214_v41 }
 0x1b8   : > { %v1283_v46 = vpack.c.bf16 %v1282_v38, %v1281_v43  ;;  %1343 = vst.msk [vmem:[#allocation4] sm:$0xf] %vm242_vm2, %v1342_v44  ;;  %1345 = vst.msk [vmem:[#allocation4 + $0x4] sm:$0xf] %vm242_vm2, %v1344_v45  ;;  %v1356_v47 = vld [vmem:[#allocation4 + $0x8] sm:$0xff]  ;;  %2125 = vmatprep.subr.bf16.mxu0 %v2265_v7 }
 0x1b9   : > { %1421 = vst.msk [vmem:[#allocation4 + $0x8] sm:$0xf] %vm242_vm2, %v1420_v48  ;;  %1423 = vst.msk [vmem:[#allocation4 + $0xc] sm:$0xf] %vm242_vm2, %v1422_v49 }
 0x1ba   : > { %2106 = vmatmul.mubr.msk.bf16.vlgmr.msra.gmra.mxu1 %vm288_vm3, %v1283_v46 }
 0x1bb   : > { %2118 = vmatpush3.bf16.msra.mxu1 %v2215_v42  ;;  %2121 = vmatprep.mubr.msk.bf16.mxu1 %vm2266_vm1, %v2265_v7 }
 0x1bc   : > { %2119 = vmatprep.subr.bf16.mxu1 %v2265_v7 }
 0x1bf   : > { %v1355_v52 = vld [vmem:[#allocation4] sm:$0xff]  ;;  %2120 = vmatpush3.bf16.msra.mxu1 %v2216_v50 }
 0x1c0   : > { %v1357_v55 = vpack.c.bf16 %v1356_v47, %v1355_v52  ;;  %1417 = vst.msk [vmem:[#allocation4] sm:$0xf] %vm242_vm2, %v1416_v53  ;;  %1419 = vst.msk [vmem:[#allocation4 + $0x4] sm:$0xf] %vm242_vm2, %v1418_v54  ;;  %v1430_v56 = vld [vmem:[#allocation4 + $0x8] sm:$0xff]  ;;  %2133 = vmatprep.subr.bf16.mxu1 %v2265_v7 }
 0x1c1   : > { %1495 = vst.msk [vmem:[#allocation4 + $0x8] sm:$0xf] %vm242_vm2, %v1494_v57  ;;  %1497 = vst.msk [vmem:[#allocation4 + $0xc] sm:$0xf] %vm242_vm2, %v1496_v58 }
 0x1c2   : > { %2114 = vmatmul.mubr.msk.bf16.vlgmr.msra.gmra.mxu0 %vm288_vm3, %v1357_v55 }
 0x1c3   : > { %2126 = vmatpush3.bf16.msra.mxu0 %v2217_v51  ;;  %2129 = vmatprep.mubr.msk.bf16.mxu0 %vm2266_vm1, %v2265_v7 }
 0x1c4   : > { %2127 = vmatprep.subr.bf16.mxu0 %v2265_v7 }
 0x1c7   : > { %v1429_v61 = vld [vmem:[#allocation4] sm:$0xff]  ;;  %2128 = vmatpush3.bf16.msra.mxu0 %v2218_v59 }
 0x1c8   : > { %v1431_v0 = vpack.c.bf16 %v1430_v56, %v1429_v61  ;;  %1491 = vst.msk [vmem:[#allocation4] sm:$0xf] %vm242_vm2, %v1490_v62  ;;  %1493 = vst.msk [vmem:[#allocation4 + $0x4] sm:$0xf] %vm242_vm2, %v1492_v63  ;;  %v1504_v1 = vld [vmem:[#allocation4 + $0x8] sm:$0xff] }
 0x1c9   : > { %1569 = vst.msk [vmem:[#allocation4 + $0x8] sm:$0xf] %vm242_vm2, %v1568_v2  ;;  %1571 = vst.msk [vmem:[#allocation4 + $0xc] sm:$0xf] %vm242_vm2, %v1570_v3 }
 0x1ca   : > { %2122 = vmatmul.mubr.msk.bf16.vlgmr.msra.gmra.mxu1 %vm288_vm3, %v1431_v0 }
 0x1cb   : > { %2134 = vmatpush3.bf16.msra.mxu1 %v2219_v60  ;;  %2137 = vmatprep.mubr.msk.bf16.mxu1 %vm2266_vm1, %v2265_v7 }
 0x1cc   : > { %2135 = vmatprep.subr.bf16.mxu1 %v2265_v7 }
 0x1cf   : > { %v1503_v5 = vld [vmem:[#allocation4] sm:$0xff]  ;;  %2136 = vmatpush3.bf16.msra.mxu1 %v2220_v4 }
 0x1d0   : > { %v1505_v9 = vpack.c.bf16 %v1504_v1, %v1503_v5  ;;  %1565 = vst.msk [vmem:[#allocation4] sm:$0xf] %vm242_vm2, %v1564_v6  ;;  %1567 = vst.msk [vmem:[#allocation4 + $0x4] sm:$0xf] %vm242_vm2, %v1566_v8  ;;  %v1578_v11 = vld [vmem:[#allocation4 + $0x8] sm:$0xff] }
 0x1d2   : > { %2130 = vmatmul.mubr.msk.bf16.vlgmr.msra.gmra.mxu0 %vm288_vm3, %v1505_v9 }
 0x1d7   : > { %v1577_v10 = vld [vmem:[#allocation4] sm:$0xff] }
 0x1d8   : > { %v1579_v12 = vpack.c.bf16 %v1578_v11, %v1577_v10 }
 0x1da   : > { %2138 = vmatmul.mubr.msk.bf16.vlgmr.msra.gmra.mxu1 %vm288_vm3, %v1579_v12 }
 0x25a   : > { %v1113_v13 = vpop.f32.mrf.mxu0 }
 0x25c   : > { %v2083_v14 = vpop.f32.mrf.mxu0 }
 0x25e   : > { %v1116_v15 = vpop.f32.mrf.mxu0 }
 0x260   : > { %v2084_v7 = vpop.f32.mrf.mxu0 }
 0x262   : > { %v1057_v16 = vpop.f32.mrf.mxu1 }
 0x263   : > { %v1114_v39 = vadd.f32 %v1113_v13, %v1057_v16 }
 0x264   : > { %v2075_v17 = vpop.f32.mrf.mxu1 }
 0x266   : > { %v1060_v18 = vpop.f32.mrf.mxu1 }
 0x267   : > { %v1117_v41 = vadd.f32 %v1116_v15, %v1060_v18 }
 0x268   : > { %v2076_v19 = vpop.f32.mrf.mxu1 }
 0x26a   : > { %v1185_v20 = vpop.f32.mrf.mxu1 }
 0x26b   : > { %v1192_v42 = vadd.f32 %v1185_v20, %v1114_v39 }
 0x26c   : > { %v2091_v21 = vpop.f32.mrf.mxu1 }
 0x26e   : > { %v1188_v22 = vpop.f32.mrf.mxu1 }
 0x26f   : > { %v1193_v44 = vadd.f32 %v1188_v22, %v1117_v41 }
 0x270   : > { %v2092_v23 = vpop.f32.mrf.mxu1 }
 0x272   : > { %v1259_v24 = vpop.f32.mrf.mxu0 }
 0x273   : > { %v1266_v45 = vadd.f32 %v1259_v24, %v1192_v42 }
 0x274   : > { %v2099_v25 = vpop.f32.mrf.mxu0 }
 0x276   : > { %v1262_v26 = vpop.f32.mrf.mxu0 }
 0x277   : > { %v1267_v47 = vadd.f32 %v1262_v26, %v1193_v44 }
 0x278   : > { %v2100_v27 = vpop.f32.mrf.mxu0 }
 0x27a   : > { %v1333_v28 = vpop.f32.mrf.mxu1 }
 0x27b   : > { %v1340_v48 = vadd.f32 %v1333_v28, %v1266_v45 }
 0x27c   : > { %v2107_v29 = vpop.f32.mrf.mxu1 }
 0x27e   : > { %v1336_v30 = vpop.f32.mrf.mxu1 }
 0x27f   : > { %v1341_v50 = vadd.f32 %v1336_v30, %v1267_v47  ;;  %v1670_v30 = vld [vmem:[#allocation2 + $0x9] sm:$0xf] }
 0x280   : > { %v2108_v31 = vpop.f32.mrf.mxu1 }
 0x281   : > { %v1674_v31 = vld [vmem:[#allocation2 + $0x11] sm:$0xf] }
 0x282   : > { %v1407_v32 = vpop.f32.mrf.mxu0 }
 0x283   : > { %v1414_v51 = vadd.f32 %v1407_v32, %v1340_v48  ;;  %v1678_v32 = vld [vmem:[#allocation2 + $0x19] sm:$0xf] }
 0x284   : > { %v2115_v33 = vpop.f32.mrf.mxu0 }
 0x285   : > { %v1682_v33 = vld [vmem:[#allocation2 + $0x21] sm:$0xf] }
 0x286   : > { %v1410_v34 = vpop.f32.mrf.mxu0 }
 0x287   : > { %v1415_v53 = vadd.f32 %v1410_v34, %v1341_v50 }
 0x288   : > { %v2116_v35 = vpop.f32.mrf.mxu0 }
 0x28a   : > { %v1481_v36 = vpop.f32.mrf.mxu1 }
 0x28b   : > { %v1488_v54 = vadd.f32 %v1481_v36, %v1414_v51 }
 0x28c   : > { %v2123_v37 = vpop.f32.mrf.mxu1 }
 0x28e   : > { %v1484_v38 = vpop.f32.mrf.mxu1 }
 0x28f   : > { %v1489_v56 = vadd.f32 %v1484_v38, %v1415_v53 }
 0x290   : > { %v2124_v40 = vpop.f32.mrf.mxu1 }
 0x292   : > { %v1555_v43 = vpop.f32.mrf.mxu0 }
 0x293   : > { %v1562_v57 = vadd.f32 %v1555_v43, %v1488_v54 }
 0x294   : > { %v2131_v46 = vpop.f32.mrf.mxu0 }
 0x296   : > { %v1558_v49 = vpop.f32.mrf.mxu0 }
 0x297   : > { %v1563_v59 = vadd.f32 %v1558_v49, %v1489_v56 }
 0x298   : > { %v2132_v52 = vpop.f32.mrf.mxu0 }
 0x29a   : > { %v1629_v55 = vpop.f32.mrf.mxu1 }
 0x29b   : > { %v1636_v60 = vadd.f32 %v1629_v55, %v1562_v57 }
 0x29c   : > { %v2139_v58 = vpop.f32.mrf.mxu1 }
 0x29d   : > { %v1638_v0 = vsel %vm288_vm3, %v1636_v60, 0.0 }
 0x29e   : > { %v1632_v61 = vpop.f32.mrf.mxu1 }
 0x29f   : > { %v1637_v62 = vadd.f32 %v1632_v61, %v1563_v59 }
 0x2a0   : > { %v2140_v63 = vpop.f32.mrf.mxu1 }
 0x2a1   : > { %v1639_v1 = vsel %vm288_vm3, %v1637_v62, 0.0 }
 0x2a2   : > { %v1640_v2 = vadd.f32 %v1639_v1, %v1638_v0 }
 0x2a4   : > { %v1641_v3 = vrot.slane %v1640_v2, 4 }
 0x2a6   : > { %v1642_v4 = vadd.f32 %v1641_v3, %v1640_v2 }
 0x2a8   : > { %v1643_v5 = vrot.slane %v1642_v4, 2 }
 0x2aa   : > { %v1644_v6 = vadd.f32 %v1643_v5, %v1642_v4 }
 0x2ac   : > { %v1645_v8 = vrot.slane %v1644_v6, 1 }
 0x2ae   : > { %v1646_v9 = vadd.f32 %v1645_v8, %v1644_v6 }
 0x2b0   : > { %v1647_v10 = vmul.f32 0.0625, %v1646_v9 }
 0x2b2   : > { %v1648_v11 = vsub.f32 %v1636_v60, %v1647_v10  ;;  %v1649_v12 = vsub.f32 %v1637_v62, %v1647_v10 }
 0x2b4   : > { %v1650_v13 = vmul.f32 %v1648_v11, %v1648_v11  ;;  %v1651_v14 = vmul.f32 %v1649_v12, %v1649_v12 }
 0x2b6   : > { %v1652_v15 = vsel %vm288_vm3, %v1650_v13, 0.0  ;;  %v1653_v7 = vsel %vm288_vm3, %v1651_v14, 0.0 }
 0x2b7   : > { %v1654_v16 = vadd.f32 %v1653_v7, %v1652_v15 }
 0x2b9   : > { %v1655_v17 = vrot.slane %v1654_v16, 4 }
 0x2bb   : > { %v1656_v18 = vadd.f32 %v1655_v17, %v1654_v16 }
 0x2bd   : > { %v1657_v19 = vrot.slane %v1656_v18, 2 }
 0x2bf   : > { %v1658_v20 = vadd.f32 %v1657_v19, %v1656_v18 }
 0x2c1   : > { %v1659_v21 = vrot.slane %v1658_v20, 1 }
 0x2c3   : > { %v1660_v22 = vadd.f32 %v1659_v21, %v1658_v20 }
 0x2c5   : > { %v1661_v23 = vmul.f32 0.0625, %v1660_v22 }
 0x2c7   : > { %v1662_v24 = vadd.f32 1e-05, %v1661_v23 }
 0x2c9   : > { %2223 = vrsqrt.f32 %v1662_v24 }
 0x2d6   : > { %v2224_v25 = vpop.eup %2223 }
 0x2d7   : > { %v1664_v26 = vmul.f32 %v2224_v25, %v1648_v11  ;;  %v1665_v27 = vmul.f32 %v2224_v25, %v1649_v12 }
 0x2d9   : > { %v1666_v28 = vmax.f32 %v1664_v26, 0.0  ;;  %v1667_v29 = vmax.f32 %v1665_v27, 0.0 }
 0x2db   : > { %1668 = vst.msk [vmem:[#allocation4] sm:$0xff] %vm288_vm3, %v1666_v28  ;;  %1669 = vst.msk [vmem:[#allocation4 + $0x8] sm:$0xff] %vm288_vm3, %v1667_v29 }
 0x2e2   : > { %v1671_v34 = vld [vmem:[#allocation4] sm:$0xf]  ;;  %v1675_v35 = vld [vmem:[#allocation4 + $0x4] sm:$0xf]  ;;  %v1679_v36 = vld [vmem:[#allocation4 + $0x8] sm:$0xf] }
 0x2e3   : > { %v1672_v37 = vadd.f32 %v1671_v34, %v1670_v30  ;;  %v1676_v38 = vadd.f32 %v1675_v35, %v1674_v31  ;;  %v1680_v39 = vadd.f32 %v1679_v36, %v1678_v32  ;;  %v1683_v40 = vld [vmem:[#allocation4 + $0xc] sm:$0xf] }
 0x2e4   : > { %v1684_v41 = vadd.f32 %v1683_v40, %v1682_v33 }
 0x2e5   : > { %1673 = vst.msk [vmem:[#allocation2 + $0x9] sm:$0xf] %vm242_vm2, %v1672_v37  ;;  %1677 = vst.msk [vmem:[#allocation2 + $0x11] sm:$0xf] %vm242_vm2, %v1676_v38 }
 0x2e6   : > { %1681 = vst.msk [vmem:[#allocation2 + $0x19] sm:$0xf] %vm242_vm2, %v1680_v39  ;;  %1685 = vst.msk [vmem:[#allocation2 + $0x21] sm:$0xf] %vm242_vm2, %v1684_v41 }
 0x2ec   : > { %v1686_v42 = vld [vmem:[#allocation2 + $0xa] sm:$0x1]  ;;  %v1688_v43 = vld [vmem:[#allocation2 + $0xb] sm:$0x1]  ;;  %v1690_v44 = vld [vmem:[#allocation2 + $0x12] sm:$0x1] }
 0x2ed   : > { %1687 = vst.msk [vmem:[#allocation2 + $0x8] sm:$0x1] %vm955_vm4, %v1686_v42  ;;  %1689 = vst.msk [vmem:[#allocation2 + $0xd] sm:$0x1] %vm955_vm4, %v1688_v43  ;;  %v1692_v45 = vld [vmem:[#allocation2 + $0x13] sm:$0x1] }
 0x2ee   : > { %1691 = vst.msk [vmem:[#allocation2 + $0x10] sm:$0x1] %vm955_vm4, %v1690_v44  ;;  %v1694_v46 = vld [vmem:[#allocation2 + $0x1a] sm:$0x1]  ;;  %v1696_v47 = vld [vmem:[#allocation2 + $0x1b] sm:$0x1] }
 0x2ef   : > { %1693 = vst.msk [vmem:[#allocation2 + $0x15] sm:$0x1] %vm955_vm4, %v1692_v45  ;;  %1695 = vst.msk [vmem:[#allocation2 + $0x18] sm:$0x1] %vm955_vm4, %v1694_v46  ;;  %v1698_v48 = vld [vmem:[#allocation2 + $0x22] sm:$0x1] }
 0x2f0   : > { %1697 = vst.msk [vmem:[#allocation2 + $0x1d] sm:$0x1] %vm955_vm4, %v1696_v47  ;;  %v1700_v49 = vld [vmem:[#allocation2 + $0x23] sm:$0x1]  ;;  %1699 = vst.msk [vmem:[#allocation2 + $0x20] sm:$0x1] %vm955_vm4, %v1698_v48 }
 0x2f1   : > { %1701 = vst.msk [vmem:[#allocation2 + $0x25] sm:$0x1] %vm955_vm4, %v1700_v49 }
 0x2f4   : > { %1709 = sbr.rel (%p1940_p8) target bundleno = 769 (0x301), region = 40 }
 0x2f6   : > { %v1702_v50 = vld [vmem:[#allocation2 + $0x10] sm:$0x3f] }
 0x2f7   : > { %v1704_v51 = vld [vmem:[#allocation2 + $0x18] sm:$0x3f]  ;;  %1703 = vst.msk [vmem:[#allocation2] sm:$0x3f] %vm972_vm5, %v1702_v50 }
 0x2f8   : > { %1705 = vst.msk [vmem:[#allocation2 + $0x28] sm:$0x3f] %vm972_vm5, %v1704_v51 }
 0x2f9   : > { %v1711_v53 = vld [vmem:[#allocation2 + $0x8] sm:$0x3f]  ;;  %v1712_v54 = vld [vmem:[#allocation2 + $0x10] sm:$0x3f]  ;;  %v1713_v55 = vld [vmem:[#allocation2 + $0x18] sm:$0x3f] }
 0x2fa   : > { %1717 = vst.msk [vmem:[%s2327_s27 + $0x8] sm:$0x3f] %vm972_vm5, %v1711_v53  ;;  %1718 = vst.msk [vmem:[%s2327_s27 + $0x10] sm:$0x3f] %vm972_vm5, %v1712_v54  ;;  %v1714_v56 = vld [vmem:[#allocation2 + $0x20] sm:$0x3f] }
 0x2fb   : > { %1719 = vst.msk [vmem:[%s2327_s27 + $0x18] sm:$0x3f] %vm972_vm5, %v1713_v55  ;;  %1720 = vst.msk [vmem:[%s2327_s27 + $0x20] sm:$0x3f] %vm972_vm5, %v1714_v56 }
 0x2fe   : > { %v1710_v52 = vld [vmem:[#allocation2] sm:$0x3f] }
 0x2ff   : > { %1716 = vst.msk [vmem:[%s2327_s27] sm:$0x3f] %vm972_vm5, %v1710_v52  ;;  %v1715_v57 = vld [vmem:[#allocation2 + $0x28] sm:$0x3f] }
 0x300   : > { %1721 = vst.msk [vmem:[%s2327_s27 + $0x28] sm:$0x3f] %vm972_vm5, %v1715_v57 }
 0x301 PF: > { %s13_s16 = sadd.s32 1, %s2263_s16   ;;  %s2610_s12 = smov %s2255_s14 }
 0x302   : > { %p10_p9 = scmp.ge.s32.totalorder %s13_s16, 20   ;;  %s2611_s13 = smov %s2259_s15 }
 0x303   : > { %s2612_s14 = smov %s2615_s17  ;;  %s2613_s15 = smov %s2619_s18 }
 0x304   :  { %12 = sbr.rel (!%p10_p9) target bundleno = 3 (0x3), region = 102 }

// kernel: cyclegan_generator_forward.11
= control target key start
LH: loop header
LB: loop body
LE: loop exit
PB: predicated region body
PF: predicated region fallthrough
CT: control target
= control target key end

     0   :  { %s845_s9 = smov 0   ;;  %s962_s0 = inlined_call_operand.vmem [shape: bf16[128,288], index: 0, kind: input, shape index: {}]   ;;  %s963_s1 = inlined_call_operand.vmem [shape: bf16[288,16], index: 1, kind: input, shape index: {}]   ;;  %s964_s2 = inlined_call_operand.vmem [shape: f32[128,16], index: 2, kind: output, shape index: {}]  }
   0x1 LB: > { %s658_s10 = sadd.s32 4294967295, %s828_s9   ;;  %p662_p0 = scmp.ge.s32.totalorder %s828_s9, 1  ;;  %s828_s9 = sphi %s845_s9, %s12_s9  }
   0x2   : > { %p114_p1 = scmp.lt.s32.totalorder %s828_s9, 3 }
   0x4   : > { %p115_p2 = pnand %p662_p0, %p114_p1 }
   0x5   : > { %s663_s13 = sshll.u32 (!%p115_p2), %s658_s10, 3 }
   0x6   : > { %118 = sbr.rel (%p115_p2) target bundleno = 341 (0x155), region = 28  ;;  %p138_p3 = scmp.lt.s32.totalorder (!%p115_p2), %s663_s13, 15 }
   0xb   : > { %v786_v0 = vld [vmem:[%s963_s1 + $0x78] sm:$0xff]   ;;  %v788_v2 = vld [vmem:[%s963_s1 + $0x70] sm:$0xff]   ;;  %v790_v4 = vld [vmem:[%s963_s1 + $0x68] sm:$0xff]   ;;  %s966_s13 = smov (!%p138_p3, %s663_s13), 15  ;;  %vm371_vm0 = vcmask 261120   ;;  %vm514_vm1 = vcmask 130048  }
   0xc   : > { %v787_v1 = vld [vmem:[%s963_s1 + $0x38] sm:$0xff]   ;;  %703 = vmatprep.subr.bf16.mxu0 %v786_v0  ;;  %761 = vmatprep.subr.bf16.mxu1 %v786_v0  ;;  %v789_v3 = vld [vmem:[%s963_s1 + $0x30] sm:$0xff]   ;;  %v791_v5 = vld [vmem:[%s963_s1 + $0x28] sm:$0xff]   ;;  %s777_s26 = smul.u32 12, %s966_s13 }
   0xd   : > { %704 = vmatpush3.bf16.msra.mxu0 %v787_v1  ;;  %769 = vmatpush3.bf16.msra.mxu1 %v787_v1  ;;  %v792_v6 = vld [vmem:[%s963_s1 + $0x60] sm:$0xff]   ;;  %v794_v8 = vld [vmem:[%s963_s1 + $0x58] sm:$0xff]   ;;  %v796_v10 = vld [vmem:[%s963_s1 + $0x50] sm:$0xff]  }
   0xe   : > { %705 = vmatprep.subr.bf16.mxu0 %v788_v2  ;;  %762 = vmatprep.subr.bf16.mxu1 %v788_v2  ;;  %v793_v7 = vld [vmem:[%s963_s1 + $0x20] sm:$0xff]   ;;  %s886_s5 = scalar_lea.vmem %s962_s0, %s777_s26  ;;  %v795_v9 = vld [vmem:[%s963_s1 + $0x18] sm:$0xff]   ;;  %v797_v13 = vld [vmem:[%s963_s1 + $0x10] sm:$0xff]   ;;  %s666_s26 = sshll.u32 %s966_s13, 3 }
   0xf   : > { %v804_v11 = vld [vmem:[%s886_s5 + $0x4] ss:$12 sps:$4 sm:$0xff]   ;;  %v807_v12 = vld [vmem:[%s886_s5 + $0x4c] ss:$12 sps:$4 sm:$0xff]   ;;  %v805_v20 = vld [vmem:[%s886_s5 + $0x48] ss:$12 sps:$4 sm:$0xff]   ;;  %s148_s29 = scalar_lea.vmem %s964_s2, %s666_s26 }
  0x10   : > { %v798_v14 = vld [vmem:[%s963_s1 + $0x48] sm:$0xff]   ;;  %416 = vmatprep.mubr.bf16.mxu0 %v804_v11  ;;  %440 = vmatprep.mubr.bf16.mxu1 %v807_v12  ;;  %v800_v16 = vld [vmem:[%s963_s1 + $0x40] sm:$0xff]   ;;  %v818_v28 = vld [vmem:[%s886_s5 + $0x30] ss:$12 sps:$4 sm:$0xff]  }
  0x11   : > { %706 = vmatpush3.bf16.msra.mxu0 %v789_v3  ;;  %770 = vmatpush3.bf16.msra.mxu1 %v789_v3  ;;  %v799_v15 = vld [vmem:[%s963_s1 + $0x8] sm:$0xff]   ;;  %v801_v17 = vld [vmem:[%s963_s1] sm:$0xff]   ;;  %v819_v29 = vld [vmem:[%s886_s5 + $0x50] ss:$12 sps:$4 sm:$0xff]  }
  0x12   : > { %707 = vmatprep.subr.bf16.mxu0 %v790_v4  ;;  %763 = vmatprep.subr.bf16.mxu1 %v790_v4  ;;  %v808_v18 = vld [vmem:[%s963_s1 + $0x88] sm:$0xff]   ;;  %v809_v22 = vld [vmem:[%s963_s1 + $0x80] sm:$0xff]  }
  0x13   : > { %v802_v19 = vld [vmem:[%s886_s5] ss:$12 sps:$4 sm:$0xff]   ;;  %v810_v21 = vld [vmem:[%s886_s5 + $0x1c] ss:$12 sps:$4 sm:$0xff]   ;;  %v813_v24 = vld [vmem:[%s886_s5 + $0x18] ss:$12 sps:$4 sm:$0xff]  }
  0x14   : > { %v812_v23 = vld [vmem:[%s886_s5 + $0x8] ss:$12 sps:$4 sm:$0xff]   ;;  %v814_v25 = vld [vmem:[%s886_s5 + $0x20] ss:$12 sps:$4 sm:$0xff]   ;;  %v817_v27 = vld [vmem:[%s886_s5 + $0x38] ss:$12 sps:$4 sm:$0xff]  }
  0x15   : > { %708 = vmatpush3.bf16.msra.mxu0 %v791_v5  ;;  %771 = vmatpush3.bf16.msra.mxu1 %v791_v5  ;;  %v815_v26 = vld [vmem:[%s886_s5 + $0x34] ss:$12 sps:$4 sm:$0xff]  }
  0x16   : > { %709 = vmatprep.subr.bf16.mxu0 %v792_v6  ;;  %764 = vmatprep.subr.bf16.mxu1 %v792_v6 }
  0x19   : > { %710 = vmatpush3.bf16.msra.mxu0 %v793_v7  ;;  %772 = vmatpush3.bf16.msra.mxu1 %v793_v7 }
  0x1a   : > { %711 = vmatprep.subr.bf16.mxu0 %v794_v8  ;;  %765 = vmatprep.subr.bf16.mxu1 %v794_v8 }
  0x1d   : > { %712 = vmatpush3.bf16.msra.mxu0 %v795_v9  ;;  %773 = vmatpush3.bf16.msra.mxu1 %v795_v9 }
  0x1e   : > { %713 = vmatprep.subr.bf16.mxu0 %v796_v10  ;;  %766 = vmatprep.subr.bf16.mxu1 %v796_v10 }
  0x21   : > { %714 = vmatpush3.bf16.msra.mxu0 %v797_v13  ;;  %774 = vmatpush3.bf16.msra.mxu1 %v797_v13 }
  0x22   : > { %715 = vmatprep.subr.bf16.mxu0 %v798_v14  ;;  %767 = vmatprep.subr.bf16.mxu1 %v798_v14 }
  0x25   : > { %716 = vmatpush3.bf16.msra.mxu0 %v799_v15  ;;  %775 = vmatpush3.bf16.msra.mxu1 %v799_v15 }
  0x26   : > { %717 = vmatprep.subr.bf16.mxu0 %v800_v16  ;;  %768 = vmatprep.subr.bf16.mxu1 %v800_v16 }
  0x29   : > { %718 = vmatpush3.bf16.msra.mxu0 %v801_v17  ;;  %776 = vmatpush3.bf16.msra.mxu1 %v801_v17 }
  0x2a   : > { %749 = vmatprep.subr.bf16.mxu1 %v808_v18 }
  0x2c   : > { %417 = vmatmul.mubr.bf16.vlgmr.msra.gmra.mxu0 %v802_v19  ;;  %441 = vmatmul.mubr.bf16.vlgmr.msra.gmra.mxu1 %v805_v20 }
  0x2d   : > { %750 = vmatpush3.bf16.msra.mxu1 %v808_v18  ;;  %424 = vmatprep.mubr.bf16.mxu0 %v810_v21 }
  0x2e   : > { %751 = vmatprep.subr.bf16.mxu1 %v809_v22  ;;  %753 = vmatprep.mubr.msk.bf16.mxu1 %vm371_vm0, %v812_v23 }
  0x31   : > { %752 = vmatpush3.bf16.msra.mxu1 %v809_v22 }
  0x34   : > { %425 = vmatmul.mubr.bf16.gmra.mxu0 %v813_v24  ;;  %754 = vmatmul.mubr.msk.bf16.vlgmr.msra.gmra.mxu1 %vm371_vm0, %v814_v25 }
  0x35   : > { %432 = vmatprep.mubr.bf16.mxu0 %v815_v26  ;;  %757 = vmatprep.mubr.msk.bf16.mxu1 %vm371_vm0, %v817_v27 }
  0x3c   : > { %433 = vmatmul.mubr.bf16.gmra.mxu0 %v818_v28  ;;  %758 = vmatmul.mubr.msk.bf16.gmra.mxu1 %vm371_vm0, %v819_v29 }
  0xec   : > { %v719_v30 = vpop.f32.mrf.mxu0  ;;  %v737_v31 = vpop.f32.mrf.mxu1 }
  0xee   : > { %v720_v32 = vpop.f32.mrf.mxu0  ;;  %v738_v33 = vpop.f32.mrf.mxu1 }
  0xef   : > { %v721_v42 = vadd.f32 %v720_v32, %v719_v30  ;;  %v739_v6 = vadd.f32 %v738_v33, %v737_v31 }
  0xf0   : > { %v722_v34 = vpop.f32.mrf.mxu0  ;;  %v740_v35 = vpop.f32.mrf.mxu1 }
  0xf2   : > { %v723_v36 = vpop.f32.mrf.mxu0  ;;  %v741_v37 = vpop.f32.mrf.mxu1 }
  0xf3   : > { %v724_v46 = vadd.f32 %v723_v36, %v722_v34  ;;  %v742_v10 = vadd.f32 %v741_v37, %v740_v35 }
  0xf4   : > { %v725_v38 = vpop.f32.mrf.mxu0  ;;  %v755_v39 = vpop.f32.mrf.mxu1 }
  0xf6   : > { %v726_v40 = vpop.f32.mrf.mxu0  ;;  %v483_v41 = vpop.f32.mrf.mxu1 }
  0xf7   : > { %v727_v43 = vadd.f32 %v726_v40, %v725_v38  ;;  %v484_v47 = vadd.f32 %v721_v42, %v483_v41 }
  0xf8   : > { %v728_v44 = vpop.f32.mrf.mxu0  ;;  %v756_v45 = vpop.f32.mrf.mxu1 }
  0xf9   : > { %v492_v50 = vadd.f32 %v755_v39, %v727_v43  ;;  %v515_v55 = vsel %vm514_vm1, %v484_v47, 0.0 }
  0xfa   : > { %v729_v48 = vpop.f32.mrf.mxu0  ;;  %v486_v49 = vpop.f32.mrf.mxu1 }
  0xfb   : > { %v730_v51 = vadd.f32 %v729_v48, %v728_v44  ;;  %v487_v52 = vadd.f32 %v724_v46, %v486_v49  ;;  %v518_v61 = vsel %vm514_vm1, %v492_v50, 0.0 }
  0xfc   : > { %v731_v53 = vpop.f32.mrf.mxu0  ;;  %v759_v54 = vpop.f32.mrf.mxu1 }
  0xfd   : > { %v495_v56 = vadd.f32 %v756_v45, %v730_v51  ;;  %v516_v57 = vsel %vm514_vm1, %v487_v52, 0.0  ;;  %v508_v11 = vadd.f32 %v759_v54, %v739_v6 }
  0xfe   : > { %v517_v58 = vadd.f32 %v516_v57, %v515_v55  ;;  %v732_v59 = vpop.f32.mrf.mxu0  ;;  %v499_v60 = vpop.f32.mrf.mxu1 }
  0xff   : > { %v733_v62 = vadd.f32 %v732_v59, %v731_v53  ;;  %v520_v2 = vsel %vm514_vm1, %v495_v56, 0.0  ;;  %v526_v17 = vsel %vm514_vm1, %v508_v11, 0.0 }
 0x100   : > { %v519_v63 = vadd.f32 %v518_v61, %v517_v58  ;;  %v734_v0 = vpop.f32.mrf.mxu0  ;;  %v760_v1 = vpop.f32.mrf.mxu1 }
 0x101   : > { %v500_v3 = vadd.f32 %v733_v62, %v499_v60  ;;  %v511_v14 = vadd.f32 %v760_v1, %v742_v10 }
 0x102   : > { %v521_v4 = vadd.f32 %v520_v2, %v519_v63  ;;  %v735_v5 = vpop.f32.mrf.mxu0  ;;  %v502_v9 = vpop.f32.mrf.mxu1 }
 0x103   : > { %v522_v7 = vsel %vm514_vm1, %v500_v3, 0.0  ;;  %v736_v8 = vadd.f32 %v735_v5, %v734_v0  ;;  %v528_v19 = vsel %vm514_vm1, %v511_v14, 0.0 }
 0x104   : > { %v523_v13 = vadd.f32 %v522_v7, %v521_v4 }
 0x105   : > { %v503_v12 = vadd.f32 %v736_v8, %v502_v9 }
 0x107   : > { %v524_v15 = vsel %vm514_vm1, %v503_v12, 0.0 }
 0x108   : > { %v525_v16 = vadd.f32 %v524_v15, %v523_v13 }
 0x10a   : > { %v527_v18 = vadd.f32 %v526_v17, %v525_v16 }
 0x10c   : > { %v529_v20 = vadd.f32 %v528_v19, %v527_v18 }
 0x10e   : > { %v530_v21 = vrot.slane %v529_v20, 4 }
 0x110   : > { %v531_v22 = vadd.f32 %v530_v21, %v529_v20 }
 0x112   : > { %v532_v23 = vrot.slane %v531_v22, 2 }
 0x114   : > { %v533_v24 = vadd.f32 %v532_v23, %v531_v22 }
 0x116   : > { %v534_v25 = vrot.slane %v533_v24, 1 }
 0x118   : > { %v535_v26 = vadd.f32 %v534_v25, %v533_v24 }
 0x11a   : > { %v537_v27 = vmul.f32 0.015625, %v535_v26 }
 0x11c   : > { %v538_v28 = vsub.f32 %v484_v47, %v537_v27  ;;  %v539_v29 = vsub.f32 %v487_v52, %v537_v27  ;;  %v540_v30 = vsub.f32 %v492_v50, %v537_v27  ;;  %v541_v31 = vsub.f32 %v495_v56, %v537_v27 }
 0x11d   : > { %v542_v32 = vsub.f32 %v500_v3, %v537_v27  ;;  %v543_v36 = vsub.f32 %v503_v12, %v537_v27  ;;  %v544_v41 = vsub.f32 %v508_v11, %v537_v27  ;;  %v545_v45 = vsub.f32 %v511_v14, %v537_v27 }
 0x11e   : > { %v546_v33 = vmul.f32 %v538_v28, %v538_v28  ;;  %v547_v34 = vmul.f32 %v539_v29, %v539_v29  ;;  %v548_v35 = vmul.f32 %v540_v30, %v540_v30  ;;  %v549_v37 = vmul.f32 %v541_v31, %v541_v31 }
 0x11f   : > { %v550_v42 = vmul.f32 %v542_v32, %v542_v32  ;;  %v551_v46 = vmul.f32 %v543_v36, %v543_v36  ;;  %v552_v49 = vmul.f32 %v544_v41, %v544_v41  ;;  %v553_v52 = vmul.f32 %v545_v45, %v545_v45 }
 0x120   : > { %v554_v38 = vsel %vm514_vm1, %v546_v33, 0.0  ;;  %v555_v39 = vsel %vm514_vm1, %v547_v34, 0.0  ;;  %v557_v43 = vsel %vm514_vm1, %v548_v35, 0.0  ;;  %v559_v47 = vsel %vm514_vm1, %v549_v37, 0.0 }
 0x121   : > { %v556_v40 = vadd.f32 %v555_v39, %v554_v38  ;;  %v561_v50 = vsel %vm514_vm1, %v550_v42, 0.0  ;;  %v563_v53 = vsel %vm514_vm1, %v551_v46, 0.0  ;;  %v565_v55 = vsel %vm514_vm1, %v552_v49, 0.0 }
 0x122   : > { %v567_v57 = vsel %vm514_vm1, %v553_v52, 0.0 }
 0x123   : > { %v558_v44 = vadd.f32 %v557_v43, %v556_v40 }
 0x125   : > { %v560_v48 = vadd.f32 %v559_v47, %v558_v44 }
 0x127   : > { %v562_v51 = vadd.f32 %v561_v50, %v560_v48 }
 0x129   : > { %v564_v54 = vadd.f32 %v563_v53, %v562_v51 }
 0x12b   : > { %v566_v56 = vadd.f32 %v565_v55, %v564_v54 }
 0x12d   : > { %v568_v58 = vadd.f32 %v567_v57, %v566_v56 }
 0x12f   : > { %v569_v59 = vrot.slane %v568_v58, 4 }
 0x131   : > { %v570_v60 = vadd.f32 %v569_v59, %v568_v58 }
 0x133   : > { %v571_v61 = vrot.slane %v570_v60, 2 }
 0x135   : > { %v572_v62 = vadd.f32 %v571_v61, %v570_v60 }
 0x137   : > { %v573_v63 = vrot.slane %v572_v62, 1 }
 0x139   : > { %v574_v0 = vadd.f32 %v573_v63, %v572_v62 }
 0x13b   : > { %v575_v1 = vmul.f32 0.015625, %v574_v0 }
 0x13d   : > { %v576_v2 = vadd.f32 1e-05, %v575_v1 }
 0x13f   : > { %820 = vrsqrt.f32 %v576_v2 }
 0x14c   : > { %v821_v3 = vpop.eup %820 }
 0x14d   : > { %v578_v4 = vmul.f32 %v821_v3, %v538_v28  ;;  %v579_v5 = vmul.f32 %v821_v3, %v539_v29  ;;  %v580_v6 = vmul.f32 %v821_v3, %v540_v30  ;;  %v581_v7 = vmul.f32 %v821_v3, %v541_v31 }
 0x14e   : > { %v582_v8 = vmul.f32 %v821_v3, %v542_v32  ;;  %v583_v9 = vmul.f32 %v821_v3, %v543_v36  ;;  %v584_v10 = vmul.f32 %v821_v3, %v544_v41  ;;  %v585_v11 = vmul.f32 %v821_v3, %v545_v45 }
 0x14f   : > { %v586_v12 = vmax.f32 %v578_v4, 0.0  ;;  %v587_v13 = vmax.f32 %v579_v5, 0.0  ;;  %v588_v14 = vmax.f32 %v580_v6, 0.0  ;;  %v589_v15 = vmax.f32 %v581_v7, 0.0 }
 0x150   : > { %v590_v16 = vmax.f32 %v582_v8, 0.0  ;;  %v591_v17 = vmax.f32 %v583_v9, 0.0  ;;  %v592_v18 = vmax.f32 %v584_v10, 0.0  ;;  %v593_v19 = vmax.f32 %v585_v11, 0.0 }
 0x151   : > { %594 = vst.msk [vmem:[%s148_s29] sm:$0xff] %vm514_vm1, %v586_v12  ;;  %595 = vst.msk [vmem:[%s148_s29 + $0x8] sm:$0xff] %vm514_vm1, %v587_v13 }
 0x152   : > { %596 = vst.msk [vmem:[%s148_s29 + $0x10] sm:$0xff] %vm514_vm1, %v588_v14  ;;  %597 = vst.msk [vmem:[%s148_s29 + $0x18] sm:$0xff] %vm514_vm1, %v589_v15 }
 0x153   : > { %598 = vst.msk [vmem:[%s148_s29 + $0x20] sm:$0xff] %vm514_vm1, %v590_v16  ;;  %599 = vst.msk [vmem:[%s148_s29 + $0x28] sm:$0xff] %vm514_vm1, %v591_v17 }
 0x154   : > { %600 = vst.msk [vmem:[%s148_s29 + $0x30] sm:$0xff] %vm514_vm1, %v592_v18  ;;  %601 = vst.msk [vmem:[%s148_s29 + $0x38] sm:$0xff] %vm514_vm1, %v593_v19 }
 0x155 PF: > { %s12_s9 = sadd.s32 1, %s828_s9  }
 0x156   : > { %p9_p4 = scmp.ge.s32.totalorder %s12_s9, 4  }
 0x158   :  { %11 = sbr.rel (!%p9_p4) target bundleno = 1 (0x1), region = 58 }

// kernel: cyclegan_generator_forward.12
= control target key start
LH: loop header
LB: loop body
LE: loop exit
PB: predicated region body
PF: predicated region fallthrough
CT: control target
= control target key end

     0   :  { %s1149_s9 = smov 0   ;;  %s1723_s0 = inlined_call_operand.vmem [shape: bf16[512,144], index: 0, kind: input, shape index: {}]   ;;  %s1724_s1 = inlined_call_operand.vmem [shape: bf16[144,8], index: 1, kind: input, shape index: {}]   ;;  %s1725_s2 = inlined_call_operand.vmem [shape: f32[512,8], index: 2, kind: output, shape index: {}]  }
   0x1 LB: > { %s969_s10 = sadd.s32 4294967295, %s1131_s9   ;;  %p973_p0 = scmp.ge.s32.totalorder %s1131_s9, 1  ;;  %s1131_s9 = sphi %s1149_s9, %s12_s9  }
   0x2   : > { %p114_p1 = scmp.lt.s32.totalorder %s1131_s9, 3 }
   0x4   : > { %p115_p2 = pnand %p973_p0, %p114_p1 }
   0x5   : > { %s974_s13 = sshll.u32 (!%p115_p2), %s969_s10, 5 }
   0x6   : > { %118 = sbr.rel (%p115_p2) target bundleno = 473 (0x1d9), region = 28  ;;  %p138_p3 = scmp.lt.s32.totalorder (!%p115_p2), %s974_s13, 63 }
   0xb   : > { %v1066_v0 = vld [vmem:[%s1724_s1 + $0x38] sm:$0xff]   ;;  %v1133_v1 = vmov 0   ;;  %v1067_v2 = vld [vmem:[%s1724_s1 + $0x30] sm:$0xff]   ;;  %s1727_s13 = smov (!%p138_p3, %s974_s13), 63  ;;  %v1068_v3 = vld [vmem:[%s1724_s1 + $0x28] sm:$0xff]   ;;  %vm399_vm0 = vcmask 130048  }
   0xc   : > { %448 = vmatprep.subr.bf16.mxu0 %v1133_v1  ;;  %1039 = vmatprep.subr.bf16.mxu1 %v1133_v1  ;;  %s1038_s18 = sshll.u32 %s1727_s13, 3  ;;  %v1069_v4 = vld [vmem:[%s1724_s1 + $0x20] sm:$0xff]   ;;  %v1070_v6 = vld [vmem:[%s1724_s1 + $0x18] sm:$0xff]   ;;  %v1071_v8 = vld [vmem:[%s1724_s1 + $0x10] sm:$0xff]   ;;  %vm609_vm1 = vcmask 64512  }
   0xd   : > { %449 = vmatpush1.bf16.msra.mxu0 %v1066_v0  ;;  %1048 = vmatpush1.bf16.msra.mxu1 %v1066_v0  ;;  %s1174_s21 = scalar_lea.vmem %s1723_s0, %s1038_s18  ;;  %v1072_v9 = vld [vmem:[%s1724_s1 + $0x8] sm:$0xff]   ;;  %v1073_v10 = vld [vmem:[%s1724_s1] sm:$0xff]   ;;  %s1633_s8 = scalar_lea.vmem %s1725_s2, %s1038_s18 }
   0xe   : > { %450 = vmatprep.subr.bf16.mxu0 %v1133_v1  ;;  %1040 = vmatprep.subr.bf16.mxu1 %v1133_v1  ;;  %v1077_v5 = vld [vmem:[%s1174_s21 + $0x4] ss:$8 sps:$4 sm:$0xff]   ;;  %v1075_v12 = vld [vmem:[%s1174_s21] ss:$8 sps:$4 sm:$0xff]   ;;  %v1078_v14 = vld [vmem:[%s1174_s21 + $0x14] ss:$8 sps:$4 sm:$0xff]  }
   0xf   : > { %1020 = vmatprep.mubr.msk.bf16.mxu0 %vm399_vm0, %v1077_v5  ;;  %v1089_v7 = vld [vmem:[%s1174_s21 + $0x84] ss:$8 sps:$4 sm:$0xff]   ;;  %v1087_v13 = vld [vmem:[%s1174_s21 + $0x80] ss:$8 sps:$4 sm:$0xff]   ;;  %v1093_v15 = vld [vmem:[%s1174_s21 + $0x94] ss:$8 sps:$4 sm:$0xff]  }
  0x10   : > { %1028 = vmatprep.mubr.msk.bf16.mxu1 %vm399_vm0, %v1089_v7  ;;  %v1074_v11 = vld [vmem:[%s1724_s1 + $0x40] sm:$0xff]   ;;  %v1080_v16 = vld [vmem:[%s1174_s21 + $0x10] ss:$8 sps:$4 sm:$0xff]   ;;  %v1084_v22 = vld [vmem:[%s1174_s21 + $0x34] ss:$8 sps:$4 sm:$0xff]  }
  0x11   : > { %451 = vmatpush1.bf16.msra.mxu0 %v1067_v2  ;;  %1049 = vmatpush1.bf16.msra.mxu1 %v1067_v2  ;;  %v1095_v17 = vld [vmem:[%s1174_s21 + $0x90] ss:$8 sps:$4 sm:$0xff]   ;;  %v1081_v18 = vld [vmem:[%s1174_s21 + $0x24] ss:$8 sps:$4 sm:$0xff]   ;;  %v1083_v20 = vld [vmem:[%s1174_s21 + $0x20] ss:$8 sps:$4 sm:$0xff]  }
  0x12   : > { %452 = vmatprep.subr.bf16.mxu0 %v1133_v1  ;;  %1041 = vmatprep.subr.bf16.mxu1 %v1133_v1  ;;  %v1099_v19 = vld [vmem:[%s1174_s21 + $0xa4] ss:$8 sps:$4 sm:$0xff]   ;;  %v1101_v21 = vld [vmem:[%s1174_s21 + $0xa0] ss:$8 sps:$4 sm:$0xff]   ;;  %v1105_v23 = vld [vmem:[%s1174_s21 + $0xb4] ss:$8 sps:$4 sm:$0xff]  }
  0x13   : > { %v1086_v24 = vld [vmem:[%s1174_s21 + $0x30] ss:$8 sps:$4 sm:$0xff]   ;;  %v1090_v26 = vld [vmem:[%s1174_s21 + $0x44] ss:$8 sps:$4 sm:$0xff]   ;;  %v1092_v28 = vld [vmem:[%s1174_s21 + $0x40] ss:$8 sps:$4 sm:$0xff]  }
  0x14   : > { %v1107_v25 = vld [vmem:[%s1174_s21 + $0xb0] ss:$8 sps:$4 sm:$0xff]   ;;  %v1111_v27 = vld [vmem:[%s1174_s21 + $0xc4] ss:$8 sps:$4 sm:$0xff]   ;;  %v1113_v29 = vld [vmem:[%s1174_s21 + $0xc0] ss:$8 sps:$4 sm:$0xff]  }
  0x15   : > { %453 = vmatpush1.bf16.msra.mxu0 %v1068_v3  ;;  %1050 = vmatpush1.bf16.msra.mxu1 %v1068_v3  ;;  %v1096_v30 = vld [vmem:[%s1174_s21 + $0x54] ss:$8 sps:$4 sm:$0xff]   ;;  %v1098_v32 = vld [vmem:[%s1174_s21 + $0x50] ss:$8 sps:$4 sm:$0xff]   ;;  %v1102_v34 = vld [vmem:[%s1174_s21 + $0x64] ss:$8 sps:$4 sm:$0xff]  }
  0x16   : > { %454 = vmatprep.subr.bf16.mxu0 %v1133_v1  ;;  %1042 = vmatprep.subr.bf16.mxu1 %v1133_v1  ;;  %v1114_v31 = vld [vmem:[%s1174_s21 + $0xd4] ss:$8 sps:$4 sm:$0xff]   ;;  %v1116_v33 = vld [vmem:[%s1174_s21 + $0xd0] ss:$8 sps:$4 sm:$0xff]   ;;  %v1117_v35 = vld [vmem:[%s1174_s21 + $0xe4] ss:$8 sps:$4 sm:$0xff]  }
  0x17   : > { %v1104_v36 = vld [vmem:[%s1174_s21 + $0x60] ss:$8 sps:$4 sm:$0xff]   ;;  %v1108_v38 = vld [vmem:[%s1174_s21 + $0x74] ss:$8 sps:$4 sm:$0xff]   ;;  %v1110_v40 = vld [vmem:[%s1174_s21 + $0x70] ss:$8 sps:$4 sm:$0xff]  }
  0x18   : > { %v1119_v37 = vld [vmem:[%s1174_s21 + $0xe0] ss:$8 sps:$4 sm:$0xff]   ;;  %v1120_v39 = vld [vmem:[%s1174_s21 + $0xf4] ss:$8 sps:$4 sm:$0xff]   ;;  %v1122_v41 = vld [vmem:[%s1174_s21 + $0xf0] ss:$8 sps:$4 sm:$0xff]  }
  0x19   : > { %455 = vmatpush1.bf16.msra.mxu0 %v1069_v4  ;;  %1051 = vmatpush1.bf16.msra.mxu1 %v1069_v4 }
  0x1a   : > { %456 = vmatprep.subr.bf16.mxu0 %v1133_v1  ;;  %1043 = vmatprep.subr.bf16.mxu1 %v1133_v1 }
  0x1d   : > { %457 = vmatpush1.bf16.msra.mxu0 %v1070_v6  ;;  %1052 = vmatpush1.bf16.msra.mxu1 %v1070_v6 }
  0x1e   : > { %458 = vmatprep.subr.bf16.mxu0 %v1133_v1  ;;  %1044 = vmatprep.subr.bf16.mxu1 %v1133_v1 }
  0x21   : > { %459 = vmatpush1.bf16.msra.mxu0 %v1071_v8  ;;  %1053 = vmatpush1.bf16.msra.mxu1 %v1071_v8 }
  0x22   : > { %460 = vmatprep.subr.bf16.mxu0 %v1133_v1  ;;  %1045 = vmatprep.subr.bf16.mxu1 %v1133_v1 }
  0x25   : > { %461 = vmatpush1.bf16.msra.mxu0 %v1072_v9  ;;  %1054 = vmatpush1.bf16.msra.mxu1 %v1072_v9 }
  0x26   : > { %462 = vmatprep.subr.bf16.mxu0 %v1133_v1  ;;  %1046 = vmatprep.subr.bf16.mxu1 %v1133_v1 }
  0x29   : > { %463 = vmatpush1.bf16.msra.mxu0 %v1073_v10  ;;  %1055 = vmatpush1.bf16.msra.mxu1 %v1073_v10 }
  0x2a   : > { %478 = vmatprep.subr.bf16.mxu0 %v1133_v1  ;;  %1047 = vmatprep.subr.bf16.mxu1 %v1133_v1 }
  0x2d   : > { %479 = vmatpush2.bf16.msra.mxu0 %v1074_v11  ;;  %1056 = vmatpush2.bf16.msra.mxu1 %v1074_v11 }
  0x30   : > { %481 = vmatmul.mubr.bf16.vlgmr.msra.gmra.mxu0 %v1075_v12  ;;  %545 = vmatmul.mubr.bf16.vlgmr.msra.gmra.mxu1 %v1087_v13 }
  0x31   : > { %1021 = vmatprep.mubr.msk.bf16.mxu0 %vm399_vm0, %v1078_v14  ;;  %1029 = vmatprep.mubr.msk.bf16.mxu1 %vm399_vm0, %v1093_v15 }
  0x38   : > { %489 = vmatmul.mubr.bf16.gmra.mxu0 %v1080_v16  ;;  %553 = vmatmul.mubr.bf16.gmra.mxu1 %v1095_v17 }
  0x39   : > { %1022 = vmatprep.mubr.msk.bf16.mxu0 %vm399_vm0, %v1081_v18  ;;  %1030 = vmatprep.mubr.msk.bf16.mxu1 %vm399_vm0, %v1099_v19 }
  0x40   : > { %497 = vmatmul.mubr.bf16.gmra.mxu0 %v1083_v20  ;;  %561 = vmatmul.mubr.bf16.gmra.mxu1 %v1101_v21 }
  0x41   : > { %1023 = vmatprep.mubr.msk.bf16.mxu0 %vm399_vm0, %v1084_v22  ;;  %1031 = vmatprep.mubr.msk.bf16.mxu1 %vm399_vm0, %v1105_v23 }
  0x48   : > { %505 = vmatmul.mubr.bf16.gmra.mxu0 %v1086_v24  ;;  %569 = vmatmul.mubr.bf16.gmra.mxu1 %v1107_v25 }
  0x49   : > { %1024 = vmatprep.mubr.msk.bf16.mxu0 %vm399_vm0, %v1090_v26  ;;  %1032 = vmatprep.mubr.msk.bf16.mxu1 %vm399_vm0, %v1111_v27 }
  0x50   : > { %513 = vmatmul.mubr.bf16.gmra.mxu0 %v1092_v28  ;;  %577 = vmatmul.mubr.bf16.gmra.mxu1 %v1113_v29 }
  0x51   : > { %1025 = vmatprep.mubr.msk.bf16.mxu0 %vm399_vm0, %v1096_v30  ;;  %1033 = vmatprep.mubr.msk.bf16.mxu1 %vm399_vm0, %v1114_v31 }
  0x58   : > { %521 = vmatmul.mubr.bf16.gmra.mxu0 %v1098_v32  ;;  %585 = vmatmul.mubr.bf16.gmra.mxu1 %v1116_v33 }
  0x59   : > { %1026 = vmatprep.mubr.msk.bf16.mxu0 %vm399_vm0, %v1102_v34  ;;  %1034 = vmatprep.mubr.msk.bf16.mxu1 %vm399_vm0, %v1117_v35 }
  0x60   : > { %529 = vmatmul.mubr.bf16.gmra.mxu0 %v1104_v36  ;;  %593 = vmatmul.mubr.bf16.gmra.mxu1 %v1119_v37 }
  0x61   : > { %1027 = vmatprep.mubr.msk.bf16.mxu0 %vm399_vm0, %v1108_v38  ;;  %1035 = vmatprep.mubr.msk.bf16.mxu1 %vm399_vm0, %v1120_v39 }
  0x68   : > { %537 = vmatmul.mubr.bf16.gmra.mxu0 %v1110_v40  ;;  %601 = vmatmul.mubr.bf16.gmra.mxu1 %v1122_v41 }
  0xf0   : > { %v1242_v42 = vpop.f32.mrf.mxu0  ;;  %v1244_v43 = vpop.f32.mrf.mxu1 }
  0xf1   : > { %v610_v13 = vsel %vm609_vm1, %v1242_v42, 0.0 }
  0xf2   : > { %v484_v44 = vpop.f32.mrf.mxu0  ;;  %v548_v45 = vpop.f32.mrf.mxu1 }
  0xf4   : > { %v1246_v46 = vpop.f32.mrf.mxu0  ;;  %v1248_v47 = vpop.f32.mrf.mxu1 }
  0xf5   : > { %v611_v10 = vsel %vm609_vm1, %v1246_v46, 0.0 }
  0xf6   : > { %v487_v48 = vpop.f32.mrf.mxu0  ;;  %v551_v49 = vpop.f32.mrf.mxu1  ;;  %v612_v15 = vadd.f32 %v611_v10, %v610_v13 }
  0xf8   : > { %v1250_v50 = vpop.f32.mrf.mxu0  ;;  %v1252_v51 = vpop.f32.mrf.mxu1 }
  0xf9   : > { %v613_v14 = vsel %vm609_vm1, %v1250_v50, 0.0 }
  0xfa   : > { %v492_v52 = vpop.f32.mrf.mxu0  ;;  %v556_v53 = vpop.f32.mrf.mxu1  ;;  %v614_v19 = vadd.f32 %v613_v14, %v612_v15 }
  0xfc   : > { %v1254_v54 = vpop.f32.mrf.mxu0  ;;  %v1256_v55 = vpop.f32.mrf.mxu1 }
  0xfd   : > { %v615_v18 = vsel %vm609_vm1, %v1254_v54, 0.0 }
  0xfe   : > { %v495_v56 = vpop.f32.mrf.mxu0  ;;  %v559_v57 = vpop.f32.mrf.mxu1  ;;  %v616_v23 = vadd.f32 %v615_v18, %v614_v19 }
 0x100   : > { %v1258_v58 = vpop.f32.mrf.mxu0  ;;  %v1260_v59 = vpop.f32.mrf.mxu1 }
 0x101   : > { %v617_v22 = vsel %vm609_vm1, %v1258_v58, 0.0 }
 0x102   : > { %v500_v60 = vpop.f32.mrf.mxu0  ;;  %v564_v61 = vpop.f32.mrf.mxu1  ;;  %v618_v27 = vadd.f32 %v617_v22, %v616_v23 }
 0x104   : > { %v1262_v62 = vpop.f32.mrf.mxu0  ;;  %v1264_v63 = vpop.f32.mrf.mxu1 }
 0x105   : > { %v619_v26 = vsel %vm609_vm1, %v1262_v62, 0.0 }
 0x106   : > { %v503_v0 = vpop.f32.mrf.mxu0  ;;  %v567_v1 = vpop.f32.mrf.mxu1  ;;  %v620_v31 = vadd.f32 %v619_v26, %v618_v27 }
 0x108   : > { %v1266_v2 = vpop.f32.mrf.mxu0  ;;  %v1268_v3 = vpop.f32.mrf.mxu1 }
 0x109   : > { %v621_v30 = vsel %vm609_vm1, %v1266_v2, 0.0 }
 0x10a   : > { %v508_v4 = vpop.f32.mrf.mxu0  ;;  %v572_v5 = vpop.f32.mrf.mxu1  ;;  %v622_v35 = vadd.f32 %v621_v30, %v620_v31  ;;  %v641_v31 = vsel %vm609_vm1, %v1244_v43, 0.0 }
 0x10c   : > { %v1270_v6 = vpop.f32.mrf.mxu0  ;;  %v1272_v7 = vpop.f32.mrf.mxu1 }
 0x10d   : > { %v623_v34 = vsel %vm609_vm1, %v1270_v6, 0.0 }
 0x10e   : > { %v511_v8 = vpop.f32.mrf.mxu0  ;;  %v575_v9 = vpop.f32.mrf.mxu1  ;;  %v624_v39 = vadd.f32 %v623_v34, %v622_v35  ;;  %v645_v35 = vsel %vm609_vm1, %v1252_v51, 0.0 }
 0x110   : > { %v1276_v11 = vpop.f32.mrf.mxu0  ;;  %v1278_v12 = vpop.f32.mrf.mxu1 }
 0x111   : > { %v625_v38 = vsel %vm609_vm1, %v1276_v11, 0.0 }
 0x112   : > { %v516_v16 = vpop.f32.mrf.mxu0  ;;  %v580_v17 = vpop.f32.mrf.mxu1  ;;  %v626_v45 = vadd.f32 %v625_v38, %v624_v39  ;;  %v647_v39 = vsel %vm609_vm1, %v1256_v55, 0.0 }
 0x114   : > { %v1286_v20 = vpop.f32.mrf.mxu0  ;;  %v1288_v21 = vpop.f32.mrf.mxu1 }
 0x115   : > { %v627_v44 = vsel %vm609_vm1, %v1286_v20, 0.0 }
 0x116   : > { %v519_v24 = vpop.f32.mrf.mxu0  ;;  %v583_v25 = vpop.f32.mrf.mxu1  ;;  %v628_v53 = vadd.f32 %v627_v44, %v626_v45  ;;  %v651_v45 = vsel %vm609_vm1, %v1264_v63, 0.0 }
 0x118   : > { %v1294_v28 = vpop.f32.mrf.mxu0  ;;  %v1296_v29 = vpop.f32.mrf.mxu1 }
 0x119   : > { %v629_v52 = vsel %vm609_vm1, %v1294_v28, 0.0 }
 0x11a   : > { %v524_v32 = vpop.f32.mrf.mxu0  ;;  %v588_v33 = vpop.f32.mrf.mxu1  ;;  %v630_v61 = vadd.f32 %v629_v52, %v628_v53  ;;  %v653_v53 = vsel %vm609_vm1, %v1268_v3, 0.0 }
 0x11b   : > { %v643_v33 = vsel %vm609_vm1, %v1248_v47, 0.0 }
 0x11c   : > { %v1302_v36 = vpop.f32.mrf.mxu0  ;;  %v1304_v37 = vpop.f32.mrf.mxu1 }
 0x11d   : > { %v631_v60 = vsel %vm609_vm1, %v1302_v36, 0.0 }
 0x11e   : > { %v527_v40 = vpop.f32.mrf.mxu0  ;;  %v591_v41 = vpop.f32.mrf.mxu1  ;;  %v632_v5 = vadd.f32 %v631_v60, %v630_v61  ;;  %v657_v61 = vsel %vm609_vm1, %v1278_v12, 0.0 }
 0x11f   : > { %v649_v41 = vsel %vm609_vm1, %v1260_v59, 0.0 }
 0x120   : > { %v1310_v48 = vpop.f32.mrf.mxu0  ;;  %v1312_v49 = vpop.f32.mrf.mxu1 }
 0x121   : > { %v633_v4 = vsel %vm609_vm1, %v1310_v48, 0.0 }
 0x122   : > { %v532_v56 = vpop.f32.mrf.mxu0  ;;  %v596_v57 = vpop.f32.mrf.mxu1  ;;  %v634_v13 = vadd.f32 %v633_v4, %v632_v5  ;;  %v659_v5 = vsel %vm609_vm1, %v1288_v21, 0.0 }
 0x123   : > { %v655_v57 = vsel %vm609_vm1, %v1272_v7, 0.0 }
 0x124   : > { %v1318_v0 = vpop.f32.mrf.mxu0  ;;  %v1320_v1 = vpop.f32.mrf.mxu1 }
 0x125   : > { %v635_v10 = vsel %vm609_vm1, %v1318_v0, 0.0 }
 0x126   : > { %v535_v8 = vpop.f32.mrf.mxu0  ;;  %v599_v9 = vpop.f32.mrf.mxu1  ;;  %v636_v17 = vadd.f32 %v635_v10, %v634_v13  ;;  %v663_v13 = vsel %vm609_vm1, %v1304_v37, 0.0 }
 0x127   : > { %v661_v9 = vsel %vm609_vm1, %v1296_v29, 0.0 }
 0x128   : > { %v1326_v14 = vpop.f32.mrf.mxu0  ;;  %v1328_v15 = vpop.f32.mrf.mxu1 }
 0x129   : > { %v637_v16 = vsel %vm609_vm1, %v1326_v14, 0.0 }
 0x12a   : > { %v540_v18 = vpop.f32.mrf.mxu0  ;;  %v604_v19 = vpop.f32.mrf.mxu1  ;;  %v638_v22 = vadd.f32 %v637_v16, %v636_v17  ;;  %v665_v17 = vsel %vm609_vm1, %v1312_v49, 0.0 }
 0x12b   : > { %v667_v19 = vsel %vm609_vm1, %v1320_v1, 0.0 }
 0x12c   : > { %v1332_v23 = vpop.f32.mrf.mxu0  ;;  %v1334_v24 = vpop.f32.mrf.mxu1 }
 0x12d   : > { %v639_v25 = vsel %vm609_vm1, %v1332_v23, 0.0 }
 0x12e   : > { %v640_v26 = vadd.f32 %v639_v25, %v638_v22  ;;  %v543_v27 = vpop.f32.mrf.mxu0  ;;  %v607_v30 = vpop.f32.mrf.mxu1  ;;  %v669_v25 = vsel %vm609_vm1, %v1328_v15, 0.0 }
 0x12f   : > { %v671_v27 = vsel %vm609_vm1, %v1334_v24, 0.0 }
 0x130   : > { %v642_v32 = vadd.f32 %v641_v31, %v640_v26 }
 0x132   : > { %v644_v34 = vadd.f32 %v643_v33, %v642_v32 }
 0x134   : > { %v646_v38 = vadd.f32 %v645_v35, %v644_v34 }
 0x136   : > { %v648_v40 = vadd.f32 %v647_v39, %v646_v38 }
 0x138   : > { %v650_v44 = vadd.f32 %v649_v41, %v648_v40 }
 0x13a   : > { %v652_v52 = vadd.f32 %v651_v45, %v650_v44 }
 0x13c   : > { %v654_v56 = vadd.f32 %v653_v53, %v652_v52 }
 0x13e   : > { %v656_v60 = vadd.f32 %v655_v57, %v654_v56 }
 0x140   : > { %v658_v4 = vadd.f32 %v657_v61, %v656_v60 }
 0x142   : > { %v660_v8 = vadd.f32 %v659_v5, %v658_v4 }
 0x144   : > { %v662_v10 = vadd.f32 %v661_v9, %v660_v8 }
 0x146   : > { %v664_v16 = vadd.f32 %v663_v13, %v662_v10 }
 0x148   : > { %v666_v18 = vadd.f32 %v665_v17, %v664_v16 }
 0x14a   : > { %v668_v22 = vadd.f32 %v667_v19, %v666_v18 }
 0x14c   : > { %v670_v26 = vadd.f32 %v669_v25, %v668_v22 }
 0x14e   : > { %v672_v30 = vadd.f32 %v671_v27, %v670_v26 }
 0x150   : > { %v673_v31 = vrot.slane %v672_v30, 4 }
 0x152   : > { %v674_v32 = vadd.f32 %v673_v31, %v672_v30 }
 0x154   : > { %v675_v33 = vrot.slane %v674_v32, 2 }
 0x156   : > { %v676_v34 = vadd.f32 %v675_v33, %v674_v32 }
 0x158   : > { %v677_v35 = vrot.slane %v676_v34, 1 }
 0x15a   : > { %v678_v38 = vadd.f32 %v677_v35, %v676_v34 }
 0x15c   : > { %v1370_v39 = vmul.f32 0.00390625, %v678_v38 }
 0x15e   : > { %v1374_v40 = vsub.f32 %v1242_v42, %v1370_v39  ;;  %v1378_v41 = vsub.f32 %v1246_v46, %v1370_v39  ;;  %v1382_v44 = vsub.f32 %v1250_v50, %v1370_v39  ;;  %v1386_v45 = vsub.f32 %v1254_v54, %v1370_v39 }
 0x15f   : > { %v1394_v42 = vsub.f32 %v1258_v58, %v1370_v39  ;;  %v1400_v50 = vsub.f32 %v1262_v62, %v1370_v39  ;;  %v1408_v61 = vsub.f32 %v1266_v2, %v1370_v39  ;;  %v1415_v62 = vsub.f32 %v1270_v6, %v1370_v39 }
 0x160   : > { %v713_v52 = vmul.f32 %v1374_v40, %v1374_v40  ;;  %v714_v53 = vmul.f32 %v1378_v41, %v1378_v41  ;;  %v715_v46 = vmul.f32 %v1382_v44, %v1382_v44  ;;  %v716_v54 = vmul.f32 %v1386_v45, %v1386_v45 }
 0x161   : > { %v717_v58 = vmul.f32 %v1394_v42, %v1394_v42  ;;  %v718_v8 = vmul.f32 %v1400_v50, %v1400_v50  ;;  %v1422_v2 = vsub.f32 %v1276_v11, %v1370_v39  ;;  %v719_v13 = vmul.f32 %v1408_v61, %v1408_v61 }
 0x162   : > { %v745_v56 = vsel %vm609_vm1, %v713_v52, 0.0  ;;  %v746_v57 = vsel %vm609_vm1, %v714_v53, 0.0  ;;  %v748_v4 = vsel %vm609_vm1, %v715_v46, 0.0  ;;  %v750_v9 = vsel %vm609_vm1, %v716_v54, 0.0 }
 0x163   : > { %v747_v60 = vadd.f32 %v746_v57, %v745_v56  ;;  %v752_v16 = vsel %vm609_vm1, %v717_v58, 0.0  ;;  %v1429_v6 = vsub.f32 %v1286_v20, %v1370_v39  ;;  %v720_v18 = vmul.f32 %v1415_v62, %v1415_v62 }
 0x164   : > { %v754_v19 = vsel %vm609_vm1, %v718_v8, 0.0  ;;  %v1436_v11 = vsub.f32 %v1294_v28, %v1370_v39  ;;  %v721_v25 = vmul.f32 %v1422_v2, %v1422_v2  ;;  %v756_v26 = vsel %vm609_vm1, %v719_v13, 0.0 }
 0x165   : > { %v749_v5 = vadd.f32 %v748_v4, %v747_v60  ;;  %v1443_v20 = vsub.f32 %v1302_v36, %v1370_v39  ;;  %v722_v30 = vmul.f32 %v1429_v6, %v1429_v6  ;;  %v758_v31 = vsel %vm609_vm1, %v720_v18, 0.0 }
 0x166   : > { %v1450_v28 = vsub.f32 %v1310_v48, %v1370_v39  ;;  %v723_v33 = vmul.f32 %v1436_v11, %v1436_v11  ;;  %v760_v34 = vsel %vm609_vm1, %v721_v25, 0.0  ;;  %v1457_v36 = vsub.f32 %v1318_v0, %v1370_v39 }
 0x167   : > { %v751_v10 = vadd.f32 %v750_v9, %v749_v5  ;;  %v724_v38 = vmul.f32 %v1443_v20, %v1443_v20  ;;  %v762_v52 = vsel %vm609_vm1, %v722_v30, 0.0  ;;  %v1464_v48 = vsub.f32 %v1326_v14, %v1370_v39 }
 0x168   : > { %v725_v46 = vmul.f32 %v1450_v28, %v1450_v28  ;;  %v764_v54 = vsel %vm609_vm1, %v723_v33, 0.0  ;;  %v1471_v0 = vsub.f32 %v1332_v23, %v1370_v39  ;;  %v726_v57 = vmul.f32 %v1457_v36, %v1457_v36 }
 0x169   : > { %v753_v17 = vadd.f32 %v752_v16, %v751_v10  ;;  %v766_v60 = vsel %vm609_vm1, %v724_v38, 0.0  ;;  %v1478_v14 = vsub.f32 %v1244_v43, %v1370_v39  ;;  %v727_v4 = vmul.f32 %v1464_v48, %v1464_v48 }
 0x16a   : > { %v768_v5 = vsel %vm609_vm1, %v725_v46, 0.0  ;;  %v1485_v23 = vsub.f32 %v1248_v47, %v1370_v39  ;;  %v728_v9 = vmul.f32 %v1471_v0, %v1471_v0  ;;  %v770_v10 = vsel %vm609_vm1, %v726_v57, 0.0 }
 0x16b   : > { %v755_v22 = vadd.f32 %v754_v19, %v753_v17  ;;  %v1492_v43 = vsub.f32 %v1252_v51, %v1370_v39  ;;  %v729_v16 = vmul.f32 %v1478_v14, %v1478_v14  ;;  %v772_v17 = vsel %vm609_vm1, %v727_v4, 0.0 }
 0x16c   : > { %v1499_v47 = vsub.f32 %v1256_v55, %v1370_v39  ;;  %v730_v19 = vmul.f32 %v1485_v23, %v1485_v23  ;;  %v1506_v51 = vsub.f32 %v1260_v59, %v1370_v39  ;;  %v1513_v55 = vsub.f32 %v1264_v63, %v1370_v39 }
 0x16d   : > { %v757_v27 = vadd.f32 %v756_v26, %v755_v22  ;;  %v774_v22 = vsel %vm609_vm1, %v728_v9, 0.0  ;;  %v731_v26 = vmul.f32 %v1492_v43, %v1492_v43  ;;  %v1520_v59 = vsub.f32 %v1268_v3, %v1370_v39 }
 0x16e   : > { %v1527_v63 = vsub.f32 %v1272_v7, %v1370_v39  ;;  %v1534_v3 = vsub.f32 %v1278_v12, %v1370_v39  ;;  %v1541_v7 = vsub.f32 %v1288_v21, %v1370_v39  ;;  %v1548_v12 = vsub.f32 %v1296_v29, %v1370_v39 }
 0x16f   : > { %v759_v32 = vadd.f32 %v758_v31, %v757_v27  ;;  %v776_v27 = vsel %vm609_vm1, %v729_v16, 0.0  ;;  %v732_v31 = vmul.f32 %v1499_v47, %v1499_v47  ;;  %v1555_v21 = vsub.f32 %v1304_v37, %v1370_v39 }
 0x170   : > { %v1562_v29 = vsub.f32 %v1312_v49, %v1370_v39  ;;  %v710_v37 = vsub.f32 %v1320_v1, %v1370_v39 }
 0x171   : > { %v761_v35 = vadd.f32 %v760_v34, %v759_v32  ;;  %v778_v32 = vsel %vm609_vm1, %v730_v19, 0.0  ;;  %v733_v34 = vmul.f32 %v1506_v51, %v1506_v51 }
 0x172   : > { %v741_v49 = vmul.f32 %v1562_v29, %v1562_v29 }
 0x173   : > { %v763_v53 = vadd.f32 %v762_v52, %v761_v35  ;;  %v780_v35 = vsel %vm609_vm1, %v731_v26, 0.0  ;;  %v734_v52 = vmul.f32 %v1513_v55, %v1513_v55 }
 0x175   : > { %v765_v56 = vadd.f32 %v764_v54, %v763_v53  ;;  %v782_v53 = vsel %vm609_vm1, %v732_v31, 0.0  ;;  %v735_v54 = vmul.f32 %v1520_v59, %v1520_v59 }
 0x177   : > { %v767_v58 = vadd.f32 %v766_v60, %v765_v56  ;;  %v784_v56 = vsel %vm609_vm1, %v733_v34, 0.0  ;;  %v736_v60 = vmul.f32 %v1527_v63, %v1527_v63 }
 0x179   : > { %v769_v8 = vadd.f32 %v768_v5, %v767_v58  ;;  %v786_v58 = vsel %vm609_vm1, %v734_v52, 0.0  ;;  %v737_v5 = vmul.f32 %v1534_v3, %v1534_v3 }
 0x17b   : > { %v771_v13 = vadd.f32 %v770_v10, %v769_v8  ;;  %v788_v8 = vsel %vm609_vm1, %v735_v54, 0.0  ;;  %v738_v10 = vmul.f32 %v1541_v7, %v1541_v7 }
 0x17d   : > { %v773_v18 = vadd.f32 %v772_v17, %v771_v13  ;;  %v790_v13 = vsel %vm609_vm1, %v736_v60, 0.0  ;;  %v739_v17 = vmul.f32 %v1548_v12, %v1548_v12 }
 0x17f   : > { %v775_v25 = vadd.f32 %v774_v22, %v773_v18  ;;  %v792_v18 = vsel %vm609_vm1, %v737_v5, 0.0  ;;  %v740_v22 = vmul.f32 %v1555_v21, %v1555_v21 }
 0x181   : > { %v777_v30 = vadd.f32 %v776_v27, %v775_v25  ;;  %v794_v25 = vsel %vm609_vm1, %v738_v10, 0.0  ;;  %v711_v27 = vsub.f32 %v1328_v15, %v1370_v39  ;;  %v798_v1 = vsel %vm609_vm1, %v740_v22, 0.0 }
 0x183   : > { %v779_v33 = vadd.f32 %v778_v32, %v777_v30  ;;  %v796_v30 = vsel %vm609_vm1, %v739_v17, 0.0  ;;  %v712_v32 = vsub.f32 %v1334_v24, %v1370_v39 }
 0x185   : > { %v781_v38 = vadd.f32 %v780_v35, %v779_v33  ;;  %v742_v33 = vmul.f32 %v710_v37, %v710_v37  ;;  %v743_v35 = vmul.f32 %v711_v27, %v711_v27 }
 0x187   : > { %v783_v46 = vadd.f32 %v782_v53, %v781_v38  ;;  %v800_v38 = vsel %vm609_vm1, %v741_v49, 0.0  ;;  %v744_v53 = vmul.f32 %v712_v32, %v712_v32  ;;  %v802_v15 = vsel %vm609_vm1, %v742_v33, 0.0 }
 0x188   : > { %v804_v54 = vsel %vm609_vm1, %v743_v35, 0.0 }
 0x189   : > { %v785_v57 = vadd.f32 %v784_v56, %v783_v46 }
 0x18b   : > { %v787_v4 = vadd.f32 %v786_v58, %v785_v57  ;;  %v806_v57 = vsel %vm609_vm1, %v744_v53, 0.0 }
 0x18d   : > { %v789_v9 = vadd.f32 %v788_v8, %v787_v4 }
 0x18f   : > { %v791_v16 = vadd.f32 %v790_v13, %v789_v9 }
 0x191   : > { %v793_v19 = vadd.f32 %v792_v18, %v791_v16 }
 0x193   : > { %v795_v26 = vadd.f32 %v794_v25, %v793_v19 }
 0x195   : > { %v797_v31 = vadd.f32 %v796_v30, %v795_v26 }
 0x197   : > { %v799_v34 = vadd.f32 %v798_v1, %v797_v31 }
 0x199   : > { %v801_v52 = vadd.f32 %v800_v38, %v799_v34 }
 0x19b   : > { %v803_v46 = vadd.f32 %v802_v15, %v801_v52 }
 0x19d   : > { %v805_v56 = vadd.f32 %v804_v54, %v803_v46 }
 0x19f   : > { %v807_v60 = vadd.f32 %v806_v57, %v805_v56 }
 0x1a1   : > { %v808_v58 = vrot.slane %v807_v60, 4 }
 0x1a3   : > { %v809_v24 = vadd.f32 %v808_v58, %v807_v60 }
 0x1a5   : > { %v810_v39 = vrot.slane %v809_v24, 2 }
 0x1a7   : > { %v811_v4 = vadd.f32 %v810_v39, %v809_v24 }
 0x1a9   : > { %v812_v5 = vrot.slane %v811_v4, 1 }
 0x1ab   : > { %v813_v8 = vadd.f32 %v812_v5, %v811_v4 }
 0x1ad   : > { %v814_v9 = vmul.f32 0.00390625, %v813_v8 }
 0x1af   : > { %v815_v10 = vadd.f32 1e-05, %v814_v9 }
 0x1b1   : > { %1123 = vrsqrt.f32 %v815_v10 }
 0x1be   : > { %v1124_v13 = vpop.eup %1123 }
 0x1bf   : > { %v817_v16 = vmul.f32 %v1124_v13, %v1374_v40  ;;  %v818_v17 = vmul.f32 %v1124_v13, %v1378_v41  ;;  %v819_v18 = vmul.f32 %v1124_v13, %v1382_v44  ;;  %v820_v19 = vmul.f32 %v1124_v13, %v1386_v45 }
 0x1c0   : > { %v821_v22 = vmul.f32 %v1124_v13, %v1394_v42  ;;  %v822_v25 = vmul.f32 %v1124_v13, %v1400_v50  ;;  %v823_v26 = vmul.f32 %v1124_v13, %v1408_v61  ;;  %v824_v49 = vmul.f32 %v1124_v13, %v1415_v62 }
 0x1c1   : > { %v825_v30 = vmul.f32 %v1124_v13, %v1422_v2  ;;  %v826_v31 = vmul.f32 %v1124_v13, %v1429_v6  ;;  %v827_v40 = vmul.f32 %v1124_v13, %v1436_v11  ;;  %v828_v41 = vmul.f32 %v1124_v13, %v1443_v20 }
 0x1c2   : > { %v829_v44 = vmul.f32 %v1124_v13, %v1450_v28  ;;  %v830_v45 = vmul.f32 %v1124_v13, %v1457_v36  ;;  %v831_v42 = vmul.f32 %v1124_v13, %v1464_v48  ;;  %v832_v50 = vmul.f32 %v1124_v13, %v1471_v0 }
 0x1c3   : > { %v833_v61 = vmul.f32 %v1124_v13, %v1478_v14  ;;  %v834_v62 = vmul.f32 %v1124_v13, %v1485_v23  ;;  %v835_v2 = vmul.f32 %v1124_v13, %v1492_v43  ;;  %v836_v6 = vmul.f32 %v1124_v13, %v1499_v47 }
 0x1c4   : > { %v1605_v11 = vmul.f32 %v1124_v13, %v1506_v51  ;;  %v1608_v20 = vmul.f32 %v1124_v13, %v1513_v55  ;;  %v1611_v28 = vmul.f32 %v1124_v13, %v1520_v59  ;;  %v1614_v36 = vmul.f32 %v1124_v13, %v1527_v63 }
 0x1c5   : > { %v1617_v48 = vmul.f32 %v1124_v13, %v1534_v3  ;;  %v1620_v0 = vmul.f32 %v1124_v13, %v1541_v7  ;;  %v1623_v14 = vmul.f32 %v1124_v13, %v1548_v12  ;;  %v1626_v23 = vmul.f32 %v1124_v13, %v1555_v21 }
 0x1c6   : > { %v1636_v43 = vmul.f32 %v1124_v13, %v1562_v29  ;;  %v1638_v47 = vmul.f32 %v1124_v13, %v710_v37  ;;  %v1640_v51 = vmul.f32 %v1124_v13, %v711_v27  ;;  %v1642_v55 = vmul.f32 %v1124_v13, %v712_v32 }
 0x1c7   : > { %v849_v59 = vmax.f32 %v817_v16, 0.0  ;;  %v850_v63 = vmax.f32 %v818_v17, 0.0  ;;  %v851_v3 = vmax.f32 %v819_v18, 0.0  ;;  %v852_v7 = vmax.f32 %v820_v19, 0.0 }
 0x1c8   : > { %v853_v12 = vmax.f32 %v821_v22, 0.0  ;;  %v854_v21 = vmax.f32 %v822_v25, 0.0  ;;  %v855_v29 = vmax.f32 %v823_v26, 0.0  ;;  %v856_v33 = vmax.f32 %v824_v49, 0.0 }
 0x1c9   : > { %v857_v37 = vmax.f32 %v825_v30, 0.0  ;;  %v858_v1 = vmax.f32 %v826_v31, 0.0  ;;  %v859_v27 = vmax.f32 %v827_v40, 0.0  ;;  %v860_v34 = vmax.f32 %v828_v41, 0.0  ;;  %881 = vst.msk [vmem:[%s1633_s8] sm:$0xff] %vm609_vm1, %v849_v59  ;;  %882 = vst.msk [vmem:[%s1633_s8 + $0x8] sm:$0xff] %vm609_vm1, %v850_v63 }
 0x1ca   : > { %883 = vst.msk [vmem:[%s1633_s8 + $0x10] sm:$0xff] %vm609_vm1, %v851_v3  ;;  %884 = vst.msk [vmem:[%s1633_s8 + $0x18] sm:$0xff] %vm609_vm1, %v852_v7  ;;  %v861_v32 = vmax.f32 %v829_v44, 0.0  ;;  %v862_v35 = vmax.f32 %v830_v45, 0.0  ;;  %v863_v38 = vmax.f32 %v831_v42, 0.0  ;;  %v864_v52 = vmax.f32 %v832_v50, 0.0 }
 0x1cb   : > { %885 = vst.msk [vmem:[%s1633_s8 + $0x20] sm:$0xff] %vm609_vm1, %v853_v12  ;;  %886 = vst.msk [vmem:[%s1633_s8 + $0x28] sm:$0xff] %vm609_vm1, %v854_v21  ;;  %v865_v53 = vmax.f32 %v833_v61, 0.0  ;;  %v866_v15 = vmax.f32 %v834_v62, 0.0  ;;  %v867_v46 = vmax.f32 %v835_v2, 0.0  ;;  %v868_v54 = vmax.f32 %v836_v6, 0.0 }
 0x1cc   : > { %887 = vst.msk [vmem:[%s1633_s8 + $0x30] sm:$0xff] %vm609_vm1, %v855_v29  ;;  %888 = vst.msk [vmem:[%s1633_s8 + $0x38] sm:$0xff] %vm609_vm1, %v856_v33  ;;  %v869_v56 = vmax.f32 %v1605_v11, 0.0  ;;  %v870_v57 = vmax.f32 %v1608_v20, 0.0  ;;  %v871_v60 = vmax.f32 %v1611_v28, 0.0  ;;  %v872_v58 = vmax.f32 %v1614_v36, 0.0 }
 0x1cd   : > { %889 = vst.msk [vmem:[%s1633_s8 + $0x40] sm:$0xff] %vm609_vm1, %v857_v37  ;;  %890 = vst.msk [vmem:[%s1633_s8 + $0x48] sm:$0xff] %vm609_vm1, %v858_v1  ;;  %v873_v24 = vmax.f32 %v1617_v48, 0.0  ;;  %v874_v39 = vmax.f32 %v1620_v0, 0.0  ;;  %v875_v4 = vmax.f32 %v1623_v14, 0.0  ;;  %v876_v5 = vmax.f32 %v1626_v23, 0.0 }
 0x1ce   : > { %891 = vst.msk [vmem:[%s1633_s8 + $0x50] sm:$0xff] %vm609_vm1, %v859_v27  ;;  %892 = vst.msk [vmem:[%s1633_s8 + $0x58] sm:$0xff] %vm609_vm1, %v860_v34  ;;  %v877_v8 = vmax.f32 %v1636_v43, 0.0  ;;  %v878_v9 = vmax.f32 %v1638_v47, 0.0  ;;  %v879_v10 = vmax.f32 %v1640_v51, 0.0  ;;  %v880_v13 = vmax.f32 %v1642_v55, 0.0 }
 0x1cf   : > { %893 = vst.msk [vmem:[%s1633_s8 + $0x60] sm:$0xff] %vm609_vm1, %v861_v32  ;;  %894 = vst.msk [vmem:[%s1633_s8 + $0x68] sm:$0xff] %vm609_vm1, %v862_v35 }
 0x1d0   : > { %895 = vst.msk [vmem:[%s1633_s8 + $0x70] sm:$0xff] %vm609_vm1, %v863_v38  ;;  %896 = vst.msk [vmem:[%s1633_s8 + $0x78] sm:$0xff] %vm609_vm1, %v864_v52 }
 0x1d1   : > { %897 = vst.msk [vmem:[%s1633_s8 + $0x80] sm:$0xff] %vm609_vm1, %v865_v53  ;;  %898 = vst.msk [vmem:[%s1633_s8 + $0x88] sm:$0xff] %vm609_vm1, %v866_v15 }
 0x1d2   : > { %899 = vst.msk [vmem:[%s1633_s8 + $0x90] sm:$0xff] %vm609_vm1, %v867_v46  ;;  %900 = vst.msk [vmem:[%s1633_s8 + $0x98] sm:$0xff] %vm609_vm1, %v868_v54 }
 0x1d3   : > { %901 = vst.msk [vmem:[%s1633_s8 + $0xa0] sm:$0xff] %vm609_vm1, %v869_v56  ;;  %902 = vst.msk [vmem:[%s1633_s8 + $0xa8] sm:$0xff] %vm609_vm1, %v870_v57 }
 0x1d4   : > { %903 = vst.msk [vmem:[%s1633_s8 + $0xb0] sm:$0xff] %vm609_vm1, %v871_v60  ;;  %904 = vst.msk [vmem:[%s1633_s8 + $0xb8] sm:$0xff] %vm609_vm1, %v872_v58 }
 0x1d5   : > { %905 = vst.msk [vmem:[%s1633_s8 + $0xc0] sm:$0xff] %vm609_vm1, %v873_v24  ;;  %906 = vst.msk [vmem:[%s1633_s8 + $0xc8] sm:$0xff] %vm609_vm1, %v874_v39 }
 0x1d6   : > { %907 = vst.msk [vmem:[%s1633_s8 + $0xd0] sm:$0xff] %vm609_vm1, %v875_v4  ;;  %908 = vst.msk [vmem:[%s1633_s8 + $0xd8] sm:$0xff] %vm609_vm1, %v876_v5 }
 0x1d7   : > { %909 = vst.msk [vmem:[%s1633_s8 + $0xe0] sm:$0xff] %vm609_vm1, %v877_v8  ;;  %910 = vst.msk [vmem:[%s1633_s8 + $0xe8] sm:$0xff] %vm609_vm1, %v878_v9 }
 0x1d8   : > { %911 = vst.msk [vmem:[%s1633_s8 + $0xf0] sm:$0xff] %vm609_vm1, %v879_v10  ;;  %912 = vst.msk [vmem:[%s1633_s8 + $0xf8] sm:$0xff] %vm609_vm1, %v880_v13 }
 0x1d9 PF: > { %s12_s9 = sadd.s32 1, %s1131_s9  }
 0x1da   : > { %p9_p4 = scmp.ge.s32.totalorder %s12_s9, 4  }
 0x1dc   :  { %11 = sbr.rel (!%p9_p4) target bundleno = 1 (0x1), region = 58 }

// kernel: cyclegan_generator_forward.13
= control target key start
LH: loop header
LB: loop body
LE: loop exit
PB: predicated region body
PF: predicated region fallthrough
CT: control target
= control target key end

     0   :  { %s1699_s12 = smov 0   ;;  %s1989_s0 = inlined_call_operand.vmem [shape: bf16[512,392], index: 0, kind: input, shape index: {}]   ;;  %s1990_s1 = inlined_call_operand.vmem [shape: bf16[392,3], index: 1, kind: input, shape index: {}]   ;;  %s1991_s2 = inlined_call_operand.vmem [shape: f32[1,3], index: 2, kind: input, shape index: {}]   ;;  %s1992_s3 = inlined_call_operand.vmem [shape: f32[512,3], index: 3, kind: output, shape index: {}]  }
   0x1 LB: > { %s1245_s13 = sadd.s32 4294967295, %s1676_s12   ;;  %p1249_p0 = scmp.ge.s32.totalorder %s1676_s12, 1  ;;  %s1676_s12 = sphi %s1699_s12, %s13_s12  }
   0x2   : > { %p139_p1 = scmp.lt.s32.totalorder %s1676_s12, 3 }
   0x4   : > { %p140_p2 = pnand %p1249_p0, %p139_p1 }
   0x5   : > { %s1250_s5 = sshll.u32 (!%p140_p2), %s1245_s13, 5 }
   0x6   : > { %143 = sbr.rel (%p140_p2) target bundleno = 385 (0x181), region = 32  ;;  %p165_p3 = scmp.lt.s32.totalorder (!%p140_p2), %s1250_s5, 63 }
   0xb   : > { %v1485_v0 = vld [vmem:[%s1990_s1 + $0x78] sm:$0xff]   ;;  %v1678_v1 = vmov 0   ;;  %v1488_v4 = vld [vmem:[%s1990_s1 + $0x70] sm:$0xff]   ;;  %v1491_v7 = vld [vmem:[%s1990_s1 + $0x68] sm:$0xff]   ;;  %s1994_s5 = smov (!%p165_p3, %s1250_s5), 63  ;;  %vm749_vm0 = vcmask 64512  }
   0xc   : > { %963 = vmatprep.subr.bf16.mxu1 %v1678_v1  ;;  %v1486_v2 = vld [vmem:[%s1990_s1 + $0xb8] sm:$0xff]   ;;  %1364 = vmatprep.subr.bf16.mxu0 %v1485_v0  ;;  %v1489_v5 = vld [vmem:[%s1990_s1 + $0xb0] sm:$0xff]   ;;  %v1492_v8 = vld [vmem:[%s1990_s1 + $0xa8] sm:$0xff]   ;;  %s1363_s23 = sshll.u32 %s1994_s5, 4  ;;  %vm798_vm1 = vcmask 1043456   ;;  %s1254_s20 = sshll.u32 %s1994_s5, 3 }
   0xd   : > { %v1487_v3 = vld [vmem:[%s1990_s1 + $0x38] sm:$0xff]   ;;  %964 = vmatpush1.bf16.msra.mxu1 %v1486_v2  ;;  %v1490_v6 = vld [vmem:[%s1990_s1 + $0x30] sm:$0xff]   ;;  %v1493_v9 = vld [vmem:[%s1990_s1 + $0x28] sm:$0xff]   ;;  %s1776_s30 = scalar_lea.vmem %s1989_s0, %s1363_s23  ;;  %s1892_s23 = scalar_lea.vmem %s1992_s3, %s1254_s20  ;;  %vm1156_vm2 = vcmask 23552  }
   0xe   : > { %1365 = vmatpush3.bf16.msra.mxu0 %v1487_v3  ;;  %965 = vmatprep.subr.bf16.mxu1 %v1678_v1  ;;  %v1494_v10 = vld [vmem:[%s1990_s1 + $0x60] sm:$0xff]   ;;  %v1497_v13 = vld [vmem:[%s1990_s1 + $0x58] sm:$0xff]   ;;  %v1500_v16 = vld [vmem:[%s1990_s1 + $0x50] sm:$0xff]  }
   0xf   : > { %1366 = vmatprep.subr.bf16.mxu0 %v1488_v4  ;;  %v1495_v11 = vld [vmem:[%s1990_s1 + $0xa0] sm:$0xff]   ;;  %v1498_v14 = vld [vmem:[%s1990_s1 + $0x98] sm:$0xff]   ;;  %v1501_v17 = vld [vmem:[%s1990_s1 + $0x90] sm:$0xff]  }
  0x10   : > { %v1496_v12 = vld [vmem:[%s1990_s1 + $0x20] sm:$0xff]   ;;  %v1499_v15 = vld [vmem:[%s1990_s1 + $0x18] sm:$0xff]   ;;  %v1502_v18 = vld [vmem:[%s1990_s1 + $0x10] sm:$0xff]  }
  0x11   : > { %966 = vmatpush1.bf16.msra.mxu1 %v1489_v5  ;;  %v1503_v19 = vld [vmem:[%s1990_s1 + $0x48] sm:$0xff]   ;;  %v1506_v22 = vld [vmem:[%s1990_s1 + $0x40] sm:$0xff]  }
  0x12   : > { %1367 = vmatpush3.bf16.msra.mxu0 %v1490_v6  ;;  %967 = vmatprep.subr.bf16.mxu1 %v1678_v1  ;;  %v1504_v20 = vld [vmem:[%s1990_s1 + $0x88] sm:$0xff]   ;;  %v1511_v23 = vld [vmem:[%s1776_s30 + $0x4] ss:$16 sps:$4 sm:$0xff]   ;;  %v1512_v27 = vld [vmem:[%s1990_s1 + $0xc0] ss:$0 sps:$4 sm:$0xff]  }
  0x13   : > { %1368 = vmatprep.subr.bf16.mxu0 %v1491_v7  ;;  %v1505_v21 = vld [vmem:[%s1990_s1 + $0x8] sm:$0xff]   ;;  %v1507_v24 = vld [vmem:[%s1990_s1 + $0x80] sm:$0xff]   ;;  %834 = vmatprep.mubr.bf16.mxu0 %v1511_v23  ;;  %v800_v29 = vsel %vm798_vm1, %v1512_v27, 0 }
  0x14   : > { %v1515_v25 = vld [vmem:[%s1776_s30 + $0xc] ss:$16 sps:$4 sm:$0xff]   ;;  %v1508_v26 = vld [vmem:[%s1990_s1] sm:$0xff]   ;;  %v1513_v31 = vld [vmem:[%s1776_s30 + $0x8] ss:$16 sps:$4 sm:$0xff]  }
  0x15   : > { %968 = vmatpush1.bf16.msra.mxu1 %v1492_v8  ;;  %1345 = vmatprep.mubr.msk.bf16.mxu1 %vm749_vm0, %v1515_v25  ;;  %v1509_v28 = vld [vmem:[%s1776_s30] ss:$16 sps:$4 sm:$0xff]   ;;  %v1516_v30 = vld [vmem:[%s1776_s30 + $0x24] ss:$16 sps:$4 sm:$0xff]   ;;  %v1519_v32 = vld [vmem:[%s1776_s30 + $0x2c] ss:$16 sps:$4 sm:$0xff]  }
  0x16   : > { %1369 = vmatpush3.bf16.msra.mxu0 %v1493_v9  ;;  %969 = vmatprep.subr.bf16.mxu1 %v1678_v1  ;;  %v1518_v33 = vld [vmem:[%s1776_s30 + $0x20] ss:$16 sps:$4 sm:$0xff]   ;;  %v1522_v34 = vld [vmem:[%s1776_s30 + $0x44] ss:$16 sps:$4 sm:$0xff]   ;;  %v1521_v35 = vld [vmem:[%s1776_s30 + $0x28] ss:$16 sps:$4 sm:$0xff]  }
  0x17   : > { %1370 = vmatprep.subr.bf16.mxu0 %v1494_v10  ;;  %v1525_v36 = vld [vmem:[%s1776_s30 + $0x4c] ss:$16 sps:$4 sm:$0xff]   ;;  %v1524_v37 = vld [vmem:[%s1776_s30 + $0x40] ss:$16 sps:$4 sm:$0xff]   ;;  %v1528_v38 = vld [vmem:[%s1776_s30 + $0x64] ss:$16 sps:$4 sm:$0xff]  }
  0x18   : > { %v1527_v39 = vld [vmem:[%s1776_s30 + $0x48] ss:$16 sps:$4 sm:$0xff]   ;;  %v1531_v40 = vld [vmem:[%s1776_s30 + $0x6c] ss:$16 sps:$4 sm:$0xff]   ;;  %v1530_v41 = vld [vmem:[%s1776_s30 + $0x60] ss:$16 sps:$4 sm:$0xff]  }
  0x19   : > { %970 = vmatpush1.bf16.msra.mxu1 %v1495_v11  ;;  %v1534_v42 = vld [vmem:[%s1776_s30 + $0x84] ss:$16 sps:$4 sm:$0xff]   ;;  %v1533_v43 = vld [vmem:[%s1776_s30 + $0x68] ss:$16 sps:$4 sm:$0xff]   ;;  %v1537_v44 = vld [vmem:[%s1776_s30 + $0x8c] ss:$16 sps:$4 sm:$0xff]  }
  0x1a   : > { %1371 = vmatpush3.bf16.msra.mxu0 %v1496_v12  ;;  %971 = vmatprep.subr.bf16.mxu1 %v1678_v1  ;;  %v1536_v45 = vld [vmem:[%s1776_s30 + $0x80] ss:$16 sps:$4 sm:$0xff]   ;;  %v1540_v46 = vld [vmem:[%s1776_s30 + $0xa4] ss:$16 sps:$4 sm:$0xff]   ;;  %v1539_v47 = vld [vmem:[%s1776_s30 + $0x88] ss:$16 sps:$4 sm:$0xff]  }
  0x1b   : > { %1372 = vmatprep.subr.bf16.mxu0 %v1497_v13  ;;  %v1543_v48 = vld [vmem:[%s1776_s30 + $0xac] ss:$16 sps:$4 sm:$0xff]   ;;  %v1542_v49 = vld [vmem:[%s1776_s30 + $0xa0] ss:$16 sps:$4 sm:$0xff]   ;;  %v1546_v50 = vld [vmem:[%s1776_s30 + $0xc4] ss:$16 sps:$4 sm:$0xff]  }
  0x1c   : > { %v1545_v51 = vld [vmem:[%s1776_s30 + $0xa8] ss:$16 sps:$4 sm:$0xff]   ;;  %v1549_v52 = vld [vmem:[%s1776_s30 + $0xcc] ss:$16 sps:$4 sm:$0xff]   ;;  %v1548_v53 = vld [vmem:[%s1776_s30 + $0xc0] ss:$16 sps:$4 sm:$0xff]  }
  0x1d   : > { %972 = vmatpush1.bf16.msra.mxu1 %v1498_v14  ;;  %v1552_v54 = vld [vmem:[%s1776_s30 + $0xe4] ss:$16 sps:$4 sm:$0xff]   ;;  %v1551_v55 = vld [vmem:[%s1776_s30 + $0xc8] ss:$16 sps:$4 sm:$0xff]   ;;  %v1555_v56 = vld [vmem:[%s1776_s30 + $0xec] ss:$16 sps:$4 sm:$0xff]  }
  0x1e   : > { %1373 = vmatpush3.bf16.msra.mxu0 %v1499_v15  ;;  %973 = vmatprep.subr.bf16.mxu1 %v1678_v1  ;;  %v1554_v57 = vld [vmem:[%s1776_s30 + $0xe0] ss:$16 sps:$4 sm:$0xff]   ;;  %v1558_v58 = vld [vmem:[%s1776_s30 + $0x104] ss:$16 sps:$4 sm:$0xff]   ;;  %v1557_v59 = vld [vmem:[%s1776_s30 + $0xe8] ss:$16 sps:$4 sm:$0xff]  }
  0x1f   : > { %1374 = vmatprep.subr.bf16.mxu0 %v1500_v16  ;;  %v1561_v60 = vld [vmem:[%s1776_s30 + $0x10c] ss:$16 sps:$4 sm:$0xff]   ;;  %v1560_v61 = vld [vmem:[%s1776_s30 + $0x100] ss:$16 sps:$4 sm:$0xff]   ;;  %v1564_v62 = vld [vmem:[%s1776_s30 + $0x124] ss:$16 sps:$4 sm:$0xff]  }
  0x20   : > { %v1563_v63 = vld [vmem:[%s1776_s30 + $0x108] ss:$16 sps:$4 sm:$0xff]   ;;  %v1567_v0 = vld [vmem:[%s1776_s30 + $0x12c] ss:$16 sps:$4 sm:$0xff]   ;;  %v1570_v2 = vld [vmem:[%s1776_s30 + $0x144] ss:$16 sps:$4 sm:$0xff]  }
  0x21   : > { %974 = vmatpush1.bf16.msra.mxu1 %v1501_v17  ;;  %v1569_v3 = vld [vmem:[%s1776_s30 + $0x128] ss:$16 sps:$4 sm:$0xff]   ;;  %v1573_v4 = vld [vmem:[%s1776_s30 + $0x14c] ss:$16 sps:$4 sm:$0xff]   ;;  %v1572_v5 = vld [vmem:[%s1776_s30 + $0x140] ss:$16 sps:$4 sm:$0xff]  }
  0x22   : > { %1375 = vmatpush3.bf16.msra.mxu0 %v1502_v18  ;;  %975 = vmatprep.subr.bf16.mxu1 %v1678_v1  ;;  %v1576_v6 = vld [vmem:[%s1776_s30 + $0x164] ss:$16 sps:$4 sm:$0xff]   ;;  %v1575_v7 = vld [vmem:[%s1776_s30 + $0x148] ss:$16 sps:$4 sm:$0xff]   ;;  %v1579_v8 = vld [vmem:[%s1776_s30 + $0x16c] ss:$16 sps:$4 sm:$0xff]  }
  0x23   : > { %1376 = vmatprep.subr.bf16.mxu0 %v1503_v19  ;;  %v1578_v9 = vld [vmem:[%s1776_s30 + $0x160] ss:$16 sps:$4 sm:$0xff]   ;;  %v1582_v10 = vld [vmem:[%s1776_s30 + $0x184] ss:$16 sps:$4 sm:$0xff]   ;;  %v1581_v11 = vld [vmem:[%s1776_s30 + $0x168] ss:$16 sps:$4 sm:$0xff]  }
  0x24   : > { %v1585_v12 = vld [vmem:[%s1776_s30 + $0x18c] ss:$16 sps:$4 sm:$0xff]   ;;  %v1584_v13 = vld [vmem:[%s1776_s30 + $0x180] ss:$16 sps:$4 sm:$0xff]   ;;  %v1588_v14 = vld [vmem:[%s1776_s30 + $0x1a4] ss:$16 sps:$4 sm:$0xff]  }
  0x25   : > { %976 = vmatpush1.bf16.msra.mxu1 %v1504_v20  ;;  %v1587_v15 = vld [vmem:[%s1776_s30 + $0x188] ss:$16 sps:$4 sm:$0xff]   ;;  %v1591_v16 = vld [vmem:[%s1776_s30 + $0x1ac] ss:$16 sps:$4 sm:$0xff]   ;;  %v1590_v17 = vld [vmem:[%s1776_s30 + $0x1a0] ss:$16 sps:$4 sm:$0xff]  }
  0x26   : > { %1377 = vmatpush3.bf16.msra.mxu0 %v1505_v21  ;;  %977 = vmatprep.subr.bf16.mxu1 %v1678_v1  ;;  %v1594_v18 = vld [vmem:[%s1776_s30 + $0x1c4] ss:$16 sps:$4 sm:$0xff]   ;;  %v1593_v19 = vld [vmem:[%s1776_s30 + $0x1a8] ss:$16 sps:$4 sm:$0xff]   ;;  %v1597_v20 = vld [vmem:[%s1776_s30 + $0x1cc] ss:$16 sps:$4 sm:$0xff]  }
  0x27   : > { %1378 = vmatprep.subr.bf16.mxu0 %v1506_v22  ;;  %v1596_v21 = vld [vmem:[%s1776_s30 + $0x1c0] ss:$16 sps:$4 sm:$0xff]   ;;  %v1600_v22 = vld [vmem:[%s1776_s30 + $0x1e4] ss:$16 sps:$4 sm:$0xff]   ;;  %v1599_v23 = vld [vmem:[%s1776_s30 + $0x1c8] ss:$16 sps:$4 sm:$0xff]  }
  0x28   : > { %v1602_v25 = vld [vmem:[%s1776_s30 + $0x1e0] ss:$16 sps:$4 sm:$0xff]  }
  0x29   : > { %978 = vmatpush1.bf16.msra.mxu1 %v1507_v24  ;;  %v1603_v24 = vld [vmem:[%s1776_s30 + $0x1ec] ss:$16 sps:$4 sm:$0xff]  }
  0x2a   : > { %1379 = vmatpush3.bf16.msra.mxu0 %v1508_v26  ;;  %993 = vmatprep.subr.bf16.mxu1 %v1678_v1  ;;  %v1566_v1 = vld [vmem:[%s1776_s30 + $0x120] ss:$16 sps:$4 sm:$0xff]   ;;  %v1605_v26 = vld [vmem:[%s1776_s30 + $0x1e8] ss:$16 sps:$4 sm:$0xff]  }
  0x2d   : > { %835 = vmatmul.mubr.bf16.vlgmr.msra.gmra.mxu0 %v1509_v28  ;;  %994 = vmatpush2.bf16.msra.mxu1 %v800_v29  ;;  %v1882_v29 = vld [vmem:[%s1991_s2] ss:$0 sm:$0xff] }
  0x2e   : > { %842 = vmatprep.mubr.bf16.mxu0 %v1516_v30 }
  0x30   : > { %996 = vmatmul.mubr.bf16.vlgmr.msra.gmra.mxu1 %v1513_v31 }
  0x31   : > { %1346 = vmatprep.mubr.msk.bf16.mxu1 %vm749_vm0, %v1519_v32 }
  0x35   : > { %843 = vmatmul.mubr.bf16.gmra.mxu0 %v1518_v33 }
  0x36   : > { %850 = vmatprep.mubr.bf16.mxu0 %v1522_v34 }
  0x38   : > { %1004 = vmatmul.mubr.bf16.gmra.mxu1 %v1521_v35 }
  0x39   : > { %1347 = vmatprep.mubr.msk.bf16.mxu1 %vm749_vm0, %v1525_v36 }
  0x3d   : > { %851 = vmatmul.mubr.bf16.gmra.mxu0 %v1524_v37 }
  0x3e   : > { %858 = vmatprep.mubr.bf16.mxu0 %v1528_v38 }
  0x40   : > { %1012 = vmatmul.mubr.bf16.gmra.mxu1 %v1527_v39 }
  0x41   : > { %1348 = vmatprep.mubr.msk.bf16.mxu1 %vm749_vm0, %v1531_v40 }
  0x45   : > { %859 = vmatmul.mubr.bf16.gmra.mxu0 %v1530_v41 }
  0x46   : > { %866 = vmatprep.mubr.bf16.mxu0 %v1534_v42 }
  0x48   : > { %1020 = vmatmul.mubr.bf16.gmra.mxu1 %v1533_v43 }
  0x49   : > { %1349 = vmatprep.mubr.msk.bf16.mxu1 %vm749_vm0, %v1537_v44 }
  0x4d   : > { %867 = vmatmul.mubr.bf16.gmra.mxu0 %v1536_v45 }
  0x4e   : > { %874 = vmatprep.mubr.bf16.mxu0 %v1540_v46 }
  0x50   : > { %1028 = vmatmul.mubr.bf16.gmra.mxu1 %v1539_v47 }
  0x51   : > { %1350 = vmatprep.mubr.msk.bf16.mxu1 %vm749_vm0, %v1543_v48 }
  0x55   : > { %875 = vmatmul.mubr.bf16.gmra.mxu0 %v1542_v49 }
  0x56   : > { %882 = vmatprep.mubr.bf16.mxu0 %v1546_v50 }
  0x58   : > { %1036 = vmatmul.mubr.bf16.gmra.mxu1 %v1545_v51 }
  0x59   : > { %1351 = vmatprep.mubr.msk.bf16.mxu1 %vm749_vm0, %v1549_v52 }
  0x5d   : > { %883 = vmatmul.mubr.bf16.gmra.mxu0 %v1548_v53 }
  0x5e   : > { %890 = vmatprep.mubr.bf16.mxu0 %v1552_v54 }
  0x60   : > { %1044 = vmatmul.mubr.bf16.gmra.mxu1 %v1551_v55 }
  0x61   : > { %1352 = vmatprep.mubr.msk.bf16.mxu1 %vm749_vm0, %v1555_v56 }
  0x65   : > { %891 = vmatmul.mubr.bf16.gmra.mxu0 %v1554_v57 }
  0x66   : > { %898 = vmatprep.mubr.bf16.mxu0 %v1558_v58 }
  0x68   : > { %1052 = vmatmul.mubr.bf16.gmra.mxu1 %v1557_v59 }
  0x69   : > { %1353 = vmatprep.mubr.msk.bf16.mxu1 %vm749_vm0, %v1561_v60 }
  0x6d   : > { %899 = vmatmul.mubr.bf16.gmra.mxu0 %v1560_v61 }
  0x6e   : > { %906 = vmatprep.mubr.bf16.mxu0 %v1564_v62 }
  0x70   : > { %1060 = vmatmul.mubr.bf16.gmra.mxu1 %v1563_v63 }
  0x71   : > { %1354 = vmatprep.mubr.msk.bf16.mxu1 %vm749_vm0, %v1567_v0 }
  0x75   : > { %907 = vmatmul.mubr.bf16.gmra.mxu0 %v1566_v1 }
  0x76   : > { %914 = vmatprep.mubr.bf16.mxu0 %v1570_v2 }
  0x78   : > { %1068 = vmatmul.mubr.bf16.gmra.mxu1 %v1569_v3 }
  0x79   : > { %1355 = vmatprep.mubr.msk.bf16.mxu1 %vm749_vm0, %v1573_v4 }
  0x7d   : > { %915 = vmatmul.mubr.bf16.gmra.mxu0 %v1572_v5 }
  0x7e   : > { %922 = vmatprep.mubr.bf16.mxu0 %v1576_v6 }
  0x80   : > { %1076 = vmatmul.mubr.bf16.gmra.mxu1 %v1575_v7 }
  0x81   : > { %1356 = vmatprep.mubr.msk.bf16.mxu1 %vm749_vm0, %v1579_v8 }
  0x85   : > { %923 = vmatmul.mubr.bf16.gmra.mxu0 %v1578_v9 }
  0x86   : > { %930 = vmatprep.mubr.bf16.mxu0 %v1582_v10 }
  0x88   : > { %1084 = vmatmul.mubr.bf16.gmra.mxu1 %v1581_v11 }
  0x89   : > { %1357 = vmatprep.mubr.msk.bf16.mxu1 %vm749_vm0, %v1585_v12 }
  0x8d   : > { %931 = vmatmul.mubr.bf16.gmra.mxu0 %v1584_v13 }
  0x8e   : > { %938 = vmatprep.mubr.bf16.mxu0 %v1588_v14 }
  0x90   : > { %1092 = vmatmul.mubr.bf16.gmra.mxu1 %v1587_v15 }
  0x91   : > { %1358 = vmatprep.mubr.msk.bf16.mxu1 %vm749_vm0, %v1591_v16 }
  0x95   : > { %939 = vmatmul.mubr.bf16.gmra.mxu0 %v1590_v17 }
  0x96   : > { %946 = vmatprep.mubr.bf16.mxu0 %v1594_v18 }
  0x98   : > { %1100 = vmatmul.mubr.bf16.gmra.mxu1 %v1593_v19 }
  0x99   : > { %1359 = vmatprep.mubr.msk.bf16.mxu1 %vm749_vm0, %v1597_v20 }
  0x9d   : > { %947 = vmatmul.mubr.bf16.gmra.mxu0 %v1596_v21 }
  0x9e   : > { %954 = vmatprep.mubr.bf16.mxu0 %v1600_v22 }
  0xa0   : > { %1108 = vmatmul.mubr.bf16.gmra.mxu1 %v1599_v23 }
  0xa1   : > { %1360 = vmatprep.mubr.msk.bf16.mxu1 %vm749_vm0, %v1603_v24 }
  0xa5   : > { %955 = vmatmul.mubr.bf16.gmra.mxu0 %v1602_v25 }
  0xa8   : > { %1116 = vmatmul.mubr.bf16.gmra.mxu1 %v1605_v26 }
  0xed   : > { %v1380_v27 = vpop.f32.mrf.mxu0 }
  0xef   : > { %v1381_v28 = vpop.f32.mrf.mxu0 }
  0xf0   : > { %v1382_v30 = vadd.f32 %v1381_v28, %v1380_v27  ;;  %v997_v31 = vpop.f32.mrf.mxu1 }
  0xf1   : > { %v1383_v32 = vpop.f32.mrf.mxu0 }
  0xf2   : > { %v837_v33 = vadd.f32 %v1382_v30, %v1882_v29  ;;  %v999_v34 = vpop.f32.mrf.mxu1 }
  0xf3   : > { %v1384_v35 = vpop.f32.mrf.mxu0 }
  0xf4   : > { %v998_v36 = vadd.f32 %v997_v31, %v837_v33  ;;  %v1385_v37 = vadd.f32 %v1384_v35, %v1383_v32  ;;  %v1000_v38 = vpop.f32.mrf.mxu1 }
  0xf5   : > { %v1386_v39 = vpop.f32.mrf.mxu0 }
  0xf6   : > { %1606 = vtanh.f32 %v998_v36  ;;  %v840_v40 = vadd.f32 %v1385_v37, %v1882_v29  ;;  %v1002_v41 = vpop.f32.mrf.mxu1 }
  0xf7   : > { %v1387_v42 = vpop.f32.mrf.mxu0 }
  0xf8   : > { %v1001_v43 = vadd.f32 %v1000_v38, %v840_v40  ;;  %v1388_v44 = vadd.f32 %v1387_v42, %v1386_v39  ;;  %v1005_v45 = vpop.f32.mrf.mxu1 }
  0xf9   : > { %v1389_v46 = vpop.f32.mrf.mxu0 }
  0xfa   : > { %1608 = vtanh.f32 %v1001_v43  ;;  %v845_v47 = vadd.f32 %v1388_v44, %v1882_v29  ;;  %v1007_v48 = vpop.f32.mrf.mxu1 }
  0xfb   : > { %v1390_v49 = vpop.f32.mrf.mxu0 }
  0xfc   : > { %v1006_v50 = vadd.f32 %v1005_v45, %v845_v47  ;;  %v1391_v51 = vadd.f32 %v1390_v49, %v1389_v46  ;;  %v1008_v52 = vpop.f32.mrf.mxu1 }
  0xfd   : > { %v1392_v53 = vpop.f32.mrf.mxu0 }
  0xfe   : > { %1610 = vtanh.f32 %v1006_v50  ;;  %v848_v54 = vadd.f32 %v1391_v51, %v1882_v29  ;;  %v1010_v55 = vpop.f32.mrf.mxu1 }
  0xff   : > { %v1393_v56 = vpop.f32.mrf.mxu0 }
 0x100   : > { %v1009_v57 = vadd.f32 %v1008_v52, %v848_v54  ;;  %v1394_v58 = vadd.f32 %v1393_v56, %v1392_v53  ;;  %v1013_v59 = vpop.f32.mrf.mxu1 }
 0x101   : > { %v1395_v60 = vpop.f32.mrf.mxu0 }
 0x102   : > { %1612 = vtanh.f32 %v1009_v57  ;;  %v853_v61 = vadd.f32 %v1394_v58, %v1882_v29  ;;  %v1015_v62 = vpop.f32.mrf.mxu1 }
 0x103   : > { %v1607_v63 = vpop.eup %1606  ;;  %v1396_v0 = vpop.f32.mrf.mxu0 }
 0x104   : > { %1157 = vst.msk [vmem:[%s1892_s23] sm:$0xff] %vm1156_vm2, %v1607_v63  ;;  %v1014_v1 = vadd.f32 %v1013_v59, %v853_v61  ;;  %v1397_v2 = vadd.f32 %v1396_v0, %v1395_v60  ;;  %v1016_v3 = vpop.f32.mrf.mxu1 }
 0x105   : > { %v1398_v4 = vpop.f32.mrf.mxu0 }
 0x106   : > { %1614 = vtanh.f32 %v1014_v1  ;;  %v856_v5 = vadd.f32 %v1397_v2, %v1882_v29  ;;  %v1018_v6 = vpop.f32.mrf.mxu1 }
 0x107   : > { %v1609_v7 = vpop.eup %1608  ;;  %v1399_v8 = vpop.f32.mrf.mxu0 }
 0x108   : > { %1158 = vst.msk [vmem:[%s1892_s23 + $0x8] sm:$0xff] %vm1156_vm2, %v1609_v7  ;;  %v1017_v9 = vadd.f32 %v1016_v3, %v856_v5  ;;  %v1400_v10 = vadd.f32 %v1399_v8, %v1398_v4  ;;  %v1021_v11 = vpop.f32.mrf.mxu1 }
 0x109   : > { %v1401_v12 = vpop.f32.mrf.mxu0 }
 0x10a   : > { %1616 = vtanh.f32 %v1017_v9  ;;  %v861_v13 = vadd.f32 %v1400_v10, %v1882_v29  ;;  %v1023_v14 = vpop.f32.mrf.mxu1 }
 0x10b   : > { %v1611_v15 = vpop.eup %1610  ;;  %v1402_v16 = vpop.f32.mrf.mxu0 }
 0x10c   : > { %1159 = vst.msk [vmem:[%s1892_s23 + $0x10] sm:$0xff] %vm1156_vm2, %v1611_v15  ;;  %v1022_v17 = vadd.f32 %v1021_v11, %v861_v13  ;;  %v1403_v18 = vadd.f32 %v1402_v16, %v1401_v12  ;;  %v1024_v19 = vpop.f32.mrf.mxu1 }
 0x10d   : > { %v1404_v20 = vpop.f32.mrf.mxu0 }
 0x10e   : > { %1618 = vtanh.f32 %v1022_v17  ;;  %v864_v21 = vadd.f32 %v1403_v18, %v1882_v29  ;;  %v1026_v22 = vpop.f32.mrf.mxu1 }
 0x10f   : > { %v1613_v23 = vpop.eup %1612  ;;  %v1405_v24 = vpop.f32.mrf.mxu0 }
 0x110   : > { %1160 = vst.msk [vmem:[%s1892_s23 + $0x18] sm:$0xff] %vm1156_vm2, %v1613_v23  ;;  %v1025_v25 = vadd.f32 %v1024_v19, %v864_v21  ;;  %v1406_v26 = vadd.f32 %v1405_v24, %v1404_v20  ;;  %v1029_v27 = vpop.f32.mrf.mxu1 }
 0x111   : > { %v1407_v28 = vpop.f32.mrf.mxu0 }
 0x112   : > { %1620 = vtanh.f32 %v1025_v25  ;;  %v869_v30 = vadd.f32 %v1406_v26, %v1882_v29  ;;  %v1031_v31 = vpop.f32.mrf.mxu1 }
 0x113   : > { %v1615_v32 = vpop.eup %1614  ;;  %v1408_v33 = vpop.f32.mrf.mxu0 }
 0x114   : > { %1161 = vst.msk [vmem:[%s1892_s23 + $0x20] sm:$0xff] %vm1156_vm2, %v1615_v32  ;;  %v1030_v34 = vadd.f32 %v1029_v27, %v869_v30  ;;  %v1409_v35 = vadd.f32 %v1408_v33, %v1407_v28  ;;  %v1032_v36 = vpop.f32.mrf.mxu1 }
 0x115   : > { %v1410_v37 = vpop.f32.mrf.mxu0 }
 0x116   : > { %1622 = vtanh.f32 %v1030_v34  ;;  %v872_v38 = vadd.f32 %v1409_v35, %v1882_v29  ;;  %v1034_v39 = vpop.f32.mrf.mxu1 }
 0x117   : > { %v1617_v40 = vpop.eup %1616  ;;  %v1411_v41 = vpop.f32.mrf.mxu0 }
 0x118   : > { %1162 = vst.msk [vmem:[%s1892_s23 + $0x28] sm:$0xff] %vm1156_vm2, %v1617_v40  ;;  %v1033_v42 = vadd.f32 %v1032_v36, %v872_v38  ;;  %v1412_v43 = vadd.f32 %v1411_v41, %v1410_v37  ;;  %v1037_v44 = vpop.f32.mrf.mxu1 }
 0x119   : > { %v1413_v45 = vpop.f32.mrf.mxu0 }
 0x11a   : > { %1624 = vtanh.f32 %v1033_v42  ;;  %v877_v46 = vadd.f32 %v1412_v43, %v1882_v29  ;;  %v1039_v47 = vpop.f32.mrf.mxu1 }
 0x11b   : > { %v1619_v48 = vpop.eup %1618  ;;  %v1414_v49 = vpop.f32.mrf.mxu0 }
 0x11c   : > { %1163 = vst.msk [vmem:[%s1892_s23 + $0x30] sm:$0xff] %vm1156_vm2, %v1619_v48  ;;  %v1038_v50 = vadd.f32 %v1037_v44, %v877_v46  ;;  %v1415_v51 = vadd.f32 %v1414_v49, %v1413_v45  ;;  %v1040_v52 = vpop.f32.mrf.mxu1 }
 0x11d   : > { %v1416_v53 = vpop.f32.mrf.mxu0 }
 0x11e   : > { %1626 = vtanh.f32 %v1038_v50  ;;  %v880_v54 = vadd.f32 %v1415_v51, %v1882_v29  ;;  %v1042_v55 = vpop.f32.mrf.mxu1 }
 0x11f   : > { %v1621_v56 = vpop.eup %1620  ;;  %v1417_v57 = vpop.f32.mrf.mxu0 }
 0x120   : > { %1164 = vst.msk [vmem:[%s1892_s23 + $0x38] sm:$0xff] %vm1156_vm2, %v1621_v56  ;;  %v1041_v58 = vadd.f32 %v1040_v52, %v880_v54  ;;  %v1418_v59 = vadd.f32 %v1417_v57, %v1416_v53  ;;  %v1045_v60 = vpop.f32.mrf.mxu1 }
 0x121   : > { %v1419_v61 = vpop.f32.mrf.mxu0 }
 0x122   : > { %1628 = vtanh.f32 %v1041_v58  ;;  %v885_v62 = vadd.f32 %v1418_v59, %v1882_v29  ;;  %v1047_v63 = vpop.f32.mrf.mxu1 }
 0x123   : > { %v1623_v0 = vpop.eup %1622  ;;  %v1420_v1 = vpop.f32.mrf.mxu0 }
 0x124   : > { %1165 = vst.msk [vmem:[%s1892_s23 + $0x40] sm:$0xff] %vm1156_vm2, %v1623_v0  ;;  %v1046_v2 = vadd.f32 %v1045_v60, %v885_v62  ;;  %v1421_v3 = vadd.f32 %v1420_v1, %v1419_v61  ;;  %v1048_v4 = vpop.f32.mrf.mxu1 }
 0x125   : > { %v1422_v5 = vpop.f32.mrf.mxu0 }
 0x126   : > { %1630 = vtanh.f32 %v1046_v2  ;;  %v888_v6 = vadd.f32 %v1421_v3, %v1882_v29  ;;  %v1050_v7 = vpop.f32.mrf.mxu1 }
 0x127   : > { %v1625_v8 = vpop.eup %1624  ;;  %v1423_v9 = vpop.f32.mrf.mxu0 }
 0x128   : > { %1166 = vst.msk [vmem:[%s1892_s23 + $0x48] sm:$0xff] %vm1156_vm2, %v1625_v8  ;;  %v1049_v10 = vadd.f32 %v1048_v4, %v888_v6  ;;  %v1424_v11 = vadd.f32 %v1423_v9, %v1422_v5  ;;  %v1053_v12 = vpop.f32.mrf.mxu1 }
 0x129   : > { %v1425_v13 = vpop.f32.mrf.mxu0 }
 0x12a   : > { %1632 = vtanh.f32 %v1049_v10  ;;  %v893_v14 = vadd.f32 %v1424_v11, %v1882_v29  ;;  %v1055_v15 = vpop.f32.mrf.mxu1 }
 0x12b   : > { %v1627_v16 = vpop.eup %1626  ;;  %v1426_v17 = vpop.f32.mrf.mxu0 }
 0x12c   : > { %1167 = vst.msk [vmem:[%s1892_s23 + $0x50] sm:$0xff] %vm1156_vm2, %v1627_v16  ;;  %v1054_v18 = vadd.f32 %v1053_v12, %v893_v14  ;;  %v1427_v19 = vadd.f32 %v1426_v17, %v1425_v13  ;;  %v1056_v20 = vpop.f32.mrf.mxu1 }
 0x12d   : > { %v1428_v21 = vpop.f32.mrf.mxu0 }
 0x12e   : > { %1634 = vtanh.f32 %v1054_v18  ;;  %v896_v22 = vadd.f32 %v1427_v19, %v1882_v29  ;;  %v1058_v23 = vpop.f32.mrf.mxu1 }
 0x12f   : > { %v1629_v24 = vpop.eup %1628  ;;  %v1429_v25 = vpop.f32.mrf.mxu0 }
 0x130   : > { %1168 = vst.msk [vmem:[%s1892_s23 + $0x58] sm:$0xff] %vm1156_vm2, %v1629_v24  ;;  %v1057_v26 = vadd.f32 %v1056_v20, %v896_v22  ;;  %v1430_v27 = vadd.f32 %v1429_v25, %v1428_v21  ;;  %v1061_v28 = vpop.f32.mrf.mxu1 }
 0x131   : > { %v1431_v30 = vpop.f32.mrf.mxu0 }
 0x132   : > { %1636 = vtanh.f32 %v1057_v26  ;;  %v901_v31 = vadd.f32 %v1430_v27, %v1882_v29  ;;  %v1063_v32 = vpop.f32.mrf.mxu1 }
 0x133   : > { %v1631_v33 = vpop.eup %1630  ;;  %v1432_v34 = vpop.f32.mrf.mxu0 }
 0x134   : > { %1169 = vst.msk [vmem:[%s1892_s23 + $0x60] sm:$0xff] %vm1156_vm2, %v1631_v33  ;;  %v1062_v35 = vadd.f32 %v1061_v28, %v901_v31  ;;  %v1433_v36 = vadd.f32 %v1432_v34, %v1431_v30  ;;  %v1064_v37 = vpop.f32.mrf.mxu1 }
 0x135   : > { %v1434_v38 = vpop.f32.mrf.mxu0 }
 0x136   : > { %1638 = vtanh.f32 %v1062_v35  ;;  %v904_v39 = vadd.f32 %v1433_v36, %v1882_v29  ;;  %v1066_v40 = vpop.f32.mrf.mxu1 }
 0x137   : > { %v1633_v41 = vpop.eup %1632  ;;  %v1435_v42 = vpop.f32.mrf.mxu0 }
 0x138   : > { %1170 = vst.msk [vmem:[%s1892_s23 + $0x68] sm:$0xff] %vm1156_vm2, %v1633_v41  ;;  %v1065_v43 = vadd.f32 %v1064_v37, %v904_v39  ;;  %v1436_v44 = vadd.f32 %v1435_v42, %v1434_v38  ;;  %v1069_v45 = vpop.f32.mrf.mxu1 }
 0x139   : > { %v1437_v46 = vpop.f32.mrf.mxu0 }
 0x13a   : > { %1640 = vtanh.f32 %v1065_v43  ;;  %v909_v47 = vadd.f32 %v1436_v44, %v1882_v29  ;;  %v1071_v48 = vpop.f32.mrf.mxu1 }
 0x13b   : > { %v1635_v49 = vpop.eup %1634  ;;  %v1438_v50 = vpop.f32.mrf.mxu0 }
 0x13c   : > { %1171 = vst.msk [vmem:[%s1892_s23 + $0x70] sm:$0xff] %vm1156_vm2, %v1635_v49  ;;  %v1070_v51 = vadd.f32 %v1069_v45, %v909_v47  ;;  %v1439_v52 = vadd.f32 %v1438_v50, %v1437_v46  ;;  %v1072_v53 = vpop.f32.mrf.mxu1 }
 0x13d   : > { %v1440_v54 = vpop.f32.mrf.mxu0 }
 0x13e   : > { %1642 = vtanh.f32 %v1070_v51  ;;  %v912_v55 = vadd.f32 %v1439_v52, %v1882_v29  ;;  %v1074_v56 = vpop.f32.mrf.mxu1 }
 0x13f   : > { %v1637_v57 = vpop.eup %1636  ;;  %v1441_v58 = vpop.f32.mrf.mxu0 }
 0x140   : > { %1172 = vst.msk [vmem:[%s1892_s23 + $0x78] sm:$0xff] %vm1156_vm2, %v1637_v57  ;;  %v1073_v59 = vadd.f32 %v1072_v53, %v912_v55  ;;  %v1442_v60 = vadd.f32 %v1441_v58, %v1440_v54  ;;  %v1077_v61 = vpop.f32.mrf.mxu1 }
 0x141   : > { %v1443_v62 = vpop.f32.mrf.mxu0 }
 0x142   : > { %1644 = vtanh.f32 %v1073_v59  ;;  %v917_v63 = vadd.f32 %v1442_v60, %v1882_v29  ;;  %v1079_v0 = vpop.f32.mrf.mxu1 }
 0x143   : > { %v1639_v1 = vpop.eup %1638  ;;  %v1444_v2 = vpop.f32.mrf.mxu0 }
 0x144   : > { %1173 = vst.msk [vmem:[%s1892_s23 + $0x80] sm:$0xff] %vm1156_vm2, %v1639_v1  ;;  %v1078_v3 = vadd.f32 %v1077_v61, %v917_v63  ;;  %v1445_v4 = vadd.f32 %v1444_v2, %v1443_v62  ;;  %v1080_v5 = vpop.f32.mrf.mxu1 }
 0x145   : > { %v1446_v6 = vpop.f32.mrf.mxu0 }
 0x146   : > { %1646 = vtanh.f32 %v1078_v3  ;;  %v920_v7 = vadd.f32 %v1445_v4, %v1882_v29  ;;  %v1082_v8 = vpop.f32.mrf.mxu1 }
 0x147   : > { %v1641_v9 = vpop.eup %1640  ;;  %v1447_v10 = vpop.f32.mrf.mxu0 }
 0x148   : > { %1174 = vst.msk [vmem:[%s1892_s23 + $0x88] sm:$0xff] %vm1156_vm2, %v1641_v9  ;;  %v1081_v11 = vadd.f32 %v1080_v5, %v920_v7  ;;  %v1448_v12 = vadd.f32 %v1447_v10, %v1446_v6  ;;  %v1085_v13 = vpop.f32.mrf.mxu1 }
 0x149   : > { %v1449_v14 = vpop.f32.mrf.mxu0 }
 0x14a   : > { %1648 = vtanh.f32 %v1081_v11  ;;  %v925_v15 = vadd.f32 %v1448_v12, %v1882_v29  ;;  %v1087_v16 = vpop.f32.mrf.mxu1 }
 0x14b   : > { %v1643_v17 = vpop.eup %1642  ;;  %v1450_v18 = vpop.f32.mrf.mxu0 }
 0x14c   : > { %1175 = vst.msk [vmem:[%s1892_s23 + $0x90] sm:$0xff] %vm1156_vm2, %v1643_v17  ;;  %v1086_v19 = vadd.f32 %v1085_v13, %v925_v15  ;;  %v1451_v20 = vadd.f32 %v1450_v18, %v1449_v14  ;;  %v1088_v21 = vpop.f32.mrf.mxu1 }
 0x14d   : > { %v1452_v22 = vpop.f32.mrf.mxu0 }
 0x14e   : > { %1650 = vtanh.f32 %v1086_v19  ;;  %v928_v23 = vadd.f32 %v1451_v20, %v1882_v29  ;;  %v1090_v24 = vpop.f32.mrf.mxu1 }
 0x14f   : > { %v1645_v25 = vpop.eup %1644  ;;  %v1453_v26 = vpop.f32.mrf.mxu0 }
 0x150   : > { %1176 = vst.msk [vmem:[%s1892_s23 + $0x98] sm:$0xff] %vm1156_vm2, %v1645_v25  ;;  %v1089_v27 = vadd.f32 %v1088_v21, %v928_v23  ;;  %v1454_v28 = vadd.f32 %v1453_v26, %v1452_v22  ;;  %v1093_v30 = vpop.f32.mrf.mxu1 }
 0x151   : > { %v1455_v31 = vpop.f32.mrf.mxu0 }
 0x152   : > { %1652 = vtanh.f32 %v1089_v27  ;;  %v933_v32 = vadd.f32 %v1454_v28, %v1882_v29  ;;  %v1095_v33 = vpop.f32.mrf.mxu1 }
 0x153   : > { %v1647_v34 = vpop.eup %1646  ;;  %v1456_v35 = vpop.f32.mrf.mxu0 }
 0x154   : > { %1177 = vst.msk [vmem:[%s1892_s23 + $0xa0] sm:$0xff] %vm1156_vm2, %v1647_v34  ;;  %v1094_v36 = vadd.f32 %v1093_v30, %v933_v32  ;;  %v1457_v37 = vadd.f32 %v1456_v35, %v1455_v31  ;;  %v1096_v38 = vpop.f32.mrf.mxu1 }
 0x155   : > { %v1458_v39 = vpop.f32.mrf.mxu0 }
 0x156   : > { %1654 = vtanh.f32 %v1094_v36  ;;  %v936_v40 = vadd.f32 %v1457_v37, %v1882_v29  ;;  %v1098_v41 = vpop.f32.mrf.mxu1 }
 0x157   : > { %v1649_v42 = vpop.eup %1648  ;;  %v1459_v43 = vpop.f32.mrf.mxu0 }
 0x158   : > { %1178 = vst.msk [vmem:[%s1892_s23 + $0xa8] sm:$0xff] %vm1156_vm2, %v1649_v42  ;;  %v1097_v44 = vadd.f32 %v1096_v38, %v936_v40  ;;  %v1460_v45 = vadd.f32 %v1459_v43, %v1458_v39  ;;  %v1101_v46 = vpop.f32.mrf.mxu1 }
 0x159   : > { %v1461_v47 = vpop.f32.mrf.mxu0 }
 0x15a   : > { %1656 = vtanh.f32 %v1097_v44  ;;  %v941_v48 = vadd.f32 %v1460_v45, %v1882_v29  ;;  %v1103_v49 = vpop.f32.mrf.mxu1 }
 0x15b   : > { %v1651_v50 = vpop.eup %1650  ;;  %v1462_v51 = vpop.f32.mrf.mxu0 }
 0x15c   : > { %1179 = vst.msk [vmem:[%s1892_s23 + $0xb0] sm:$0xff] %vm1156_vm2, %v1651_v50  ;;  %v1102_v52 = vadd.f32 %v1101_v46, %v941_v48  ;;  %v1463_v53 = vadd.f32 %v1462_v51, %v1461_v47  ;;  %v1104_v54 = vpop.f32.mrf.mxu1 }
 0x15d   : > { %v1464_v55 = vpop.f32.mrf.mxu0 }
 0x15e   : > { %1658 = vtanh.f32 %v1102_v52  ;;  %v944_v56 = vadd.f32 %v1463_v53, %v1882_v29  ;;  %v1106_v57 = vpop.f32.mrf.mxu1 }
 0x15f   : > { %v1653_v58 = vpop.eup %1652  ;;  %v1465_v59 = vpop.f32.mrf.mxu0 }
 0x160   : > { %1180 = vst.msk [vmem:[%s1892_s23 + $0xb8] sm:$0xff] %vm1156_vm2, %v1653_v58  ;;  %v1105_v60 = vadd.f32 %v1104_v54, %v944_v56  ;;  %v1466_v61 = vadd.f32 %v1465_v59, %v1464_v55  ;;  %v1109_v62 = vpop.f32.mrf.mxu1 }
 0x161   : > { %v1467_v63 = vpop.f32.mrf.mxu0 }
 0x162   : > { %1660 = vtanh.f32 %v1105_v60  ;;  %v949_v0 = vadd.f32 %v1466_v61, %v1882_v29  ;;  %v1111_v1 = vpop.f32.mrf.mxu1 }
 0x163   : > { %v1655_v2 = vpop.eup %1654  ;;  %v1468_v3 = vpop.f32.mrf.mxu0 }
 0x164   : > { %1181 = vst.msk [vmem:[%s1892_s23 + $0xc0] sm:$0xff] %vm1156_vm2, %v1655_v2  ;;  %v1110_v4 = vadd.f32 %v1109_v62, %v949_v0  ;;  %v1469_v5 = vadd.f32 %v1468_v3, %v1467_v63  ;;  %v1112_v6 = vpop.f32.mrf.mxu1 }
 0x165   : > { %v1470_v7 = vpop.f32.mrf.mxu0 }
 0x166   : > { %1662 = vtanh.f32 %v1110_v4  ;;  %v952_v8 = vadd.f32 %v1469_v5, %v1882_v29  ;;  %v1114_v9 = vpop.f32.mrf.mxu1 }
 0x167   : > { %v1657_v10 = vpop.eup %1656  ;;  %v1471_v11 = vpop.f32.mrf.mxu0 }
 0x168   : > { %1182 = vst.msk [vmem:[%s1892_s23 + $0xc8] sm:$0xff] %vm1156_vm2, %v1657_v10  ;;  %v1113_v12 = vadd.f32 %v1112_v6, %v952_v8  ;;  %v1472_v13 = vadd.f32 %v1471_v11, %v1470_v7  ;;  %v1117_v14 = vpop.f32.mrf.mxu1 }
 0x169   : > { %v1473_v15 = vpop.f32.mrf.mxu0 }
 0x16a   : > { %1664 = vtanh.f32 %v1113_v12  ;;  %v957_v16 = vadd.f32 %v1472_v13, %v1882_v29  ;;  %v1119_v17 = vpop.f32.mrf.mxu1 }
 0x16b   : > { %v1659_v18 = vpop.eup %1658  ;;  %v1474_v19 = vpop.f32.mrf.mxu0 }
 0x16c   : > { %1183 = vst.msk [vmem:[%s1892_s23 + $0xd0] sm:$0xff] %vm1156_vm2, %v1659_v18  ;;  %v1118_v20 = vadd.f32 %v1117_v14, %v957_v16  ;;  %v1475_v21 = vadd.f32 %v1474_v19, %v1473_v15  ;;  %v1120_v22 = vpop.f32.mrf.mxu1 }
 0x16e   : > { %1666 = vtanh.f32 %v1118_v20  ;;  %v960_v23 = vadd.f32 %v1475_v21, %v1882_v29  ;;  %v1122_v24 = vpop.f32.mrf.mxu1 }
 0x16f   : > { %v1661_v25 = vpop.eup %1660 }
 0x170   : > { %1184 = vst.msk [vmem:[%s1892_s23 + $0xd8] sm:$0xff] %vm1156_vm2, %v1661_v25  ;;  %v1121_v26 = vadd.f32 %v1120_v22, %v960_v23 }
 0x172   : > { %1668 = vtanh.f32 %v1121_v26 }
 0x173   : > { %v1663_v27 = vpop.eup %1662 }
 0x174   : > { %1185 = vst.msk [vmem:[%s1892_s23 + $0xe0] sm:$0xff] %vm1156_vm2, %v1663_v27 }
 0x177   : > { %v1665_v28 = vpop.eup %1664 }
 0x178   : > { %1186 = vst.msk [vmem:[%s1892_s23 + $0xe8] sm:$0xff] %vm1156_vm2, %v1665_v28 }
 0x17b   : > { %v1667_v30 = vpop.eup %1666 }
 0x17c   : > { %1187 = vst.msk [vmem:[%s1892_s23 + $0xf0] sm:$0xff] %vm1156_vm2, %v1667_v30 }
 0x17f   : > { %v1669_v31 = vpop.eup %1668 }
 0x180   : > { %1188 = vst.msk [vmem:[%s1892_s23 + $0xf8] sm:$0xff] %vm1156_vm2, %v1669_v31 }
 0x181 PF: > { %s13_s12 = sadd.s32 1, %s1676_s12  }
 0x182   : > { %p10_p4 = scmp.ge.s32.totalorder %s13_s12, 4  }
 0x184   :  { %12 = sbr.rel (!%p10_p4) target bundleno = 1 (0x1), region = 62 }

</bundles_post_ra>
